<compile_context>
chip_gen: v7x
topology: tpu7x:2x2x1
jax: 0.10.0
libtpu: 0.0.40
codegen_flags: <defaults>
</compile_context>

<pallas_src>
import functools
import numpy as np
import jax
import jax.numpy as jnp
from jax import lax
from jax.experimental import pallas as pl
from jax.experimental.pallas import tpu as pltpu


# ---------------------------------------------------------------------------
# Constant-slab layout (entries of the (N,64,64) weight slab / (N,64) vec slab)
# ---------------------------------------------------------------------------
_IDX_WC1, _IDX_WC2, _IDX_WC3 = 0, 1, 6          # conv1 (folded rows), conv2 x5, conv3 x3
_IDX_R4, _IDX_R3, _IDX_R2 = 9, 15, 21           # each RRB: w1 taps 0..2, w2 taps 3..5
_IDX_B4, _IDX_B3, _IDX_B2 = 27, 30, 33          # blend convs, 3 taps each
_N_W64 = 36

_V_ENC = 0                                      # conv1/conv2/conv3 biases (3 rows)
_V_R4, _V_R3, _V_R2, _V_R1 = 3, 9, 15, 21       # RRB vectors [b1,s1,h1,b2,s2,h2]
_V_B4, _V_B3, _V_B2, _V_B1 = 27, 29, 31, 33     # blend vectors [scale, shift]
_N_VEC = 35


# ---------------------------------------------------------------------------
# In-kernel helpers (values + refs; everything stays in VMEM / vregs)
# ---------------------------------------------------------------------------
def _dot(a, b):
    return jnp.dot(a, b, preferred_element_type=jnp.float32)


def _valid_conv(x, taps):
    """Valid 1-D conv, channels-last. x: (L, Cin) value; taps: list of (Cin, Cout)."""
    K = len(taps)
    Lo = x.shape[0] - K + 1
    acc = _dot(x[0:Lo, :], taps[0])
    for k in range(1, K):
        acc = acc + _dot(x[k:k + Lo, :], taps[k])
    return acc


def _pad_rows(x, pad, pad_ref):
    """Zero-pad x (L, C) by `pad` rows top+bottom, staged through a VMEM scratch."""
    L, C = x.shape
    pad_ref[0:pad, 0:C] = jnp.zeros((pad, C), jnp.float32)
    pad_ref[pad:pad + L, 0:C] = x
    pad_ref[pad + L:pad + L + pad, 0:C] = jnp.zeros((pad, C), jnp.float32)
    return pad_ref[0:L + 2 * pad, 0:C]


def _maxpool(x, P, pool_ref):
    """MaxPool1d(kernel=P, stride=P), floor mode. x: (L, 64) value (full lanes)."""
    L = x.shape[0]
    Lp = (L - P) // P + 1
    pool_ref[0:L, :] = x
    out = pool_ref[pl.ds(0, Lp, stride=P), :]
    for p in range(1, P):
        out = jnp.maximum(out, pool_ref[pl.ds(p, Lp, stride=P), :])
    return out


def _rrb(x, taps1, taps2, v, pad_ref):
    """RRBlock (shortcut=True): x + BN2(Conv2(BN1(ReLU(Conv1(x))))).
    x: (L, C), taps*: 3 x (C, C), v: (6, C) rows [b1, s1, h1, b2, s2, h2]."""
    L, _ = x.shape
    xp = _pad_rows(x, 2, pad_ref)                                   # (L+4, C)
    a = _valid_conv(xp, taps1)                                      # (L+2, C)
    a = jnp.maximum(a + v[0:1, :], 0.0)                             # conv1 bias + ReLU
    a = a * v[1:2, :] + v[2:3, :]                                   # BatchNorm1d #1
    row = lax.broadcasted_iota(jnp.int32, a.shape, 0)
    a = jnp.where((row >= 1) & (row <= L), a, 0.0)                  # zero halo => 'same' pad
    t = _valid_conv(a, taps2) + v[3:4, :]                           # conv2 + bias
    t = t * v[4:5, :] + v[5:6, :]                                   # BatchNorm1d #2
    return x + t                                                    # residual shortcut


def _blend(x, taps, v, pad_ref):
    """BN -> ReLU -> Conv1d(k=3, pad=1, no bias). x: (L, Cin), taps: 3 x (Cin, Cout),
    v: (2, Cin) rows [scale, shift]."""
    t = jnp.maximum(x * v[0:1, :] + v[1:2, :], 0.0)
    tp = _pad_rows(t, 1, pad_ref)                                   # (L+2, Cin)
    return _valid_conv(tp, taps)                                    # (L, Cout)


# ---------------------------------------------------------------------------
# Fused forward kernel: one grid step == `tb` batch elements
# ---------------------------------------------------------------------------
def _fcnarrb_kernel(x_ref, w64_ref, vec_ref, wsm_ref, m43_ref, m32_ref, m21_ref,
                    o_ref, pool_ref, rpad_ref, bpad_ref, *, motiflen):
    TB, L1, Cin = x_ref.shape
    K1 = motiflen
    L1c = L1 - K1 + 1

    m43 = m43_ref[...]
    m32 = m32_ref[...]
    m21 = m21_ref[...]

    # Diagonal mask for the (L1,1) -> (1,L1) lane-dense transpose (shared by all samples).
    row = lax.broadcasted_iota(jnp.int32, (L1, L1), 0)
    col = lax.broadcasted_iota(jnp.int32, (L1, L1), 1)
    diag = row == col

    for s in range(TB):
        x = x_ref[s]                                                # (L1, Cin)  = skip1

        # ---- encoder stage 1: conv1 (windows built in-kernel) + ReLU + MaxPool(4) ----
        w1 = w64_ref[_IDX_WC1]                                      # (64,64); row k*Cin+c
        h = _dot(x[0:L1c, :], w1[0:Cin, :])
        for k in range(1, K1):
            h = h + _dot(x[k:k + L1c, :], w1[k * Cin:(k + 1) * Cin, :])
        h = jnp.maximum(h + vec_ref[_V_ENC:_V_ENC + 1, :], 0.0)
        skip2 = _maxpool(h, 4, pool_ref)                            # (L2, 64)

        # ---- encoder stage 2: conv2 (K=5) + ReLU + MaxPool(4) ----
        h = _valid_conv(skip2, [w64_ref[_IDX_WC2 + k] for k in range(5)])
        h = jnp.maximum(h + vec_ref[_V_ENC + 1:_V_ENC + 2, :], 0.0)
        skip3 = _maxpool(h, 4, pool_ref)                            # (L3, 64)

        # ---- encoder stage 3: conv3 (K=3) + ReLU + MaxPool(2) ----
        h = _valid_conv(skip3, [w64_ref[_IDX_WC3 + k] for k in range(3)])
        h = jnp.maximum(h + vec_ref[_V_ENC + 2:_V_ENC + 3, :], 0.0)
        skip4 = _maxpool(h, 2, pool_ref)                            # (L4, 64)
        L4 = skip4.shape[0]

        # ---- decoder level 4: AdaptiveAvgPool1d(1) + linear upsample == broadcast mean ----
        g = jnp.sum(skip4, axis=0, keepdims=True) * (1.0 / L4)      # (1, 64)
        r4 = _rrb(skip4,
                  [w64_ref[_IDX_R4 + k] for k in range(3)],
                  [w64_ref[_IDX_R4 + 3 + k] for k in range(3)],
                  vec_ref[_V_R4:_V_R4 + 6, :], rpad_ref)
        up4 = _blend(g + r4, [w64_ref[_IDX_B4 + k] for k in range(3)],
                     vec_ref[_V_B4:_V_B4 + 2, :], bpad_ref)          # (L4, 64)

        # ---- level 3 ----
        r3 = _rrb(skip3,
                  [w64_ref[_IDX_R3 + k] for k in range(3)],
                  [w64_ref[_IDX_R3 + 3 + k] for k in range(3)],
                  vec_ref[_V_R3:_V_R3 + 6, :], rpad_ref)
        up3 = _blend(_dot(m43, up4) + r3, [w64_ref[_IDX_B3 + k] for k in range(3)],
                     vec_ref[_V_B3:_V_B3 + 2, :], bpad_ref)          # (L3, 64)

        # ---- level 2 ----
        r2 = _rrb(skip2,
                  [w64_ref[_IDX_R2 + k] for k in range(3)],
                  [w64_ref[_IDX_R2 + 3 + k] for k in range(3)],
                  vec_ref[_V_R2:_V_R2 + 6, :], rpad_ref)
        up2 = _blend(_dot(m32, up3) + r2, [w64_ref[_IDX_B2 + k] for k in range(3)],
                     vec_ref[_V_B2:_V_B2 + 2, :], bpad_ref)          # (L2, 64) (lanes >=Cin are 0)
        up2 = up2[:, 0:Cin]                                          # (L2, Cin)

        # ---- level 1 (small-C path) ----
        r1 = _rrb(x,
                  [wsm_ref[k] for k in range(3)],
                  [wsm_ref[3 + k] for k in range(3)],
                  vec_ref[_V_R1:_V_R1 + 6, 0:Cin], rpad_ref)
        y = _blend(_dot(m21, up2) + r1,
                   [wsm_ref[6 + k, :, 0:1] for k in range(3)],
                   vec_ref[_V_B1:_V_B1 + 2, 0:Cin], bpad_ref)        # (L1, 1)

        # Lane-dense store: transpose (L1,1) -> (1,L1) via diagonal mask + sublane reduce,
        # then sigmoid on a single lane-dense row.
        y_t = jnp.sum(jnp.where(diag, y, 0.0), axis=0, keepdims=True)   # (1, L1)
        o_ref[s] = 1.0 / (1.0 + jnp.exp(-y_t))


# ---------------------------------------------------------------------------
# F.interpolate(mode='linear', align_corners=False) as a constant matrix
# ---------------------------------------------------------------------------
def interp_matrix(l_in, l_out):
    if l_in == 1:
        return jnp.ones((l_out, 1), jnp.float32)
    scale = l_in / l_out
    i = np.arange(l_out)
    src = np.maximum((i + 0.5) * scale - 0.5, 0.0)
    i0 = np.minimum(np.floor(src).astype(np.int64), l_in - 1)
    i1 = np.minimum(i0 + 1, l_in - 1)
    w1 = src - i0
    w0 = 1.0 - w1
    M = np.zeros((l_out, l_in), np.float32)
    M[np.arange(l_out), i0] += w0
    M[np.arange(l_out), i1] += w1
    return jnp.asarray(M)


def _pick_tb(B):
    """Samples per grid step: amortize per-step overhead for big batches while
    always keeping >= 2 grid steps when B >= 2 (v7x has 2 TensorCores)."""
    if B <= 2:
        return 1
    best = 1
    for tb in range(2, min(8, B // 2) + 1):
        if B % tb == 0:
            best = tb
    return best


def _pack_params(params, channels, motiflen):
    """Pack 23 per-layer constants into 3 slabs (fewer, larger constant DMAs)."""
    c = channels
    pad_oc = lambda w: jnp.pad(w, ((0, 0), (0, 0), (0, 64 - w.shape[2])))
    w64 = jnp.concatenate([
        jnp.pad(params["wc1"], ((0, 64 - motiflen * c), (0, 0)))[None],   # folded conv1
        params["wc2"], params["wc3"],
        params["rrb4_w"].reshape(6, 64, 64),
        params["rrb3_w"].reshape(6, 64, 64),
        params["rrb2_w"].reshape(6, 64, 64),
        params["blend4_w"], params["blend3_w"],
        pad_oc(params["blend2_w"]),                                       # Cout 4 -> 64 (zeros)
    ], axis=0)                                                            # (36, 64, 64)

    pad_l = lambda v: jnp.pad(v, ((0, 0), (0, 64 - v.shape[1])))
    vec = jnp.concatenate([
        params["encb"],
        params["rrb4_v"], params["rrb3_v"], params["rrb2_v"], pad_l(params["rrb1_v"]),
        params["blend4_v"], params["blend3_v"], params["blend2_v"], pad_l(params["blend1_v"]),
    ], axis=0)                                                            # (35, 64)

    wsm = jnp.concatenate([
        params["rrb1_w"].reshape(6, c, c),
        jnp.pad(params["blend1_w"], ((0, 0), (0, 0), (0, c - 1))),        # (3, c, 1) -> (3, c, c)
    ], axis=0)                                                            # (9, c, c)
    return w64, vec, wsm


# ---------------------------------------------------------------------------
# Full forward pass (eval mode)
# ---------------------------------------------------------------------------
def fcnarrb_forward(x_ncl, params):
    """x_ncl: PyTorch-style (B, C, L) input. Returns (B, L) sigmoid dense output."""
    x = jnp.transpose(x_ncl, (0, 2, 1)).astype(jnp.float32)          # (B, L1, Cin)
    B, L1, Cin = x.shape
    K1 = params["wc1"].shape[0] // Cin
    assert K1 * Cin <= 64 and Cin <= 64

    # encoder lengths (valid conv + floor-mode pooling)
    L1c = L1 - K1 + 1
    L2 = (L1c - 4) // 4 + 1
    L2c = L2 - 5 + 1
    L3 = (L2c - 4) // 4 + 1
    L3c = L3 - 3 + 1
    L4 = (L3c - 2) // 2 + 1
    assert L4 >= 1

    m43 = interp_matrix(L4, L3)
    m32 = interp_matrix(L3, L2)
    m21 = interp_matrix(L2, L1)
    w64, vec, wsm = _pack_params(params, Cin, K1)

    tb = _pick_tb(B)
    assert B % tb == 0
    grid = (B // tb,)

    def _const(a):
        zeros = (0,) * a.ndim
        return pl.BlockSpec(a.shape, lambda i, z=zeros: z)

    in_specs = [pl.BlockSpec((tb, L1, Cin), lambda i: (i, 0, 0))] + \
               [_const(a) for a in (w64, vec, wsm, m43, m32, m21)]

    # VMEM footprint per step: weights ~0.6 MB + 3 small scratches + tiny activations —
    # well under the v5e 16 MiB scoped default / v7x 64 MiB physical for moderate L.
    out = pl.pallas_call(
        functools.partial(_fcnarrb_kernel, motiflen=K1),
        out_shape=jax.ShapeDtypeStruct((B, 1, L1), jnp.float32),     # lane-dense output
        grid=grid,
        in_specs=in_specs,
        out_specs=pl.BlockSpec((tb, 1, L1), lambda i: (i, 0, 0)),
        scratch_shapes=[
            pltpu.VMEM((max(8, L1c), 64), jnp.float32),              # maxpool staging
            pltpu.VMEM((L1 + 4, 64), jnp.float32),                   # RRB halo padding
            pltpu.VMEM((L1 + 2, 64), jnp.float32),                   # blend halo padding
        ],
        compiler_params=pltpu.CompilerParams(dimension_semantics=("parallel",)),
    )(x, w64, vec, wsm, m43, m32, m21)
    return out.reshape(B, L1)


# ---------------------------------------------------------------------------
# Parameter construction (xavier-uniform conv weights, zero biases, BatchNorm
# eval affine with default running stats) — mirrors FCNARRB._init_weights().
# ---------------------------------------------------------------------------
def make_params(seed=0, channels=4, motiflen=13):
    keys = jax.random.split(jax.random.PRNGKey(seed), 64)
    ctr = [0]

    def nxt():
        k = keys[ctr[0]]
        ctr[0] += 1
        return k

    def conv(cout, cin, k):
        fan_in, fan_out = cin * k, cout * k
        lim = float(np.sqrt(6.0 / (fan_in + fan_out)))
        w = jax.random.uniform(nxt(), (cout, cin, k), jnp.float32, -lim, lim)
        return jnp.transpose(w, (2, 1, 0))               # (K, Cin, Cout)

    bn_scale = float(1.0 / np.sqrt(1.0 + 1e-5))           # gamma=1, var=1, mean=0, beta=0

    def rrb(c):
        w = jnp.stack([conv(c, c, 3), conv(c, c, 3)])     # (2, 3, c, c): [w1, w2]
        v = jnp.stack([jnp.zeros((c,), jnp.float32),                  # b1
                       jnp.full((c,), bn_scale, jnp.float32),         # s1
                       jnp.zeros((c,), jnp.float32),                  # h1
                       jnp.zeros((c,), jnp.float32),                  # b2
                       jnp.full((c,), bn_scale, jnp.float32),         # s2
                       jnp.zeros((c,), jnp.float32)])                 # h2
        return w, v

    def blend_p(cin, cout):
        w = conv(cout, cin, 3)                            # (3, cin, cout)
        v = jnp.stack([jnp.full((cin,), bn_scale, jnp.float32),       # scale
                       jnp.zeros((cin,), jnp.float32)])               # shift
        return w, v

    wc1 = conv(64, channels, motiflen).reshape(motiflen * channels, 64)   # rows k*Cin+c
    wc2 = conv(64, 64, 5)
    wc3 = conv(64, 64, 3)
    encb = jnp.zeros((3, 64), jnp.float32)

    r4w, r4v = rrb(64)
    r3w, r3v = rrb(64)
    r2w, r2v = rrb(64)
    r1w, r1v = rrb(channels)
    b4w, b4v = blend_p(64, 64)
    b3w, b3v = blend_p(64, 64)
    b2w, b2v = blend_p(64, channels)
    b1w, b1v = blend_p(channels, 1)

    return dict(wc1=wc1, wc2=wc2, wc3=wc3, encb=encb,
                rrb4_w=r4w, rrb4_v=r4v, rrb3_w=r3w, rrb3_v=r3v,
                rrb2_w=r2w, rrb2_v=r2v, rrb1_w=r1w, rrb1_v=r1v,
                blend4_w=b4w, blend4_v=b4v, blend3_w=b3w, blend3_v=b3v,
                blend2_w=b2w, blend2_v=b2v, blend1_w=b1w, blend1_v=b1v)


if __name__ == "__main__":
    B, C, L = 2, 4, 128
    key = jax.random.PRNGKey(0)
    x = jax.random.normal(key, (B, C, L), jnp.float32)    # PyTorch-style NCW input
    params = make_params(seed=0, channels=C, motiflen=13)
    fwd = jax.jit(fcnarrb_forward)
    out = jax.block_until_ready(fwd(x, params))
    assert out.shape == (B, L) and bool(jnp.all(jnp.isfinite(out)))
    assert bool(jnp.all((out >= 0.0) & (out <= 1.0)))     # sigmoid output range
    print("KERNEL_OK")
</pallas_src>

<mosaic_0001>
module attributes {stable_mosaic.version = 11 : i64} {
  func.func @_fcnarrb_kernel(%arg0: i32, %arg1: memref<1x128x4xf32, #tpu.memory_space<vmem>>, %arg2: memref<36x64x64xf32, #tpu.memory_space<vmem>>, %arg3: memref<35x64xf32, #tpu.memory_space<vmem>>, %arg4: memref<9x4x4xf32, #tpu.memory_space<vmem>>, %arg5: memref<6x2xf32, #tpu.memory_space<vmem>>, %arg6: memref<29x6xf32, #tpu.memory_space<vmem>>, %arg7: memref<128x29xf32, #tpu.memory_space<vmem>>, %arg8: memref<1x1x128xf32, #tpu.memory_space<vmem>>, %arg9: memref<116x64xf32, #tpu.memory_space<vmem>>, %arg10: memref<132x64xf32, #tpu.memory_space<vmem>>, %arg11: memref<130x64xf32, #tpu.memory_space<vmem>>) attributes {dimension_semantics = [#tpu.dimension_semantics<parallel>], iteration_bounds = array<i64: 2>, scalar_prefetch = 0 : i64, scratch_operands = 3 : i64, tpu.core_type = #tpu.core_type<tc>, window_params = [{transform_indices = @transform_0, window_bounds = array<i64: 1, 128, 4>}, {pipeline_mode = #tpu.pipeline_mode<synchronous>, transform_indices = @transform_1, window_bounds = array<i64: 36, 64, 64>}, {pipeline_mode = #tpu.pipeline_mode<synchronous>, transform_indices = @transform_2, window_bounds = array<i64: 35, 64>}, {pipeline_mode = #tpu.pipeline_mode<synchronous>, transform_indices = @transform_3, window_bounds = array<i64: 9, 4, 4>}, {pipeline_mode = #tpu.pipeline_mode<synchronous>, transform_indices = @transform_4, window_bounds = array<i64: 6, 2>}, {pipeline_mode = #tpu.pipeline_mode<synchronous>, transform_indices = @transform_5, window_bounds = array<i64: 29, 6>}, {pipeline_mode = #tpu.pipeline_mode<synchronous>, transform_indices = @transform_6, window_bounds = array<i64: 128, 29>}, {transform_indices = @transform_7, window_bounds = array<i64: 1, 1, 128>}]} {
    %c0 = arith.constant 0 : index
    %c0_0 = arith.constant 0 : index
    %0 = vector.load %arg5[%c0, %c0_0] : memref<6x2xf32, #tpu.memory_space<vmem>>, vector<6x2xf32>
    %c0_1 = arith.constant 0 : index
    %c0_2 = arith.constant 0 : index
    %1 = vector.load %arg6[%c0_1, %c0_2] : memref<29x6xf32, #tpu.memory_space<vmem>>, vector<29x6xf32>
    %c0_3 = arith.constant 0 : index
    %c0_4 = arith.constant 0 : index
    %2 = vector.load %arg7[%c0_3, %c0_4] : memref<128x29xf32, #tpu.memory_space<vmem>>, vector<128x29xf32>
    %3 = tpu.iota {dimensions = array<i32: 0>} : vector<128x128xi32>
    %4 = tpu.iota {dimensions = array<i32: 1>} : vector<128x128xi32>
    %5 = arith.cmpi eq, %3, %4 : vector<128x128xi32>
    %c0_5 = arith.constant 0 : index
    %c0_6 = arith.constant 0 : index
    %c0_7 = arith.constant 0 : index
    %6 = vector.load %arg1[%c0_5, %c0_6, %c0_7] : memref<1x128x4xf32, #tpu.memory_space<vmem>>, vector<1x128x4xf32>
    %7 = vector.shape_cast %6 : vector<1x128x4xf32> to vector<128x4xf32>
    %c0_8 = arith.constant 0 : index
    %c0_9 = arith.constant 0 : index
    %c0_10 = arith.constant 0 : index
    %8 = vector.load %arg2[%c0_8, %c0_9, %c0_10] : memref<36x64x64xf32, #tpu.memory_space<vmem>>, vector<1x64x64xf32>
    %9 = vector.shape_cast %8 : vector<1x64x64xf32> to vector<64x64xf32>
    %10 = vector.extract_strided_slice %7 {offsets = [0, 0], sizes = [116, 4], strides = [1, 1]} : vector<128x4xf32> to vector<116x4xf32>
    %11 = vector.extract_strided_slice %9 {offsets = [0, 0], sizes = [4, 64], strides = [1, 1]} : vector<64x64xf32> to vector<4x64xf32>
    %cst = arith.constant dense<0.000000e+00> : vector<116x64xf32>
    %12 = tpu.matmul %10, %11, %cst {dimension_numbers = #tpu.dot_dimension_numbers<[1], [0], [0], [1], [0, 0, 1, 1], [], []>} : vector<116x4xf32>, vector<4x64xf32>, vector<116x64xf32> -> vector<116x64xf32>
    %13 = vector.extract_strided_slice %7 {offsets = [1, 0], sizes = [116, 4], strides = [1, 1]} : vector<128x4xf32> to vector<116x4xf32>
    %14 = vector.extract_strided_slice %9 {offsets = [4, 0], sizes = [4, 64], strides = [1, 1]} : vector<64x64xf32> to vector<4x64xf32>
    %cst_11 = arith.constant dense<0.000000e+00> : vector<116x64xf32>
    %15 = tpu.matmul %13, %14, %cst_11 {dimension_numbers = #tpu.dot_dimension_numbers<[1], [0], [0], [1], [0, 0, 1, 1], [], []>} : vector<116x4xf32>, vector<4x64xf32>, vector<116x64xf32> -> vector<116x64xf32>
    %16 = arith.addf %12, %15 : vector<116x64xf32>
    %17 = vector.extract_strided_slice %7 {offsets = [2, 0], sizes = [116, 4], strides = [1, 1]} : vector<128x4xf32> to vector<116x4xf32>
    %18 = vector.extract_strided_slice %9 {offsets = [8, 0], sizes = [4, 64], strides = [1, 1]} : vector<64x64xf32> to vector<4x64xf32>
    %cst_12 = arith.constant dense<0.000000e+00> : vector<116x64xf32>
    %19 = tpu.matmul %17, %18, %cst_12 {dimension_numbers = #tpu.dot_dimension_numbers<[1], [0], [0], [1], [0, 0, 1, 1], [], []>} : vector<116x4xf32>, vector<4x64xf32>, vector<116x64xf32> -> vector<116x64xf32>
    %20 = arith.addf %16, %19 : vector<116x64xf32>
    %21 = vector.extract_strided_slice %7 {offsets = [3, 0], sizes = [116, 4], strides = [1, 1]} : vector<128x4xf32> to vector<116x4xf32>
    %22 = vector.extract_strided_slice %9 {offsets = [12, 0], sizes = [4, 64], strides = [1, 1]} : vector<64x64xf32> to vector<4x64xf32>
    %cst_13 = arith.constant dense<0.000000e+00> : vector<116x64xf32>
    %23 = tpu.matmul %21, %22, %cst_13 {dimension_numbers = #tpu.dot_dimension_numbers<[1], [0], [0], [1], [0, 0, 1, 1], [], []>} : vector<116x4xf32>, vector<4x64xf32>, vector<116x64xf32> -> vector<116x64xf32>
    %24 = arith.addf %20, %23 : vector<116x64xf32>
    %25 = vector.extract_strided_slice %7 {offsets = [4, 0], sizes = [116, 4], strides = [1, 1]} : vector<128x4xf32> to vector<116x4xf32>
    %26 = vector.extract_strided_slice %9 {offsets = [16, 0], sizes = [4, 64], strides = [1, 1]} : vector<64x64xf32> to vector<4x64xf32>
    %cst_14 = arith.constant dense<0.000000e+00> : vector<116x64xf32>
    %27 = tpu.matmul %25, %26, %cst_14 {dimension_numbers = #tpu.dot_dimension_numbers<[1], [0], [0], [1], [0, 0, 1, 1], [], []>} : vector<116x4xf32>, vector<4x64xf32>, vector<116x64xf32> -> vector<116x64xf32>
    %28 = arith.addf %24, %27 : vector<116x64xf32>
    %29 = vector.extract_strided_slice %7 {offsets = [5, 0], sizes = [116, 4], strides = [1, 1]} : vector<128x4xf32> to vector<116x4xf32>
    %30 = vector.extract_strided_slice %9 {offsets = [20, 0], sizes = [4, 64], strides = [1, 1]} : vector<64x64xf32> to vector<4x64xf32>
    %cst_15 = arith.constant dense<0.000000e+00> : vector<116x64xf32>
    %31 = tpu.matmul %29, %30, %cst_15 {dimension_numbers = #tpu.dot_dimension_numbers<[1], [0], [0], [1], [0, 0, 1, 1], [], []>} : vector<116x4xf32>, vector<4x64xf32>, vector<116x64xf32> -> vector<116x64xf32>
    %32 = arith.addf %28, %31 : vector<116x64xf32>
    %33 = vector.extract_strided_slice %7 {offsets = [6, 0], sizes = [116, 4], strides = [1, 1]} : vector<128x4xf32> to vector<116x4xf32>
    %34 = vector.extract_strided_slice %9 {offsets = [24, 0], sizes = [4, 64], strides = [1, 1]} : vector<64x64xf32> to vector<4x64xf32>
    %cst_16 = arith.constant dense<0.000000e+00> : vector<116x64xf32>
    %35 = tpu.matmul %33, %34, %cst_16 {dimension_numbers = #tpu.dot_dimension_numbers<[1], [0], [0], [1], [0, 0, 1, 1], [], []>} : vector<116x4xf32>, vector<4x64xf32>, vector<116x64xf32> -> vector<116x64xf32>
    %36 = arith.addf %32, %35 : vector<116x64xf32>
    %37 = vector.extract_strided_slice %7 {offsets = [7, 0], sizes = [116, 4], strides = [1, 1]} : vector<128x4xf32> to vector<116x4xf32>
    %38 = vector.extract_strided_slice %9 {offsets = [28, 0], sizes = [4, 64], strides = [1, 1]} : vector<64x64xf32> to vector<4x64xf32>
    %cst_17 = arith.constant dense<0.000000e+00> : vector<116x64xf32>
    %39 = tpu.matmul %37, %38, %cst_17 {dimension_numbers = #tpu.dot_dimension_numbers<[1], [0], [0], [1], [0, 0, 1, 1], [], []>} : vector<116x4xf32>, vector<4x64xf32>, vector<116x64xf32> -> vector<116x64xf32>
    %40 = arith.addf %36, %39 : vector<116x64xf32>
    %41 = vector.extract_strided_slice %7 {offsets = [8, 0], sizes = [116, 4], strides = [1, 1]} : vector<128x4xf32> to vector<116x4xf32>
    %42 = vector.extract_strided_slice %9 {offsets = [32, 0], sizes = [4, 64], strides = [1, 1]} : vector<64x64xf32> to vector<4x64xf32>
    %cst_18 = arith.constant dense<0.000000e+00> : vector<116x64xf32>
    %43 = tpu.matmul %41, %42, %cst_18 {dimension_numbers = #tpu.dot_dimension_numbers<[1], [0], [0], [1], [0, 0, 1, 1], [], []>} : vector<116x4xf32>, vector<4x64xf32>, vector<116x64xf32> -> vector<116x64xf32>
    %44 = arith.addf %40, %43 : vector<116x64xf32>
    %45 = vector.extract_strided_slice %7 {offsets = [9, 0], sizes = [116, 4], strides = [1, 1]} : vector<128x4xf32> to vector<116x4xf32>
    %46 = vector.extract_strided_slice %9 {offsets = [36, 0], sizes = [4, 64], strides = [1, 1]} : vector<64x64xf32> to vector<4x64xf32>
    %cst_19 = arith.constant dense<0.000000e+00> : vector<116x64xf32>
    %47 = tpu.matmul %45, %46, %cst_19 {dimension_numbers = #tpu.dot_dimension_numbers<[1], [0], [0], [1], [0, 0, 1, 1], [], []>} : vector<116x4xf32>, vector<4x64xf32>, vector<116x64xf32> -> vector<116x64xf32>
    %48 = arith.addf %44, %47 : vector<116x64xf32>
    %49 = vector.extract_strided_slice %7 {offsets = [10, 0], sizes = [116, 4], strides = [1, 1]} : vector<128x4xf32> to vector<116x4xf32>
    %50 = vector.extract_strided_slice %9 {offsets = [40, 0], sizes = [4, 64], strides = [1, 1]} : vector<64x64xf32> to vector<4x64xf32>
    %cst_20 = arith.constant dense<0.000000e+00> : vector<116x64xf32>
    %51 = tpu.matmul %49, %50, %cst_20 {dimension_numbers = #tpu.dot_dimension_numbers<[1], [0], [0], [1], [0, 0, 1, 1], [], []>} : vector<116x4xf32>, vector<4x64xf32>, vector<116x64xf32> -> vector<116x64xf32>
    %52 = arith.addf %48, %51 : vector<116x64xf32>
    %53 = vector.extract_strided_slice %7 {offsets = [11, 0], sizes = [116, 4], strides = [1, 1]} : vector<128x4xf32> to vector<116x4xf32>
    %54 = vector.extract_strided_slice %9 {offsets = [44, 0], sizes = [4, 64], strides = [1, 1]} : vector<64x64xf32> to vector<4x64xf32>
    %cst_21 = arith.constant dense<0.000000e+00> : vector<116x64xf32>
    %55 = tpu.matmul %53, %54, %cst_21 {dimension_numbers = #tpu.dot_dimension_numbers<[1], [0], [0], [1], [0, 0, 1, 1], [], []>} : vector<116x4xf32>, vector<4x64xf32>, vector<116x64xf32> -> vector<116x64xf32>
    %56 = arith.addf %52, %55 : vector<116x64xf32>
    %57 = vector.extract_strided_slice %7 {offsets = [12, 0], sizes = [116, 4], strides = [1, 1]} : vector<128x4xf32> to vector<116x4xf32>
    %58 = vector.extract_strided_slice %9 {offsets = [48, 0], sizes = [4, 64], strides = [1, 1]} : vector<64x64xf32> to vector<4x64xf32>
    %cst_22 = arith.constant dense<0.000000e+00> : vector<116x64xf32>
    %59 = tpu.matmul %57, %58, %cst_22 {dimension_numbers = #tpu.dot_dimension_numbers<[1], [0], [0], [1], [0, 0, 1, 1], [], []>} : vector<116x4xf32>, vector<4x64xf32>, vector<116x64xf32> -> vector<116x64xf32>
    %60 = arith.addf %56, %59 : vector<116x64xf32>
    %c0_23 = arith.constant 0 : index
    %c0_24 = arith.constant 0 : index
    %61 = vector.load %arg3[%c0_23, %c0_24] : memref<35x64xf32, #tpu.memory_space<vmem>>, vector<1x64xf32>
    %62 = vector.broadcast %61 : vector<1x64xf32> to vector<116x64xf32>
    %63 = arith.addf %60, %62 : vector<116x64xf32>
    %cst_25 = arith.constant 0.000000e+00 : f32
    %64 = vector.broadcast %cst_25 : f32 to vector<116x64xf32>
    %65 = arith.maximumf %63, %64 : vector<116x64xf32>
    %c0_26 = arith.constant 0 : index
    %c0_27 = arith.constant 0 : index
    %66 = vector.load %arg9[%c0_26, %c0_27] : memref<116x64xf32, #tpu.memory_space<vmem>>, vector<116x64xf32>
    tpu.vector_store %arg9[%c0_26, %c0_27], %65 {strides = array<i32>} : memref<116x64xf32, #tpu.memory_space<vmem>>, vector<116x64xf32>,
    %c0_28 = arith.constant 0 : index
    %c0_29 = arith.constant 0 : index
    %67 = tpu.strided_load %arg9[%c0_28, %c0_29] {strides = array<i32: 4, 1>} : memref<116x64xf32, #tpu.memory_space<vmem>>, vector<29x64xf32>
    %c1 = arith.constant 1 : index
    %c0_30 = arith.constant 0 : index
    %68 = tpu.strided_load %arg9[%c1, %c0_30] {strides = array<i32: 4, 1>} : memref<116x64xf32, #tpu.memory_space<vmem>>, vector<29x64xf32>
    %69 = arith.maximumf %67, %68 : vector<29x64xf32>
    %c2 = arith.constant 2 : index
    %c0_31 = arith.constant 0 : index
    %70 = tpu.strided_load %arg9[%c2, %c0_31] {strides = array<i32: 4, 1>} : memref<116x64xf32, #tpu.memory_space<vmem>>, vector<29x64xf32>
    %71 = arith.maximumf %69, %70 : vector<29x64xf32>
    %c3 = arith.constant 3 : index
    %c0_32 = arith.constant 0 : index
    %72 = tpu.strided_load %arg9[%c3, %c0_32] {strides = array<i32: 4, 1>} : memref<116x64xf32, #tpu.memory_space<vmem>>, vector<29x64xf32>
    %73 = arith.maximumf %71, %72 : vector<29x64xf32>
    %c1_33 = arith.constant 1 : index
    %c0_34 = arith.constant 0 : index
    %c0_35 = arith.constant 0 : index
    %74 = vector.load %arg2[%c1_33, %c0_34, %c0_35] : memref<36x64x64xf32, #tpu.memory_space<vmem>>, vector<1x64x64xf32>
    %75 = vector.shape_cast %74 : vector<1x64x64xf32> to vector<64x64xf32>
    %c2_36 = arith.constant 2 : index
    %c0_37 = arith.constant 0 : index
    %c0_38 = arith.constant 0 : index
    %76 = vector.load %arg2[%c2_36, %c0_37, %c0_38] : memref<36x64x64xf32, #tpu.memory_space<vmem>>, vector<1x64x64xf32>
    %77 = vector.shape_cast %76 : vector<1x64x64xf32> to vector<64x64xf32>
    %c3_39 = arith.constant 3 : index
    %c0_40 = arith.constant 0 : index
    %c0_41 = arith.constant 0 : index
    %78 = vector.load %arg2[%c3_39, %c0_40, %c0_41] : memref<36x64x64xf32, #tpu.memory_space<vmem>>, vector<1x64x64xf32>
    %79 = vector.shape_cast %78 : vector<1x64x64xf32> to vector<64x64xf32>
    %c4 = arith.constant 4 : index
    %c0_42 = arith.constant 0 : index
    %c0_43 = arith.constant 0 : index
    %80 = vector.load %arg2[%c4, %c0_42, %c0_43] : memref<36x64x64xf32, #tpu.memory_space<vmem>>, vector<1x64x64xf32>
    %81 = vector.shape_cast %80 : vector<1x64x64xf32> to vector<64x64xf32>
    %c5 = arith.constant 5 : index
    %c0_44 = arith.constant 0 : index
    %c0_45 = arith.constant 0 : index
    %82 = vector.load %arg2[%c5, %c0_44, %c0_45] : memref<36x64x64xf32, #tpu.memory_space<vmem>>, vector<1x64x64xf32>
    %83 = vector.shape_cast %82 : vector<1x64x64xf32> to vector<64x64xf32>
    %84 = vector.extract_strided_slice %73 {offsets = [0, 0], sizes = [25, 64], strides = [1, 1]} : vector<29x64xf32> to vector<25x64xf32>
    %cst_46 = arith.constant dense<0.000000e+00> : vector<25x64xf32>
    %85 = tpu.matmul %84, %75, %cst_46 {dimension_numbers = #tpu.dot_dimension_numbers<[1], [0], [0], [1], [0, 0, 1, 1], [], []>} : vector<25x64xf32>, vector<64x64xf32>, vector<25x64xf32> -> vector<25x64xf32>
    %86 = vector.extract_strided_slice %73 {offsets = [1, 0], sizes = [25, 64], strides = [1, 1]} : vector<29x64xf32> to vector<25x64xf32>
    %cst_47 = arith.constant dense<0.000000e+00> : vector<25x64xf32>
    %87 = tpu.matmul %86, %77, %cst_47 {dimension_numbers = #tpu.dot_dimension_numbers<[1], [0], [0], [1], [0, 0, 1, 1], [], []>} : vector<25x64xf32>, vector<64x64xf32>, vector<25x64xf32> -> vector<25x64xf32>
    %88 = arith.addf %85, %87 : vector<25x64xf32>
    %89 = vector.extract_strided_slice %73 {offsets = [2, 0], sizes = [25, 64], strides = [1, 1]} : vector<29x64xf32> to vector<25x64xf32>
    %cst_48 = arith.constant dense<0.000000e+00> : vector<25x64xf32>
    %90 = tpu.matmul %89, %79, %cst_48 {dimension_numbers = #tpu.dot_dimension_numbers<[1], [0], [0], [1], [0, 0, 1, 1], [], []>} : vector<25x64xf32>, vector<64x64xf32>, vector<25x64xf32> -> vector<25x64xf32>
    %91 = arith.addf %88, %90 : vector<25x64xf32>
    %92 = vector.extract_strided_slice %73 {offsets = [3, 0], sizes = [25, 64], strides = [1, 1]} : vector<29x64xf32> to vector<25x64xf32>
    %cst_49 = arith.constant dense<0.000000e+00> : vector<25x64xf32>
    %93 = tpu.matmul %92, %81, %cst_49 {dimension_numbers = #tpu.dot_dimension_numbers<[1], [0], [0], [1], [0, 0, 1, 1], [], []>} : vector<25x64xf32>, vector<64x64xf32>, vector<25x64xf32> -> vector<25x64xf32>
    %94 = arith.addf %91, %93 : vector<25x64xf32>
    %95 = vector.extract_strided_slice %73 {offsets = [4, 0], sizes = [25, 64], strides = [1, 1]} : vector<29x64xf32> to vector<25x64xf32>
    %cst_50 = arith.constant dense<0.000000e+00> : vector<25x64xf32>
    %96 = tpu.matmul %95, %83, %cst_50 {dimension_numbers = #tpu.dot_dimension_numbers<[1], [0], [0], [1], [0, 0, 1, 1], [], []>} : vector<25x64xf32>, vector<64x64xf32>, vector<25x64xf32> -> vector<25x64xf32>
    %97 = arith.addf %94, %96 : vector<25x64xf32>
    %c1_51 = arith.constant 1 : index
    %c0_52 = arith.constant 0 : index
    %98 = vector.load %arg3[%c1_51, %c0_52] : memref<35x64xf32, #tpu.memory_space<vmem>>, vector<1x64xf32>
    %99 = vector.broadcast %98 : vector<1x64xf32> to vector<25x64xf32>
    %100 = arith.addf %97, %99 : vector<25x64xf32>
    %cst_53 = arith.constant 0.000000e+00 : f32
    %101 = vector.broadcast %cst_53 : f32 to vector<25x64xf32>
    %102 = arith.maximumf %100, %101 : vector<25x64xf32>
    %c0_54 = arith.constant 0 : index
    %c0_55 = arith.constant 0 : index
    %103 = vector.load %arg9[%c0_54, %c0_55] : memref<116x64xf32, #tpu.memory_space<vmem>>, vector<25x64xf32>
    tpu.vector_store %arg9[%c0_54, %c0_55], %102 {strides = array<i32>} : memref<116x64xf32, #tpu.memory_space<vmem>>, vector<25x64xf32>,
    %c0_56 = arith.constant 0 : index
    %c0_57 = arith.constant 0 : index
    %104 = tpu.strided_load %arg9[%c0_56, %c0_57] {strides = array<i32: 4, 1>} : memref<116x64xf32, #tpu.memory_space<vmem>>, vector<6x64xf32>
    %c1_58 = arith.constant 1 : index
    %c0_59 = arith.constant 0 : index
    %105 = tpu.strided_load %arg9[%c1_58, %c0_59] {strides = array<i32: 4, 1>} : memref<116x64xf32, #tpu.memory_space<vmem>>, vector<6x64xf32>
    %106 = arith.maximumf %104, %105 : vector<6x64xf32>
    %c2_60 = arith.constant 2 : index
    %c0_61 = arith.constant 0 : index
    %107 = tpu.strided_load %arg9[%c2_60, %c0_61] {strides = array<i32: 4, 1>} : memref<116x64xf32, #tpu.memory_space<vmem>>, vector<6x64xf32>
    %108 = arith.maximumf %106, %107 : vector<6x64xf32>
    %c3_62 = arith.constant 3 : index
    %c0_63 = arith.constant 0 : index
    %109 = tpu.strided_load %arg9[%c3_62, %c0_63] {strides = array<i32: 4, 1>} : memref<116x64xf32, #tpu.memory_space<vmem>>, vector<6x64xf32>
    %110 = arith.maximumf %108, %109 : vector<6x64xf32>
    %c6 = arith.constant 6 : index
    %c0_64 = arith.constant 0 : index
    %c0_65 = arith.constant 0 : index
    %111 = vector.load %arg2[%c6, %c0_64, %c0_65] : memref<36x64x64xf32, #tpu.memory_space<vmem>>, vector<1x64x64xf32>
    %112 = vector.shape_cast %111 : vector<1x64x64xf32> to vector<64x64xf32>
    %c7 = arith.constant 7 : index
    %c0_66 = arith.constant 0 : index
    %c0_67 = arith.constant 0 : index
    %113 = vector.load %arg2[%c7, %c0_66, %c0_67] : memref<36x64x64xf32, #tpu.memory_space<vmem>>, vector<1x64x64xf32>
    %114 = vector.shape_cast %113 : vector<1x64x64xf32> to vector<64x64xf32>
    %c8 = arith.constant 8 : index
    %c0_68 = arith.constant 0 : index
    %c0_69 = arith.constant 0 : index
    %115 = vector.load %arg2[%c8, %c0_68, %c0_69] : memref<36x64x64xf32, #tpu.memory_space<vmem>>, vector<1x64x64xf32>
    %116 = vector.shape_cast %115 : vector<1x64x64xf32> to vector<64x64xf32>
    %117 = vector.extract_strided_slice %110 {offsets = [0, 0], sizes = [4, 64], strides = [1, 1]} : vector<6x64xf32> to vector<4x64xf32>
    %cst_70 = arith.constant dense<0.000000e+00> : vector<4x64xf32>
    %118 = tpu.matmul %117, %112, %cst_70 {dimension_numbers = #tpu.dot_dimension_numbers<[1], [0], [0], [1], [0, 0, 1, 1], [], []>} : vector<4x64xf32>, vector<64x64xf32>, vector<4x64xf32> -> vector<4x64xf32>
    %119 = vector.extract_strided_slice %110 {offsets = [1, 0], sizes = [4, 64], strides = [1, 1]} : vector<6x64xf32> to vector<4x64xf32>
    %cst_71 = arith.constant dense<0.000000e+00> : vector<4x64xf32>
    %120 = tpu.matmul %119, %114, %cst_71 {dimension_numbers = #tpu.dot_dimension_numbers<[1], [0], [0], [1], [0, 0, 1, 1], [], []>} : vector<4x64xf32>, vector<64x64xf32>, vector<4x64xf32> -> vector<4x64xf32>
    %121 = arith.addf %118, %120 : vector<4x64xf32>
    %122 = vector.extract_strided_slice %110 {offsets = [2, 0], sizes = [4, 64], strides = [1, 1]} : vector<6x64xf32> to vector<4x64xf32>
    %cst_72 = arith.constant dense<0.000000e+00> : vector<4x64xf32>
    %123 = tpu.matmul %122, %116, %cst_72 {dimension_numbers = #tpu.dot_dimension_numbers<[1], [0], [0], [1], [0, 0, 1, 1], [], []>} : vector<4x64xf32>, vector<64x64xf32>, vector<4x64xf32> -> vector<4x64xf32>
    %124 = arith.addf %121, %123 : vector<4x64xf32>
    %c2_73 = arith.constant 2 : index
    %c0_74 = arith.constant 0 : index
    %125 = vector.load %arg3[%c2_73, %c0_74] : memref<35x64xf32, #tpu.memory_space<vmem>>, vector<1x64xf32>
    %126 = vector.broadcast %125 : vector<1x64xf32> to vector<4x64xf32>
    %127 = arith.addf %124, %126 : vector<4x64xf32>
    %cst_75 = arith.constant 0.000000e+00 : f32
    %128 = vector.broadcast %cst_75 : f32 to vector<4x64xf32>
    %129 = arith.maximumf %127, %128 : vector<4x64xf32>
    %c0_76 = arith.constant 0 : index
    %c0_77 = arith.constant 0 : index
    %130 = vector.load %arg9[%c0_76, %c0_77] : memref<116x64xf32, #tpu.memory_space<vmem>>, vector<4x64xf32>
    tpu.vector_store %arg9[%c0_76, %c0_77], %129 {strides = array<i32>} : memref<116x64xf32, #tpu.memory_space<vmem>>, vector<4x64xf32>,
    %c0_78 = arith.constant 0 : index
    %c0_79 = arith.constant 0 : index
    %131 = tpu.strided_load %arg9[%c0_78, %c0_79] {strides = array<i32: 2, 1>} : memref<116x64xf32, #tpu.memory_space<vmem>>, vector<2x64xf32>
    %c1_80 = arith.constant 1 : index
    %c0_81 = arith.constant 0 : index
    %132 = tpu.strided_load %arg9[%c1_80, %c0_81] {strides = array<i32: 2, 1>} : memref<116x64xf32, #tpu.memory_space<vmem>>, vector<2x64xf32>
    %133 = arith.maximumf %131, %132 : vector<2x64xf32>
    %cst_82 = arith.constant dense<0.000000e+00> : vector<64xf32>
    %134 = vector.multi_reduction <add>, %133, %cst_82 [0] : vector<2x64xf32> to vector<64xf32>
    %135 = vector.shape_cast %134 : vector<64xf32> to vector<1x64xf32>
    %cst_83 = arith.constant 5.000000e-01 : f32
    %136 = vector.broadcast %cst_83 : f32 to vector<1x64xf32>
    %137 = arith.mulf %135, %136 : vector<1x64xf32>
    %c9 = arith.constant 9 : index
    %c0_84 = arith.constant 0 : index
    %c0_85 = arith.constant 0 : index
    %138 = vector.load %arg2[%c9, %c0_84, %c0_85] : memref<36x64x64xf32, #tpu.memory_space<vmem>>, vector<1x64x64xf32>
    %139 = vector.shape_cast %138 : vector<1x64x64xf32> to vector<64x64xf32>
    %c10 = arith.constant 10 : index
    %c0_86 = arith.constant 0 : index
    %c0_87 = arith.constant 0 : index
    %140 = vector.load %arg2[%c10, %c0_86, %c0_87] : memref<36x64x64xf32, #tpu.memory_space<vmem>>, vector<1x64x64xf32>
    %141 = vector.shape_cast %140 : vector<1x64x64xf32> to vector<64x64xf32>
    %c11 = arith.constant 11 : index
    %c0_88 = arith.constant 0 : index
    %c0_89 = arith.constant 0 : index
    %142 = vector.load %arg2[%c11, %c0_88, %c0_89] : memref<36x64x64xf32, #tpu.memory_space<vmem>>, vector<1x64x64xf32>
    %143 = vector.shape_cast %142 : vector<1x64x64xf32> to vector<64x64xf32>
    %c12 = arith.constant 12 : index
    %c0_90 = arith.constant 0 : index
    %c0_91 = arith.constant 0 : index
    %144 = vector.load %arg2[%c12, %c0_90, %c0_91] : memref<36x64x64xf32, #tpu.memory_space<vmem>>, vector<1x64x64xf32>
    %145 = vector.shape_cast %144 : vector<1x64x64xf32> to vector<64x64xf32>
    %c13 = arith.constant 13 : index
    %c0_92 = arith.constant 0 : index
    %c0_93 = arith.constant 0 : index
    %146 = vector.load %arg2[%c13, %c0_92, %c0_93] : memref<36x64x64xf32, #tpu.memory_space<vmem>>, vector<1x64x64xf32>
    %147 = vector.shape_cast %146 : vector<1x64x64xf32> to vector<64x64xf32>
    %c14 = arith.constant 14 : index
    %c0_94 = arith.constant 0 : index
    %c0_95 = arith.constant 0 : index
    %148 = vector.load %arg2[%c14, %c0_94, %c0_95] : memref<36x64x64xf32, #tpu.memory_space<vmem>>, vector<1x64x64xf32>
    %149 = vector.shape_cast %148 : vector<1x64x64xf32> to vector<64x64xf32>
    %c3_96 = arith.constant 3 : index
    %c0_97 = arith.constant 0 : index
    %150 = vector.load %arg3[%c3_96, %c0_97] : memref<35x64xf32, #tpu.memory_space<vmem>>, vector<6x64xf32>
    %cst_98 = arith.constant 0.000000e+00 : f32
    %151 = vector.broadcast %cst_98 : f32 to vector<2x64xf32>
    %c0_99 = arith.constant 0 : index
    %c0_100 = arith.constant 0 : index
    %152 = vector.load %arg10[%c0_99, %c0_100] : memref<132x64xf32, #tpu.memory_space<vmem>>, vector<2x64xf32>
    tpu.vector_store %arg10[%c0_99, %c0_100], %151 {strides = array<i32>} : memref<132x64xf32, #tpu.memory_space<vmem>>, vector<2x64xf32>,
    %c2_101 = arith.constant 2 : index
    %c0_102 = arith.constant 0 : index
    %153 = vector.load %arg10[%c2_101, %c0_102] : memref<132x64xf32, #tpu.memory_space<vmem>>, vector<2x64xf32>
    tpu.vector_store %arg10[%c2_101, %c0_102], %133 {strides = array<i32>} : memref<132x64xf32, #tpu.memory_space<vmem>>, vector<2x64xf32>,
    %cst_103 = arith.constant 0.000000e+00 : f32
    %154 = vector.broadcast %cst_103 : f32 to vector<2x64xf32>
    %c4_104 = arith.constant 4 : index
    %c0_105 = arith.constant 0 : index
    %155 = vector.load %arg10[%c4_104, %c0_105] : memref<132x64xf32, #tpu.memory_space<vmem>>, vector<2x64xf32>
    tpu.vector_store %arg10[%c4_104, %c0_105], %154 {strides = array<i32>} : memref<132x64xf32, #tpu.memory_space<vmem>>, vector<2x64xf32>,
    %c0_106 = arith.constant 0 : index
    %c0_107 = arith.constant 0 : index
    %156 = vector.load %arg10[%c0_106, %c0_107] : memref<132x64xf32, #tpu.memory_space<vmem>>, vector<6x64xf32>
    %157 = vector.extract_strided_slice %156 {offsets = [0, 0], sizes = [4, 64], strides = [1, 1]} : vector<6x64xf32> to vector<4x64xf32>
    %cst_108 = arith.constant dense<0.000000e+00> : vector<4x64xf32>
    %158 = tpu.matmul %157, %139, %cst_108 {dimension_numbers = #tpu.dot_dimension_numbers<[1], [0], [0], [1], [0, 0, 1, 1], [], []>} : vector<4x64xf32>, vector<64x64xf32>, vector<4x64xf32> -> vector<4x64xf32>
    %159 = vector.extract_strided_slice %156 {offsets = [1, 0], sizes = [4, 64], strides = [1, 1]} : vector<6x64xf32> to vector<4x64xf32>
    %cst_109 = arith.constant dense<0.000000e+00> : vector<4x64xf32>
    %160 = tpu.matmul %159, %141, %cst_109 {dimension_numbers = #tpu.dot_dimension_numbers<[1], [0], [0], [1], [0, 0, 1, 1], [], []>} : vector<4x64xf32>, vector<64x64xf32>, vector<4x64xf32> -> vector<4x64xf32>
    %161 = arith.addf %158, %160 : vector<4x64xf32>
    %162 = vector.extract_strided_slice %156 {offsets = [2, 0], sizes = [4, 64], strides = [1, 1]} : vector<6x64xf32> to vector<4x64xf32>
    %cst_110 = arith.constant dense<0.000000e+00> : vector<4x64xf32>
    %163 = tpu.matmul %162, %143, %cst_110 {dimension_numbers = #tpu.dot_dimension_numbers<[1], [0], [0], [1], [0, 0, 1, 1], [], []>} : vector<4x64xf32>, vector<64x64xf32>, vector<4x64xf32> -> vector<4x64xf32>
    %164 = arith.addf %161, %163 : vector<4x64xf32>
    %165 = vector.extract_strided_slice %150 {offsets = [0, 0], sizes = [1, 64], strides = [1, 1]} : vector<6x64xf32> to vector<1x64xf32>
    %166 = vector.broadcast %165 : vector<1x64xf32> to vector<4x64xf32>
    %167 = arith.addf %164, %166 : vector<4x64xf32>
    %cst_111 = arith.constant 0.000000e+00 : f32
    %168 = vector.broadcast %cst_111 : f32 to vector<4x64xf32>
    %169 = arith.maximumf %167, %168 : vector<4x64xf32>
    %170 = vector.extract_strided_slice %150 {offsets = [1, 0], sizes = [1, 64], strides = [1, 1]} : vector<6x64xf32> to vector<1x64xf32>
    %171 = vector.broadcast %170 : vector<1x64xf32> to vector<4x64xf32>
    %172 = arith.mulf %169, %171 : vector<4x64xf32>
    %173 = vector.extract_strided_slice %150 {offsets = [2, 0], sizes = [1, 64], strides = [1, 1]} : vector<6x64xf32> to vector<1x64xf32>
    %174 = vector.broadcast %173 : vector<1x64xf32> to vector<4x64xf32>
    %175 = arith.addf %172, %174 : vector<4x64xf32>
    %176 = tpu.iota {dimensions = array<i32: 0>} : vector<4x64xi32>
    %c1_i32 = arith.constant 1 : i32
    %177 = vector.broadcast %c1_i32 : i32 to vector<4x64xi32>
    %178 = arith.cmpi sge, %176, %177 : vector<4x64xi32>
    %c2_i32 = arith.constant 2 : i32
    %179 = vector.broadcast %c2_i32 : i32 to vector<4x64xi32>
    %180 = arith.cmpi sle, %176, %179 : vector<4x64xi32>
    %181 = arith.andi %178, %180 : vector<4x64xi1>
    %cst_112 = arith.constant 0.000000e+00 : f32
    %182 = vector.broadcast %cst_112 : f32 to vector<4x64xf32>
    %183 = arith.select %181, %175, %182 : vector<4x64xi1>, vector<4x64xf32>
    %184 = vector.extract_strided_slice %183 {offsets = [0, 0], sizes = [2, 64], strides = [1, 1]} : vector<4x64xf32> to vector<2x64xf32>
    %cst_113 = arith.constant dense<0.000000e+00> : vector<2x64xf32>
    %185 = tpu.matmul %184, %145, %cst_113 {dimension_numbers = #tpu.dot_dimension_numbers<[1], [0], [0], [1], [0, 0, 1, 1], [], []>} : vector<2x64xf32>, vector<64x64xf32>, vector<2x64xf32> -> vector<2x64xf32>
    %186 = vector.extract_strided_slice %183 {offsets = [1, 0], sizes = [2, 64], strides = [1, 1]} : vector<4x64xf32> to vector<2x64xf32>
    %cst_114 = arith.constant dense<0.000000e+00> : vector<2x64xf32>
    %187 = tpu.matmul %186, %147, %cst_114 {dimension_numbers = #tpu.dot_dimension_numbers<[1], [0], [0], [1], [0, 0, 1, 1], [], []>} : vector<2x64xf32>, vector<64x64xf32>, vector<2x64xf32> -> vector<2x64xf32>
    %188 = arith.addf %185, %187 : vector<2x64xf32>
    %189 = vector.extract_strided_slice %183 {offsets = [2, 0], sizes = [2, 64], strides = [1, 1]} : vector<4x64xf32> to vector<2x64xf32>
    %cst_115 = arith.constant dense<0.000000e+00> : vector<2x64xf32>
    %190 = tpu.matmul %189, %149, %cst_115 {dimension_numbers = #tpu.dot_dimension_numbers<[1], [0], [0], [1], [0, 0, 1, 1], [], []>} : vector<2x64xf32>, vector<64x64xf32>, vector<2x64xf32> -> vector<2x64xf32>
    %191 = arith.addf %188, %190 : vector<2x64xf32>
    %192 = vector.extract_strided_slice %150 {offsets = [3, 0], sizes = [1, 64], strides = [1, 1]} : vector<6x64xf32> to vector<1x64xf32>
    %193 = vector.broadcast %192 : vector<1x64xf32> to vector<2x64xf32>
    %194 = arith.addf %191, %193 : vector<2x64xf32>
    %195 = vector.extract_strided_slice %150 {offsets = [4, 0], sizes = [1, 64], strides = [1, 1]} : vector<6x64xf32> to vector<1x64xf32>
    %196 = vector.broadcast %195 : vector<1x64xf32> to vector<2x64xf32>
    %197 = arith.mulf %194, %196 : vector<2x64xf32>
    %198 = vector.extract_strided_slice %150 {offsets = [5, 0], sizes = [1, 64], strides = [1, 1]} : vector<6x64xf32> to vector<1x64xf32>
    %199 = vector.broadcast %198 : vector<1x64xf32> to vector<2x64xf32>
    %200 = arith.addf %197, %199 : vector<2x64xf32>
    %201 = arith.addf %133, %200 : vector<2x64xf32>
    %202 = vector.broadcast %137 : vector<1x64xf32> to vector<2x64xf32>
    %203 = arith.addf %202, %201 : vector<2x64xf32>
    %c27 = arith.constant 27 : index
    %c0_116 = arith.constant 0 : index
    %c0_117 = arith.constant 0 : index
    %204 = vector.load %arg2[%c27, %c0_116, %c0_117] : memref<36x64x64xf32, #tpu.memory_space<vmem>>, vector<1x64x64xf32>
    %205 = vector.shape_cast %204 : vector<1x64x64xf32> to vector<64x64xf32>
    %c28 = arith.constant 28 : index
    %c0_118 = arith.constant 0 : index
    %c0_119 = arith.constant 0 : index
    %206 = vector.load %arg2[%c28, %c0_118, %c0_119] : memref<36x64x64xf32, #tpu.memory_space<vmem>>, vector<1x64x64xf32>
    %207 = vector.shape_cast %206 : vector<1x64x64xf32> to vector<64x64xf32>
    %c29 = arith.constant 29 : index
    %c0_120 = arith.constant 0 : index
    %c0_121 = arith.constant 0 : index
    %208 = vector.load %arg2[%c29, %c0_120, %c0_121] : memref<36x64x64xf32, #tpu.memory_space<vmem>>, vector<1x64x64xf32>
    %209 = vector.shape_cast %208 : vector<1x64x64xf32> to vector<64x64xf32>
    %c27_122 = arith.constant 27 : index
    %c0_123 = arith.constant 0 : index
    %210 = vector.load %arg3[%c27_122, %c0_123] : memref<35x64xf32, #tpu.memory_space<vmem>>, vector<2x64xf32>
    %211 = vector.extract_strided_slice %210 {offsets = [0, 0], sizes = [1, 64], strides = [1, 1]} : vector<2x64xf32> to vector<1x64xf32>
    %212 = vector.broadcast %211 : vector<1x64xf32> to vector<2x64xf32>
    %213 = arith.mulf %203, %212 : vector<2x64xf32>
    %214 = vector.extract_strided_slice %210 {offsets = [1, 0], sizes = [1, 64], strides = [1, 1]} : vector<2x64xf32> to vector<1x64xf32>
    %215 = vector.broadcast %214 : vector<1x64xf32> to vector<2x64xf32>
    %216 = arith.addf %213, %215 : vector<2x64xf32>
    %cst_124 = arith.constant 0.000000e+00 : f32
    %217 = vector.broadcast %cst_124 : f32 to vector<2x64xf32>
    %218 = arith.maximumf %216, %217 : vector<2x64xf32>
    %cst_125 = arith.constant 0.000000e+00 : f32
    %219 = vector.broadcast %cst_125 : f32 to vector<1x64xf32>
    %c0_126 = arith.constant 0 : index
    %c0_127 = arith.constant 0 : index
    %220 = vector.load %arg11[%c0_126, %c0_127] : memref<130x64xf32, #tpu.memory_space<vmem>>, vector<1x64xf32>
    tpu.vector_store %arg11[%c0_126, %c0_127], %219 {strides = array<i32>} : memref<130x64xf32, #tpu.memory_space<vmem>>, vector<1x64xf32>,
    %c1_128 = arith.constant 1 : index
    %c0_129 = arith.constant 0 : index
    %221 = vector.load %arg11[%c1_128, %c0_129] : memref<130x64xf32, #tpu.memory_space<vmem>>, vector<2x64xf32>
    tpu.vector_store %arg11[%c1_128, %c0_129], %218 {strides = array<i32>} : memref<130x64xf32, #tpu.memory_space<vmem>>, vector<2x64xf32>,
    %cst_130 = arith.constant 0.000000e+00 : f32
    %222 = vector.broadcast %cst_130 : f32 to vector<1x64xf32>
    %c3_131 = arith.constant 3 : index
    %c0_132 = arith.constant 0 : index
    %223 = vector.load %arg11[%c3_131, %c0_132] : memref<130x64xf32, #tpu.memory_space<vmem>>, vector<1x64xf32>
    tpu.vector_store %arg11[%c3_131, %c0_132], %222 {strides = array<i32>} : memref<130x64xf32, #tpu.memory_space<vmem>>, vector<1x64xf32>,
    %c0_133 = arith.constant 0 : index
    %c0_134 = arith.constant 0 : index
    %224 = vector.load %arg11[%c0_133, %c0_134] : memref<130x64xf32, #tpu.memory_space<vmem>>, vector<4x64xf32>
    %225 = vector.extract_strided_slice %224 {offsets = [0, 0], sizes = [2, 64], strides = [1, 1]} : vector<4x64xf32> to vector<2x64xf32>
    %cst_135 = arith.constant dense<0.000000e+00> : vector<2x64xf32>
    %226 = tpu.matmul %225, %205, %cst_135 {dimension_numbers = #tpu.dot_dimension_numbers<[1], [0], [0], [1], [0, 0, 1, 1], [], []>} : vector<2x64xf32>, vector<64x64xf32>, vector<2x64xf32> -> vector<2x64xf32>
    %227 = vector.extract_strided_slice %224 {offsets = [1, 0], sizes = [2, 64], strides = [1, 1]} : vector<4x64xf32> to vector<2x64xf32>
    %cst_136 = arith.constant dense<0.000000e+00> : vector<2x64xf32>
    %228 = tpu.matmul %227, %207, %cst_136 {dimension_numbers = #tpu.dot_dimension_numbers<[1], [0], [0], [1], [0, 0, 1, 1], [], []>} : vector<2x64xf32>, vector<64x64xf32>, vector<2x64xf32> -> vector<2x64xf32>
    %229 = arith.addf %226, %228 : vector<2x64xf32>
    %230 = vector.extract_strided_slice %224 {offsets = [2, 0], sizes = [2, 64], strides = [1, 1]} : vector<4x64xf32> to vector<2x64xf32>
    %cst_137 = arith.constant dense<0.000000e+00> : vector<2x64xf32>
    %231 = tpu.matmul %230, %209, %cst_137 {dimension_numbers = #tpu.dot_dimension_numbers<[1], [0], [0], [1], [0, 0, 1, 1], [], []>} : vector<2x64xf32>, vector<64x64xf32>, vector<2x64xf32> -> vector<2x64xf32>
    %232 = arith.addf %229, %231 : vector<2x64xf32>
    %c15 = arith.constant 15 : index
    %c0_138 = arith.constant 0 : index
    %c0_139 = arith.constant 0 : index
    %233 = vector.load %arg2[%c15, %c0_138, %c0_139] : memref<36x64x64xf32, #tpu.memory_space<vmem>>, vector<1x64x64xf32>
    %234 = vector.shape_cast %233 : vector<1x64x64xf32> to vector<64x64xf32>
    %c16 = arith.constant 16 : index
    %c0_140 = arith.constant 0 : index
    %c0_141 = arith.constant 0 : index
    %235 = vector.load %arg2[%c16, %c0_140, %c0_141] : memref<36x64x64xf32, #tpu.memory_space<vmem>>, vector<1x64x64xf32>
    %236 = vector.shape_cast %235 : vector<1x64x64xf32> to vector<64x64xf32>
    %c17 = arith.constant 17 : index
    %c0_142 = arith.constant 0 : index
    %c0_143 = arith.constant 0 : index
    %237 = vector.load %arg2[%c17, %c0_142, %c0_143] : memref<36x64x64xf32, #tpu.memory_space<vmem>>, vector<1x64x64xf32>
    %238 = vector.shape_cast %237 : vector<1x64x64xf32> to vector<64x64xf32>
    %c18 = arith.constant 18 : index
    %c0_144 = arith.constant 0 : index
    %c0_145 = arith.constant 0 : index
    %239 = vector.load %arg2[%c18, %c0_144, %c0_145] : memref<36x64x64xf32, #tpu.memory_space<vmem>>, vector<1x64x64xf32>
    %240 = vector.shape_cast %239 : vector<1x64x64xf32> to vector<64x64xf32>
    %c19 = arith.constant 19 : index
    %c0_146 = arith.constant 0 : index
    %c0_147 = arith.constant 0 : index
    %241 = vector.load %arg2[%c19, %c0_146, %c0_147] : memref<36x64x64xf32, #tpu.memory_space<vmem>>, vector<1x64x64xf32>
    %242 = vector.shape_cast %241 : vector<1x64x64xf32> to vector<64x64xf32>
    %c20 = arith.constant 20 : index
    %c0_148 = arith.constant 0 : index
    %c0_149 = arith.constant 0 : index
    %243 = vector.load %arg2[%c20, %c0_148, %c0_149] : memref<36x64x64xf32, #tpu.memory_space<vmem>>, vector<1x64x64xf32>
    %244 = vector.shape_cast %243 : vector<1x64x64xf32> to vector<64x64xf32>
    %c9_150 = arith.constant 9 : index
    %c0_151 = arith.constant 0 : index
    %245 = vector.load %arg3[%c9_150, %c0_151] : memref<35x64xf32, #tpu.memory_space<vmem>>, vector<6x64xf32>
    %cst_152 = arith.constant 0.000000e+00 : f32
    %246 = vector.broadcast %cst_152 : f32 to vector<2x64xf32>
    %c0_153 = arith.constant 0 : index
    %c0_154 = arith.constant 0 : index
    %247 = vector.load %arg10[%c0_153, %c0_154] : memref<132x64xf32, #tpu.memory_space<vmem>>, vector<2x64xf32>
    tpu.vector_store %arg10[%c0_153, %c0_154], %246 {strides = array<i32>} : memref<132x64xf32, #tpu.memory_space<vmem>>, vector<2x64xf32>,
    %c2_155 = arith.constant 2 : index
    %c0_156 = arith.constant 0 : index
    %248 = vector.load %arg10[%c2_155, %c0_156] : memref<132x64xf32, #tpu.memory_space<vmem>>, vector<6x64xf32>
    tpu.vector_store %arg10[%c2_155, %c0_156], %110 {strides = array<i32>} : memref<132x64xf32, #tpu.memory_space<vmem>>, vector<6x64xf32>,
    %cst_157 = arith.constant 0.000000e+00 : f32
    %249 = vector.broadcast %cst_157 : f32 to vector<2x64xf32>
    %c8_158 = arith.constant 8 : index
    %c0_159 = arith.constant 0 : index
    %250 = vector.load %arg10[%c8_158, %c0_159] : memref<132x64xf32, #tpu.memory_space<vmem>>, vector<2x64xf32>
    tpu.vector_store %arg10[%c8_158, %c0_159], %249 {strides = array<i32>} : memref<132x64xf32, #tpu.memory_space<vmem>>, vector<2x64xf32>,
    %c0_160 = arith.constant 0 : index
    %c0_161 = arith.constant 0 : index
    %251 = vector.load %arg10[%c0_160, %c0_161] : memref<132x64xf32, #tpu.memory_space<vmem>>, vector<10x64xf32>
    %252 = vector.extract_strided_slice %251 {offsets = [0, 0], sizes = [8, 64], strides = [1, 1]} : vector<10x64xf32> to vector<8x64xf32>
    %cst_162 = arith.constant dense<0.000000e+00> : vector<8x64xf32>
    %253 = tpu.matmul %252, %234, %cst_162 {dimension_numbers = #tpu.dot_dimension_numbers<[1], [0], [0], [1], [0, 0, 1, 1], [], []>} : vector<8x64xf32>, vector<64x64xf32>, vector<8x64xf32> -> vector<8x64xf32>
    %254 = vector.extract_strided_slice %251 {offsets = [1, 0], sizes = [8, 64], strides = [1, 1]} : vector<10x64xf32> to vector<8x64xf32>
    %cst_163 = arith.constant dense<0.000000e+00> : vector<8x64xf32>
    %255 = tpu.matmul %254, %236, %cst_163 {dimension_numbers = #tpu.dot_dimension_numbers<[1], [0], [0], [1], [0, 0, 1, 1], [], []>} : vector<8x64xf32>, vector<64x64xf32>, vector<8x64xf32> -> vector<8x64xf32>
    %256 = arith.addf %253, %255 : vector<8x64xf32>
    %257 = vector.extract_strided_slice %251 {offsets = [2, 0], sizes = [8, 64], strides = [1, 1]} : vector<10x64xf32> to vector<8x64xf32>
    %cst_164 = arith.constant dense<0.000000e+00> : vector<8x64xf32>
    %258 = tpu.matmul %257, %238, %cst_164 {dimension_numbers = #tpu.dot_dimension_numbers<[1], [0], [0], [1], [0, 0, 1, 1], [], []>} : vector<8x64xf32>, vector<64x64xf32>, vector<8x64xf32> -> vector<8x64xf32>
    %259 = arith.addf %256, %258 : vector<8x64xf32>
    %260 = vector.extract_strided_slice %245 {offsets = [0, 0], sizes = [1, 64], strides = [1, 1]} : vector<6x64xf32> to vector<1x64xf32>
    %261 = vector.broadcast %260 : vector<1x64xf32> to vector<8x64xf32>
    %262 = arith.addf %259, %261 : vector<8x64xf32>
    %cst_165 = arith.constant 0.000000e+00 : f32
    %263 = vector.broadcast %cst_165 : f32 to vector<8x64xf32>
    %264 = arith.maximumf %262, %263 : vector<8x64xf32>
    %265 = vector.extract_strided_slice %245 {offsets = [1, 0], sizes = [1, 64], strides = [1, 1]} : vector<6x64xf32> to vector<1x64xf32>
    %266 = vector.broadcast %265 : vector<1x64xf32> to vector<8x64xf32>
    %267 = arith.mulf %264, %266 : vector<8x64xf32>
    %268 = vector.extract_strided_slice %245 {offsets = [2, 0], sizes = [1, 64], strides = [1, 1]} : vector<6x64xf32> to vector<1x64xf32>
    %269 = vector.broadcast %268 : vector<1x64xf32> to vector<8x64xf32>
    %270 = arith.addf %267, %269 : vector<8x64xf32>
    %271 = tpu.iota {dimensions = array<i32: 0>} : vector<8x64xi32>
    %c1_i32_166 = arith.constant 1 : i32
    %272 = vector.broadcast %c1_i32_166 : i32 to vector<8x64xi32>
    %273 = arith.cmpi sge, %271, %272 : vector<8x64xi32>
    %c6_i32 = arith.constant 6 : i32
    %274 = vector.broadcast %c6_i32 : i32 to vector<8x64xi32>
    %275 = arith.cmpi sle, %271, %274 : vector<8x64xi32>
    %276 = arith.andi %273, %275 : vector<8x64xi1>
    %cst_167 = arith.constant 0.000000e+00 : f32
    %277 = vector.broadcast %cst_167 : f32 to vector<8x64xf32>
    %278 = arith.select %276, %270, %277 : vector<8x64xi1>, vector<8x64xf32>
    %279 = vector.extract_strided_slice %278 {offsets = [0, 0], sizes = [6, 64], strides = [1, 1]} : vector<8x64xf32> to vector<6x64xf32>
    %cst_168 = arith.constant dense<0.000000e+00> : vector<6x64xf32>
    %280 = tpu.matmul %279, %240, %cst_168 {dimension_numbers = #tpu.dot_dimension_numbers<[1], [0], [0], [1], [0, 0, 1, 1], [], []>} : vector<6x64xf32>, vector<64x64xf32>, vector<6x64xf32> -> vector<6x64xf32>
    %281 = vector.extract_strided_slice %278 {offsets = [1, 0], sizes = [6, 64], strides = [1, 1]} : vector<8x64xf32> to vector<6x64xf32>
    %cst_169 = arith.constant dense<0.000000e+00> : vector<6x64xf32>
    %282 = tpu.matmul %281, %242, %cst_169 {dimension_numbers = #tpu.dot_dimension_numbers<[1], [0], [0], [1], [0, 0, 1, 1], [], []>} : vector<6x64xf32>, vector<64x64xf32>, vector<6x64xf32> -> vector<6x64xf32>
    %283 = arith.addf %280, %282 : vector<6x64xf32>
    %284 = vector.extract_strided_slice %278 {offsets = [2, 0], sizes = [6, 64], strides = [1, 1]} : vector<8x64xf32> to vector<6x64xf32>
    %cst_170 = arith.constant dense<0.000000e+00> : vector<6x64xf32>
    %285 = tpu.matmul %284, %244, %cst_170 {dimension_numbers = #tpu.dot_dimension_numbers<[1], [0], [0], [1], [0, 0, 1, 1], [], []>} : vector<6x64xf32>, vector<64x64xf32>, vector<6x64xf32> -> vector<6x64xf32>
    %286 = arith.addf %283, %285 : vector<6x64xf32>
    %287 = vector.extract_strided_slice %245 {offsets = [3, 0], sizes = [1, 64], strides = [1, 1]} : vector<6x64xf32> to vector<1x64xf32>
    %288 = vector.broadcast %287 : vector<1x64xf32> to vector<6x64xf32>
    %289 = arith.addf %286, %288 : vector<6x64xf32>
    %290 = vector.extract_strided_slice %245 {offsets = [4, 0], sizes = [1, 64], strides = [1, 1]} : vector<6x64xf32> to vector<1x64xf32>
    %291 = vector.broadcast %290 : vector<1x64xf32> to vector<6x64xf32>
    %292 = arith.mulf %289, %291 : vector<6x64xf32>
    %293 = vector.extract_strided_slice %245 {offsets = [5, 0], sizes = [1, 64], strides = [1, 1]} : vector<6x64xf32> to vector<1x64xf32>
    %294 = vector.broadcast %293 : vector<1x64xf32> to vector<6x64xf32>
    %295 = arith.addf %292, %294 : vector<6x64xf32>
    %296 = arith.addf %110, %295 : vector<6x64xf32>
    %cst_171 = arith.constant dense<0.000000e+00> : vector<6x64xf32>
    %297 = tpu.matmul %0, %232, %cst_171 {dimension_numbers = #tpu.dot_dimension_numbers<[1], [0], [0], [1], [0, 0, 1, 1], [], []>} : vector<6x2xf32>, vector<2x64xf32>, vector<6x64xf32> -> vector<6x64xf32>
    %298 = arith.addf %297, %296 : vector<6x64xf32>
    %c30 = arith.constant 30 : index
    %c0_172 = arith.constant 0 : index
    %c0_173 = arith.constant 0 : index
    %299 = vector.load %arg2[%c30, %c0_172, %c0_173] : memref<36x64x64xf32, #tpu.memory_space<vmem>>, vector<1x64x64xf32>
    %300 = vector.shape_cast %299 : vector<1x64x64xf32> to vector<64x64xf32>
    %c31 = arith.constant 31 : index
    %c0_174 = arith.constant 0 : index
    %c0_175 = arith.constant 0 : index
    %301 = vector.load %arg2[%c31, %c0_174, %c0_175] : memref<36x64x64xf32, #tpu.memory_space<vmem>>, vector<1x64x64xf32>
    %302 = vector.shape_cast %301 : vector<1x64x64xf32> to vector<64x64xf32>
    %c32 = arith.constant 32 : index
    %c0_176 = arith.constant 0 : index
    %c0_177 = arith.constant 0 : index
    %303 = vector.load %arg2[%c32, %c0_176, %c0_177] : memref<36x64x64xf32, #tpu.memory_space<vmem>>, vector<1x64x64xf32>
    %304 = vector.shape_cast %303 : vector<1x64x64xf32> to vector<64x64xf32>
    %c29_178 = arith.constant 29 : index
    %c0_179 = arith.constant 0 : index
    %305 = vector.load %arg3[%c29_178, %c0_179] : memref<35x64xf32, #tpu.memory_space<vmem>>, vector<2x64xf32>
    %306 = vector.extract_strided_slice %305 {offsets = [0, 0], sizes = [1, 64], strides = [1, 1]} : vector<2x64xf32> to vector<1x64xf32>
    %307 = vector.broadcast %306 : vector<1x64xf32> to vector<6x64xf32>
    %308 = arith.mulf %298, %307 : vector<6x64xf32>
    %309 = vector.extract_strided_slice %305 {offsets = [1, 0], sizes = [1, 64], strides = [1, 1]} : vector<2x64xf32> to vector<1x64xf32>
    %310 = vector.broadcast %309 : vector<1x64xf32> to vector<6x64xf32>
    %311 = arith.addf %308, %310 : vector<6x64xf32>
    %cst_180 = arith.constant 0.000000e+00 : f32
    %312 = vector.broadcast %cst_180 : f32 to vector<6x64xf32>
    %313 = arith.maximumf %311, %312 : vector<6x64xf32>
    %cst_181 = arith.constant 0.000000e+00 : f32
    %314 = vector.broadcast %cst_181 : f32 to vector<1x64xf32>
    %c0_182 = arith.constant 0 : index
    %c0_183 = arith.constant 0 : index
    %315 = vector.load %arg11[%c0_182, %c0_183] : memref<130x64xf32, #tpu.memory_space<vmem>>, vector<1x64xf32>
    tpu.vector_store %arg11[%c0_182, %c0_183], %314 {strides = array<i32>} : memref<130x64xf32, #tpu.memory_space<vmem>>, vector<1x64xf32>,
    %c1_184 = arith.constant 1 : index
    %c0_185 = arith.constant 0 : index
    %316 = vector.load %arg11[%c1_184, %c0_185] : memref<130x64xf32, #tpu.memory_space<vmem>>, vector<6x64xf32>
    tpu.vector_store %arg11[%c1_184, %c0_185], %313 {strides = array<i32>} : memref<130x64xf32, #tpu.memory_space<vmem>>, vector<6x64xf32>,
    %cst_186 = arith.constant 0.000000e+00 : f32
    %317 = vector.broadcast %cst_186 : f32 to vector<1x64xf32>
    %c7_187 = arith.constant 7 : index
    %c0_188 = arith.constant 0 : index
    %318 = vector.load %arg11[%c7_187, %c0_188] : memref<130x64xf32, #tpu.memory_space<vmem>>, vector<1x64xf32>
    tpu.vector_store %arg11[%c7_187, %c0_188], %317 {strides = array<i32>} : memref<130x64xf32, #tpu.memory_space<vmem>>, vector<1x64xf32>,
    %c0_189 = arith.constant 0 : index
    %c0_190 = arith.constant 0 : index
    %319 = vector.load %arg11[%c0_189, %c0_190] : memref<130x64xf32, #tpu.memory_space<vmem>>, vector<8x64xf32>
    %320 = vector.extract_strided_slice %319 {offsets = [0, 0], sizes = [6, 64], strides = [1, 1]} : vector<8x64xf32> to vector<6x64xf32>
    %cst_191 = arith.constant dense<0.000000e+00> : vector<6x64xf32>
    %321 = tpu.matmul %320, %300, %cst_191 {dimension_numbers = #tpu.dot_dimension_numbers<[1], [0], [0], [1], [0, 0, 1, 1], [], []>} : vector<6x64xf32>, vector<64x64xf32>, vector<6x64xf32> -> vector<6x64xf32>
    %322 = vector.extract_strided_slice %319 {offsets = [1, 0], sizes = [6, 64], strides = [1, 1]} : vector<8x64xf32> to vector<6x64xf32>
    %cst_192 = arith.constant dense<0.000000e+00> : vector<6x64xf32>
    %323 = tpu.matmul %322, %302, %cst_192 {dimension_numbers = #tpu.dot_dimension_numbers<[1], [0], [0], [1], [0, 0, 1, 1], [], []>} : vector<6x64xf32>, vector<64x64xf32>, vector<6x64xf32> -> vector<6x64xf32>
    %324 = arith.addf %321, %323 : vector<6x64xf32>
    %325 = vector.extract_strided_slice %319 {offsets = [2, 0], sizes = [6, 64], strides = [1, 1]} : vector<8x64xf32> to vector<6x64xf32>
    %cst_193 = arith.constant dense<0.000000e+00> : vector<6x64xf32>
    %326 = tpu.matmul %325, %304, %cst_193 {dimension_numbers = #tpu.dot_dimension_numbers<[1], [0], [0], [1], [0, 0, 1, 1], [], []>} : vector<6x64xf32>, vector<64x64xf32>, vector<6x64xf32> -> vector<6x64xf32>
    %327 = arith.addf %324, %326 : vector<6x64xf32>
    %c21 = arith.constant 21 : index
    %c0_194 = arith.constant 0 : index
    %c0_195 = arith.constant 0 : index
    %328 = vector.load %arg2[%c21, %c0_194, %c0_195] : memref<36x64x64xf32, #tpu.memory_space<vmem>>, vector<1x64x64xf32>
    %329 = vector.shape_cast %328 : vector<1x64x64xf32> to vector<64x64xf32>
    %c22 = arith.constant 22 : index
    %c0_196 = arith.constant 0 : index
    %c0_197 = arith.constant 0 : index
    %330 = vector.load %arg2[%c22, %c0_196, %c0_197] : memref<36x64x64xf32, #tpu.memory_space<vmem>>, vector<1x64x64xf32>
    %331 = vector.shape_cast %330 : vector<1x64x64xf32> to vector<64x64xf32>
    %c23 = arith.constant 23 : index
    %c0_198 = arith.constant 0 : index
    %c0_199 = arith.constant 0 : index
    %332 = vector.load %arg2[%c23, %c0_198, %c0_199] : memref<36x64x64xf32, #tpu.memory_space<vmem>>, vector<1x64x64xf32>
    %333 = vector.shape_cast %332 : vector<1x64x64xf32> to vector<64x64xf32>
    %c24 = arith.constant 24 : index
    %c0_200 = arith.constant 0 : index
    %c0_201 = arith.constant 0 : index
    %334 = vector.load %arg2[%c24, %c0_200, %c0_201] : memref<36x64x64xf32, #tpu.memory_space<vmem>>, vector<1x64x64xf32>
    %335 = vector.shape_cast %334 : vector<1x64x64xf32> to vector<64x64xf32>
    %c25 = arith.constant 25 : index
    %c0_202 = arith.constant 0 : index
    %c0_203 = arith.constant 0 : index
    %336 = vector.load %arg2[%c25, %c0_202, %c0_203] : memref<36x64x64xf32, #tpu.memory_space<vmem>>, vector<1x64x64xf32>
    %337 = vector.shape_cast %336 : vector<1x64x64xf32> to vector<64x64xf32>
    %c26 = arith.constant 26 : index
    %c0_204 = arith.constant 0 : index
    %c0_205 = arith.constant 0 : index
    %338 = vector.load %arg2[%c26, %c0_204, %c0_205] : memref<36x64x64xf32, #tpu.memory_space<vmem>>, vector<1x64x64xf32>
    %339 = vector.shape_cast %338 : vector<1x64x64xf32> to vector<64x64xf32>
    %c15_206 = arith.constant 15 : index
    %c0_207 = arith.constant 0 : index
    %340 = vector.load %arg3[%c15_206, %c0_207] : memref<35x64xf32, #tpu.memory_space<vmem>>, vector<6x64xf32>
    %cst_208 = arith.constant 0.000000e+00 : f32
    %341 = vector.broadcast %cst_208 : f32 to vector<2x64xf32>
    %c0_209 = arith.constant 0 : index
    %c0_210 = arith.constant 0 : index
    %342 = vector.load %arg10[%c0_209, %c0_210] : memref<132x64xf32, #tpu.memory_space<vmem>>, vector<2x64xf32>
    tpu.vector_store %arg10[%c0_209, %c0_210], %341 {strides = array<i32>} : memref<132x64xf32, #tpu.memory_space<vmem>>, vector<2x64xf32>,
    %c2_211 = arith.constant 2 : index
    %c0_212 = arith.constant 0 : index
    %343 = vector.load %arg10[%c2_211, %c0_212] : memref<132x64xf32, #tpu.memory_space<vmem>>, vector<29x64xf32>
    tpu.vector_store %arg10[%c2_211, %c0_212], %73 {strides = array<i32>} : memref<132x64xf32, #tpu.memory_space<vmem>>, vector<29x64xf32>,
    %cst_213 = arith.constant 0.000000e+00 : f32
    %344 = vector.broadcast %cst_213 : f32 to vector<2x64xf32>
    %c31_214 = arith.constant 31 : index
    %c0_215 = arith.constant 0 : index
    %345 = vector.load %arg10[%c31_214, %c0_215] : memref<132x64xf32, #tpu.memory_space<vmem>>, vector<2x64xf32>
    tpu.vector_store %arg10[%c31_214, %c0_215], %344 {strides = array<i32>} : memref<132x64xf32, #tpu.memory_space<vmem>>, vector<2x64xf32>,
    %c0_216 = arith.constant 0 : index
    %c0_217 = arith.constant 0 : index
    %346 = vector.load %arg10[%c0_216, %c0_217] : memref<132x64xf32, #tpu.memory_space<vmem>>, vector<33x64xf32>
    %347 = vector.extract_strided_slice %346 {offsets = [0, 0], sizes = [31, 64], strides = [1, 1]} : vector<33x64xf32> to vector<31x64xf32>
    %cst_218 = arith.constant dense<0.000000e+00> : vector<31x64xf32>
    %348 = tpu.matmul %347, %329, %cst_218 {dimension_numbers = #tpu.dot_dimension_numbers<[1], [0], [0], [1], [0, 0, 1, 1], [], []>} : vector<31x64xf32>, vector<64x64xf32>, vector<31x64xf32> -> vector<31x64xf32>
    %349 = vector.extract_strided_slice %346 {offsets = [1, 0], sizes = [31, 64], strides = [1, 1]} : vector<33x64xf32> to vector<31x64xf32>
    %cst_219 = arith.constant dense<0.000000e+00> : vector<31x64xf32>
    %350 = tpu.matmul %349, %331, %cst_219 {dimension_numbers = #tpu.dot_dimension_numbers<[1], [0], [0], [1], [0, 0, 1, 1], [], []>} : vector<31x64xf32>, vector<64x64xf32>, vector<31x64xf32> -> vector<31x64xf32>
    %351 = arith.addf %348, %350 : vector<31x64xf32>
    %352 = vector.extract_strided_slice %346 {offsets = [2, 0], sizes = [31, 64], strides = [1, 1]} : vector<33x64xf32> to vector<31x64xf32>
    %cst_220 = arith.constant dense<0.000000e+00> : vector<31x64xf32>
    %353 = tpu.matmul %352, %333, %cst_220 {dimension_numbers = #tpu.dot_dimension_numbers<[1], [0], [0], [1], [0, 0, 1, 1], [], []>} : vector<31x64xf32>, vector<64x64xf32>, vector<31x64xf32> -> vector<31x64xf32>
    %354 = arith.addf %351, %353 : vector<31x64xf32>
    %355 = vector.extract_strided_slice %340 {offsets = [0, 0], sizes = [1, 64], strides = [1, 1]} : vector<6x64xf32> to vector<1x64xf32>
    %356 = vector.broadcast %355 : vector<1x64xf32> to vector<31x64xf32>
    %357 = arith.addf %354, %356 : vector<31x64xf32>
    %cst_221 = arith.constant 0.000000e+00 : f32
    %358 = vector.broadcast %cst_221 : f32 to vector<31x64xf32>
    %359 = arith.maximumf %357, %358 : vector<31x64xf32>
    %360 = vector.extract_strided_slice %340 {offsets = [1, 0], sizes = [1, 64], strides = [1, 1]} : vector<6x64xf32> to vector<1x64xf32>
    %361 = vector.broadcast %360 : vector<1x64xf32> to vector<31x64xf32>
    %362 = arith.mulf %359, %361 : vector<31x64xf32>
    %363 = vector.extract_strided_slice %340 {offsets = [2, 0], sizes = [1, 64], strides = [1, 1]} : vector<6x64xf32> to vector<1x64xf32>
    %364 = vector.broadcast %363 : vector<1x64xf32> to vector<31x64xf32>
    %365 = arith.addf %362, %364 : vector<31x64xf32>
    %366 = tpu.iota {dimensions = array<i32: 0>} : vector<31x64xi32>
    %c1_i32_222 = arith.constant 1 : i32
    %367 = vector.broadcast %c1_i32_222 : i32 to vector<31x64xi32>
    %368 = arith.cmpi sge, %366, %367 : vector<31x64xi32>
    %c29_i32 = arith.constant 29 : i32
    %369 = vector.broadcast %c29_i32 : i32 to vector<31x64xi32>
    %370 = arith.cmpi sle, %366, %369 : vector<31x64xi32>
    %371 = arith.andi %368, %370 : vector<31x64xi1>
    %cst_223 = arith.constant 0.000000e+00 : f32
    %372 = vector.broadcast %cst_223 : f32 to vector<31x64xf32>
    %373 = arith.select %371, %365, %372 : vector<31x64xi1>, vector<31x64xf32>
    %374 = vector.extract_strided_slice %373 {offsets = [0, 0], sizes = [29, 64], strides = [1, 1]} : vector<31x64xf32> to vector<29x64xf32>
    %cst_224 = arith.constant dense<0.000000e+00> : vector<29x64xf32>
    %375 = tpu.matmul %374, %335, %cst_224 {dimension_numbers = #tpu.dot_dimension_numbers<[1], [0], [0], [1], [0, 0, 1, 1], [], []>} : vector<29x64xf32>, vector<64x64xf32>, vector<29x64xf32> -> vector<29x64xf32>
    %376 = vector.extract_strided_slice %373 {offsets = [1, 0], sizes = [29, 64], strides = [1, 1]} : vector<31x64xf32> to vector<29x64xf32>
    %cst_225 = arith.constant dense<0.000000e+00> : vector<29x64xf32>
    %377 = tpu.matmul %376, %337, %cst_225 {dimension_numbers = #tpu.dot_dimension_numbers<[1], [0], [0], [1], [0, 0, 1, 1], [], []>} : vector<29x64xf32>, vector<64x64xf32>, vector<29x64xf32> -> vector<29x64xf32>
    %378 = arith.addf %375, %377 : vector<29x64xf32>
    %379 = vector.extract_strided_slice %373 {offsets = [2, 0], sizes = [29, 64], strides = [1, 1]} : vector<31x64xf32> to vector<29x64xf32>
    %cst_226 = arith.constant dense<0.000000e+00> : vector<29x64xf32>
    %380 = tpu.matmul %379, %339, %cst_226 {dimension_numbers = #tpu.dot_dimension_numbers<[1], [0], [0], [1], [0, 0, 1, 1], [], []>} : vector<29x64xf32>, vector<64x64xf32>, vector<29x64xf32> -> vector<29x64xf32>
    %381 = arith.addf %378, %380 : vector<29x64xf32>
    %382 = vector.extract_strided_slice %340 {offsets = [3, 0], sizes = [1, 64], strides = [1, 1]} : vector<6x64xf32> to vector<1x64xf32>
    %383 = vector.broadcast %382 : vector<1x64xf32> to vector<29x64xf32>
    %384 = arith.addf %381, %383 : vector<29x64xf32>
    %385 = vector.extract_strided_slice %340 {offsets = [4, 0], sizes = [1, 64], strides = [1, 1]} : vector<6x64xf32> to vector<1x64xf32>
    %386 = vector.broadcast %385 : vector<1x64xf32> to vector<29x64xf32>
    %387 = arith.mulf %384, %386 : vector<29x64xf32>
    %388 = vector.extract_strided_slice %340 {offsets = [5, 0], sizes = [1, 64], strides = [1, 1]} : vector<6x64xf32> to vector<1x64xf32>
    %389 = vector.broadcast %388 : vector<1x64xf32> to vector<29x64xf32>
    %390 = arith.addf %387, %389 : vector<29x64xf32>
    %391 = arith.addf %73, %390 : vector<29x64xf32>
    %cst_227 = arith.constant dense<0.000000e+00> : vector<29x64xf32>
    %392 = tpu.matmul %1, %327, %cst_227 {dimension_numbers = #tpu.dot_dimension_numbers<[1], [0], [0], [1], [0, 0, 1, 1], [], []>} : vector<29x6xf32>, vector<6x64xf32>, vector<29x64xf32> -> vector<29x64xf32>
    %393 = arith.addf %392, %391 : vector<29x64xf32>
    %c33 = arith.constant 33 : index
    %c0_228 = arith.constant 0 : index
    %c0_229 = arith.constant 0 : index
    %394 = vector.load %arg2[%c33, %c0_228, %c0_229] : memref<36x64x64xf32, #tpu.memory_space<vmem>>, vector<1x64x64xf32>
    %395 = vector.shape_cast %394 : vector<1x64x64xf32> to vector<64x64xf32>
    %c34 = arith.constant 34 : index
    %c0_230 = arith.constant 0 : index
    %c0_231 = arith.constant 0 : index
    %396 = vector.load %arg2[%c34, %c0_230, %c0_231] : memref<36x64x64xf32, #tpu.memory_space<vmem>>, vector<1x64x64xf32>
    %397 = vector.shape_cast %396 : vector<1x64x64xf32> to vector<64x64xf32>
    %c35 = arith.constant 35 : index
    %c0_232 = arith.constant 0 : index
    %c0_233 = arith.constant 0 : index
    %398 = vector.load %arg2[%c35, %c0_232, %c0_233] : memref<36x64x64xf32, #tpu.memory_space<vmem>>, vector<1x64x64xf32>
    %399 = vector.shape_cast %398 : vector<1x64x64xf32> to vector<64x64xf32>
    %c31_234 = arith.constant 31 : index
    %c0_235 = arith.constant 0 : index
    %400 = vector.load %arg3[%c31_234, %c0_235] : memref<35x64xf32, #tpu.memory_space<vmem>>, vector<2x64xf32>
    %401 = vector.extract_strided_slice %400 {offsets = [0, 0], sizes = [1, 64], strides = [1, 1]} : vector<2x64xf32> to vector<1x64xf32>
    %402 = vector.broadcast %401 : vector<1x64xf32> to vector<29x64xf32>
    %403 = arith.mulf %393, %402 : vector<29x64xf32>
    %404 = vector.extract_strided_slice %400 {offsets = [1, 0], sizes = [1, 64], strides = [1, 1]} : vector<2x64xf32> to vector<1x64xf32>
    %405 = vector.broadcast %404 : vector<1x64xf32> to vector<29x64xf32>
    %406 = arith.addf %403, %405 : vector<29x64xf32>
    %cst_236 = arith.constant 0.000000e+00 : f32
    %407 = vector.broadcast %cst_236 : f32 to vector<29x64xf32>
    %408 = arith.maximumf %406, %407 : vector<29x64xf32>
    %cst_237 = arith.constant 0.000000e+00 : f32
    %409 = vector.broadcast %cst_237 : f32 to vector<1x64xf32>
    %c0_238 = arith.constant 0 : index
    %c0_239 = arith.constant 0 : index
    %410 = vector.load %arg11[%c0_238, %c0_239] : memref<130x64xf32, #tpu.memory_space<vmem>>, vector<1x64xf32>
    tpu.vector_store %arg11[%c0_238, %c0_239], %409 {strides = array<i32>} : memref<130x64xf32, #tpu.memory_space<vmem>>, vector<1x64xf32>,
    %c1_240 = arith.constant 1 : index
    %c0_241 = arith.constant 0 : index
    %411 = vector.load %arg11[%c1_240, %c0_241] : memref<130x64xf32, #tpu.memory_space<vmem>>, vector<29x64xf32>
    tpu.vector_store %arg11[%c1_240, %c0_241], %408 {strides = array<i32>} : memref<130x64xf32, #tpu.memory_space<vmem>>, vector<29x64xf32>,
    %cst_242 = arith.constant 0.000000e+00 : f32
    %412 = vector.broadcast %cst_242 : f32 to vector<1x64xf32>
    %c30_243 = arith.constant 30 : index
    %c0_244 = arith.constant 0 : index
    %413 = vector.load %arg11[%c30_243, %c0_244] : memref<130x64xf32, #tpu.memory_space<vmem>>, vector<1x64xf32>
    tpu.vector_store %arg11[%c30_243, %c0_244], %412 {strides = array<i32>} : memref<130x64xf32, #tpu.memory_space<vmem>>, vector<1x64xf32>,
    %c0_245 = arith.constant 0 : index
    %c0_246 = arith.constant 0 : index
    %414 = vector.load %arg11[%c0_245, %c0_246] : memref<130x64xf32, #tpu.memory_space<vmem>>, vector<31x64xf32>
    %415 = vector.extract_strided_slice %414 {offsets = [0, 0], sizes = [29, 64], strides = [1, 1]} : vector<31x64xf32> to vector<29x64xf32>
    %cst_247 = arith.constant dense<0.000000e+00> : vector<29x64xf32>
    %416 = tpu.matmul %415, %395, %cst_247 {dimension_numbers = #tpu.dot_dimension_numbers<[1], [0], [0], [1], [0, 0, 1, 1], [], []>} : vector<29x64xf32>, vector<64x64xf32>, vector<29x64xf32> -> vector<29x64xf32>
    %417 = vector.extract_strided_slice %414 {offsets = [1, 0], sizes = [29, 64], strides = [1, 1]} : vector<31x64xf32> to vector<29x64xf32>
    %cst_248 = arith.constant dense<0.000000e+00> : vector<29x64xf32>
    %418 = tpu.matmul %417, %397, %cst_248 {dimension_numbers = #tpu.dot_dimension_numbers<[1], [0], [0], [1], [0, 0, 1, 1], [], []>} : vector<29x64xf32>, vector<64x64xf32>, vector<29x64xf32> -> vector<29x64xf32>
    %419 = arith.addf %416, %418 : vector<29x64xf32>
    %420 = vector.extract_strided_slice %414 {offsets = [2, 0], sizes = [29, 64], strides = [1, 1]} : vector<31x64xf32> to vector<29x64xf32>
    %cst_249 = arith.constant dense<0.000000e+00> : vector<29x64xf32>
    %421 = tpu.matmul %420, %399, %cst_249 {dimension_numbers = #tpu.dot_dimension_numbers<[1], [0], [0], [1], [0, 0, 1, 1], [], []>} : vector<29x64xf32>, vector<64x64xf32>, vector<29x64xf32> -> vector<29x64xf32>
    %422 = arith.addf %419, %421 : vector<29x64xf32>
    %423 = vector.extract_strided_slice %422 {offsets = [0, 0], sizes = [29, 4], strides = [1, 1]} : vector<29x64xf32> to vector<29x4xf32>
    %c0_250 = arith.constant 0 : index
    %c0_251 = arith.constant 0 : index
    %c0_252 = arith.constant 0 : index
    %424 = vector.load %arg4[%c0_250, %c0_251, %c0_252] : memref<9x4x4xf32, #tpu.memory_space<vmem>>, vector<1x4x4xf32>
    %425 = vector.shape_cast %424 : vector<1x4x4xf32> to vector<4x4xf32>
    %c1_253 = arith.constant 1 : index
    %c0_254 = arith.constant 0 : index
    %c0_255 = arith.constant 0 : index
    %426 = vector.load %arg4[%c1_253, %c0_254, %c0_255] : memref<9x4x4xf32, #tpu.memory_space<vmem>>, vector<1x4x4xf32>
    %427 = vector.shape_cast %426 : vector<1x4x4xf32> to vector<4x4xf32>
    %c2_256 = arith.constant 2 : index
    %c0_257 = arith.constant 0 : index
    %c0_258 = arith.constant 0 : index
    %428 = vector.load %arg4[%c2_256, %c0_257, %c0_258] : memref<9x4x4xf32, #tpu.memory_space<vmem>>, vector<1x4x4xf32>
    %429 = vector.shape_cast %428 : vector<1x4x4xf32> to vector<4x4xf32>
    %c3_259 = arith.constant 3 : index
    %c0_260 = arith.constant 0 : index
    %c0_261 = arith.constant 0 : index
    %430 = vector.load %arg4[%c3_259, %c0_260, %c0_261] : memref<9x4x4xf32, #tpu.memory_space<vmem>>, vector<1x4x4xf32>
    %431 = vector.shape_cast %430 : vector<1x4x4xf32> to vector<4x4xf32>
    %c4_262 = arith.constant 4 : index
    %c0_263 = arith.constant 0 : index
    %c0_264 = arith.constant 0 : index
    %432 = vector.load %arg4[%c4_262, %c0_263, %c0_264] : memref<9x4x4xf32, #tpu.memory_space<vmem>>, vector<1x4x4xf32>
    %433 = vector.shape_cast %432 : vector<1x4x4xf32> to vector<4x4xf32>
    %c5_265 = arith.constant 5 : index
    %c0_266 = arith.constant 0 : index
    %c0_267 = arith.constant 0 : index
    %434 = vector.load %arg4[%c5_265, %c0_266, %c0_267] : memref<9x4x4xf32, #tpu.memory_space<vmem>>, vector<1x4x4xf32>
    %435 = vector.shape_cast %434 : vector<1x4x4xf32> to vector<4x4xf32>
    %c21_268 = arith.constant 21 : index
    %c0_269 = arith.constant 0 : index
    %436 = vector.load %arg3[%c21_268, %c0_269] : memref<35x64xf32, #tpu.memory_space<vmem>>, vector<6x4xf32>
    %cst_270 = arith.constant 0.000000e+00 : f32
    %437 = vector.broadcast %cst_270 : f32 to vector<2x4xf32>
    %c0_271 = arith.constant 0 : index
    %c0_272 = arith.constant 0 : index
    %438 = vector.load %arg10[%c0_271, %c0_272] : memref<132x64xf32, #tpu.memory_space<vmem>>, vector<2x4xf32>
    tpu.vector_store %arg10[%c0_271, %c0_272], %437 {strides = array<i32>} : memref<132x64xf32, #tpu.memory_space<vmem>>, vector<2x4xf32>,
    %c2_273 = arith.constant 2 : index
    %c0_274 = arith.constant 0 : index
    %439 = vector.load %arg10[%c2_273, %c0_274] : memref<132x64xf32, #tpu.memory_space<vmem>>, vector<128x4xf32>
    tpu.vector_store %arg10[%c2_273, %c0_274], %7 {strides = array<i32>} : memref<132x64xf32, #tpu.memory_space<vmem>>, vector<128x4xf32>,
    %cst_275 = arith.constant 0.000000e+00 : f32
    %440 = vector.broadcast %cst_275 : f32 to vector<2x4xf32>
    %c130 = arith.constant 130 : index
    %c0_276 = arith.constant 0 : index
    %441 = vector.load %arg10[%c130, %c0_276] : memref<132x64xf32, #tpu.memory_space<vmem>>, vector<2x4xf32>
    tpu.vector_store %arg10[%c130, %c0_276], %440 {strides = array<i32>} : memref<132x64xf32, #tpu.memory_space<vmem>>, vector<2x4xf32>,
    %c0_277 = arith.constant 0 : index
    %c0_278 = arith.constant 0 : index
    %442 = vector.load %arg10[%c0_277, %c0_278] : memref<132x64xf32, #tpu.memory_space<vmem>>, vector<132x4xf32>
    %443 = vector.extract_strided_slice %442 {offsets = [0, 0], sizes = [130, 4], strides = [1, 1]} : vector<132x4xf32> to vector<130x4xf32>
    %cst_279 = arith.constant dense<0.000000e+00> : vector<130x4xf32>
    %444 = tpu.matmul %443, %425, %cst_279 {dimension_numbers = #tpu.dot_dimension_numbers<[1], [0], [0], [1], [0, 0, 1, 1], [], []>} : vector<130x4xf32>, vector<4x4xf32>, vector<130x4xf32> -> vector<130x4xf32>
    %445 = vector.extract_strided_slice %442 {offsets = [1, 0], sizes = [130, 4], strides = [1, 1]} : vector<132x4xf32> to vector<130x4xf32>
    %cst_280 = arith.constant dense<0.000000e+00> : vector<130x4xf32>
    %446 = tpu.matmul %445, %427, %cst_280 {dimension_numbers = #tpu.dot_dimension_numbers<[1], [0], [0], [1], [0, 0, 1, 1], [], []>} : vector<130x4xf32>, vector<4x4xf32>, vector<130x4xf32> -> vector<130x4xf32>
    %447 = arith.addf %444, %446 : vector<130x4xf32>
    %448 = vector.extract_strided_slice %442 {offsets = [2, 0], sizes = [130, 4], strides = [1, 1]} : vector<132x4xf32> to vector<130x4xf32>
    %cst_281 = arith.constant dense<0.000000e+00> : vector<130x4xf32>
    %449 = tpu.matmul %448, %429, %cst_281 {dimension_numbers = #tpu.dot_dimension_numbers<[1], [0], [0], [1], [0, 0, 1, 1], [], []>} : vector<130x4xf32>, vector<4x4xf32>, vector<130x4xf32> -> vector<130x4xf32>
    %450 = arith.addf %447, %449 : vector<130x4xf32>
    %451 = vector.extract_strided_slice %436 {offsets = [0, 0], sizes = [1, 4], strides = [1, 1]} : vector<6x4xf32> to vector<1x4xf32>
    %452 = vector.broadcast %451 : vector<1x4xf32> to vector<130x4xf32>
    %453 = arith.addf %450, %452 : vector<130x4xf32>
    %cst_282 = arith.constant 0.000000e+00 : f32
    %454 = vector.broadcast %cst_282 : f32 to vector<130x4xf32>
    %455 = arith.maximumf %453, %454 : vector<130x4xf32>
    %456 = vector.extract_strided_slice %436 {offsets = [1, 0], sizes = [1, 4], strides = [1, 1]} : vector<6x4xf32> to vector<1x4xf32>
    %457 = vector.broadcast %456 : vector<1x4xf32> to vector<130x4xf32>
    %458 = arith.mulf %455, %457 : vector<130x4xf32>
    %459 = vector.extract_strided_slice %436 {offsets = [2, 0], sizes = [1, 4], strides = [1, 1]} : vector<6x4xf32> to vector<1x4xf32>
    %460 = vector.broadcast %459 : vector<1x4xf32> to vector<130x4xf32>
    %461 = arith.addf %458, %460 : vector<130x4xf32>
    %462 = tpu.iota {dimensions = array<i32: 0>} : vector<130x4xi32>
    %c1_i32_283 = arith.constant 1 : i32
    %463 = vector.broadcast %c1_i32_283 : i32 to vector<130x4xi32>
    %464 = arith.cmpi sge, %462, %463 : vector<130x4xi32>
    %c128_i32 = arith.constant 128 : i32
    %465 = vector.broadcast %c128_i32 : i32 to vector<130x4xi32>
    %466 = arith.cmpi sle, %462, %465 : vector<130x4xi32>
    %467 = arith.andi %464, %466 : vector<130x4xi1>
    %cst_284 = arith.constant 0.000000e+00 : f32
    %468 = vector.broadcast %cst_284 : f32 to vector<130x4xf32>
    %469 = arith.select %467, %461, %468 : vector<130x4xi1>, vector<130x4xf32>
    %470 = vector.extract_strided_slice %469 {offsets = [0, 0], sizes = [128, 4], strides = [1, 1]} : vector<130x4xf32> to vector<128x4xf32>
    %cst_285 = arith.constant dense<0.000000e+00> : vector<128x4xf32>
    %471 = tpu.matmul %470, %431, %cst_285 {dimension_numbers = #tpu.dot_dimension_numbers<[1], [0], [0], [1], [0, 0, 1, 1], [], []>} : vector<128x4xf32>, vector<4x4xf32>, vector<128x4xf32> -> vector<128x4xf32>
    %472 = vector.extract_strided_slice %469 {offsets = [1, 0], sizes = [128, 4], strides = [1, 1]} : vector<130x4xf32> to vector<128x4xf32>
    %cst_286 = arith.constant dense<0.000000e+00> : vector<128x4xf32>
    %473 = tpu.matmul %472, %433, %cst_286 {dimension_numbers = #tpu.dot_dimension_numbers<[1], [0], [0], [1], [0, 0, 1, 1], [], []>} : vector<128x4xf32>, vector<4x4xf32>, vector<128x4xf32> -> vector<128x4xf32>
    %474 = arith.addf %471, %473 : vector<128x4xf32>
    %475 = vector.extract_strided_slice %469 {offsets = [2, 0], sizes = [128, 4], strides = [1, 1]} : vector<130x4xf32> to vector<128x4xf32>
    %cst_287 = arith.constant dense<0.000000e+00> : vector<128x4xf32>
    %476 = tpu.matmul %475, %435, %cst_287 {dimension_numbers = #tpu.dot_dimension_numbers<[1], [0], [0], [1], [0, 0, 1, 1], [], []>} : vector<128x4xf32>, vector<4x4xf32>, vector<128x4xf32> -> vector<128x4xf32>
    %477 = arith.addf %474, %476 : vector<128x4xf32>
    %478 = vector.extract_strided_slice %436 {offsets = [3, 0], sizes = [1, 4], strides = [1, 1]} : vector<6x4xf32> to vector<1x4xf32>
    %479 = vector.broadcast %478 : vector<1x4xf32> to vector<128x4xf32>
    %480 = arith.addf %477, %479 : vector<128x4xf32>
    %481 = vector.extract_strided_slice %436 {offsets = [4, 0], sizes = [1, 4], strides = [1, 1]} : vector<6x4xf32> to vector<1x4xf32>
    %482 = vector.broadcast %481 : vector<1x4xf32> to vector<128x4xf32>
    %483 = arith.mulf %480, %482 : vector<128x4xf32>
    %484 = vector.extract_strided_slice %436 {offsets = [5, 0], sizes = [1, 4], strides = [1, 1]} : vector<6x4xf32> to vector<1x4xf32>
    %485 = vector.broadcast %484 : vector<1x4xf32> to vector<128x4xf32>
    %486 = arith.addf %483, %485 : vector<128x4xf32>
    %487 = arith.addf %7, %486 : vector<128x4xf32>
    %cst_288 = arith.constant dense<0.000000e+00> : vector<128x4xf32>
    %488 = tpu.matmul %2, %423, %cst_288 {dimension_numbers = #tpu.dot_dimension_numbers<[1], [0], [0], [1], [0, 0, 1, 1], [], []>} : vector<128x29xf32>, vector<29x4xf32>, vector<128x4xf32> -> vector<128x4xf32>
    %489 = arith.addf %488, %487 : vector<128x4xf32>
    %c6_289 = arith.constant 6 : index
    %c0_290 = arith.constant 0 : index
    %c0_291 = arith.constant 0 : index
    %490 = vector.load %arg4[%c6_289, %c0_290, %c0_291] : memref<9x4x4xf32, #tpu.memory_space<vmem>>, vector<1x4x1xf32>
    %491 = vector.shape_cast %490 : vector<1x4x1xf32> to vector<4x1xf32>
    %c7_292 = arith.constant 7 : index
    %c0_293 = arith.constant 0 : index
    %c0_294 = arith.constant 0 : index
    %492 = vector.load %arg4[%c7_292, %c0_293, %c0_294] : memref<9x4x4xf32, #tpu.memory_space<vmem>>, vector<1x4x1xf32>
    %493 = vector.shape_cast %492 : vector<1x4x1xf32> to vector<4x1xf32>
    %c8_295 = arith.constant 8 : index
    %c0_296 = arith.constant 0 : index
    %c0_297 = arith.constant 0 : index
    %494 = vector.load %arg4[%c8_295, %c0_296, %c0_297] : memref<9x4x4xf32, #tpu.memory_space<vmem>>, vector<1x4x1xf32>
    %495 = vector.shape_cast %494 : vector<1x4x1xf32> to vector<4x1xf32>
    %c33_298 = arith.constant 33 : index
    %c0_299 = arith.constant 0 : index
    %496 = vector.load %arg3[%c33_298, %c0_299] : memref<35x64xf32, #tpu.memory_space<vmem>>, vector<2x4xf32>
    %497 = vector.extract_strided_slice %496 {offsets = [0, 0], sizes = [1, 4], strides = [1, 1]} : vector<2x4xf32> to vector<1x4xf32>
    %498 = vector.broadcast %497 : vector<1x4xf32> to vector<128x4xf32>
    %499 = arith.mulf %489, %498 : vector<128x4xf32>
    %500 = vector.extract_strided_slice %496 {offsets = [1, 0], sizes = [1, 4], strides = [1, 1]} : vector<2x4xf32> to vector<1x4xf32>
    %501 = vector.broadcast %500 : vector<1x4xf32> to vector<128x4xf32>
    %502 = arith.addf %499, %501 : vector<128x4xf32>
    %cst_300 = arith.constant 0.000000e+00 : f32
    %503 = vector.broadcast %cst_300 : f32 to vector<128x4xf32>
    %504 = arith.maximumf %502, %503 : vector<128x4xf32>
    %cst_301 = arith.constant 0.000000e+00 : f32
    %505 = vector.broadcast %cst_301 : f32 to vector<1x4xf32>
    %c0_302 = arith.constant 0 : index
    %c0_303 = arith.constant 0 : index
    %506 = vector.load %arg11[%c0_302, %c0_303] : memref<130x64xf32, #tpu.memory_space<vmem>>, vector<1x4xf32>
    tpu.vector_store %arg11[%c0_302, %c0_303], %505 {strides = array<i32>} : memref<130x64xf32, #tpu.memory_space<vmem>>, vector<1x4xf32>,
    %c1_304 = arith.constant 1 : index
    %c0_305 = arith.constant 0 : index
    %507 = vector.load %arg11[%c1_304, %c0_305] : memref<130x64xf32, #tpu.memory_space<vmem>>, vector<128x4xf32>
    tpu.vector_store %arg11[%c1_304, %c0_305], %504 {strides = array<i32>} : memref<130x64xf32, #tpu.memory_space<vmem>>, vector<128x4xf32>,
    %cst_306 = arith.constant 0.000000e+00 : f32
    %508 = vector.broadcast %cst_306 : f32 to vector<1x4xf32>
    %c129 = arith.constant 129 : index
    %c0_307 = arith.constant 0 : index
    %509 = vector.load %arg11[%c129, %c0_307] : memref<130x64xf32, #tpu.memory_space<vmem>>, vector<1x4xf32>
    tpu.vector_store %arg11[%c129, %c0_307], %508 {strides = array<i32>} : memref<130x64xf32, #tpu.memory_space<vmem>>, vector<1x4xf32>,
    %c0_308 = arith.constant 0 : index
    %c0_309 = arith.constant 0 : index
    %510 = vector.load %arg11[%c0_308, %c0_309] : memref<130x64xf32, #tpu.memory_space<vmem>>, vector<130x4xf32>
    %511 = vector.extract_strided_slice %510 {offsets = [0, 0], sizes = [128, 4], strides = [1, 1]} : vector<130x4xf32> to vector<128x4xf32>
    %cst_310 = arith.constant dense<0.000000e+00> : vector<128x1xf32>
    %512 = tpu.matmul %511, %491, %cst_310 {dimension_numbers = #tpu.dot_dimension_numbers<[1], [0], [0], [1], [0, 0, 1, 1], [], []>} : vector<128x4xf32>, vector<4x1xf32>, vector<128x1xf32> -> vector<128x1xf32>
    %513 = vector.extract_strided_slice %510 {offsets = [1, 0], sizes = [128, 4], strides = [1, 1]} : vector<130x4xf32> to vector<128x4xf32>
    %cst_311 = arith.constant dense<0.000000e+00> : vector<128x1xf32>
    %514 = tpu.matmul %513, %493, %cst_311 {dimension_numbers = #tpu.dot_dimension_numbers<[1], [0], [0], [1], [0, 0, 1, 1], [], []>} : vector<128x4xf32>, vector<4x1xf32>, vector<128x1xf32> -> vector<128x1xf32>
    %515 = arith.addf %512, %514 : vector<128x1xf32>
    %516 = vector.extract_strided_slice %510 {offsets = [2, 0], sizes = [128, 4], strides = [1, 1]} : vector<130x4xf32> to vector<128x4xf32>
    %cst_312 = arith.constant dense<0.000000e+00> : vector<128x1xf32>
    %517 = tpu.matmul %516, %495, %cst_312 {dimension_numbers = #tpu.dot_dimension_numbers<[1], [0], [0], [1], [0, 0, 1, 1], [], []>} : vector<128x4xf32>, vector<4x1xf32>, vector<128x1xf32> -> vector<128x1xf32>
    %518 = arith.addf %515, %517 : vector<128x1xf32>
    %cst_313 = arith.constant 0.000000e+00 : f32
    %519 = vector.shape_cast %518 : vector<128x1xf32> to vector<128x1xf32>
    %520 = vector.broadcast %519 : vector<128x1xf32> to vector<128x128xf32>
    %521 = vector.broadcast %cst_313 : f32 to vector<128x128xf32>
    %522 = arith.select %5, %520, %521 : vector<128x128xi1>, vector<128x128xf32>
    %cst_314 = arith.constant dense<0.000000e+00> : vector<128xf32>
    %523 = vector.multi_reduction <add>, %522, %cst_314 [0] : vector<128x128xf32> to vector<128xf32>
    %524 = vector.shape_cast %523 : vector<128xf32> to vector<1x128xf32>
    %cst_315 = arith.constant 0.000000e+00 : f32
    %525 = vector.broadcast %cst_315 : f32 to vector<1x128xf32>
    %526 = arith.subf %525, %524 : vector<1x128xf32>
    %527 = math.exp %526 : vector<1x128xf32>
    %cst_316 = arith.constant 1.000000e+00 : f32
    %528 = vector.broadcast %cst_316 : f32 to vector<1x128xf32>
    %529 = arith.addf %528, %527 : vector<1x128xf32>
    %cst_317 = arith.constant 1.000000e+00 : f32
    %530 = vector.broadcast %cst_317 : f32 to vector<1x128xf32>
    %531 = arith.divf %530, %529 : vector<1x128xf32>
    %c0_318 = arith.constant 0 : index
    %c0_319 = arith.constant 0 : index
    %c0_320 = arith.constant 0 : index
    %532 = vector.load %arg8[%c0_318, %c0_319, %c0_320] : memref<1x1x128xf32, #tpu.memory_space<vmem>>, vector<1x1x128xf32>
    %533 = vector.shape_cast %532 : vector<1x1x128xf32> to vector<1x128xf32>
    %534 = vector.shape_cast %531 : vector<1x128xf32> to vector<1x1x128xf32>
    tpu.vector_store %arg8[%c0_318, %c0_319, %c0_320], %534 {strides = array<i32>} : memref<1x1x128xf32, #tpu.memory_space<vmem>>, vector<1x1x128xf32>,
    return
  }
  func.func @transform_0(%arg0: i32) -> (i32, i32, i32) {
    %c0_i32 = arith.constant 0 : i32
    %c0_i32_0 = arith.constant 0 : i32
    %c0_i32_1 = arith.constant 0 : i32
    return %arg0, %c0_i32, %c0_i32_0 : i32, i32, i32
  }
  func.func @transform_1(%arg0: i32) -> (i32, i32, i32) {
    %c0_i32 = arith.constant 0 : i32
    %c0_i32_0 = arith.constant 0 : i32
    %c0_i32_1 = arith.constant 0 : i32
    %c0_i32_2 = arith.constant 0 : i32
    return %c0_i32, %c0_i32_0, %c0_i32_1 : i32, i32, i32
  }
  func.func @transform_2(%arg0: i32) -> (i32, i32) {
    %c0_i32 = arith.constant 0 : i32
    %c0_i32_0 = arith.constant 0 : i32
    %c0_i32_1 = arith.constant 0 : i32
    return %c0_i32, %c0_i32_0 : i32, i32
  }
  func.func @transform_3(%arg0: i32) -> (i32, i32, i32) {
    %c0_i32 = arith.constant 0 : i32
    %c0_i32_0 = arith.constant 0 : i32
    %c0_i32_1 = arith.constant 0 : i32
    %c0_i32_2 = arith.constant 0 : i32
    return %c0_i32, %c0_i32_0, %c0_i32_1 : i32, i32, i32
  }
  func.func @transform_4(%arg0: i32) -> (i32, i32) {
    %c0_i32 = arith.constant 0 : i32
    %c0_i32_0 = arith.constant 0 : i32
    %c0_i32_1 = arith.constant 0 : i32
    return %c0_i32, %c0_i32_0 : i32, i32
  }
  func.func @transform_5(%arg0: i32) -> (i32, i32) {
    %c0_i32 = arith.constant 0 : i32
    %c0_i32_0 = arith.constant 0 : i32
    %c0_i32_1 = arith.constant 0 : i32
    return %c0_i32, %c0_i32_0 : i32, i32
  }
  func.func @transform_6(%arg0: i32) -> (i32, i32) {
    %c0_i32 = arith.constant 0 : i32
    %c0_i32_0 = arith.constant 0 : i32
    %c0_i32_1 = arith.constant 0 : i32
    return %c0_i32, %c0_i32_0 : i32, i32
  }
  func.func @transform_7(%arg0: i32) -> (i32, i32, i32) {
    %c0_i32 = arith.constant 0 : i32
    %c0_i32_0 = arith.constant 0 : i32
    %c0_i32_1 = arith.constant 0 : i32
    return %arg0, %c0_i32, %c0_i32_0 : i32, i32, i32
  }
}

</mosaic_0001>

<bundles_post_ra>
// kernel: fcnarrb_forward.1
= control target key start
LH: loop header
LB: loop body
LE: loop exit
PB: predicated region body
PF: predicated region fallthrough
CT: control target
= control target key end

     0   :  { %12 = vsyncpa [#allocation6], 0  ;;  %s17772_s0 = inlined_call_operand.vmem [shape: f32[2,128,4], index: 0, kind: input, shape index: {}]   ;;  %s17773_s1 = inlined_call_operand.vmem [shape: f32[36,64,64], index: 1, kind: input, shape index: {}]   ;;  %s17774_s2 = inlined_call_operand.vmem [shape: f32[35,64], index: 2, kind: input, shape index: {}]   ;;  %s17775_s3 = inlined_call_operand.vmem [shape: f32[9,4,4], index: 3, kind: input, shape index: {}]   ;;  %s17776_s4 = inlined_call_operand.vmem [shape: f32[6,2], index: 4, kind: input, shape index: {}]   ;;  %s17777_s5 = inlined_call_operand.vmem [shape: f32[29,6], index: 5, kind: input, shape index: {}]   ;;  %s17778_s6 = inlined_call_operand.vmem [shape: f32[128,29], index: 6, kind: input, shape index: {}]   ;;  %s17779_s7 = inlined_call_operand.hbm [shape: f32[2,1,128], index: 7, kind: output, shape index: {}]  }
   0x1   :  { %14 = vsyncpa [#allocation6 + $0x1], 0  ;;  %s13353_s24 = smov 0   ;;  %s13355_s25 = smov 0  }
   0x2   :  { %s13357_s26 = smov 0   ;;  %s13359_s27 = smov 0  }
   0x3 LB: > { %s13374_s28 = sadd.s32 4294967295, %s13305_s27   ;;  %s9398_s29 = sadd.s32 4294967294, %s13305_s27   ;;  %s13305_s27 = sphi %s13359_s27, %s17892_s27   ;;  %s13301_s26 = sphi %s13357_s26, %s17891_s26   ;;  %s13297_s25 = sphi %s13355_s25, %s17890_s25   ;;  %s13293_s24 = sphi %s13353_s24, %s17889_s24  }
   0x4   : > { %s13378_s30 = sadd.s32 1, %s13305_s27   ;;  %s179_s8 = sadd.s32 1, %s13301_s26 }
   0x5   : > { %s176_s9 = ssub.s32 %s13305_s27, %s13378_s30  ;;  %p189_p0 = scmp.ne.s32.totalorder %s13301_s26, %s13297_s25 }
   0x6   : > { %p177_p1 = scmp.eq.s32.totalorder %s176_s9, 0  ;;  %p190_p2 = scmp.eq.s32.totalorder %s13374_s28, 1 }
   0x7   : > { %p195_p3 = scmp.ne.s32.totalorder %s13297_s25, %s13293_s24  ;;  %p196_p4 = scmp.eq.s32.totalorder %s9398_s29, 1 }
   0x8   : > { %s13389_s10 = scalar_select %p177_p1, %s13301_s26, %s179_s8  }
   0x9   : > { %p13391_p5 = por %p190_p2, %p189_p0  ;;  %p13395_p6 = por %p196_p4, %p195_p3 }
   0xa   : > { %p9401_p7 = scmp.ge.s32.totalorder %s13305_s27, 1  ;;  %p240_p8 = scmp.lt.s32.totalorder %s13305_s27, 3 }
   0xc   : > { %p241_p9 = pnand %p9401_p7, %p240_p8 }
   0xe   : > { %244 = sbr.rel (%p241_p9) target bundleno = 3832 (0xef8), region = 48 }
  0x15   : > { %v348_v0 = vld [vmem:[%s17773_s1] sm:$0xff]  ;;  %vm433_vm0 = vcmask 1043456   ;;  %p271_p10 = scmp.lt.s32.totalorder %s13374_s28, 1  ;;  %v17808_v1 = vmov 0.0   ;;  %vm13308_vm1 = vmmov 0   ;;  %v13424_v3 = vld [vmem:[%s17773_s1 + $0x8] sm:$0xff] }
  0x16   : > { %10912 = vmatprep.subr.mxu0 %v17808_v1  ;;  %v401_v2 = vrot.slane %v348_v0, 4  ;;  %10914 = vmatprep.mubr.msk.f32.mxu0 %vm13308_vm1, %v17808_v1  ;;  %vm370_vm2 = vcmask 1046528   ;;  %vm402_vm3 = vcmask 31744   ;;  %v996_v20 = vrot.slane %v13424_v3, 4  ;;  %v13554_v34 = vld [vmem:[%s17773_s1 + $0x10] sm:$0xff]  ;;  %s10160_s17 = sshll.u32 %s13374_s28, 4 }
  0x17   : > { %s272_s15 = scalar_select %p271_p10, %s13374_s28, 1  ;;  %13076 = vmatprep.subr.mxu1 %v17808_v1  ;;  %10991 = vmatprep.mubr.msk.f32.mxu1 %vm13308_vm1, %v17808_v1  ;;  %vm966_vm4 = vcmask 1044480   ;;  %v1434_v39 = vrot.slane %v13554_v34, 4  ;;  %vm1402_vm5 = vcmask 1042432   ;;  %vm748_vm6 = vcmask 1045504  }
  0x18   : > { %10913 = vmatpush3.msk.msra.mxu0 %vm433_vm0, %v401_v2  ;;  %13077 = vmatpush3.msk.msra.mxu1 %vm433_vm0, %v348_v0  ;;  %vm1842_vm7 = vcmask 1040384   ;;  %vm1622_vm8 = vcmask 1041408   ;;  %vm3810_vm9 = vcmask 517120   ;;  %vm2913_vm10 = vcmask 523264   ;;  %s17730_s22 = scalar_lea.hbm %s17779_s7, %s10160_s17  ;;  %s13312_s28 = smov [#allocation5]  }
  0x19   : > { %s10163_s16 = sshll.u32 %s272_s15, 7  ;;  %10959 = vmatprep.subr.mxu0 %v17808_v1  ;;  %11053 = vmatprep.subr.mxu1 %v17808_v1  ;;  %vm2928_vm11 = vcmask 519168   ;;  %vm5558_vm12 = vcmask 520192   ;;  %vm3543_vm13 = vcmask 516096   ;;  %vm4674_vm14 = vcmask 521216   ;;  %s13247_s8 = sshll.u32 %s13312_s28, 4  ;;  %s13248_s8 = int_to_ptr.vmem [resolvable:$false] %s13247_s8 }
  0x1a   : > { %s13419_s19 = scalar_lea.vmem %s17772_s0, %s10163_s16  ;;  %s269_s16 = sand.u32 1, %s13297_s25  }
  0x1b   : > { %v13427_v4 = vld [vmem:[%s13419_s19] sm:$0xff]  ;;  %v13430_v5 = vld [vmem:[%s13419_s19 + $0x8] sm:$0xff]  ;;  %v13433_v6 = vld [vmem:[%s13419_s19 + $0x10] sm:$0xff]  ;;  %s270_s18 = scalar_lea.vmem [#allocation5], %s269_s16  ;;  %s9331_s23 = scalar_lea.sflag [#allocation6], %s269_s16 }
  0x1c   : > { %17820 = vst [vmem:[#allocation8_spill] sm:$0xff] %v13427_v4  ;;  %v371_v7 = vrot.slane %v13427_v4, 1  ;;  %v372_v8 = vrot.slane %v13430_v5, 1  ;;  %v374_v9 = vrot.slane %v13433_v6, 1  ;;  %v13439_v10 = vld [vmem:[%s13419_s19 + $0x18] sm:$0xff]  ;;  %v13442_v11 = vld [vmem:[%s13419_s19 + $0x20] sm:$0xff] }
  0x1d   : > { %v13445_v12 = vld [vmem:[%s13419_s19 + $0x28] sm:$0xff]  ;;  %6720 = vst.msk [vmem:[#allocation3 + $0x22] sm:$0xff] %vm402_vm3, %v13442_v11  ;;  %v13452_v13 = vld [vmem:[%s13419_s19 + $0x30] sm:$0xff]  ;;  %v13455_v14 = vld [vmem:[%s13419_s19 + $0x38] sm:$0xff]  ;;  %v376_v25 = vrot.slane %v13439_v10, 1  ;;  %v378_v27 = vrot.slane %v13442_v11, 1 }
  0x1e   : > { %6721 = vst.msk [vmem:[#allocation3 + $0x2a] sm:$0xff] %vm402_vm3, %v13445_v12  ;;  %v13458_v15 = vld [vmem:[%s13419_s19 + $0x40] sm:$0xff]  ;;  %v373_v16 = vsel %vm370_vm2, %v371_v7, %v372_v8  ;;  %6722 = vst.msk [vmem:[#allocation3 + $0x32] sm:$0xff] %vm402_vm3, %v13452_v13  ;;  %v13468_v17 = vld [vmem:[%s13419_s19 + $0x48] sm:$0xff]  ;;  %v13498_v24 = vsel %vm370_vm2, %v372_v8, %v374_v9  ;;  %v380_v29 = vrot.slane %v13445_v12, 1  ;;  %v382_v31 = vrot.slane %v13452_v13, 1 }
  0x1f   : > { %17821 = vst [vmem:[#allocation9_spill] sm:$0xff] %v13458_v15  ;;  %6723 = vst.msk [vmem:[#allocation3 + $0x3a] sm:$0xff] %vm402_vm3, %v13455_v14  ;;  %v13471_v18 = vld [vmem:[%s13419_s19 + $0x50] sm:$0xff]  ;;  %v13474_v19 = vld [vmem:[%s13419_s19 + $0x58] sm:$0xff]  ;;  %10915 = vmatmul.mubr.msk.f32.vlgmr.msra.gmra.mrb[0].mxu0 %vm402_vm3, %v373_v16  ;;  %v13519_v26 = vsel %vm370_vm2, %v374_v9, %v376_v25  ;;  %v13532_v28 = vsel %vm370_vm2, %v376_v25, %v378_v27  ;;  %v967_v32 = vrot.slane %v13427_v4, 3  ;;  %v968_v33 = vrot.slane %v13430_v5, 3 }
  0x20   : > { %6724 = vst.msk [vmem:[#allocation3 + $0x42] sm:$0xff] %vm402_vm3, %v13458_v15  ;;  %17822 = vst [vmem:[#allocation10_spill] sm:$0xff] %v13471_v18  ;;  %10992 = vmatmul.mubr.msk.f32.vlgmr.msra.gmra.mrb[0].mxu1 %vm402_vm3, %v13471_v18  ;;  %v13487_v21 = vld [vmem:[%s13419_s19 + $0x60] sm:$0xff]  ;;  %v13490_v22 = vld [vmem:[%s13419_s19 + $0x68] sm:$0xff]  ;;  %10917 = vmatprep.mubr.msk.f32.mxu0 %vm13308_vm1, %v17808_v1  ;;  %v13544_v30 = vsel %vm370_vm2, %v378_v27, %v380_v29  ;;  %v13563_v35 = vsel %vm370_vm2, %v380_v29, %v382_v31  ;;  %v384_v36 = vrot.slane %v13455_v14, 1  ;;  %s13249_s9 = scalar_lea.vmem %s13248_s8, 32 }
  0x21   : > { %6725 = vst.msk [vmem:[#allocation3 + $0x4a] sm:$0xff] %vm402_vm3, %v13468_v17  ;;  %6726 = vst.msk [vmem:[#allocation3 + $0x52] sm:$0xff] %vm402_vm3, %v13471_v18  ;;  %v13493_v23 = vld [vmem:[%s13419_s19 + $0x70] sm:$0xff]  ;;  %10960 = vmatpush3.msk.msra.mxu0 %vm433_vm0, %v348_v0  ;;  %10994 = vmatprep.mubr.msk.f32.mxu1 %vm13308_vm1, %v17808_v1  ;;  %v969_v37 = vsel %vm966_vm4, %v967_v32, %v968_v33  ;;  %v970_v38 = vrot.slane %v13433_v6, 3  ;;  %v386_v41 = vrot.slane %v13458_v15, 1  ;;  %v972_v43 = vrot.slane %v13439_v10, 3 }
  0x22   : > { %6727 = vst.msk [vmem:[#allocation3 + $0x5a] sm:$0xff] %vm402_vm3, %v13474_v19  ;;  %17823 = vst [vmem:[#allocation11_spill] sm:$0xff] %v13487_v21  ;;  %11006 = vmatprep.subr.mxu0 %v17808_v1  ;;  %11054 = vmatpush3.msk.msra.mxu1 %vm433_vm0, %v996_v20  ;;  %v13577_v40 = vsel %vm370_vm2, %v382_v31, %v384_v36  ;;  %v388_v45 = vrot.slane %v13468_v17, 1  ;;  %v974_v47 = vrot.slane %v13442_v11, 3  ;;  %v390_v49 = vrot.slane %v13471_v18, 1 }
  0x23   : > { %17824 = vst [vmem:[#allocation12_spill] sm:$0xff] %v13490_v22  ;;  %17825 = vst [vmem:[#allocation13_spill] sm:$0xff] %v13493_v23  ;;  %10918 = vmatmul.mubr.msk.f32.gmra.mrb[2].mxu0 %vm402_vm3, %v13498_v24  ;;  %11147 = vmatprep.subr.mxu1 %v17808_v1  ;;  %v13583_v42 = vsel %vm966_vm4, %v968_v33, %v970_v38  ;;  %v13595_v44 = vsel %vm370_vm2, %v384_v36, %v386_v41  ;;  %v976_v51 = vrot.slane %v13445_v12, 3 }
  0x24   : > { %6728 = vst.msk [vmem:[#allocation3 + $0x62] sm:$0xff] %vm402_vm3, %v13487_v21  ;;  %6729 = vst.msk [vmem:[#allocation3 + $0x6a] sm:$0xff] %vm402_vm3, %v13490_v22  ;;  %10995 = vmatmul.mubr.msk.f32.gmra.mrb[2].mxu1 %vm402_vm3, %v13474_v19  ;;  %10920 = vmatprep.mubr.msk.f32.mxu0 %vm13308_vm1, %v17808_v1  ;;  %v13601_v46 = vsel %vm966_vm4, %v970_v38, %v972_v43  ;;  %v13611_v48 = vsel %vm370_vm2, %v386_v41, %v388_v45  ;;  %v392_v53 = vrot.slane %v13474_v19, 1  ;;  %v13780_v41 = vld [vmem:[%s17773_s1 + $0x18] sm:$0xff] }
  0x25   : > { %6730 = vst.msk [vmem:[#allocation3 + $0x72] sm:$0xff] %vm402_vm3, %v13493_v23  ;;  %10997 = vmatprep.mubr.msk.f32.mxu1 %vm13308_vm1, %v17808_v1  ;;  %v13617_v50 = vsel %vm966_vm4, %v972_v43, %v974_v47  ;;  %v13627_v52 = vsel %vm370_vm2, %v388_v45, %v390_v49  ;;  %v13633_v54 = vsel %vm966_vm4, %v974_v47, %v976_v51  ;;  %v978_v55 = vrot.slane %v13452_v13, 3 }
  0x26   : > { %v13643_v56 = vsel %vm370_vm2, %v390_v49, %v392_v53  ;;  %v394_v57 = vrot.slane %v13487_v21, 1  ;;  %v980_v59 = vrot.slane %v13455_v14, 3  ;;  %v396_v61 = vrot.slane %v13490_v22, 1 }
  0x27   : > { %10921 = vmatmul.mubr.msk.f32.gmra.mrb[4].mxu0 %vm402_vm3, %v13519_v26  ;;  %v13649_v58 = vsel %vm966_vm4, %v976_v51, %v978_v55  ;;  %v982_v63 = vrot.slane %v13458_v15, 3  ;;  %v13678_v2 = vrot.slane %v13493_v23, 1  ;;  %v984_v8 = vrot.slane %v13468_v17, 3 }
  0x28   : > { %10998 = vmatmul.mubr.msk.f32.gmra.mrb[4].mxu1 %vm402_vm3, %v13487_v21  ;;  %10923 = vmatprep.mubr.msk.f32.mxu0 %vm13308_vm1, %v17808_v1  ;;  %v13659_v60 = vsel %vm370_vm2, %v392_v53, %v394_v57  ;;  %v13665_v62 = vsel %vm966_vm4, %v978_v55, %v980_v59  ;;  %v13675_v0 = vsel %vm370_vm2, %v394_v57, %v396_v61  ;;  %v986_v20 = vrot.slane %v13471_v18, 3  ;;  %v13814_v57 = vld [vmem:[%s13419_s19 + $0x78] sm:$0xff] }
  0x29   : > { %11000 = vmatprep.mubr.msk.f32.mxu1 %vm13308_vm1, %v17808_v1  ;;  %v13683_v7 = vsel %vm966_vm4, %v980_v59, %v982_v63  ;;  %v13694_v9 = vsel %vm370_vm2, %v396_v61, %v13678_v2  ;;  %v13699_v16 = vsel %vm966_vm4, %v982_v63, %v984_v8  ;;  %v988_v27 = vrot.slane %v13474_v19, 3  ;;  %17826 = vst [vmem:[#allocation14_spill] sm:$0xff] %v13814_v57 }
  0x2a   : > { %v13711_v25 = vsel %vm966_vm4, %v984_v8, %v986_v20  ;;  %v990_v31 = vrot.slane %v13487_v21, 3  ;;  %v992_v33 = vrot.slane %v13490_v22, 3  ;;  %v13753_v36 = vrot.slane %v13493_v23, 3  ;;  %6731 = vst.msk [vmem:[#allocation3 + $0x7a] sm:$0xff] %vm402_vm3, %v13814_v57 }
  0x2b   : > { %10924 = vmatmul.mubr.msk.f32.gmra.mrb[6].mxu0 %vm402_vm3, %v13532_v28  ;;  %v13723_v29 = vsel %vm966_vm4, %v986_v20, %v988_v27  ;;  %v1403_v38 = vrot.slane %v13427_v4, 5  ;;  %v1406_v45 = vrot.slane %v13433_v6, 5  ;;  %v1874_v47 = vrot.slane %v13780_v41, 4 }
  0x2c   : > { %11001 = vmatmul.mubr.msk.f32.gmra.mrb[6].mxu1 %vm402_vm3, %v13490_v22  ;;  %10926 = vmatprep.mubr.msk.f32.mxu0 %vm13308_vm1, %v17808_v1  ;;  %v13735_v32 = vsel %vm966_vm4, %v988_v27, %v990_v31  ;;  %v1408_v51 = vrot.slane %v13439_v10, 5  ;;  %v1410_v55 = vrot.slane %v13442_v11, 5  ;;  %v1412_v61 = vrot.slane %v13445_v12, 5 }
  0x2d   : > { %11003 = vmatprep.mubr.msk.f32.mxu1 %vm13308_vm1, %v17808_v1  ;;  %v749_v63 = vrot.slane %v13427_v4, 2  ;;  %v750_v8 = vrot.slane %v13430_v5, 2  ;;  %v1414_v27 = vrot.slane %v13452_v13, 5 }
  0x2e   : > { %v1409_v53 = vsel %vm1402_vm5, %v1406_v45, %v1408_v51  ;;  %v1411_v59 = vsel %vm1402_vm5, %v1408_v51, %v1410_v55  ;;  %v1413_v20 = vsel %vm1402_vm5, %v1410_v55, %v1412_v61  ;;  %v756_v51 = vrot.slane %v13442_v11, 2 }
  0x2f   : > { %10927 = vmatmul.mubr.msk.f32.gmra.mrb[8].mxu0 %vm402_vm3, %v13544_v30  ;;  %v1420_v55 = vrot.slane %v13468_v17, 5 }
  0x30   : > { %11004 = vmatmul.mubr.msk.f32.gmra.mrb[8].mxu1 %vm402_vm3, %v13493_v23  ;;  %10929 = vmatprep.mubr.msk.f32.mxu0 %vm13308_vm1, %v17808_v1 }
  0x31   : > { %11055 = vmatprep.mubr.msk.f32.mxu1 %vm13308_vm1, %v17808_v1 }
  0x33   : > { %10930 = vmatmul.mubr.msk.f32.gmra.mrb[10].mxu0 %vm402_vm3, %v13563_v35 }
  0x34   : > { %11056 = vmatmul.mubr.msk.f32.vlgmr.msra.gmra.mrb[10].mxu1 %vm402_vm3, %v969_v37  ;;  %10932 = vmatprep.mubr.msk.f32.mxu0 %vm13308_vm1, %v17808_v1  ;;  %v13765_v37 = vsel %vm966_vm4, %v992_v33, %v13753_v36 }
  0x35   : > { %11058 = vmatprep.mubr.msk.f32.mxu1 %vm13308_vm1, %v17808_v1  ;;  %11148 = vmatpush3.msk.msra.mxu1 %vm433_vm0, %v1434_v39  ;;  %v1404_v39 = vrot.slane %v13430_v5, 5 }
  0x36   : > { %11241 = vmatprep.subr.mxu1 %v17808_v1 }
  0x37   : > { %10933 = vmatmul.mubr.msk.f32.gmra.mrb[12].mxu0 %vm402_vm3, %v13577_v40  ;;  %v1405_v43 = vsel %vm1402_vm5, %v1403_v38, %v1404_v39  ;;  %v1407_v49 = vsel %vm1402_vm5, %v1404_v39, %v1406_v45  ;;  %v1415_v38 = vsel %vm1402_vm5, %v1412_v61, %v1414_v27  ;;  %v1416_v39 = vrot.slane %v13455_v14, 5 }
  0x38   : > { %11059 = vmatmul.mubr.msk.f32.gmra.mrb[12].mxu1 %vm402_vm3, %v13583_v42  ;;  %10935 = vmatprep.mubr.msk.f32.mxu0 %vm13308_vm1, %v17808_v1  ;;  %v754_v45 = vrot.slane %v13439_v10, 2  ;;  %v758_v61 = vrot.slane %v13445_v12, 2 }
  0x39   : > { %11061 = vmatprep.mubr.msk.f32.mxu1 %vm13308_vm1, %v17808_v1 }
  0x3b   : > { %10936 = vmatmul.mubr.msk.f32.gmra.mrb[14].mxu0 %vm402_vm3, %v13595_v44 }
  0x3c   : > { %11062 = vmatmul.mubr.msk.f32.gmra.mrb[14].mxu1 %vm402_vm3, %v13601_v46  ;;  %10938 = vmatprep.mubr.msk.f32.mxu0 %vm13308_vm1, %v17808_v1 }
  0x3d   : > { %11064 = vmatprep.mubr.msk.f32.mxu1 %vm13308_vm1, %v17808_v1 }
  0x3f   : > { %10939 = vmatmul.mubr.msk.f32.gmra.mrb[16].mxu0 %vm402_vm3, %v13611_v48 }
  0x40   : > { %11065 = vmatmul.mubr.msk.f32.gmra.mrb[16].mxu1 %vm402_vm3, %v13617_v50  ;;  %10941 = vmatprep.mubr.msk.f32.mxu0 %vm13308_vm1, %v17808_v1 }
  0x41   : > { %11067 = vmatprep.mubr.msk.f32.mxu1 %vm13308_vm1, %v17808_v1 }
  0x43   : > { %10942 = vmatmul.mubr.msk.f32.gmra.mrb[18].mxu0 %vm402_vm3, %v13627_v52 }
  0x44   : > { %11068 = vmatmul.mubr.msk.f32.gmra.mrb[18].mxu1 %vm402_vm3, %v13633_v54  ;;  %10944 = vmatprep.mubr.msk.f32.mxu0 %vm13308_vm1, %v17808_v1 }
  0x45   : > { %11070 = vmatprep.mubr.msk.f32.mxu1 %vm13308_vm1, %v17808_v1 }
  0x47   : > { %10945 = vmatmul.mubr.msk.f32.gmra.mrb[20].mxu0 %vm402_vm3, %v13643_v56 }
  0x48   : > { %11071 = vmatmul.mubr.msk.f32.gmra.mrb[20].mxu1 %vm402_vm3, %v13649_v58  ;;  %10947 = vmatprep.mubr.msk.f32.mxu0 %vm13308_vm1, %v17808_v1 }
  0x49   : > { %11073 = vmatprep.mubr.msk.f32.mxu1 %vm13308_vm1, %v17808_v1 }
  0x4b   : > { %10948 = vmatmul.mubr.msk.f32.gmra.mrb[22].mxu0 %vm402_vm3, %v13659_v60 }
  0x4c   : > { %11074 = vmatmul.mubr.msk.f32.gmra.mrb[22].mxu1 %vm402_vm3, %v13665_v62  ;;  %10950 = vmatprep.mubr.msk.f32.mxu0 %vm13308_vm1, %v17808_v1 }
  0x4d   : > { %11076 = vmatprep.mubr.msk.f32.mxu1 %vm13308_vm1, %v17808_v1 }
  0x4f   : > { %10951 = vmatmul.mubr.msk.f32.gmra.mrb[24].mxu0 %vm402_vm3, %v13675_v0 }
  0x50   : > { %11077 = vmatmul.mubr.msk.f32.gmra.mrb[24].mxu1 %vm402_vm3, %v13683_v7  ;;  %10953 = vmatprep.mubr.msk.f32.mxu0 %vm13308_vm1, %v17808_v1 }
  0x51   : > { %11079 = vmatprep.mubr.msk.f32.mxu1 %vm13308_vm1, %v17808_v1 }
  0x53   : > { %10954 = vmatmul.mubr.msk.f32.gmra.mrb[26].mxu0 %vm402_vm3, %v13694_v9 }
  0x54   : > { %11080 = vmatmul.mubr.msk.f32.gmra.mrb[26].mxu1 %vm402_vm3, %v13699_v16  ;;  %10956 = vmatprep.mubr.msk.f32.mxu0 %vm13308_vm1, %v17808_v1 }
  0x55   : > { %11082 = vmatprep.mubr.msk.f32.mxu1 %vm13308_vm1, %v17808_v1 }
  0x57   : > { %10957 = vmatmul.mubr.msk.f32.gmra.mrb[28].mxu0 %vm402_vm3, %v13678_v2 }
  0x58   : > { %11083 = vmatmul.mubr.msk.f32.gmra.mrb[28].mxu1 %vm402_vm3, %v13711_v25  ;;  %10961 = vmatprep.mubr.msk.f32.mxu0 %vm13308_vm1, %v17808_v1 }
  0x59   : > { %11085 = vmatprep.mubr.msk.f32.mxu1 %vm13308_vm1, %v17808_v1 }
  0x5b   : > { %10962 = vmatmul.mubr.msk.f32.vlgmr.msra.gmra.mrb[30].mxu0 %vm402_vm3, %v13427_v4 }
  0x5c   : > { %11086 = vmatmul.mubr.msk.f32.gmra.mrb[30].mxu1 %vm402_vm3, %v13723_v29  ;;  %10964 = vmatprep.mubr.msk.f32.mxu0 %vm13308_vm1, %v17808_v1 }
  0x5d   : > { %11007 = vmatpush3.msk.msra.mxu0 %vm433_vm0, %v13424_v3  ;;  %11088 = vmatprep.mubr.msk.f32.mxu1 %vm13308_vm1, %v17808_v1  ;;  %v13750_v3 = vsel %vm966_vm4, %v990_v31, %v992_v33  ;;  %v751_v31 = vsel %vm748_vm6, %v749_v63, %v750_v8  ;;  %v752_v33 = vrot.slane %v13433_v6, 2 }
  0x5e   : > { %11100 = vmatprep.subr.mxu0 %v17808_v1 }
  0x5f   : > { %10965 = vmatmul.mubr.msk.f32.gmra.mrb[32].mxu0 %vm402_vm3, %v13430_v5 }
  0x60   : > { %11089 = vmatmul.mubr.msk.f32.gmra.mrb[32].mxu1 %vm402_vm3, %v13735_v32  ;;  %10967 = vmatprep.mubr.msk.f32.mxu0 %vm13308_vm1, %v17808_v1 }
  0x61   : > { %11091 = vmatprep.mubr.msk.f32.mxu1 %vm13308_vm1, %v17808_v1 }
  0x63   : > { %10968 = vmatmul.mubr.msk.f32.gmra.mrb[34].mxu0 %vm402_vm3, %v13433_v6 }
  0x64   : > { %11092 = vmatmul.mubr.msk.f32.gmra.mrb[34].mxu1 %vm402_vm3, %v13750_v3  ;;  %10970 = vmatprep.mubr.msk.f32.mxu0 %vm13308_vm1, %v17808_v1 }
  0x65   : > { %11094 = vmatprep.mubr.msk.f32.mxu1 %vm13308_vm1, %v17808_v1 }
  0x67   : > { %10971 = vmatmul.mubr.msk.f32.gmra.mrb[36].mxu0 %vm402_vm3, %v13439_v10 }
  0x68   : > { %11095 = vmatmul.mubr.msk.f32.gmra.mrb[36].mxu1 %vm402_vm3, %v13765_v37  ;;  %10973 = vmatprep.mubr.msk.f32.mxu0 %vm13308_vm1, %v17808_v1 }
  0x69   : > { %11097 = vmatprep.mubr.msk.f32.mxu1 %vm13308_vm1, %v17808_v1 }
  0x6b   : > { %10974 = vmatmul.mubr.msk.f32.gmra.mrb[38].mxu0 %vm402_vm3, %v13442_v11 }
  0x6c   : > { %11098 = vmatmul.mubr.msk.f32.gmra.mrb[38].mxu1 %vm402_vm3, %v13753_v36  ;;  %10976 = vmatprep.mubr.msk.f32.mxu0 %vm13308_vm1, %v17808_v1 }
  0x6d   : > { %11149 = vmatprep.mubr.msk.f32.mxu1 %vm13308_vm1, %v17808_v1 }
  0x6f   : > { %10977 = vmatmul.mubr.msk.f32.gmra.mrb[40].mxu0 %vm402_vm3, %v13445_v12 }
  0x70   : > { %11150 = vmatmul.mubr.msk.f32.vlgmr.msra.gmra.mrb[40].mxu1 %vm402_vm3, %v1405_v43  ;;  %10979 = vmatprep.mubr.msk.f32.mxu0 %vm13308_vm1, %v17808_v1  ;;  %v13854_v43 = vsel %vm748_vm6, %v750_v8, %v752_v33  ;;  %v1422_v8 = vrot.slane %v13471_v18, 5 }
  0x71   : > { %11152 = vmatprep.mubr.msk.f32.mxu1 %vm13308_vm1, %v17808_v1  ;;  %11242 = vmatpush3.msk.msra.mxu1 %vm433_vm0, %v1874_v47  ;;  %v1417_v47 = vsel %vm1402_vm5, %v1414_v27, %v1416_v39  ;;  %v760_v27 = vrot.slane %v13452_v13, 2 }
  0x72   : > { %11335 = vmatprep.subr.mxu1 %v17808_v1 }
  0x73   : > { %10980 = vmatmul.mubr.msk.f32.gmra.mrb[42].mxu0 %vm402_vm3, %v13452_v13 }
  0x74   : > { %11153 = vmatmul.mubr.msk.f32.gmra.mrb[42].mxu1 %vm402_vm3, %v1407_v49  ;;  %10982 = vmatprep.mubr.msk.f32.mxu0 %vm13308_vm1, %v17808_v1  ;;  %v1418_v49 = vrot.slane %v13458_v15, 5 }
  0x75   : > { %11155 = vmatprep.mubr.msk.f32.mxu1 %vm13308_vm1, %v17808_v1 }
  0x76   : > { %v1421_v63 = vsel %vm1402_vm5, %v1418_v49, %v1420_v55 }
  0x77   : > { %10983 = vmatmul.mubr.msk.f32.gmra.mrb[44].mxu0 %vm402_vm3, %v13455_v14 }
  0x78   : > { %11156 = vmatmul.mubr.msk.f32.gmra.mrb[44].mxu1 %vm402_vm3, %v1409_v53  ;;  %10985 = vmatprep.mubr.msk.f32.mxu0 %vm13308_vm1, %v17808_v1  ;;  %v1419_v53 = vsel %vm1402_vm5, %v1416_v39, %v1418_v49  ;;  %v762_v39 = vrot.slane %v13455_v14, 2 }
  0x79   : > { %11158 = vmatprep.mubr.msk.f32.mxu1 %vm13308_vm1, %v17808_v1 }
  0x7a   : > { %v13922_v49 = vsel %vm748_vm6, %v760_v27, %v762_v39 }
  0x7b   : > { %10986 = vmatmul.mubr.msk.f32.gmra.mrb[46].mxu0 %vm402_vm3, %v13458_v15  ;;  %17829 = vst [vmem:[#allocation17_spill] sm:$0xff] %v13922_v49 }
  0x7c   : > { %11159 = vmatmul.mubr.msk.f32.gmra.mrb[46].mxu1 %vm402_vm3, %v1411_v59  ;;  %10988 = vmatprep.mubr.msk.f32.mxu0 %vm13308_vm1, %v17808_v1  ;;  %v13883_v59 = vsel %vm748_vm6, %v754_v45, %v756_v51 }
  0x7d   : > { %11161 = vmatprep.mubr.msk.f32.mxu1 %vm13308_vm1, %v17808_v1 }
  0x7f   : > { %10989 = vmatmul.mubr.msk.f32.gmra.mrb[48].mxu0 %vm402_vm3, %v13468_v17 }
  0x80   : > { %11162 = vmatmul.mubr.msk.f32.gmra.mrb[48].mxu1 %vm402_vm3, %v1413_v20  ;;  %11008 = vmatprep.mubr.msk.f32.mxu0 %vm13308_vm1, %v17808_v1  ;;  %v13896_v20 = vsel %vm748_vm6, %v756_v51, %v758_v61  ;;  %v764_v51 = vrot.slane %v13458_v15, 2 }
  0x81   : > { %11164 = vmatprep.mubr.msk.f32.mxu1 %vm13308_vm1, %v17808_v1  ;;  %17827 = vst [vmem:[#allocation15_spill] sm:$0xff] %v13896_v20 }
  0x83   : > { %11009 = vmatmul.mubr.msk.f32.vlgmr.msra.gmra.mrb[50].mxu0 %vm402_vm3, %v751_v31  ;;  %v1423_v31 = vsel %vm1402_vm5, %v1420_v55, %v1422_v8  ;;  %v1428_v55 = vrot.slane %v13490_v22, 5 }
  0x84   : > { %11165 = vmatmul.mubr.msk.f32.gmra.mrb[50].mxu1 %vm402_vm3, %v1415_v38  ;;  %11011 = vmatprep.mubr.msk.f32.mxu0 %vm13308_vm1, %v17808_v1  ;;  %v13909_v38 = vsel %vm748_vm6, %v758_v61, %v760_v27  ;;  %v13935_v61 = vsel %vm748_vm6, %v762_v39, %v764_v51  ;;  %v1430_v27 = vrot.slane %v13493_v23, 5 }
  0x85   : > { %11101 = vmatpush3.msk.msra.mxu0 %vm433_vm0, %v13554_v34  ;;  %11167 = vmatprep.mubr.msk.f32.mxu1 %vm13308_vm1, %v17808_v1  ;;  %v13870_v34 = vsel %vm748_vm6, %v752_v33, %v754_v45  ;;  %v1424_v33 = vrot.slane %v13474_v19, 5  ;;  %17828 = vst [vmem:[#allocation16_spill] sm:$0xff] %v13909_v38  ;;  %17830 = vst [vmem:[#allocation18_spill] sm:$0xff] %v13935_v61 }
  0x86   : > { %11194 = vmatprep.subr.mxu0 %v17808_v1  ;;  %v1431_v39 = vsel %vm1402_vm5, %v1428_v55, %v1430_v27 }
  0x87   : > { %11012 = vmatmul.mubr.msk.f32.gmra.mrb[52].mxu0 %vm402_vm3, %v13854_v43  ;;  %v1425_v45 = vsel %vm1402_vm5, %v1422_v8, %v1424_v33 }
  0x88   : > { %11168 = vmatmul.mubr.msk.f32.gmra.mrb[52].mxu1 %vm402_vm3, %v1417_v47  ;;  %11014 = vmatprep.mubr.msk.f32.mxu0 %vm13308_vm1, %v17808_v1  ;;  %v1426_v47 = vrot.slane %v13487_v21, 5 }
  0x89   : > { %11170 = vmatprep.mubr.msk.f32.mxu1 %vm13308_vm1, %v17808_v1 }
  0x8a   : > { %v1429_v8 = vsel %vm1402_vm5, %v1426_v47, %v1428_v55  ;;  %v1843_v55 = vrot.slane %v13427_v4, 7 }
  0x8b   : > { %11015 = vmatmul.mubr.msk.f32.gmra.mrb[54].mxu0 %vm402_vm3, %v13870_v34 }
  0x8c   : > { %11171 = vmatmul.mubr.msk.f32.gmra.mrb[54].mxu1 %vm402_vm3, %v1419_v53  ;;  %11017 = vmatprep.mubr.msk.f32.mxu0 %vm13308_vm1, %v17808_v1  ;;  %v1427_v53 = vsel %vm1402_vm5, %v1424_v33, %v1426_v47  ;;  %v768_v33 = vrot.slane %v13471_v18, 2  ;;  %v770_v47 = vrot.slane %v13474_v19, 2 }
  0x8d   : > { %11173 = vmatprep.mubr.msk.f32.mxu1 %vm13308_vm1, %v17808_v1 }
  0x8f   : > { %11018 = vmatmul.mubr.msk.f32.gmra.mrb[56].mxu0 %vm402_vm3, %v13883_v59 }
  0x90   : > { %11174 = vmatmul.mubr.msk.f32.gmra.mrb[56].mxu1 %vm402_vm3, %v1421_v63  ;;  %11020 = vmatprep.mubr.msk.f32.mxu0 %vm13308_vm1, %v17808_v1  ;;  %v766_v63 = vrot.slane %v13468_v17, 2 }
  0x91   : > { %11176 = vmatprep.mubr.msk.f32.mxu1 %vm13308_vm1, %v17808_v1 }
  0x93   : > { %11021 = vmatmul.mubr.msk.f32.gmra.mrb[58].mxu0 %vm402_vm3, %v13896_v20  ;;  %v1644_v20 = vrot.slane %v13474_v19, 6 }
  0x94   : > { %11177 = vmatmul.mubr.msk.f32.gmra.mrb[58].mxu1 %vm402_vm3, %v1423_v31  ;;  %11023 = vmatprep.mubr.msk.f32.mxu0 %vm13308_vm1, %v17808_v1  ;;  %v13948_v31 = vsel %vm748_vm6, %v764_v51, %v766_v63  ;;  %v13962_v51 = vsel %vm748_vm6, %v766_v63, %v768_v33  ;;  %v13980_v63 = vsel %vm748_vm6, %v768_v33, %v770_v47 }
  0x95   : > { %11179 = vmatprep.mubr.msk.f32.mxu1 %vm13308_vm1, %v17808_v1  ;;  %17831 = vst [vmem:[#allocation19_spill] sm:$0xff] %v13948_v31  ;;  %17832 = vst [vmem:[#allocation20_spill] sm:$0xff] %v13962_v51 }
  0x96   : > { %17833 = vst [vmem:[#allocation21_spill] sm:$0xff] %v13980_v63 }
  0x97   : > { %11024 = vmatmul.mubr.msk.f32.gmra.mrb[60].mxu0 %vm402_vm3, %v13909_v38 }
  0x98   : > { %11180 = vmatmul.mubr.msk.f32.gmra.mrb[60].mxu1 %vm402_vm3, %v1425_v45  ;;  %11026 = vmatprep.mubr.msk.f32.mxu0 %vm13308_vm1, %v17808_v1  ;;  %v1432_v45 = vrot.slane %v13814_v57, 5 }
  0x99   : > { %11182 = vmatprep.mubr.msk.f32.mxu1 %vm13308_vm1, %v17808_v1 }
  0x9b   : > { %11027 = vmatmul.mubr.msk.f32.gmra.mrb[62].mxu0 %vm402_vm3, %v13922_v49 }
  0x9c   : > { %11183 = vmatmul.mubr.msk.f32.gmra.mrb[62].mxu1 %vm402_vm3, %v1427_v53  ;;  %11029 = vmatprep.mubr.msk.f32.mxu0 %vm13308_vm1, %v17808_v1  ;;  %v1433_v53 = vsel %vm1402_vm5, %v1430_v27, %v1432_v45  ;;  %v772_v27 = vrot.slane %v13487_v21, 2 }
  0x9d   : > { %11185 = vmatprep.mubr.msk.f32.mxu1 %vm13308_vm1, %v17808_v1 }
  0x9e   : > { %v13994_v33 = vsel %vm748_vm6, %v770_v47, %v772_v27 }
  0x9f   : > { %11030 = vmatmul.mubr.msk.f32.gmra.mrb[64].mxu0 %vm402_vm3, %v13935_v61  ;;  %17834 = vst [vmem:[#allocation22_spill] sm:$0xff] %v13994_v33 }
  0xa0   : > { %11186 = vmatmul.mubr.msk.f32.gmra.mrb[64].mxu1 %vm402_vm3, %v1429_v8  ;;  %11032 = vmatprep.mubr.msk.f32.mxu0 %vm13308_vm1, %v17808_v1  ;;  %v1844_v8 = vrot.slane %v13430_v5, 7 }
  0xa1   : > { %11188 = vmatprep.mubr.msk.f32.mxu1 %vm13308_vm1, %v17808_v1 }
  0xa2   : > { %v1845_v45 = vsel %vm1842_vm7, %v1843_v55, %v1844_v8 }
  0xa3   : > { %11033 = vmatmul.mubr.msk.f32.gmra.mrb[66].mxu0 %vm402_vm3, %v13948_v31  ;;  %v1846_v31 = vrot.slane %v13433_v6, 7 }
  0xa4   : > { %11189 = vmatmul.mubr.msk.f32.gmra.mrb[66].mxu1 %vm402_vm3, %v1431_v39  ;;  %11035 = vmatprep.mubr.msk.f32.mxu0 %vm13308_vm1, %v17808_v1  ;;  %v13972_v39 = vld [vmem:[%s17773_s1 + $0x20] sm:$0xff] }
  0xa5   : > { %11191 = vmatprep.mubr.msk.f32.mxu1 %vm13308_vm1, %v17808_v1  ;;  %v2224_v61 = vrot.slane %v13972_v39, 4  ;;  %v1847_v55 = vsel %vm1842_vm7, %v1844_v8, %v1846_v31  ;;  %v1850_v8 = vrot.slane %v13442_v11, 7 }
  0xa7   : > { %11036 = vmatmul.mubr.msk.f32.gmra.mrb[68].mxu0 %vm402_vm3, %v13962_v51  ;;  %v1848_v51 = vrot.slane %v13439_v10, 7 }
  0xa8   : > { %11192 = vmatmul.mubr.msk.f32.gmra.mrb[68].mxu1 %vm402_vm3, %v1433_v53  ;;  %11038 = vmatprep.mubr.msk.f32.mxu0 %vm13308_vm1, %v17808_v1  ;;  %v774_v53 = vrot.slane %v13490_v22, 2 }
  0xa9   : > { %11243 = vmatprep.mubr.msk.f32.mxu1 %vm13308_vm1, %v17808_v1 }
  0xaa   : > { %v14009_v47 = vsel %vm748_vm6, %v772_v27, %v774_v53 }
  0xab   : > { %11039 = vmatmul.mubr.msk.f32.gmra.mrb[70].mxu0 %vm402_vm3, %v13980_v63  ;;  %17835 = vst [vmem:[#allocation23_spill] sm:$0xff] %v14009_v47 }
  0xac   : > { %11244 = vmatmul.mubr.msk.f32.vlgmr.msra.gmra.mrb[70].mxu1 %vm402_vm3, %v1845_v45  ;;  %11041 = vmatprep.mubr.msk.f32.mxu0 %vm13308_vm1, %v17808_v1  ;;  %v14012_v45 = vrot.slane %v13493_v23, 2 }
  0xad   : > { %11246 = vmatprep.mubr.msk.f32.mxu1 %vm13308_vm1, %v17808_v1  ;;  %11336 = vmatpush3.msk.msra.mxu1 %vm433_vm0, %v2224_v61  ;;  %v1849_v61 = vsel %vm1842_vm7, %v1846_v31, %v1848_v51  ;;  %v1852_v31 = vrot.slane %v13445_v12, 7 }
  0xae   : > { %11429 = vmatprep.subr.mxu1 %v17808_v1  ;;  %17836 = vst [vmem:[#allocation24_spill] sm:$0xff] %v14012_v45  ;;  %v14025_v27 = vsel %vm748_vm6, %v774_v53, %v14012_v45  ;;  %v1185_v53 = vrot.slane %v13430_v5, 4 }
  0xaf   : > { %11042 = vmatmul.mubr.msk.f32.gmra.mrb[72].mxu0 %vm402_vm3, %v13994_v33  ;;  %17837 = vst [vmem:[#allocation25_spill] sm:$0xff] %v14025_v27 }
  0xb0   : > { %11247 = vmatmul.mubr.msk.f32.gmra.mrb[72].mxu1 %vm402_vm3, %v1847_v55  ;;  %11044 = vmatprep.mubr.msk.f32.mxu0 %vm13308_vm1, %v17808_v1  ;;  %v1851_v55 = vsel %vm1842_vm7, %v1848_v51, %v1850_v8  ;;  %v1854_v51 = vrot.slane %v13452_v13, 7 }
  0xb1   : > { %11249 = vmatprep.mubr.msk.f32.mxu1 %vm13308_vm1, %v17808_v1 }
  0xb2   : > { %v1855_v33 = vsel %vm1842_vm7, %v1852_v31, %v1854_v51 }
  0xb3   : > { %11045 = vmatmul.mubr.msk.f32.gmra.mrb[74].mxu0 %vm402_vm3, %v14009_v47  ;;  %v1853_v47 = vsel %vm1842_vm7, %v1850_v8, %v1852_v31  ;;  %v1856_v8 = vrot.slane %v13455_v14, 7  ;;  %v1858_v31 = vrot.slane %v13458_v15, 7 }
  0xb4   : > { %11250 = vmatmul.mubr.msk.f32.gmra.mrb[74].mxu1 %vm402_vm3, %v1849_v61  ;;  %11047 = vmatprep.mubr.msk.f32.mxu0 %vm13308_vm1, %v17808_v1  ;;  %v1184_v61 = vrot.slane %v13427_v4, 4 }
  0xb5   : > { %11252 = vmatprep.mubr.msk.f32.mxu1 %vm13308_vm1, %v17808_v1 }
  0xb7   : > { %11048 = vmatmul.mubr.msk.f32.gmra.mrb[76].mxu0 %vm402_vm3, %v14025_v27  ;;  %v1187_v27 = vrot.slane %v13433_v6, 4 }
  0xb8   : > { %11253 = vmatmul.mubr.msk.f32.gmra.mrb[76].mxu1 %vm402_vm3, %v1851_v55  ;;  %11050 = vmatprep.mubr.msk.f32.mxu0 %vm13308_vm1, %v17808_v1  ;;  %v1186_v55 = vsel %vm433_vm0, %v1184_v61, %v1185_v53  ;;  %v1189_v61 = vrot.slane %v13439_v10, 4 }
  0xb9   : > { %11255 = vmatprep.mubr.msk.f32.mxu1 %vm13308_vm1, %v17808_v1 }
  0xbb   : > { %11051 = vmatmul.mubr.msk.f32.gmra.mrb[78].mxu0 %vm402_vm3, %v14012_v45  ;;  %v1857_v45 = vsel %vm1842_vm7, %v1854_v51, %v1856_v8  ;;  %v1860_v51 = vrot.slane %v13468_v17, 7 }
  0xbc   : > { %11256 = vmatmul.mubr.msk.f32.gmra.mrb[78].mxu1 %vm402_vm3, %v1853_v47  ;;  %11102 = vmatprep.mubr.msk.f32.mxu0 %vm13308_vm1, %v17808_v1  ;;  %v14058_v47 = vsel %vm433_vm0, %v1185_v53, %v1187_v27  ;;  %v1859_v53 = vsel %vm1842_vm7, %v1856_v8, %v1858_v31  ;;  %v1862_v8 = vrot.slane %v13471_v18, 7 }
  0xbd   : > { %11258 = vmatprep.mubr.msk.f32.mxu1 %vm13308_vm1, %v17808_v1  ;;  %17838 = vst [vmem:[#allocation26_spill] sm:$0xff] %v14058_v47 }
  0xbf   : > { %11103 = vmatmul.mubr.msk.f32.vlgmr.msra.gmra.mrb[80].mxu0 %vm402_vm3, %v1186_v55  ;;  %v1861_v55 = vsel %vm1842_vm7, %v1858_v31, %v1860_v51  ;;  %v1863_v31 = vsel %vm1842_vm7, %v1860_v51, %v1862_v8 }
  0xc0   : > { %11259 = vmatmul.mubr.msk.f32.gmra.mrb[80].mxu1 %vm402_vm3, %v1855_v33  ;;  %11105 = vmatprep.mubr.msk.f32.mxu0 %vm13308_vm1, %v17808_v1  ;;  %v1191_v33 = vrot.slane %v13442_v11, 4 }
  0xc1   : > { %11195 = vmatpush3.msk.msra.mxu0 %vm433_vm0, %v13780_v41  ;;  %11261 = vmatprep.mubr.msk.f32.mxu1 %vm13308_vm1, %v17808_v1  ;;  %v14074_v41 = vsel %vm433_vm0, %v1187_v27, %v1189_v61  ;;  %v1193_v27 = vrot.slane %v13445_v12, 4 }
  0xc2   : > { %11288 = vmatprep.subr.mxu0 %v17808_v1  ;;  %17839 = vst [vmem:[#allocation27_spill] sm:$0xff] %v14074_v41 }
  0xc3   : > { %11106 = vmatmul.mubr.msk.f32.gmra.mrb[82].mxu0 %vm402_vm3, %v14058_v47 }
  0xc4   : > { %11262 = vmatmul.mubr.msk.f32.gmra.mrb[82].mxu1 %vm402_vm3, %v1857_v45  ;;  %11108 = vmatprep.mubr.msk.f32.mxu0 %vm13308_vm1, %v17808_v1  ;;  %v14087_v45 = vsel %vm433_vm0, %v1189_v61, %v1191_v33  ;;  %v14100_v61 = vsel %vm433_vm0, %v1191_v33, %v1193_v27 }
  0xc5   : > { %11264 = vmatprep.mubr.msk.f32.mxu1 %vm13308_vm1, %v17808_v1  ;;  %17840 = vst [vmem:[#allocation28_spill] sm:$0xff] %v14087_v45  ;;  %17841 = vst [vmem:[#allocation29_spill] sm:$0xff] %v14100_v61 }
  0xc7   : > { %11109 = vmatmul.mubr.msk.f32.gmra.mrb[84].mxu0 %vm402_vm3, %v14074_v41  ;;  %v1864_v41 = vrot.slane %v13474_v19, 7 }
  0xc8   : > { %11265 = vmatmul.mubr.msk.f32.gmra.mrb[84].mxu1 %vm402_vm3, %v1859_v53  ;;  %11111 = vmatprep.mubr.msk.f32.mxu0 %vm13308_vm1, %v17808_v1  ;;  %v1195_v53 = vrot.slane %v13452_v13, 4 }
  0xc9   : > { %11267 = vmatprep.mubr.msk.f32.mxu1 %vm13308_vm1, %v17808_v1  ;;  %v1865_v51 = vsel %vm1842_vm7, %v1862_v8, %v1864_v41 }
  0xca   : > { %v14113_v33 = vsel %vm433_vm0, %v1193_v27, %v1195_v53 }
  0xcb   : > { %11112 = vmatmul.mubr.msk.f32.gmra.mrb[86].mxu0 %vm402_vm3, %v14087_v45  ;;  %17842 = vst [vmem:[#allocation30_spill] sm:$0xff] %v14113_v33  ;;  %v1866_v45 = vrot.slane %v13487_v21, 7 }
  0xcc   : > { %11268 = vmatmul.mubr.msk.f32.gmra.mrb[86].mxu1 %vm402_vm3, %v1861_v55  ;;  %11114 = vmatprep.mubr.msk.f32.mxu0 %vm13308_vm1, %v17808_v1  ;;  %v1197_v55 = vrot.slane %v13455_v14, 4 }
  0xcd   : > { %11270 = vmatprep.mubr.msk.f32.mxu1 %vm13308_vm1, %v17808_v1  ;;  %v1867_v8 = vsel %vm1842_vm7, %v1864_v41, %v1866_v45 }
  0xce   : > { %v14126_v27 = vsel %vm433_vm0, %v1195_v53, %v1197_v55 }
  0xcf   : > { %11115 = vmatmul.mubr.msk.f32.gmra.mrb[88].mxu0 %vm402_vm3, %v14100_v61  ;;  %17843 = vst [vmem:[#allocation31_spill] sm:$0xff] %v14126_v27  ;;  %v1868_v61 = vrot.slane %v13490_v22, 7 }
  0xd0   : > { %11271 = vmatmul.mubr.msk.f32.gmra.mrb[88].mxu1 %vm402_vm3, %v1863_v31  ;;  %11117 = vmatprep.mubr.msk.f32.mxu0 %vm13308_vm1, %v17808_v1  ;;  %v1199_v31 = vrot.slane %v13458_v15, 4 }
  0xd1   : > { %11273 = vmatprep.mubr.msk.f32.mxu1 %vm13308_vm1, %v17808_v1  ;;  %v1869_v41 = vsel %vm1842_vm7, %v1866_v45, %v1868_v61 }
  0xd2   : > { %v14139_v53 = vsel %vm433_vm0, %v1197_v55, %v1199_v31 }
  0xd3   : > { %11118 = vmatmul.mubr.msk.f32.gmra.mrb[90].mxu0 %vm402_vm3, %v14113_v33  ;;  %17844 = vst [vmem:[#allocation32_spill] sm:$0xff] %v14139_v53  ;;  %v1870_v33 = vrot.slane %v13493_v23, 7 }
  0xd4   : > { %11274 = vmatmul.mubr.msk.f32.gmra.mrb[90].mxu1 %vm402_vm3, %v1865_v51  ;;  %11120 = vmatprep.mubr.msk.f32.mxu0 %vm13308_vm1, %v17808_v1  ;;  %v1201_v51 = vrot.slane %v13468_v17, 4 }
  0xd5   : > { %11276 = vmatprep.mubr.msk.f32.mxu1 %vm13308_vm1, %v17808_v1  ;;  %v1871_v45 = vsel %vm1842_vm7, %v1868_v61, %v1870_v33 }
  0xd6   : > { %v14152_v55 = vsel %vm433_vm0, %v1199_v31, %v1201_v51 }
  0xd7   : > { %11121 = vmatmul.mubr.msk.f32.gmra.mrb[92].mxu0 %vm402_vm3, %v14126_v27  ;;  %17845 = vst [vmem:[#allocation33_spill] sm:$0xff] %v14152_v55  ;;  %v1872_v27 = vrot.slane %v13814_v57, 7 }
  0xd8   : > { %11277 = vmatmul.mubr.msk.f32.gmra.mrb[92].mxu1 %vm402_vm3, %v1867_v8  ;;  %11123 = vmatprep.mubr.msk.f32.mxu0 %vm13308_vm1, %v17808_v1  ;;  %v1203_v8 = vrot.slane %v13471_v18, 4 }
  0xd9   : > { %11279 = vmatprep.mubr.msk.f32.mxu1 %vm13308_vm1, %v17808_v1  ;;  %v1873_v61 = vsel %vm1842_vm7, %v1870_v33, %v1872_v27 }
  0xda   : > { %v14165_v31 = vsel %vm433_vm0, %v1201_v51, %v1203_v8 }
  0xdb   : > { %11124 = vmatmul.mubr.msk.f32.gmra.mrb[94].mxu0 %vm402_vm3, %v14139_v53  ;;  %17846 = vst [vmem:[#allocation34_spill] sm:$0xff] %v14165_v31  ;;  %v14174_v53 = vld [vmem:[%s17773_s1 + $0x28] sm:$0xff] }
  0xdc   : > { %11280 = vmatmul.mubr.msk.f32.gmra.mrb[94].mxu1 %vm402_vm3, %v1869_v41  ;;  %11126 = vmatprep.mubr.msk.f32.mxu0 %vm13308_vm1, %v17808_v1  ;;  %v1205_v41 = vrot.slane %v13474_v19, 4  ;;  %v2552_v33 = vrot.slane %v14174_v53, 4 }
  0xdd   : > { %11282 = vmatprep.mubr.msk.f32.mxu1 %vm13308_vm1, %v17808_v1 }
  0xde   : > { %v14182_v51 = vsel %vm433_vm0, %v1203_v8, %v1205_v41  ;;  %v1209_v8 = vrot.slane %v13490_v22, 4 }
  0xdf   : > { %11127 = vmatmul.mubr.msk.f32.gmra.mrb[96].mxu0 %vm402_vm3, %v14152_v55  ;;  %17847 = vst [vmem:[#allocation35_spill] sm:$0xff] %v14182_v51 }
  0xe0   : > { %11283 = vmatmul.mubr.msk.f32.gmra.mrb[96].mxu1 %vm402_vm3, %v1871_v45  ;;  %11129 = vmatprep.mubr.msk.f32.mxu0 %vm13308_vm1, %v17808_v1  ;;  %v1207_v45 = vrot.slane %v13487_v21, 4 }
  0xe1   : > { %11285 = vmatprep.mubr.msk.f32.mxu1 %vm13308_vm1, %v17808_v1 }
  0xe2   : > { %v14195_v27 = vsel %vm433_vm0, %v1205_v41, %v1207_v45  ;;  %v14211_v41 = vrot.slane %v13493_v23, 4 }
  0xe3   : > { %11130 = vmatmul.mubr.msk.f32.gmra.mrb[98].mxu0 %vm402_vm3, %v14165_v31  ;;  %17848 = vst [vmem:[#allocation36_spill] sm:$0xff] %v14195_v27 }
  0xe4   : > { %11286 = vmatmul.mubr.msk.f32.gmra.mrb[98].mxu1 %vm402_vm3, %v1873_v61  ;;  %11132 = vmatprep.mubr.msk.f32.mxu0 %vm13308_vm1, %v17808_v1  ;;  %17850 = vst [vmem:[#allocation38_spill] sm:$0xff] %v14211_v41 }
  0xe5   : > { %11337 = vmatprep.mubr.msk.f32.mxu1 %vm13308_vm1, %v17808_v1 }
  0xe7   : > { %11133 = vmatmul.mubr.msk.f32.gmra.mrb[100].mxu0 %vm402_vm3, %v14182_v51 }
  0xe8   : > { %11338 = vmatmul.mubr.msk.f32.vlgmr.msra.gmra.mrb[100].mxu1 %vm402_vm3, %v13498_v24  ;;  %11135 = vmatprep.mubr.msk.f32.mxu0 %vm13308_vm1, %v17808_v1  ;;  %v14208_v24 = vsel %vm433_vm0, %v1207_v45, %v1209_v8 }
  0xe9   : > { %11340 = vmatprep.mubr.msk.f32.mxu1 %vm13308_vm1, %v17808_v1  ;;  %11430 = vmatpush3.msk.msra.mxu1 %vm433_vm0, %v2552_v33  ;;  %17849 = vst [vmem:[#allocation37_spill] sm:$0xff] %v14208_v24 }
  0xeb   : > { %11136 = vmatmul.mubr.msk.f32.gmra.mrb[102].mxu0 %vm402_vm3, %v14195_v27 }
  0xec   : > { %11341 = vmatmul.mubr.msk.f32.gmra.mrb[102].mxu1 %vm402_vm3, %v13519_v26  ;;  %11138 = vmatprep.mubr.msk.f32.mxu0 %vm13308_vm1, %v17808_v1  ;;  %v14223_v26 = vsel %vm433_vm0, %v1209_v8, %v14211_v41  ;;  %v1624_v8 = vrot.slane %v13430_v5, 6 }
  0xed   : > { %11343 = vmatprep.mubr.msk.f32.mxu1 %vm13308_vm1, %v17808_v1  ;;  %17851 = vst [vmem:[#allocation39_spill] sm:$0xff] %v14223_v26 }
  0xef   : > { %11139 = vmatmul.mubr.msk.f32.gmra.mrb[104].mxu0 %vm402_vm3, %v14208_v24 }
  0xf0   : > { %11344 = vmatmul.mubr.msk.f32.gmra.mrb[104].mxu1 %vm402_vm3, %v13532_v28  ;;  %11141 = vmatprep.mubr.msk.f32.mxu0 %vm13308_vm1, %v17808_v1  ;;  %v1623_v28 = vrot.slane %v13427_v4, 6 }
  0xf1   : > { %11346 = vmatprep.mubr.msk.f32.mxu1 %vm13308_vm1, %v17808_v1 }
  0xf2   : > { %v14227_v61 = vpop.f32.mrb[0].mxu0  ;;  %v1625_v5 = vsel %vm1622_vm8, %v1623_v28, %v1624_v8 }
  0xf3   : > { %v14229_v45 = vpop.f32.mrb[0].mxu1  ;;  %v10916_v33 = vpop.f32.mrb[1].mxu0  ;;  %11142 = vmatmul.mubr.msk.f32.gmra.mrb[106].mxu0 %vm402_vm3, %v14223_v26 }
  0xf4   : > { %v10993_v24 = vpop.f32.mrb[1].mxu1  ;;  %11347 = vmatmul.mubr.msk.f32.gmra.mrb[106].mxu1 %vm402_vm3, %v13544_v30  ;;  %11144 = vmatprep.mubr.msk.f32.mxu0 %vm13308_vm1, %v17808_v1 }
  0xf5   : > { %11349 = vmatprep.mubr.msk.f32.mxu1 %vm13308_vm1, %v17808_v1  ;;  %v1626_v24 = vrot.slane %v13433_v6, 6  ;;  %v1628_v6 = vrot.slane %v13439_v10, 6 }
  0xf6   : > { %v14241_v27 = vpop.f32.mrb[2].mxu0 }
  0xf7   : > { %v14243_v33 = vpop.f32.mrb[2].mxu1  ;;  %v10919_v26 = vpop.f32.mrb[3].mxu0  ;;  %11145 = vmatmul.mubr.msk.f32.gmra.mrb[108].mxu0 %vm402_vm3, %v14211_v41  ;;  %v1629_v10 = vsel %vm1622_vm8, %v1626_v24, %v1628_v6 }
  0xf8   : > { %v10996_v30 = vpop.f32.mrb[3].mxu1  ;;  %11350 = vmatmul.mubr.msk.f32.gmra.mrb[108].mxu1 %vm402_vm3, %v13563_v35  ;;  %11196 = vmatprep.mubr.msk.f32.mxu0 %vm13308_vm1, %v17808_v1  ;;  %v1627_v35 = vsel %vm1622_vm8, %v1624_v8, %v1626_v24 }
  0xf9   : > { %11352 = vmatprep.mubr.msk.f32.mxu1 %vm13308_vm1, %v17808_v1 }
  0xfa   : > { %v14255_v4 = vpop.f32.mrb[4].mxu0 }
  0xfb   : > { %v14257_v26 = vpop.f32.mrb[4].mxu1  ;;  %v10922_v51 = vpop.f32.mrb[5].mxu0  ;;  %11197 = vmatmul.mubr.msk.f32.vlgmr.msra.gmra.mrb[110].mxu0 %vm402_vm3, %v1625_v5 }
  0xfc   : > { %v10999_v30 = vpop.f32.mrb[5].mxu1  ;;  %11353 = vmatmul.mubr.msk.f32.gmra.mrb[110].mxu1 %vm402_vm3, %v13577_v40  ;;  %11199 = vmatprep.mubr.msk.f32.mxu0 %vm13308_vm1, %v17808_v1 }
  0xfd   : > { %11289 = vmatpush3.msk.msra.mxu0 %vm433_vm0, %v13972_v39  ;;  %11355 = vmatprep.mubr.msk.f32.mxu1 %vm13308_vm1, %v17808_v1  ;;  %v1630_v39 = vrot.slane %v13442_v11, 6 }
  0xfe   : > { %11382 = vmatprep.subr.mxu0 %v17808_v1  ;;  %v14271_v51 = vpop.f32.mrb[6].mxu0 }
  0xff   : > { %v14273_v28 = vpop.f32.mrb[6].mxu1  ;;  %v10925_v40 = vpop.f32.mrb[7].mxu0  ;;  %11200 = vmatmul.mubr.msk.f32.gmra.mrb[112].mxu0 %vm402_vm3, %v1627_v35  ;;  %v1631_v24 = vsel %vm1622_vm8, %v1628_v6, %v1630_v39  ;;  %v1632_v35 = vrot.slane %v13445_v12, 6 }
 0x100   : > { %v11002_v5 = vpop.f32.mrb[7].mxu1  ;;  %11356 = vmatmul.mubr.msk.f32.gmra.mrb[112].mxu1 %vm402_vm3, %v13595_v44  ;;  %11202 = vmatprep.mubr.msk.f32.mxu0 %vm13308_vm1, %v17808_v1 }
 0x101   : > { %11358 = vmatprep.mubr.msk.f32.mxu1 %vm13308_vm1, %v17808_v1  ;;  %v1633_v6 = vsel %vm1622_vm8, %v1630_v39, %v1632_v35 }
 0x102   : > { %v14284_v8 = vpop.f32.mrb[8].mxu0 }
 0x103   : > { %v14286_v30 = vpop.f32.mrb[8].mxu1  ;;  %v10928_v40 = vpop.f32.mrb[9].mxu0  ;;  %11203 = vmatmul.mubr.msk.f32.gmra.mrb[114].mxu0 %vm402_vm3, %v1629_v10  ;;  %v1634_v10 = vrot.slane %v13452_v13, 6 }
 0x104   : > { %11359 = vmatmul.mubr.msk.f32.gmra.mrb[114].mxu1 %vm402_vm3, %v13611_v48  ;;  %v11005_v44 = vpop.f32.mrb[9].mxu1  ;;  %11205 = vmatprep.mubr.msk.f32.mxu0 %vm13308_vm1, %v17808_v1 }
 0x105   : > { %11361 = vmatprep.mubr.msk.f32.mxu1 %vm13308_vm1, %v17808_v1  ;;  %v1635_v39 = vsel %vm1622_vm8, %v1632_v35, %v1634_v10 }
 0x106   : > { %v14297_v5 = vpop.f32.mrb[10].mxu0 }
 0x107   : > { %v14299_v41 = vpop.f32.mrb[10].mxu1  ;;  %v10931_v40 = vpop.f32.mrb[11].mxu0  ;;  %11206 = vmatmul.mubr.msk.f32.gmra.mrb[116].mxu0 %vm402_vm3, %v1631_v24  ;;  %v1636_v24 = vrot.slane %v13455_v14, 6 }
 0x108   : > { %11362 = vmatmul.mubr.msk.f32.gmra.mrb[116].mxu1 %vm402_vm3, %v13627_v52  ;;  %v11057_v48 = vpop.f32.mrb[11].mxu1  ;;  %11208 = vmatprep.mubr.msk.f32.mxu0 %vm13308_vm1, %v17808_v1 }
 0x109   : > { %11364 = vmatprep.mubr.msk.f32.mxu1 %vm13308_vm1, %v17808_v1  ;;  %v1637_v35 = vsel %vm1622_vm8, %v1634_v10, %v1636_v24 }
 0x10a   : > { %v14310_v44 = vpop.f32.mrb[12].mxu0 }
 0x10b   : > { %v14312_v31 = vpop.f32.mrb[12].mxu1  ;;  %v10934_v40 = vpop.f32.mrb[13].mxu0  ;;  %11209 = vmatmul.mubr.msk.f32.gmra.mrb[118].mxu0 %vm402_vm3, %v1633_v6  ;;  %v1638_v6 = vrot.slane %v13458_v15, 6 }
 0x10c   : > { %11365 = vmatmul.mubr.msk.f32.gmra.mrb[118].mxu1 %vm402_vm3, %v13643_v56  ;;  %v11060_v52 = vpop.f32.mrb[13].mxu1  ;;  %11211 = vmatprep.mubr.msk.f32.mxu0 %vm13308_vm1, %v17808_v1 }
 0x10d   : > { %11367 = vmatprep.mubr.msk.f32.mxu1 %vm13308_vm1, %v17808_v1  ;;  %v1639_v10 = vsel %vm1622_vm8, %v1636_v24, %v1638_v6 }
 0x10e   : > { %v14323_v48 = vpop.f32.mrb[14].mxu0 }
 0x10f   : > { %v14325_v55 = vpop.f32.mrb[14].mxu1  ;;  %v10937_v40 = vpop.f32.mrb[15].mxu0  ;;  %11212 = vmatmul.mubr.msk.f32.gmra.mrb[120].mxu0 %vm402_vm3, %v1635_v39  ;;  %v1640_v39 = vrot.slane %v13468_v17, 6 }
 0x110   : > { %11368 = vmatmul.mubr.msk.f32.gmra.mrb[120].mxu1 %vm402_vm3, %v13659_v60  ;;  %v11063_v56 = vpop.f32.mrb[15].mxu1  ;;  %11214 = vmatprep.mubr.msk.f32.mxu0 %vm13308_vm1, %v17808_v1 }
 0x111   : > { %11370 = vmatprep.mubr.msk.f32.mxu1 %vm13308_vm1, %v17808_v1  ;;  %v2222_v56 = vrot.slane %v13814_v57, 1  ;;  %v1641_v24 = vsel %vm1622_vm8, %v1638_v6, %v1640_v39 }
 0x112   : > { %v14336_v52 = vpop.f32.mrb[16].mxu0 }
 0x113   : > { %v14338_v47 = vpop.f32.mrb[16].mxu1  ;;  %v10940_v40 = vpop.f32.mrb[17].mxu0  ;;  %11215 = vmatmul.mubr.msk.f32.gmra.mrb[122].mxu0 %vm402_vm3, %v1637_v35  ;;  %v2223_v49 = vsel %vm370_vm2, %v13678_v2, %v2222_v56 }
 0x114   : > { %11371 = vmatmul.mubr.msk.f32.gmra.mrb[122].mxu1 %vm402_vm3, %v13675_v0  ;;  %v11066_v60 = vpop.f32.mrb[17].mxu1  ;;  %11217 = vmatprep.mubr.msk.f32.mxu0 %vm13308_vm1, %v17808_v1 }
 0x115   : > { %11373 = vmatprep.mubr.msk.f32.mxu1 %vm13308_vm1, %v17808_v1  ;;  %v1642_v60 = vrot.slane %v13471_v18, 6 }
 0x116   : > { %v14350_v63 = vpop.f32.mrb[18].mxu0 }
 0x117   : > { %v14352_v40 = vpop.f32.mrb[18].mxu1  ;;  %v10943_v35 = vpop.f32.mrb[19].mxu0  ;;  %11218 = vmatmul.mubr.msk.f32.gmra.mrb[124].mxu0 %vm402_vm3, %v1639_v10  ;;  %v1643_v6 = vsel %vm1622_vm8, %v1640_v39, %v1642_v60  ;;  %v1645_v39 = vsel %vm1622_vm8, %v1642_v60, %v1644_v20 }
 0x118   : > { %11374 = vmatmul.mubr.msk.f32.gmra.mrb[124].mxu1 %vm402_vm3, %v13694_v9  ;;  %v11069_v0 = vpop.f32.mrb[19].mxu1  ;;  %11220 = vmatprep.mubr.msk.f32.mxu0 %vm13308_vm1, %v17808_v1 }
 0x119   : > { %11376 = vmatprep.mubr.msk.f32.mxu1 %vm13308_vm1, %v17808_v1 }
 0x11a   : > { %v552_v35 = vpop.f32.mrb[20].mxu0 }
 0x11b   : > { %v14365_v38 = vpop.f32.mrb[20].mxu1  ;;  %v10946_v10 = vpop.f32.mrb[21].mxu0  ;;  %11221 = vmatmul.mubr.msk.f32.gmra.mrb[126].mxu0 %vm402_vm3, %v1641_v24  ;;  %v14370_v0 = vadd.f32 %v14229_v45, %v552_v35  ;;  %v1646_v35 = vrot.slane %v13487_v21, 6 }
 0x11c   : > { %11377 = vmatmul.mubr.msk.f32.gmra.mrb[126].mxu1 %vm402_vm3, %v2223_v49  ;;  %v11072_v9 = vpop.f32.mrb[21].mxu1  ;;  %11223 = vmatprep.mubr.msk.f32.mxu0 %vm13308_vm1, %v17808_v1 }
 0x11d   : > { %11379 = vmatprep.mubr.msk.f32.mxu1 %vm13308_vm1, %v17808_v1  ;;  %v1647_v60 = vsel %vm1622_vm8, %v1644_v20, %v1646_v35 }
 0x11e   : > { %v557_v2 = vpop.f32.mrb[22].mxu0 }
 0x11f   : > { %v14378_v10 = vpop.f32.mrb[22].mxu1  ;;  %v10949_v24 = vpop.f32.mrb[23].mxu0  ;;  %11224 = vmatmul.mubr.msk.f32.gmra.mrb[128].mxu0 %vm402_vm3, %v1643_v6  ;;  %v14383_v45 = vadd.f32 %v14243_v33, %v557_v2  ;;  %v1648_v2 = vrot.slane %v13490_v22, 6 }
 0x120   : > { %11380 = vmatmul.mubr.msk.f32.gmra.mrb[128].mxu1 %vm402_vm3, %v2222_v56  ;;  %v11075_v49 = vpop.f32.mrb[23].mxu1  ;;  %11226 = vmatprep.mubr.msk.f32.mxu0 %vm13308_vm1, %v17808_v1 }
 0x121   : > { %11431 = vmatprep.mubr.msk.f32.mxu1 %vm13308_vm1, %v17808_v1  ;;  %v1649_v20 = vsel %vm1622_vm8, %v1646_v35, %v1648_v2 }
 0x122   : > { %v562_v9 = vpop.f32.mrb[24].mxu0 }
 0x123   : > { %v14391_v24 = vpop.f32.mrb[24].mxu1  ;;  %v10952_v6 = vpop.f32.mrb[25].mxu0  ;;  %11227 = vmatmul.mubr.msk.f32.gmra.mrb[130].mxu0 %vm402_vm3, %v1645_v39  ;;  %v14397_v56 = vadd.f32 %v14257_v26, %v562_v9  ;;  %v1650_v9 = vrot.slane %v13493_v23, 6 }
 0x124   : > { %11432 = vmatmul.mubr.msk.f32.vlgmr.msra.gmra.mrb[130].mxu1 %vm402_vm3, %v13583_v42  ;;  %v11078_v33 = vpop.f32.mrb[25].mxu1  ;;  %11229 = vmatprep.mubr.msk.f32.mxu0 %vm13308_vm1, %v17808_v1 }
 0x125   : > { %11434 = vmatprep.mubr.msk.f32.mxu1 %vm13308_vm1, %v17808_v1  ;;  %v1651_v35 = vsel %vm1622_vm8, %v1648_v2, %v1650_v9 }
 0x126   : > { %v567_v49 = vpop.f32.mrb[26].mxu0 }
 0x127   : > { %v14405_v6 = vpop.f32.mrb[26].mxu1  ;;  %v10955_v39 = vpop.f32.mrb[27].mxu0  ;;  %11230 = vmatmul.mubr.msk.f32.gmra.mrb[132].mxu0 %vm402_vm3, %v1647_v60  ;;  %v14411_v26 = vadd.f32 %v14273_v28, %v567_v49  ;;  %v1652_v49 = vrot.slane %v13814_v57, 6 }
 0x128   : > { %11435 = vmatmul.mubr.msk.f32.gmra.mrb[132].mxu1 %vm402_vm3, %v13601_v46  ;;  %v11081_v42 = vpop.f32.mrb[27].mxu1  ;;  %11232 = vmatprep.mubr.msk.f32.mxu0 %vm13308_vm1, %v17808_v1 }
 0x129   : > { %11437 = vmatprep.mubr.msk.f32.mxu1 %vm13308_vm1, %v17808_v1  ;;  %v1653_v2 = vsel %vm1622_vm8, %v1650_v9, %v1652_v49 }
 0x12a   : > { %v572_v33 = vpop.f32.mrb[28].mxu0 }
 0x12b   : > { %v14419_v39 = vpop.f32.mrb[28].mxu1  ;;  %v10958_v60 = vpop.f32.mrb[29].mxu0  ;;  %11233 = vmatmul.mubr.msk.f32.gmra.mrb[134].mxu0 %vm402_vm3, %v1649_v20  ;;  %v14425_v28 = vadd.f32 %v14286_v30, %v572_v33 }
 0x12c   : > { %11438 = vmatmul.mubr.msk.f32.gmra.mrb[134].mxu1 %vm402_vm3, %v13617_v50  ;;  %v11084_v46 = vpop.f32.mrb[29].mxu1  ;;  %11235 = vmatprep.mubr.msk.f32.mxu0 %vm13308_vm1, %v17808_v1 }
 0x12d   : > { %11440 = vmatprep.mubr.msk.f32.mxu1 %vm13308_vm1, %v17808_v1 }
 0x12e   : > { %v674_v42 = vpop.f32.mrb[30].mxu0 }
 0x12f   : > { %v14433_v60 = vpop.f32.mrb[30].mxu1  ;;  %v14436_v20 = vadd.f32 %v674_v42, %v14227_v61  ;;  %v10963_v50 = vpop.f32.mrb[31].mxu0  ;;  %11236 = vmatmul.mubr.msk.f32.gmra.mrb[136].mxu0 %vm402_vm3, %v1651_v35 }
 0x130   : > { %11441 = vmatmul.mubr.msk.f32.gmra.mrb[136].mxu1 %vm402_vm3, %v13633_v54  ;;  %v11087_v30 = vpop.f32.mrb[31].mxu1  ;;  %11238 = vmatprep.mubr.msk.f32.mxu0 %vm13308_vm1, %v17808_v1  ;;  %v14461_v50 = vld [vmem:[%s13419_s19 + $0x8] sm:$0xff] }
 0x131   : > { %11443 = vmatprep.mubr.msk.f32.mxu1 %vm13308_vm1, %v17808_v1 }
 0x132   : > { %v679_v33 = vpop.f32.mrb[32].mxu0 }
 0x133   : > { %v14446_v46 = vpop.f32.mrb[32].mxu1  ;;  %v10966_v61 = vpop.f32.mrb[33].mxu0  ;;  %11239 = vmatmul.mubr.msk.f32.gmra.mrb[138].mxu0 %vm402_vm3, %v1653_v2  ;;  %v14450_v35 = vadd.f32 %v679_v33, %v14241_v27  ;;  %v14480_v33 = vld [vmem:[%s13419_s19 + $0x10] sm:$0xff] }
 0x134   : > { %11444 = vmatmul.mubr.msk.f32.gmra.mrb[138].mxu1 %vm402_vm3, %v13649_v58  ;;  %v11090_v54 = vpop.f32.mrb[33].mxu1  ;;  %11290 = vmatprep.mubr.msk.f32.mxu0 %vm13308_vm1, %v17808_v1 }
 0x135   : > { %11446 = vmatprep.mubr.msk.f32.mxu1 %vm13308_vm1, %v17808_v1 }
 0x136   : > { %v684_v9 = vpop.f32.mrb[34].mxu0 }
 0x137   : > { %v14458_v49 = vpop.f32.mrb[34].mxu1  ;;  %v10969_v42 = vpop.f32.mrb[35].mxu0  ;;  %11291 = vmatmul.mubr.msk.f32.vlgmr.msra.gmra.mrb[140].mxu0 %vm402_vm3, %v14461_v50  ;;  %v14466_v27 = vadd.f32 %v684_v9, %v14255_v4 }
 0x138   : > { %11447 = vmatmul.mubr.msk.f32.gmra.mrb[140].mxu1 %vm402_vm3, %v13665_v62  ;;  %v11093_v58 = vpop.f32.mrb[35].mxu1  ;;  %11293 = vmatprep.mubr.msk.f32.mxu0 %vm13308_vm1, %v17808_v1  ;;  %v14496_v42 = vld [vmem:[%s13419_s19 + $0x18] sm:$0xff]  ;;  %s9343_s19 = sshll.u32 %s270_s18, 4  ;;  %s17732_s19 = int_to_ptr.vmem [resolvable:$true] %s9343_s19 }
 0x139   : > { %11383 = vmatpush3.msk.msra.mxu0 %vm433_vm0, %v14174_v53  ;;  %11449 = vmatprep.mubr.msk.f32.mxu1 %vm13308_vm1, %v17808_v1  ;;  %s13243_s29 = scalar_lea.vmem %s17732_s19, 16  ;;  %p13250_p0 = scmp.lt.s32.totalorder %s17732_s19, %s13248_s8 }
 0x13a   : > { %11476 = vmatprep.subr.mxu0 %v17808_v1  ;;  %v689_v30 = vpop.f32.mrb[36].mxu0  ;;  %p13244_p11 = scmp.ne.s32.totalorder %s17732_s19, %s13243_s29  ;;  %p13251_p1 = scmp.lt.s32.totalorder %s13249_s9, %s13243_s29 }
 0x13b   : > { %v14477_v2 = vpop.f32.mrb[36].mxu1  ;;  %v10972_v4 = vpop.f32.mrb[37].mxu0  ;;  %11294 = vmatmul.mubr.msk.f32.gmra.mrb[142].mxu0 %vm402_vm3, %v14480_v33  ;;  %v14485_v62 = vadd.f32 %v689_v30, %v14271_v51 }
 0x13c   : > { %11450 = vmatmul.mubr.msk.f32.gmra.mrb[142].mxu1 %vm402_vm3, %v13683_v7  ;;  %v11096_v53 = vpop.f32.mrb[37].mxu1  ;;  %11296 = vmatprep.mubr.msk.f32.mxu0 %vm13308_vm1, %v17808_v1  ;;  %p13245_p12 = pnand %p13244_p11, %p13391_p5  ;;  %p13252_p2 = por %p13251_p1, %p13250_p0 }
 0x13d   : > { %11452 = vmatprep.mubr.msk.f32.mxu1 %vm13308_vm1, %v17808_v1 }
 0x13e   : > { %v694_v61 = vpop.f32.mrb[38].mxu0  ;;  %p13246_p13 = pneg %p13245_p12 }
 0x13f   : > { %v14493_v54 = vpop.f32.mrb[38].mxu1  ;;  %v10975_v9 = vpop.f32.mrb[39].mxu0  ;;  %11297 = vmatmul.mubr.msk.f32.gmra.mrb[144].mxu0 %vm402_vm3, %v14496_v42  ;;  %v14501_v51 = vadd.f32 %v694_v61, %v14284_v8 }
 0x140   : > { %11453 = vmatmul.mubr.msk.f32.gmra.mrb[144].mxu1 %vm402_vm3, %v13699_v16  ;;  %v11099_v7 = vpop.f32.mrb[39].mxu1  ;;  %11299 = vmatprep.mubr.msk.f32.mxu0 %vm13308_vm1, %v17808_v1  ;;  %p13253_p3 = pnand %p13252_p2, %p13246_p13 }
 0x141   : > { %11455 = vmatprep.mubr.msk.f32.mxu1 %vm13308_vm1, %v17808_v1 }
 0x142   : > { %v699_v58 = vpop.f32.mrb[40].mxu0 }
 0x143   : > { %v14509_v30 = vpop.f32.mrb[40].mxu1  ;;  %v10978_v4 = vpop.f32.mrb[41].mxu0  ;;  %11300 = vmatmul.mubr.msk.f32.gmra.mrb[146].mxu0 %vm402_vm3, %v13442_v11  ;;  %v14514_v8 = vadd.f32 %v699_v58, %v14297_v5 }
 0x144   : > { %11456 = vmatmul.mubr.msk.f32.gmra.mrb[146].mxu1 %vm402_vm3, %v13711_v25  ;;  %v11151_v16 = vpop.f32.mrb[41].mxu1  ;;  %11302 = vmatprep.mubr.msk.f32.mxu0 %vm13308_vm1, %v17808_v1 }
 0x145   : > { %11458 = vmatprep.mubr.msk.f32.mxu1 %vm13308_vm1, %v17808_v1 }
 0x146   : > { %v704_v53 = vpop.f32.mrb[42].mxu0 }
 0x147   : > { %v14522_v61 = vpop.f32.mrb[42].mxu1  ;;  %v10981_v9 = vpop.f32.mrb[43].mxu0  ;;  %11303 = vmatmul.mubr.msk.f32.gmra.mrb[148].mxu0 %vm402_vm3, %v13445_v12  ;;  %v14527_v5 = vadd.f32 %v704_v53, %v14310_v44 }
 0x148   : > { %11459 = vmatmul.mubr.msk.f32.gmra.mrb[148].mxu1 %vm402_vm3, %v13723_v29  ;;  %v11154_v25 = vpop.f32.mrb[43].mxu1  ;;  %11305 = vmatprep.mubr.msk.f32.mxu0 %vm13308_vm1, %v17808_v1 }
 0x149   : > { %11461 = vmatprep.mubr.msk.f32.mxu1 %vm13308_vm1, %v17808_v1  ;;  %v2550_v25 = vrot.slane %v13814_v57, 3 }
 0x14a   : > { %v709_v7 = vpop.f32.mrb[44].mxu0 }
 0x14b   : > { %v14535_v58 = vpop.f32.mrb[44].mxu1  ;;  %v10984_v4 = vpop.f32.mrb[45].mxu0  ;;  %11306 = vmatmul.mubr.msk.f32.gmra.mrb[150].mxu0 %vm402_vm3, %v13452_v13  ;;  %v14540_v44 = vadd.f32 %v709_v7, %v14323_v48 }
 0x14c   : > { %11462 = vmatmul.mubr.msk.f32.gmra.mrb[150].mxu1 %vm402_vm3, %v13735_v32  ;;  %v11157_v29 = vpop.f32.mrb[45].mxu1  ;;  %11308 = vmatprep.mubr.msk.f32.mxu0 %vm13308_vm1, %v17808_v1 }
 0x14d   : > { %11464 = vmatprep.mubr.msk.f32.mxu1 %vm13308_vm1, %v17808_v1 }
 0x14e   : > { %v714_v16 = vpop.f32.mrb[46].mxu0 }
 0x14f   : > { %v14548_v53 = vpop.f32.mrb[46].mxu1  ;;  %v10987_v9 = vpop.f32.mrb[47].mxu0  ;;  %11309 = vmatmul.mubr.msk.f32.gmra.mrb[152].mxu0 %vm402_vm3, %v13455_v14  ;;  %v14553_v48 = vadd.f32 %v714_v16, %v14336_v52  ;;  %v2551_v16 = vsel %vm966_vm4, %v13753_v36, %v2550_v25 }
 0x150   : > { %11465 = vmatmul.mubr.msk.f32.gmra.mrb[152].mxu1 %vm402_vm3, %v13750_v3  ;;  %v11160_v32 = vpop.f32.mrb[47].mxu1  ;;  %11311 = vmatprep.mubr.msk.f32.mxu0 %vm13308_vm1, %v17808_v1 }
 0x151   : > { %11467 = vmatprep.mubr.msk.f32.mxu1 %vm13308_vm1, %v17808_v1 }
 0x152   : > { %v719_v7 = vpop.f32.mrb[48].mxu0 }
 0x153   : > { %v14562_v4 = vpop.f32.mrb[48].mxu1  ;;  %v10990_v29 = vpop.f32.mrb[49].mxu0  ;;  %11312 = vmatmul.mubr.msk.f32.gmra.mrb[154].mxu0 %vm402_vm3, %v13458_v15  ;;  %v14567_v52 = vadd.f32 %v719_v7, %v14350_v63 }
 0x154   : > { %11468 = vmatmul.mubr.msk.f32.gmra.mrb[154].mxu1 %vm402_vm3, %v13765_v37  ;;  %v11163_v3 = vpop.f32.mrb[49].mxu1  ;;  %11314 = vmatprep.mubr.msk.f32.mxu0 %vm13308_vm1, %v17808_v1 }
 0x155   : > { %11470 = vmatprep.mubr.msk.f32.mxu1 %vm13308_vm1, %v17808_v1 }
 0x156   : > { %v877_v9 = vpop.f32.mrb[50].mxu0 }
 0x157   : > { %v14577_v32 = vpop.f32.mrb[50].mxu1  ;;  %v11010_v29 = vpop.f32.mrb[51].mxu0  ;;  %11315 = vmatmul.mubr.msk.f32.gmra.mrb[156].mxu0 %vm402_vm3, %v13468_v17  ;;  %v951_v63 = vadd.f32 %v877_v9, %v14436_v20 }
 0x158   : > { %11471 = vmatmul.mubr.msk.f32.gmra.mrb[156].mxu1 %vm402_vm3, %v2551_v16  ;;  %v11166_v37 = vpop.f32.mrb[51].mxu1  ;;  %11317 = vmatprep.mubr.msk.f32.mxu0 %vm13308_vm1, %v17808_v1 }
 0x159   : > { %11473 = vmatprep.mubr.msk.f32.mxu1 %vm13308_vm1, %v17808_v1  ;;  %v14588_v36 = vadd.f32 %v14299_v41, %v951_v63 }
 0x15a   : > { %v882_v7 = vpop.f32.mrb[52].mxu0 }
 0x15b   : > { %v14590_v3 = vpop.f32.mrb[52].mxu1  ;;  %v952_v29 = vadd.f32 %v882_v7, %v14450_v35  ;;  %v11013_v15 = vpop.f32.mrb[53].mxu0  ;;  %11318 = vmatmul.mubr.msk.f32.gmra.mrb[158].mxu0 %vm402_vm3, %v13471_v18 }
 0x15c   : > { %11474 = vmatmul.mubr.msk.f32.gmra.mrb[158].mxu1 %vm402_vm3, %v2550_v25  ;;  %v11169_v20 = vpop.f32.mrb[53].mxu1  ;;  %11320 = vmatprep.mubr.msk.f32.mxu0 %vm13308_vm1, %v17808_v1 }
 0x15d   : > { %v14599_v16 = vadd.f32 %v14312_v31, %v952_v29 }
 0x15e   : > { %v887_v41 = vpop.f32.mrb[54].mxu0 }
 0x15f   : > { %v14601_v9 = vpop.f32.mrb[54].mxu1  ;;  %v953_v63 = vadd.f32 %v887_v41, %v14466_v27  ;;  %v11016_v37 = vpop.f32.mrb[55].mxu0  ;;  %11321 = vmatmul.mubr.msk.f32.gmra.mrb[160].mxu0 %vm402_vm3, %v13474_v19 }
 0x160   : > { %v11172_v15 = vpop.f32.mrb[55].mxu1  ;;  %11323 = vmatprep.mubr.msk.f32.mxu0 %vm13308_vm1, %v17808_v1 }
 0x161   : > { %v14609_v35 = vadd.f32 %v14325_v55, %v953_v63 }
 0x162   : > { %v892_v25 = vpop.f32.mrb[56].mxu0 }
 0x163   : > { %v14611_v7 = vpop.f32.mrb[56].mxu1  ;;  %v954_v31 = vadd.f32 %v892_v25, %v14485_v62  ;;  %v11019_v29 = vpop.f32.mrb[57].mxu0  ;;  %11324 = vmatmul.mubr.msk.f32.gmra.mrb[162].mxu0 %vm402_vm3, %v13487_v21 }
 0x164   : > { %v11175_v27 = vpop.f32.mrb[57].mxu1  ;;  %11326 = vmatprep.mubr.msk.f32.mxu0 %vm13308_vm1, %v17808_v1 }
 0x165   : > { %v14619_v20 = vadd.f32 %v14338_v47, %v954_v31 }
 0x166   : > { %v897_v41 = vpop.f32.mrb[58].mxu0 }
 0x167   : > { %v14621_v37 = vpop.f32.mrb[58].mxu1  ;;  %v955_v55 = vadd.f32 %v897_v41, %v14501_v51  ;;  %v11022_v63 = vpop.f32.mrb[59].mxu0  ;;  %11327 = vmatmul.mubr.msk.f32.gmra.mrb[164].mxu0 %vm402_vm3, %v13490_v22 }
 0x168   : > { %v11178_v62 = vpop.f32.mrb[59].mxu1  ;;  %11329 = vmatprep.mubr.msk.f32.mxu0 %vm13308_vm1, %v17808_v1 }
 0x169   : > { %v14629_v15 = vadd.f32 %v14352_v40, %v955_v55  ;;  %v354_v62 = vld [vmem:[%s17773_s1 + $0x30] sm:$0xff] }
 0x16a   : > { %v902_v25 = vpop.f32.mrb[60].mxu0 }
 0x16b   : > { %v14631_v29 = vpop.f32.mrb[60].mxu1  ;;  %v956_v47 = vadd.f32 %v902_v25, %v14514_v8  ;;  %v11025_v31 = vpop.f32.mrb[61].mxu0  ;;  %11330 = vmatmul.mubr.msk.f32.gmra.mrb[166].mxu0 %vm402_vm3, %v13493_v23 }
 0x16c   : > { %v11181_v51 = vpop.f32.mrb[61].mxu1  ;;  %11332 = vmatprep.mubr.msk.f32.mxu0 %vm13308_vm1, %v17808_v1 }
 0x16d   : > { %v14639_v27 = vadd.f32 %v14365_v38, %v956_v47 }
 0x16e   : > { %v907_v41 = vpop.f32.mrb[62].mxu0 }
 0x16f   : > { %v14641_v63 = vpop.f32.mrb[62].mxu1  ;;  %v957_v40 = vadd.f32 %v907_v41, %v14527_v5  ;;  %v11028_v55 = vpop.f32.mrb[63].mxu0  ;;  %11333 = vmatmul.mubr.msk.f32.gmra.mrb[168].mxu0 %vm402_vm3, %v13814_v57 }
 0x170   : > { %v11184_v8 = vpop.f32.mrb[63].mxu1  ;;  %11384 = vmatprep.mubr.msk.f32.mxu0 %vm13308_vm1, %v17808_v1 }
 0x171   : > { %v14652_v38 = vadd.f32 %v14378_v10, %v957_v40 }
 0x172   : > { %v912_v25 = vpop.f32.mrb[64].mxu0 }
 0x173   : > { %v14654_v47 = vpop.f32.mrb[64].mxu1  ;;  %v958_v5 = vadd.f32 %v912_v25, %v14540_v44  ;;  %v11031_v31 = vpop.f32.mrb[65].mxu0  ;;  %11385 = vmatmul.mubr.msk.f32.vlgmr.msra.gmra.mrb[170].mxu0 %vm402_vm3, %v13854_v43 }
 0x174   : > { %v11187_v51 = vpop.f32.mrb[65].mxu1  ;;  %11387 = vmatprep.mubr.msk.f32.mxu0 %vm13308_vm1, %v17808_v1  ;;  %11477 = vmatpush3.msk.msra.mxu0 %vm433_vm0, %v354_v62 }
 0x175   : > { %v14663_v41 = vadd.f32 %v14391_v24, %v958_v5 }
 0x176   : > { %v917_v10 = vpop.f32.mrb[66].mxu0 }
 0x177   : > { %v14665_v40 = vpop.f32.mrb[66].mxu1  ;;  %v959_v55 = vadd.f32 %v917_v10, %v14553_v48  ;;  %v11034_v8 = vpop.f32.mrb[67].mxu0  ;;  %11388 = vmatmul.mubr.msk.f32.gmra.mrb[172].mxu0 %vm402_vm3, %v13870_v34 }
 0x178   : > { %v11190_v44 = vpop.f32.mrb[67].mxu1  ;;  %11390 = vmatprep.mubr.msk.f32.mxu0 %vm13308_vm1, %v17808_v1 }
 0x179   : > { %v14673_v43 = vadd.f32 %v14405_v6, %v959_v55  ;;  %v17852_v55 = vld [vmem:[#allocation15_spill] sm:$0xff] }
 0x17a   : > { %v922_v62 = vpop.f32.mrb[68].mxu0 }
 0x17b   : > { %v14675_v25 = vpop.f32.mrb[68].mxu1  ;;  %v960_v24 = vadd.f32 %v922_v62, %v14567_v52  ;;  %v11037_v5 = vpop.f32.mrb[69].mxu0  ;;  %11391 = vmatmul.mubr.msk.f32.gmra.mrb[174].mxu0 %vm402_vm3, %v13883_v59 }
 0x17c   : > { %v11193_v48 = vpop.f32.mrb[69].mxu1  ;;  %11393 = vmatprep.mubr.msk.f32.mxu0 %vm13308_vm1, %v17808_v1 }
 0x17d   : > { %v14683_v34 = vadd.f32 %v14419_v39, %v960_v24  ;;  %v17853_v24 = vld [vmem:[#allocation16_spill] sm:$0xff] }
 0x17e   : > { %v927_v31 = vpop.f32.mrb[70].mxu0 }
 0x17f   : > { %v14685_v51 = vpop.f32.mrb[70].mxu1  ;;  %v961_v6 = vadd.f32 %v927_v31, %v14370_v0  ;;  %v11040_v10 = vpop.f32.mrb[71].mxu0  ;;  %11394 = vmatmul.mubr.msk.f32.gmra.mrb[176].mxu0 %vm402_vm3, %v17852_v55 }
 0x180   : > { %v11245_v52 = vpop.f32.mrb[71].mxu1  ;;  %11396 = vmatprep.mubr.msk.f32.mxu0 %vm13308_vm1, %v17808_v1  ;;  %v17854_v10 = vld [vmem:[#allocation17_spill] sm:$0xff] }
 0x181   : > { %v14693_v59 = vadd.f32 %v14433_v60, %v961_v6 }
 0x182   : > { %v932_v8 = vpop.f32.mrb[72].mxu0 }
 0x183   : > { %v14695_v44 = vpop.f32.mrb[72].mxu1  ;;  %v962_v39 = vadd.f32 %v932_v8, %v14383_v45  ;;  %v11043_v62 = vpop.f32.mrb[73].mxu0  ;;  %11397 = vmatmul.mubr.msk.f32.gmra.mrb[178].mxu0 %vm402_vm3, %v17853_v24 }
 0x184   : > { %v11248_v0 = vpop.f32.mrb[73].mxu1  ;;  %11399 = vmatprep.mubr.msk.f32.mxu0 %vm13308_vm1, %v17808_v1  ;;  %v17855_v62 = vld [vmem:[#allocation18_spill] sm:$0xff] }
 0x185   : > { %v14703_v5 = vadd.f32 %v14446_v46, %v962_v39 }
 0x186   : > { %v937_v48 = vpop.f32.mrb[74].mxu0 }
 0x187   : > { %v14705_v31 = vpop.f32.mrb[74].mxu1  ;;  %v963_v60 = vadd.f32 %v937_v48, %v14397_v56  ;;  %v11046_v6 = vpop.f32.mrb[75].mxu0  ;;  %11400 = vmatmul.mubr.msk.f32.gmra.mrb[180].mxu0 %vm402_vm3, %v17854_v10 }
 0x188   : > { %v11251_v45 = vpop.f32.mrb[75].mxu1  ;;  %11402 = vmatprep.mubr.msk.f32.mxu0 %vm13308_vm1, %v17808_v1  ;;  %v17856_v6 = vld [vmem:[#allocation19_spill] sm:$0xff] }
 0x189   : > { %v14713_v55 = vadd.f32 %v14458_v49, %v963_v60 }
 0x18a   : > { %v942_v52 = vpop.f32.mrb[76].mxu0 }
 0x18b   : > { %v14715_v8 = vpop.f32.mrb[76].mxu1  ;;  %v964_v46 = vadd.f32 %v942_v52, %v14411_v26  ;;  %v11049_v39 = vpop.f32.mrb[77].mxu0  ;;  %11403 = vmatmul.mubr.msk.f32.gmra.mrb[182].mxu0 %vm402_vm3, %v17855_v62 }
 0x18c   : > { %v11254_v56 = vpop.f32.mrb[77].mxu1  ;;  %11405 = vmatprep.mubr.msk.f32.mxu0 %vm13308_vm1, %v17808_v1  ;;  %v17857_v39 = vld [vmem:[#allocation20_spill] sm:$0xff] }
 0x18d   : > { %v14723_v24 = vadd.f32 %v14477_v2, %v964_v46 }
 0x18e   : > { %v947_v0 = vpop.f32.mrb[78].mxu0 }
 0x18f   : > { %v14725_v48 = vpop.f32.mrb[78].mxu1  ;;  %v965_v49 = vadd.f32 %v947_v0, %v14425_v28  ;;  %v11052_v60 = vpop.f32.mrb[79].mxu0  ;;  %11406 = vmatmul.mubr.msk.f32.gmra.mrb[184].mxu0 %vm402_vm3, %v17856_v6 }
 0x190   : > { %v11257_v26 = vpop.f32.mrb[79].mxu1  ;;  %11408 = vmatprep.mubr.msk.f32.mxu0 %vm13308_vm1, %v17808_v1  ;;  %v17858_v60 = vld [vmem:[#allocation21_spill] sm:$0xff] }
 0x191   : > { %v14733_v10 = vadd.f32 %v14493_v54, %v965_v49 }
 0x192   : > { %v1312_v45 = vpop.f32.mrb[80].mxu0 }
 0x193   : > { %v14735_v52 = vpop.f32.mrb[80].mxu1  ;;  %v1386_v2 = vadd.f32 %v1312_v45, %v14588_v36  ;;  %v11104_v46 = vpop.f32.mrb[81].mxu0  ;;  %11409 = vmatmul.mubr.msk.f32.gmra.mrb[186].mxu0 %vm402_vm3, %v17857_v39 }
 0x194   : > { %v11260_v28 = vpop.f32.mrb[81].mxu1  ;;  %11411 = vmatprep.mubr.msk.f32.mxu0 %vm13308_vm1, %v17808_v1  ;;  %v17859_v46 = vld [vmem:[#allocation22_spill] sm:$0xff] }
 0x195   : > { %v14743_v62 = vadd.f32 %v14509_v30, %v1386_v2 }
 0x196   : > { %v1317_v56 = vpop.f32.mrb[82].mxu0 }
 0x197   : > { %v14745_v0 = vpop.f32.mrb[82].mxu1  ;;  %v1387_v54 = vadd.f32 %v1317_v56, %v14599_v16  ;;  %v11107_v49 = vpop.f32.mrb[83].mxu0  ;;  %11412 = vmatmul.mubr.msk.f32.gmra.mrb[188].mxu0 %vm402_vm3, %v17858_v60  ;;  %v2386_v60 = vrot.slane %v13814_v57, 2 }
 0x198   : > { %v11263_v36 = vpop.f32.mrb[83].mxu1  ;;  %11414 = vmatprep.mubr.msk.f32.mxu0 %vm13308_vm1, %v17808_v1  ;;  %v17860_v49 = vld [vmem:[#allocation23_spill] sm:$0xff] }
 0x199   : > { %v14753_v6 = vadd.f32 %v14522_v61, %v1387_v54 }
 0x19a   : > { %v1322_v26 = vpop.f32.mrb[84].mxu0 }
 0x19b   : > { %v14755_v45 = vpop.f32.mrb[84].mxu1  ;;  %v1388_v30 = vadd.f32 %v1322_v26, %v14609_v35  ;;  %v11110_v2 = vpop.f32.mrb[85].mxu0  ;;  %11415 = vmatmul.mubr.msk.f32.gmra.mrb[190].mxu0 %vm402_vm3, %v17859_v46 }
 0x19c   : > { %v11266_v16 = vpop.f32.mrb[85].mxu1  ;;  %11417 = vmatprep.mubr.msk.f32.mxu0 %vm13308_vm1, %v17808_v1 }
 0x19d   : > { %v14763_v39 = vadd.f32 %v14535_v58, %v1388_v30  ;;  %v17862_v16 = vld [vmem:[#allocation24_spill] sm:$0xff] }
 0x19e   : > { %v1327_v28 = vpop.f32.mrb[86].mxu0 }
 0x19f   : > { %v14765_v56 = vpop.f32.mrb[86].mxu1  ;;  %v1389_v61 = vadd.f32 %v1327_v28, %v14619_v20  ;;  %v11113_v54 = vpop.f32.mrb[87].mxu0  ;;  %11418 = vmatmul.mubr.msk.f32.gmra.mrb[192].mxu0 %vm402_vm3, %v17860_v49  ;;  %v17861_v20 = vld [vmem:[#allocation25_spill] sm:$0xff]  ;;  %v2387_v28 = vsel %vm748_vm6, %v17862_v16, %v2386_v60 }
 0x1a0   : > { %v11269_v35 = vpop.f32.mrb[87].mxu1  ;;  %11420 = vmatprep.mubr.msk.f32.mxu0 %vm13308_vm1, %v17808_v1 }
 0x1a1   : > { %v14774_v36 = vadd.f32 %v14548_v53, %v1389_v61 }
 0x1a2   : > { %v1332_v58 = vpop.f32.mrb[88].mxu0 }
 0x1a3   : > { %v14776_v26 = vpop.f32.mrb[88].mxu1  ;;  %v1390_v30 = vadd.f32 %v1332_v58, %v14629_v15  ;;  %v11116_v2 = vpop.f32.mrb[89].mxu0  ;;  %11421 = vmatmul.mubr.msk.f32.gmra.mrb[194].mxu0 %vm402_vm3, %v17861_v20 }
 0x1a4   : > { %v11272_v46 = vpop.f32.mrb[89].mxu1  ;;  %11423 = vmatprep.mubr.msk.f32.mxu0 %vm13308_vm1, %v17808_v1 }
 0x1a5   : > { %v14786_v54 = vadd.f32 %v14562_v4, %v1390_v30 }
 0x1a6   : > { %v1337_v53 = vpop.f32.mrb[90].mxu0 }
 0x1a7   : > { %v14788_v61 = vpop.f32.mrb[90].mxu1  ;;  %v1391_v49 = vadd.f32 %v1337_v53, %v14639_v27  ;;  %v11119_v15 = vpop.f32.mrb[91].mxu0  ;;  %11424 = vmatmul.mubr.msk.f32.gmra.mrb[196].mxu0 %vm402_vm3, %v2387_v28 }
 0x1a8   : > { %v11275_v35 = vpop.f32.mrb[91].mxu1  ;;  %11426 = vmatprep.mubr.msk.f32.mxu0 %vm13308_vm1, %v17808_v1 }
 0x1a9   : > { %v14795_v58 = vadd.f32 %v14577_v32, %v1391_v49  ;;  %v17863_v49 = vld [vmem:[#allocation26_spill] sm:$0xff] }
 0x1aa   : > { %v1342_v2 = vpop.f32.mrb[92].mxu0 }
 0x1ab   : > { %v14797_v20 = vpop.f32.mrb[92].mxu1  ;;  %v1392_v4 = vadd.f32 %v1342_v2, %v14652_v38  ;;  %v11122_v30 = vpop.f32.mrb[93].mxu0  ;;  %11427 = vmatmul.mubr.msk.f32.gmra.mrb[198].mxu0 %vm402_vm3, %v2386_v60 }
 0x1ac   : > { %v11278_v46 = vpop.f32.mrb[93].mxu1  ;;  %11478 = vmatprep.mubr.msk.f32.mxu0 %vm13308_vm1, %v17808_v1 }
 0x1ad   : > { %v14804_v27 = vadd.f32 %v14590_v3, %v1392_v4  ;;  %v17864_v4 = vld [vmem:[#allocation27_spill] sm:$0xff] }
 0x1ae   : > { %v1347_v16 = vpop.f32.mrb[94].mxu0 }
 0x1af   : > { %v14806_v28 = vpop.f32.mrb[94].mxu1  ;;  %v1393_v32 = vadd.f32 %v1347_v16, %v14663_v41  ;;  %v11125_v53 = vpop.f32.mrb[95].mxu0  ;;  %11479 = vmatmul.mubr.msk.f32.vlgmr.msra.gmra.mrb[200].mxu0 %vm402_vm3, %v17863_v49 }
 0x1b0   : > { %v11281_v38 = vpop.f32.mrb[95].mxu1  ;;  %11481 = vmatprep.mubr.msk.f32.mxu0 %vm13308_vm1, %v17808_v1  ;;  %v17865_v53 = vld [vmem:[#allocation28_spill] sm:$0xff] }
 0x1b1   : > { %v14814_v60 = vadd.f32 %v14601_v9, %v1393_v32 }
 0x1b2   : > { %v1352_v15 = vpop.f32.mrb[96].mxu0 }
 0x1b3   : > { %v14816_v35 = vpop.f32.mrb[96].mxu1  ;;  %v1394_v3 = vadd.f32 %v1352_v15, %v14673_v43  ;;  %v11128_v2 = vpop.f32.mrb[97].mxu0  ;;  %11482 = vmatmul.mubr.msk.f32.gmra.mrb[202].mxu0 %vm402_vm3, %v17864_v4 }
 0x1b4   : > { %v11284_v41 = vpop.f32.mrb[97].mxu1  ;;  %11484 = vmatprep.mubr.msk.f32.mxu0 %vm13308_vm1, %v17808_v1  ;;  %v17866_v2 = vld [vmem:[#allocation29_spill] sm:$0xff] }
 0x1b5   : > { %v14824_v30 = vadd.f32 %v14611_v7, %v1394_v3 }
 0x1b6   : > { %v1357_v46 = vpop.f32.mrb[98].mxu0 }
 0x1b7   : > { %v14826_v16 = vpop.f32.mrb[98].mxu1  ;;  %v1395_v9 = vadd.f32 %v1357_v46, %v14683_v34  ;;  %v11131_v32 = vpop.f32.mrb[99].mxu0  ;;  %11485 = vmatmul.mubr.msk.f32.gmra.mrb[204].mxu0 %vm402_vm3, %v17865_v53 }
 0x1b8   : > { %v11287_v43 = vpop.f32.mrb[99].mxu1  ;;  %11487 = vmatprep.mubr.msk.f32.mxu0 %vm13308_vm1, %v17808_v1  ;;  %v17867_v32 = vld [vmem:[#allocation30_spill] sm:$0xff] }
 0x1b9   : > { %v14834_v49 = vadd.f32 %v14621_v37, %v1395_v9 }
 0x1ba   : > { %v1362_v38 = vpop.f32.mrb[100].mxu0 }
 0x1bb   : > { %v14836_v15 = vpop.f32.mrb[100].mxu1  ;;  %v1396_v7 = vadd.f32 %v1362_v38, %v14693_v59  ;;  %v11134_v3 = vpop.f32.mrb[101].mxu0  ;;  %11488 = vmatmul.mubr.msk.f32.gmra.mrb[206].mxu0 %vm402_vm3, %v17866_v2 }
 0x1bc   : > { %v11339_v34 = vpop.f32.mrb[101].mxu1  ;;  %11490 = vmatprep.mubr.msk.f32.mxu0 %vm13308_vm1, %v17808_v1  ;;  %v17868_v3 = vld [vmem:[#allocation31_spill] sm:$0xff] }
 0x1bd   : > { %v14844_v4 = vadd.f32 %v14631_v29, %v1396_v7 }
 0x1be   : > { %v1367_v41 = vpop.f32.mrb[102].mxu0 }
 0x1bf   : > { %v14846_v46 = vpop.f32.mrb[102].mxu1  ;;  %v1397_v37 = vadd.f32 %v1367_v41, %v14703_v5  ;;  %v11137_v9 = vpop.f32.mrb[103].mxu0  ;;  %11491 = vmatmul.mubr.msk.f32.gmra.mrb[208].mxu0 %vm402_vm3, %v17867_v32 }
 0x1c0   : > { %v11342_v59 = vpop.f32.mrb[103].mxu1  ;;  %11493 = vmatprep.mubr.msk.f32.mxu0 %vm13308_vm1, %v17808_v1  ;;  %v17869_v9 = vld [vmem:[#allocation32_spill] sm:$0xff] }
 0x1c1   : > { %v14854_v53 = vadd.f32 %v14641_v63, %v1397_v37 }
 0x1c2   : > { %v1372_v43 = vpop.f32.mrb[104].mxu0 }
 0x1c3   : > { %v14856_v38 = vpop.f32.mrb[104].mxu1  ;;  %v1398_v29 = vadd.f32 %v1372_v43, %v14713_v55  ;;  %v11140_v7 = vpop.f32.mrb[105].mxu0  ;;  %11494 = vmatmul.mubr.msk.f32.gmra.mrb[210].mxu0 %vm402_vm3, %v17868_v3 }
 0x1c4   : > { %v11345_v5 = vpop.f32.mrb[105].mxu1  ;;  %11496 = vmatprep.mubr.msk.f32.mxu0 %vm13308_vm1, %v17808_v1  ;;  %v17870_v7 = vld [vmem:[#allocation33_spill] sm:$0xff] }
 0x1c5   : > { %v14864_v2 = vadd.f32 %v14654_v47, %v1398_v29 }
 0x1c6   : > { %v1377_v34 = vpop.f32.mrb[106].mxu0 }
 0x1c7   : > { %v14866_v41 = vpop.f32.mrb[106].mxu1  ;;  %v1399_v63 = vadd.f32 %v1377_v34, %v14723_v24  ;;  %v11143_v37 = vpop.f32.mrb[107].mxu0  ;;  %11497 = vmatmul.mubr.msk.f32.gmra.mrb[212].mxu0 %vm402_vm3, %v17869_v9 }
 0x1c8   : > { %v11348_v55 = vpop.f32.mrb[107].mxu1  ;;  %11499 = vmatprep.mubr.msk.f32.mxu0 %vm13308_vm1, %v17808_v1  ;;  %v17871_v37 = vld [vmem:[#allocation34_spill] sm:$0xff] }
 0x1c9   : > { %v14874_v32 = vadd.f32 %v14665_v40, %v1399_v63 }
 0x1ca   : > { %v1382_v59 = vpop.f32.mrb[108].mxu0 }
 0x1cb   : > { %v14876_v43 = vpop.f32.mrb[108].mxu1  ;;  %v1400_v47 = vadd.f32 %v1382_v59, %v14733_v10  ;;  %v11146_v29 = vpop.f32.mrb[109].mxu0  ;;  %11500 = vmatmul.mubr.msk.f32.gmra.mrb[214].mxu0 %vm402_vm3, %v17870_v7 }
 0x1cc   : > { %v11351_v24 = vpop.f32.mrb[109].mxu1  ;;  %11502 = vmatprep.mubr.msk.f32.mxu0 %vm13308_vm1, %v17808_v1  ;;  %v17872_v29 = vld [vmem:[#allocation35_spill] sm:$0xff] }
 0x1cd   : > { %v14884_v3 = vadd.f32 %v14675_v25, %v1400_v47 }
 0x1ce   : > { %v1753_v5 = vpop.f32.mrb[110].mxu0 }
 0x1cf   : > { %v14886_v34 = vpop.f32.mrb[110].mxu1  ;;  %v1827_v40 = vadd.f32 %v1753_v5, %v14743_v62  ;;  %v11198_v63 = vpop.f32.mrb[111].mxu0  ;;  %11503 = vmatmul.mubr.msk.f32.gmra.mrb[216].mxu0 %vm402_vm3, %v17871_v37 }
 0x1d0   : > { %v11354_v10 = vpop.f32.mrb[111].mxu1  ;;  %11505 = vmatprep.mubr.msk.f32.mxu0 %vm13308_vm1, %v17808_v1  ;;  %v17873_v63 = vld [vmem:[#allocation36_spill] sm:$0xff] }
 0x1d1   : > { %v14894_v9 = vadd.f32 %v14685_v51, %v1827_v40 }
 0x1d2   : > { %v1758_v55 = vpop.f32.mrb[112].mxu0 }
 0x1d3   : > { %v14896_v59 = vpop.f32.mrb[112].mxu1  ;;  %v1828_v25 = vadd.f32 %v1758_v55, %v14753_v6  ;;  %v11201_v47 = vpop.f32.mrb[113].mxu0  ;;  %11506 = vmatmul.mubr.msk.f32.gmra.mrb[218].mxu0 %vm402_vm3, %v17872_v29  ;;  %v2714_v29 = vrot.slane %v13814_v57, 4 }
 0x1d4   : > { %v11357_v62 = vpop.f32.mrb[113].mxu1  ;;  %11508 = vmatprep.mubr.msk.f32.mxu0 %vm13308_vm1, %v17808_v1  ;;  %v17874_v47 = vld [vmem:[#allocation37_spill] sm:$0xff] }
 0x1d5   : > { %v14904_v7 = vadd.f32 %v14695_v44, %v1828_v25 }
 0x1d6   : > { %v1763_v24 = vpop.f32.mrb[114].mxu0 }
 0x1d7   : > { %v14906_v5 = vpop.f32.mrb[114].mxu1  ;;  %v1829_v51 = vadd.f32 %v1763_v24, %v14763_v39  ;;  %v11204_v40 = vpop.f32.mrb[115].mxu0  ;;  %11509 = vmatmul.mubr.msk.f32.gmra.mrb[220].mxu0 %vm402_vm3, %v17873_v63 }
 0x1d8   : > { %v11360_v6 = vpop.f32.mrb[115].mxu1  ;;  %11511 = vmatprep.mubr.msk.f32.mxu0 %vm13308_vm1, %v17808_v1 }
 0x1d9   : > { %v14914_v37 = vadd.f32 %v14705_v31, %v1829_v51  ;;  %v17876_v6 = vld [vmem:[#allocation38_spill] sm:$0xff] }
 0x1da   : > { %v1768_v10 = vpop.f32.mrb[116].mxu0 }
 0x1db   : > { %v14916_v55 = vpop.f32.mrb[116].mxu1  ;;  %v1830_v44 = vadd.f32 %v1768_v10, %v14774_v36  ;;  %v11207_v25 = vpop.f32.mrb[117].mxu0  ;;  %11512 = vmatmul.mubr.msk.f32.gmra.mrb[222].mxu0 %vm402_vm3, %v17874_v47  ;;  %v17875_v36 = vld [vmem:[#allocation39_spill] sm:$0xff]  ;;  %v2715_v10 = vsel %vm433_vm0, %v17876_v6, %v2714_v29 }
 0x1dc   : > { %v11363_v39 = vpop.f32.mrb[117].mxu1  ;;  %11514 = vmatprep.mubr.msk.f32.mxu0 %vm13308_vm1, %v17808_v1 }
 0x1dd   : > { %v14925_v62 = vadd.f32 %v14715_v8, %v1830_v44 }
 0x1de   : > { %v1773_v31 = vpop.f32.mrb[118].mxu0 }
 0x1df   : > { %v14927_v24 = vpop.f32.mrb[118].mxu1  ;;  %v1831_v51 = vadd.f32 %v1773_v31, %v14786_v54  ;;  %v11210_v40 = vpop.f32.mrb[119].mxu0  ;;  %11515 = vmatmul.mubr.msk.f32.gmra.mrb[224].mxu0 %vm402_vm3, %v17875_v36 }
 0x1e0   : > { %v11366_v63 = vpop.f32.mrb[119].mxu1  ;;  %11517 = vmatprep.mubr.msk.f32.mxu0 %vm13308_vm1, %v17808_v1 }
 0x1e1   : > { %v14937_v25 = vadd.f32 %v14725_v48, %v1831_v51 }
 0x1e2   : > { %v1778_v8 = vpop.f32.mrb[120].mxu0 }
 0x1e3   : > { %v14939_v44 = vpop.f32.mrb[120].mxu1  ;;  %v1832_v47 = vadd.f32 %v1778_v8, %v14795_v58  ;;  %v11213_v54 = vpop.f32.mrb[121].mxu0  ;;  %11518 = vmatmul.mubr.msk.f32.gmra.mrb[226].mxu0 %vm402_vm3, %v2715_v10 }
 0x1e4   : > { %v11369_v39 = vpop.f32.mrb[121].mxu1  ;;  %11520 = vmatprep.mubr.msk.f32.mxu0 %vm13308_vm1, %v17808_v1 }
 0x1e5   : > { %v14946_v31 = vadd.f32 %v14735_v52, %v1832_v47 }
 0x1e6   : > { %v1783_v40 = vpop.f32.mrb[122].mxu0 }
 0x1e7   : > { %v14948_v36 = vpop.f32.mrb[122].mxu1  ;;  %v1833_v48 = vadd.f32 %v1783_v40, %v14804_v27  ;;  %v11216_v51 = vpop.f32.mrb[123].mxu0  ;;  %11521 = vmatmul.mubr.msk.f32.gmra.mrb[228].mxu0 %vm402_vm3, %v2714_v29 }
 0x1e8   : > { %v11372_v63 = vpop.f32.mrb[123].mxu1  ;;  %11649 = vmatprep.mubr.msk.f32.mxu0 %vm13308_vm1, %v17808_v1 }
 0x1e9   : > { %v14955_v58 = vadd.f32 %v14745_v0, %v1833_v48 }
 0x1ea   : > { %v1788_v6 = vpop.f32.mrb[124].mxu0 }
 0x1eb   : > { %v14957_v10 = vpop.f32.mrb[124].mxu1  ;;  %v1834_v52 = vadd.f32 %v1788_v6, %v14814_v60  ;;  %v11219_v8 = vpop.f32.mrb[125].mxu0 }
 0x1ec   : > { %v11375_v47 = vpop.f32.mrb[125].mxu1 }
 0x1ed   : > { %v14961_v54 = vadd.f32 %v14755_v45, %v1834_v52 }
 0x1ee   : > { %v1793_v27 = vpop.f32.mrb[126].mxu0 }
 0x1ef   : > { %v14963_v39 = vpop.f32.mrb[126].mxu1  ;;  %v1835_v29 = vadd.f32 %v1793_v27, %v14824_v30  ;;  %v11222_v40 = vpop.f32.mrb[127].mxu0 }
 0x1f0   : > { %v11378_v51 = vpop.f32.mrb[127].mxu1 }
 0x1f1   : > { %v14967_v0 = vadd.f32 %v14765_v56, %v1835_v29 }
 0x1f2   : > { %v1798_v48 = vpop.f32.mrb[128].mxu0 }
 0x1f3   : > { %v14969_v63 = vpop.f32.mrb[128].mxu1  ;;  %v1836_v60 = vadd.f32 %v1798_v48, %v14834_v49  ;;  %v11225_v6 = vpop.f32.mrb[129].mxu0 }
 0x1f4   : > { %v11381_v8 = vpop.f32.mrb[129].mxu1 }
 0x1f5   : > { %v14973_v45 = vadd.f32 %v14776_v26, %v1836_v60 }
 0x1f6   : > { %v1803_v52 = vpop.f32.mrb[130].mxu0 }
 0x1f7   : > { %v14975_v47 = vpop.f32.mrb[130].mxu1  ;;  %v1837_v30 = vadd.f32 %v1803_v52, %v14844_v4  ;;  %v11228_v27 = vpop.f32.mrb[131].mxu0 }
 0x1f8   : > { %v11433_v40 = vpop.f32.mrb[131].mxu1 }
 0x1f9   : > { %v14979_v56 = vadd.f32 %v14788_v61, %v1837_v30 }
 0x1fa   : > { %v1808_v29 = vpop.f32.mrb[132].mxu0 }
 0x1fb   : > { %v14981_v51 = vpop.f32.mrb[132].mxu1  ;;  %v1838_v49 = vadd.f32 %v1808_v29, %v14854_v53  ;;  %v11231_v48 = vpop.f32.mrb[133].mxu0 }
 0x1fc   : > { %v11436_v6 = vpop.f32.mrb[133].mxu1 }
 0x1fd   : > { %v14985_v26 = vadd.f32 %v14797_v20, %v1838_v49 }
 0x1fe   : > { %v1813_v60 = vpop.f32.mrb[134].mxu0 }
 0x1ff   : > { %v14987_v8 = vpop.f32.mrb[134].mxu1  ;;  %v1839_v4 = vadd.f32 %v1813_v60, %v14864_v2  ;;  %v11234_v52 = vpop.f32.mrb[135].mxu0 }
 0x200   : > { %v11439_v27 = vpop.f32.mrb[135].mxu1 }
 0x201   : > { %v14991_v61 = vadd.f32 %v14806_v28, %v1839_v4 }
 0x202   : > { %v1818_v30 = vpop.f32.mrb[136].mxu0 }
 0x203   : > { %v14993_v40 = vpop.f32.mrb[136].mxu1  ;;  %v1840_v53 = vadd.f32 %v1818_v30, %v14874_v32  ;;  %v11237_v29 = vpop.f32.mrb[137].mxu0 }
 0x204   : > { %v11442_v48 = vpop.f32.mrb[137].mxu1 }
 0x205   : > { %v14997_v20 = vadd.f32 %v14816_v35, %v1840_v53 }
 0x206   : > { %v1823_v49 = vpop.f32.mrb[138].mxu0 }
 0x207   : > { %v14999_v6 = vpop.f32.mrb[138].mxu1  ;;  %v1841_v2 = vadd.f32 %v1823_v49, %v14884_v3  ;;  %v11240_v60 = vpop.f32.mrb[139].mxu0 }
 0x208   : > { %v11445_v52 = vpop.f32.mrb[139].mxu1 }
 0x209   : > { %v15003_v28 = vadd.f32 %v14826_v16, %v1841_v2 }
 0x20a   : > { %v2133_v4 = vpop.f32.mrb[140].mxu0 }
 0x20b   : > { %v15005_v27 = vpop.f32.mrb[140].mxu1  ;;  %v2207_v32 = vadd.f32 %v2133_v4, %v14894_v9  ;;  %v11292_v30 = vpop.f32.mrb[141].mxu0 }
 0x20c   : > { %v11448_v29 = vpop.f32.mrb[141].mxu1 }
 0x20d   : > { %v15009_v35 = vadd.f32 %v14836_v15, %v2207_v32 }
 0x20e   : > { %v2138_v53 = vpop.f32.mrb[142].mxu0 }
 0x20f   : > { %v15011_v48 = vpop.f32.mrb[142].mxu1  ;;  %v2208_v3 = vadd.f32 %v2138_v53, %v14904_v7  ;;  %v11295_v49 = vpop.f32.mrb[143].mxu0 }
 0x210   : > { %v11451_v60 = vpop.f32.mrb[143].mxu1 }
 0x211   : > { %v15015_v16 = vadd.f32 %v14846_v46, %v2208_v3 }
 0x212   : > { %v2143_v2 = vpop.f32.mrb[144].mxu0 }
 0x213   : > { %v15017_v52 = vpop.f32.mrb[144].mxu1  ;;  %v2209_v9 = vadd.f32 %v2143_v2, %v14914_v37  ;;  %v11298_v4 = vpop.f32.mrb[145].mxu0 }
 0x214   : > { %v11454_v30 = vpop.f32.mrb[145].mxu1 }
 0x215   : > { %v15021_v15 = vadd.f32 %v14856_v38, %v2209_v9  ;;  %v9621_v9 = vld [vmem:[%s17773_s1 + $0x80] sm:$0xff] }
 0x216   : > { %v2148_v32 = vpop.f32.mrb[146].mxu0 }
 0x217   : > { %v15023_v29 = vpop.f32.mrb[146].mxu1  ;;  %v2210_v7 = vadd.f32 %v2148_v32, %v14925_v62  ;;  %v11301_v53 = vpop.f32.mrb[147].mxu0  ;;  %v9622_v62 = vld [vmem:[%s17773_s1 + $0x88] sm:$0xff] }
 0x218   : > { %v11457_v49 = vpop.f32.mrb[147].mxu1  ;;  %v12590_v32 = vpack.c.bf16 %v9622_v62, %v9621_v9 }
 0x219   : > { %v15027_v46 = vadd.f32 %v14866_v41, %v2210_v7 }
 0x21a   : > { %v2153_v3 = vpop.f32.mrb[148].mxu0  ;;  %12591 = vmatprep.subr.bf16.mxu1 %v12590_v32 }
 0x21b   : > { %v15029_v60 = vpop.f32.mrb[148].mxu1  ;;  %v2211_v37 = vadd.f32 %v2153_v3, %v14937_v25  ;;  %v11304_v2 = vpop.f32.mrb[149].mxu0  ;;  %12593 = vmatpush3.bf16.msra.mxu1 %v12590_v32 }
 0x21c   : > { %v11460_v4 = vpop.f32.mrb[149].mxu1 }
 0x21d   : > { %v15033_v38 = vadd.f32 %v14876_v43, %v2211_v37 }
 0x21e   : > { %v2158_v41 = vpop.f32.mrb[150].mxu0 }
 0x21f   : > { %v15041_v30 = vpop.f32.mrb[150].mxu1  ;;  %v2212_v7 = vadd.f32 %v2158_v41, %v14946_v31  ;;  %v11307_v25 = vpop.f32.mrb[151].mxu0 }
 0x220   : > { %v11463_v53 = vpop.f32.mrb[151].mxu1 }
 0x221   : > { %v15045_v43 = vadd.f32 %v14886_v34, %v2212_v7 }
 0x222   : > { %v2163_v49 = vpop.f32.mrb[152].mxu0 }
 0x223   : > { %v15047_v3 = vpop.f32.mrb[152].mxu1  ;;  %v2213_v37 = vadd.f32 %v2163_v49, %v14955_v58  ;;  %v11310_v2 = vpop.f32.mrb[153].mxu0 }
 0x224   : > { %v11466_v4 = vpop.f32.mrb[153].mxu1 }
 0x225   : > { %v15051_v1 = vadd.f32 %v14896_v59, %v2213_v37  ;;  %v9623_v59 = vld [vmem:[%s17773_s1 + $0x90] sm:$0xff] }
 0x226   : > { %v2168_v9 = vpop.f32.mrb[154].mxu0 }
 0x227   : > { %v15053_v62 = vpop.f32.mrb[154].mxu1  ;;  %v2214_v31 = vadd.f32 %v2168_v9, %v14961_v54  ;;  %v11313_v41 = vpop.f32.mrb[155].mxu0  ;;  %v9624_v54 = vld [vmem:[%s17773_s1 + $0x98] sm:$0xff] }
 0x228   : > { %v11469_v25 = vpop.f32.mrb[155].mxu1 }
 0x229   : > { %v15057_v34 = vadd.f32 %v14906_v5, %v2214_v31  ;;  %v12594_v5 = vpack.c.bf16 %v9624_v54, %v9623_v59 }
 0x22a   : > { %v2173_v32 = vpop.f32.mrb[156].mxu0 }
 0x22b   : > { %v15059_v7 = vpop.f32.mrb[156].mxu1  ;;  %v2215_v58 = vadd.f32 %v2173_v32, %v14967_v0  ;;  %v11316_v53 = vpop.f32.mrb[157].mxu0  ;;  %12595 = vmatprep.subr.bf16.mxu1 %v12594_v5 }
 0x22c   : > { %v11472_v49 = vpop.f32.mrb[157].mxu1  ;;  %12597 = vmatpush3.bf16.msra.mxu1 %v12594_v5 }
 0x22d   : > { %v15069_v37 = vadd.f32 %v14916_v55, %v2215_v58 }
 0x22e   : > { %v2178_v2 = vpop.f32.mrb[158].mxu0 }
 0x22f   : > { %v15071_v4 = vpop.f32.mrb[158].mxu1  ;;  %v2216_v9 = vadd.f32 %v2178_v2, %v14973_v45  ;;  %v11319_v0 = vpop.f32.mrb[159].mxu0 }
 0x230   : > { %v11475_v31 = vpop.f32.mrb[159].mxu1 }
 0x231   : > { %v15075_v41 = vadd.f32 %v14927_v24, %v2216_v9  ;;  %v9625_v24 = vld [vmem:[%s17773_s1 + $0xa0] sm:$0xff]  ;;  %v9628_v31 = vld [vmem:[%s17773_s1 + $0xb8] sm:$0xff] }
 0x232   : > { %v2183_v25 = vpop.f32.mrb[160].mxu0 }
 0x233   : > { %v2217_v32 = vadd.f32 %v2183_v25, %v14979_v56  ;;  %v11322_v53 = vpop.f32.mrb[161].mxu0 }
 0x235   : > { %v15079_v55 = vadd.f32 %v14939_v44, %v2217_v32  ;;  %v9626_v44 = vld [vmem:[%s17773_s1 + $0xa8] sm:$0xff] }
 0x236   : > { %v2188_v58 = vpop.f32.mrb[162].mxu0 }
 0x237   : > { %v2218_v49 = vadd.f32 %v2188_v58, %v14985_v26  ;;  %v11325_v59 = vpop.f32.mrb[163].mxu0  ;;  %v12598_v26 = vpack.c.bf16 %v9626_v44, %v9625_v24 }
 0x239   : > { %v15083_v45 = vadd.f32 %v14948_v36, %v2218_v49  ;;  %12599 = vmatprep.subr.bf16.mxu1 %v12598_v26  ;;  %v9614_v49 = vld [vmem:[%s17773_s1 + $0x48] sm:$0xff] }
 0x23a   : > { %v2193_v54 = vpop.f32.mrb[164].mxu0  ;;  %12601 = vmatpush3.bf16.msra.mxu1 %v12598_v26 }
 0x23b   : > { %v2219_v5 = vadd.f32 %v2193_v54, %v14991_v61  ;;  %v11328_v2 = vpop.f32.mrb[165].mxu0  ;;  %v9627_v61 = vld [vmem:[%s17773_s1 + $0xb0] sm:$0xff] }
 0x23d   : > { %v15093_v56 = vadd.f32 %v14957_v10, %v2219_v5  ;;  %v12602_v10 = vpack.c.bf16 %v9628_v31, %v9627_v61  ;;  %v17877_v61 = vmov 0.0  }
 0x23e   : > { %v2198_v9 = vpop.f32.mrb[166].mxu0  ;;  %3874 = vst.msk [vmem:[#allocation3] sm:$0x3] %vm3810_vm9, %v17877_v61  ;;  %3876 = vst.msk [vmem:[#allocation3 + $0x4] sm:$0x3] %vm3810_vm9, %v17877_v61 }
 0x23f   : > { %v2220_v36 = vadd.f32 %v2198_v9, %v14997_v20  ;;  %v11331_v0 = vpop.f32.mrb[167].mxu0  ;;  %12603 = vmatprep.subr.bf16.mxu1 %v12602_v10  ;;  %v9613_v20 = vld [vmem:[%s17773_s1 + $0x40] sm:$0xff]  ;;  %4676 = vst.msk [vmem:[#allocation3 + $0x8] sm:$0x3] %vm3810_vm9, %v17877_v61  ;;  %5560 = vst.msk [vmem:[#allocation3 + $0x1f] sm:$0x3] %vm3810_vm9, %v17877_v61 }
 0x240   : > { %12605 = vmatpush3.bf16.msra.mxu1 %v12602_v10  ;;  %4394 = vst.msk [vmem:[#allocation4] sm:$0x1] %vm3543_vm13, %v17877_v61  ;;  %4396 = vst.msk [vmem:[#allocation4 + $0x3] sm:$0x1] %vm3543_vm13, %v17877_v61 }
 0x241   : > { %v15103_v25 = vadd.f32 %v14963_v39, %v2220_v36  ;;  %v15115_v39 = vpack.c.bf16 %v9614_v49, %v9613_v20  ;;  %5277 = vst.msk [vmem:[#allocation4 + $0x7] sm:$0x1] %vm3543_vm13, %v17877_v61  ;;  %6396 = vst.msk [vmem:[#allocation4 + $0x1e] sm:$0x1] %vm3543_vm13, %v17877_v61 }
 0x242   : > { %v2203_v32 = vpop.f32.mrb[168].mxu0 }
 0x243   : > { %v2221_v53 = vadd.f32 %v2203_v32, %v15003_v28  ;;  %v11334_v58 = vpop.f32.mrb[169].mxu0  ;;  %12607 = vmatprep.subr.bf16.mxu1 %v15115_v39 }
 0x245   : > { %v15113_v59 = vadd.f32 %v14969_v63, %v2221_v53 }
 0x246   : > { %v2461_v54 = vpop.f32.mrb[170].mxu0 }
 0x247   : > { %v2535_v5 = vadd.f32 %v2461_v54, %v15009_v35  ;;  %v11386_v28 = vpop.f32.mrb[171].mxu0 }
 0x249   : > { %v15120_v2 = vadd.f32 %v14975_v47, %v2535_v5 }
 0x24a   : > { %v2466_v24 = vpop.f32.mrb[172].mxu0 }
 0x24b   : > { %v2536_v44 = vadd.f32 %v2466_v24, %v15015_v16  ;;  %v11389_v26 = vpop.f32.mrb[173].mxu0 }
 0x24d   : > { %v15124_v9 = vadd.f32 %v14981_v51, %v2536_v44 }
 0x24e   : > { %v2471_v63 = vpop.f32.mrb[174].mxu0 }
 0x24f   : > { %v2537_v36 = vadd.f32 %v2471_v63, %v15021_v15  ;;  %v11392_v0 = vpop.f32.mrb[175].mxu0 }
 0x251   : > { %v15128_v35 = vadd.f32 %v14987_v8, %v2537_v36 }
 0x252   : > { %v2476_v47 = vpop.f32.mrb[176].mxu0 }
 0x253   : > { %v2538_v51 = vadd.f32 %v2476_v47, %v15027_v46  ;;  %v11395_v16 = vpop.f32.mrb[177].mxu0 }
 0x255   : > { %v15140_v15 = vadd.f32 %v14993_v40, %v2538_v51 }
 0x256   : > { %v2481_v8 = vpop.f32.mrb[178].mxu0 }
 0x257   : > { %v2539_v31 = vadd.f32 %v2481_v8, %v15033_v38  ;;  %v11398_v10 = vpop.f32.mrb[179].mxu0 }
 0x259   : > { %v15144_v32 = vadd.f32 %v14999_v6, %v2539_v31 }
 0x25a   : > { %v2486_v53 = vpop.f32.mrb[180].mxu0 }
 0x25b   : > { %v2540_v58 = vadd.f32 %v2486_v53, %v15045_v43  ;;  %v11401_v20 = vpop.f32.mrb[181].mxu0 }
 0x25d   : > { %v15148_v49 = vadd.f32 %v15005_v27, %v2540_v58 }
 0x25e   : > { %v2491_v54 = vpop.f32.mrb[182].mxu0 }
 0x25f   : > { %v2541_v46 = vadd.f32 %v2491_v54, %v15051_v1  ;;  %v11404_v5 = vpop.f32.mrb[183].mxu0 }
 0x261   : > { %v15152_v40 = vadd.f32 %v15011_v48, %v2541_v46 }
 0x262   : > { %v2496_v28 = vpop.f32.mrb[184].mxu0 }
 0x263   : > { %v2542_v38 = vadd.f32 %v2496_v28, %v15057_v34  ;;  %v11407_v24 = vpop.f32.mrb[185].mxu0 }
 0x265   : > { %v15156_v6 = vadd.f32 %v15017_v52, %v2542_v38 }
 0x266   : > { %v2501_v44 = vpop.f32.mrb[186].mxu0 }
 0x267   : > { %v2543_v43 = vadd.f32 %v2501_v44, %v15069_v37  ;;  %v11410_v26 = vpop.f32.mrb[187].mxu0 }
 0x268   : > { %v9683_v26 = vld [vmem:[%s17773_s1 + $0x1c8] sm:$0xff] }
 0x269   : > { %v15160_v27 = vadd.f32 %v15023_v29, %v2543_v43 }
 0x26a   : > { %v2506_v63 = vpop.f32.mrb[188].mxu0 }
 0x26b   : > { %v2544_v1 = vadd.f32 %v2506_v63, %v15075_v41  ;;  %v11413_v36 = vpop.f32.mrb[189].mxu0  ;;  %v13309_v63 = vmov 0.0|0.0  }
 0x26c   : > { %12670 = vmatprep.subr.bf16.mxu0 %v13309_v63 }
 0x26d   : > { %v15164_v48 = vadd.f32 %v15029_v60, %v2544_v1 }
 0x26e   : > { %v2511_v0 = vpop.f32.mrb[190].mxu0 }
 0x26f   : > { %v2545_v34 = vadd.f32 %v2511_v0, %v15079_v55  ;;  %v11416_v47 = vpop.f32.mrb[191].mxu0 }
 0x271   : > { %v15168_v52 = vadd.f32 %v15041_v30, %v2545_v34 }
 0x272   : > { %v2516_v51 = vpop.f32.mrb[192].mxu0 }
 0x273   : > { %v2546_v37 = vadd.f32 %v2516_v51, %v15083_v45  ;;  %v11419_v16 = vpop.f32.mrb[193].mxu0 }
 0x275   : > { %v15172_v29 = vadd.f32 %v15047_v3, %v2546_v37 }
 0x276   : > { %v2521_v8 = vpop.f32.mrb[194].mxu0 }
 0x277   : > { %v2547_v41 = vadd.f32 %v2521_v8, %v15093_v56  ;;  %v11422_v31 = vpop.f32.mrb[195].mxu0 }
 0x279   : > { %v15176_v60 = vadd.f32 %v15053_v62, %v2547_v41  ;;  %v15189_v62 = vld [vmem:[%s17774_s2] ss:$0 sm:$0xff] }
 0x27a   : > { %v2526_v10 = vpop.f32.mrb[196].mxu0 }
 0x27b   : > { %v2548_v55 = vadd.f32 %v2526_v10, %v15103_v25  ;;  %v11425_v53 = vpop.f32.mrb[197].mxu0 }
 0x27d   : > { %v15180_v30 = vadd.f32 %v15059_v7, %v2548_v55 }
 0x27e   : > { %v2531_v58 = vpop.f32.mrb[198].mxu0 }
 0x27f   : > { %v2549_v45 = vadd.f32 %v2531_v58, %v15113_v59  ;;  %v11428_v20 = vpop.f32.mrb[199].mxu0 }
 0x281   : > { %v15184_v3 = vadd.f32 %v15071_v4, %v2549_v45 }
 0x282   : > { %v2789_v54 = vpop.f32.mrb[200].mxu0 }
 0x283   : > { %v2863_v56 = vadd.f32 %v2789_v54, %v15120_v2  ;;  %v11480_v25 = vpop.f32.mrb[201].mxu0  ;;  %v9682_v2 = vld [vmem:[%s17773_s1 + $0x1c0] sm:$0xff] }
 0x284   : > { %v12671_v1 = vpack.c.bf16 %v9683_v26, %v9682_v2 }
 0x285   : > { %v2883_v46 = vadd.f32 %v15189_v62, %v2863_v56 }
 0x286   : > { %v2794_v7 = vpop.f32.mrb[202].mxu0  ;;  %12672 = vmatpush3.bf16.msra.mxu0 %v12671_v1 }
 0x287   : > { %v2898_v5 = vmax.f32 %v2883_v46, 0.0  ;;  %v2864_v59 = vadd.f32 %v2794_v7, %v15124_v9  ;;  %v11483_v28 = vpop.f32.mrb[203].mxu0  ;;  %v9684_v9 = vld [vmem:[%s17773_s1 + $0x1d0] sm:$0xff]  ;;  %12673 = vmatprep.subr.bf16.mxu0 %v13309_v63 }
 0x289   : > { %2914 = vst.msk [vmem:[#allocation2] sm:$0xff] %vm2913_vm10, %v2898_v5  ;;  %v2884_v4 = vadd.f32 %v15189_v62, %v2864_v59 }
 0x28a   : > { %v2799_v38 = vpop.f32.mrb[204].mxu0 }
 0x28b   : > { %v2899_v24 = vmax.f32 %v2884_v4, 0.0  ;;  %v2865_v44 = vadd.f32 %v2799_v38, %v15128_v35  ;;  %v11486_v43 = vpop.f32.mrb[205].mxu0  ;;  %v9685_v35 = vld [vmem:[%s17773_s1 + $0x1d8] sm:$0xff] }
 0x28c   : > { %v12674_v34 = vpack.c.bf16 %v9685_v35, %v9684_v9 }
 0x28d   : > { %2915 = vst.msk [vmem:[#allocation2 + $0x8] sm:$0xff] %vm2913_vm10, %v2899_v24  ;;  %v2885_v36 = vadd.f32 %v15189_v62, %v2865_v44 }
 0x28e   : > { %v2804_v0 = vpop.f32.mrb[206].mxu0  ;;  %12675 = vmatpush3.bf16.msra.mxu0 %v12674_v34 }
 0x28f   : > { %v2900_v47 = vmax.f32 %v2885_v36, 0.0  ;;  %v2866_v51 = vadd.f32 %v2804_v0, %v15140_v15  ;;  %v11489_v37 = vpop.f32.mrb[207].mxu0  ;;  %12676 = vmatprep.subr.bf16.mxu0 %v13309_v63 }
 0x291   : > { %2916 = vst.msk [vmem:[#allocation2 + $0x10] sm:$0xff] %vm2913_vm10, %v2900_v47  ;;  %v2886_v16 = vadd.f32 %v15189_v62, %v2866_v51 }
 0x292   : > { %v2809_v8 = vpop.f32.mrb[208].mxu0 }
 0x293   : > { %v2901_v41 = vmax.f32 %v2886_v16, 0.0  ;;  %v2867_v31 = vadd.f32 %v2809_v8, %v15144_v32  ;;  %v11492_v10 = vpop.f32.mrb[209].mxu0 }
 0x295   : > { %2917 = vst.msk [vmem:[#allocation2 + $0x18] sm:$0xff] %vm2913_vm10, %v2901_v41  ;;  %v2887_v55 = vadd.f32 %v15189_v62, %v2867_v31 }
 0x296   : > { %v2814_v15 = vpop.f32.mrb[210].mxu0 }
 0x297   : > { %v2902_v53 = vmax.f32 %v2887_v55, 0.0  ;;  %v2868_v58 = vadd.f32 %v2814_v15, %v15148_v49  ;;  %v11495_v45 = vpop.f32.mrb[211].mxu0 }
 0x299   : > { %2918 = vst.msk [vmem:[#allocation2 + $0x20] sm:$0xff] %vm2913_vm10, %v2902_v53  ;;  %v2888_v20 = vadd.f32 %v15189_v62, %v2868_v58 }
 0x29a   : > { %v2819_v54 = vpop.f32.mrb[212].mxu0 }
 0x29b   : > { %v2903_v56 = vmax.f32 %v2888_v20, 0.0  ;;  %v2869_v32 = vadd.f32 %v2819_v54, %v15152_v40  ;;  %v11498_v25 = vpop.f32.mrb[213].mxu0 }
 0x29c   : > { %v2930_v40 = vld [vmem:[#allocation2] ss:$4 sm:$0xff]  ;;  %v2938_v43 = vld [vmem:[#allocation2 + $0x1] ss:$4 sm:$0xff]  ;;  %v2950_v0 = vld [vmem:[#allocation2 + $0x2] ss:$4 sm:$0xff] }
 0x29d   : > { %2919 = vst.msk [vmem:[#allocation2 + $0x28] sm:$0xff] %vm2913_vm10, %v2903_v56  ;;  %v2889_v46 = vadd.f32 %v15189_v62, %v2869_v32  ;;  %v2945_v35 = vmax.f32 %v2930_v40, %v2938_v43  ;;  %v2962_v31 = vld [vmem:[#allocation2 + $0x3] ss:$4 sm:$0xff] }
 0x29e   : > { %v2824_v7 = vpop.f32.mrb[214].mxu0 }
 0x29f   : > { %v2904_v5 = vmax.f32 %v2889_v46, 0.0  ;;  %v2870_v59 = vadd.f32 %v2824_v7, %v15156_v6  ;;  %v11501_v28 = vpop.f32.mrb[215].mxu0  ;;  %v2957_v37 = vmax.f32 %v2945_v35, %v2950_v0 }
 0x2a1   : > { %2920 = vst.msk [vmem:[#allocation2 + $0x30] sm:$0xff] %vm2913_vm10, %v2904_v5  ;;  %v2890_v49 = vadd.f32 %v15189_v62, %v2870_v59  ;;  %v15239_v20 = vmax.f32 %v2957_v37, %v2962_v31  ;;  %v9617_v37 = vld [vmem:[%s17773_s1 + $0x60] sm:$0xff] }
 0x2a2   : > { %v2829_v4 = vpop.f32.mrb[216].mxu0 }
 0x2a3   : > { %v2905_v38 = vmax.f32 %v2890_v49, 0.0  ;;  %v2871_v24 = vadd.f32 %v2829_v4, %v15160_v27  ;;  %v11504_v44 = vpop.f32.mrb[217].mxu0  ;;  %v3022_v5 = vrot.slane %v15239_v20, 1 }
 0x2a5   : > { %2921 = vst.msk [vmem:[#allocation2 + $0x38] sm:$0xff] %vm2913_vm10, %v2905_v38  ;;  %v2891_v2 = vadd.f32 %v15189_v62, %v2871_v24 }
 0x2a6   : > { %v2834_v26 = vpop.f32.mrb[218].mxu0 }
 0x2a7   : > { %v2906_v9 = vmax.f32 %v2891_v2, 0.0  ;;  %v2872_v6 = vadd.f32 %v2834_v26, %v15164_v48  ;;  %v11507_v1 = vpop.f32.mrb[219].mxu0 }
 0x2a9   : > { %2922 = vst.msk [vmem:[#allocation2 + $0x40] sm:$0xff] %vm2913_vm10, %v2906_v9  ;;  %v2892_v36 = vadd.f32 %v15189_v62, %v2872_v6 }
 0x2aa   : > { %v2839_v34 = vpop.f32.mrb[220].mxu0 }
 0x2ab   : > { %v2907_v27 = vmax.f32 %v2892_v36, 0.0  ;;  %v2873_v47 = vadd.f32 %v2839_v34, %v15168_v52  ;;  %v11510_v51 = vpop.f32.mrb[221].mxu0 }
 0x2ac   : > { %v2932_v16 = vld [vmem:[#allocation2 + $0x20] ss:$4 sm:$0xff]  ;;  %v2940_v8 = vld [vmem:[#allocation2 + $0x21] ss:$4 sm:$0xff]  ;;  %v2952_v55 = vld [vmem:[#allocation2 + $0x22] ss:$4 sm:$0xff] }
 0x2ad   : > { %2923 = vst.msk [vmem:[#allocation2 + $0x48] sm:$0xff] %vm2913_vm10, %v2907_v27  ;;  %v2893_v41 = vadd.f32 %v15189_v62, %v2873_v47  ;;  %v2946_v48 = vmax.f32 %v2932_v16, %v2940_v8  ;;  %v2964_v52 = vld [vmem:[#allocation2 + $0x23] ss:$4 sm:$0xff] }
 0x2ae   : > { %v2844_v10 = vpop.f32.mrb[222].mxu0  ;;  %v9616_v27 = vld [vmem:[%s17773_s1 + $0x58] sm:$0xff]  ;;  %v9618_v16 = vld [vmem:[%s17773_s1 + $0x68] sm:$0xff] }
 0x2af   : > { %v2908_v15 = vmax.f32 %v2893_v41, 0.0  ;;  %v2874_v53 = vadd.f32 %v2844_v10, %v15172_v29  ;;  %v11513_v58 = vpop.f32.mrb[223].mxu0  ;;  %v2958_v45 = vmax.f32 %v2946_v48, %v2952_v55  ;;  %v12614_v48 = vpack.c.bf16 %v9618_v16, %v9617_v37  ;;  %v9619_v10 = vld [vmem:[%s17773_s1 + $0x70] sm:$0xff]  ;;  %v9620_v55 = vld [vmem:[%s17773_s1 + $0x78] sm:$0xff] }
 0x2b0   : > { %v3319_v16 = vrot.slane %v15239_v20, 3 }
 0x2b1   : > { %2924 = vst.msk [vmem:[#allocation2 + $0x50] sm:$0xff] %vm2913_vm10, %v2908_v15  ;;  %v2894_v54 = vadd.f32 %v15189_v62, %v2874_v53  ;;  %v15243_v56 = vmax.f32 %v2958_v45, %v2964_v52  ;;  %v12618_v45 = vpack.c.bf16 %v9620_v55, %v9619_v10  ;;  %v9629_v52 = vld [vmem:[%s17773_s1 + $0xc0] sm:$0xff] }
 0x2b2   : > { %v2849_v32 = vpop.f32.mrb[224].mxu0  ;;  %v9645_v55 = vld [vmem:[%s17773_s1 + $0x140] sm:$0xff] }
 0x2b3   : > { %v2909_v25 = vmax.f32 %v2894_v54, 0.0  ;;  %v2875_v46 = vadd.f32 %v2849_v32, %v15176_v60  ;;  %v11516_v7 = vpop.f32.mrb[225].mxu0  ;;  %v3023_v29 = vrot.slane %v15243_v56, 1  ;;  %5556 = vst.msk [vmem:[#allocation3 + $0xa] sm:$0xff] %vm2913_vm10, %v15243_v56  ;;  %v9630_v54 = vld [vmem:[%s17773_s1 + $0xc8] sm:$0xff]  ;;  %v3320_v37 = vrot.slane %v15243_v56, 3 }
 0x2b4   : > { %v9631_v7 = vld [vmem:[%s17773_s1 + $0xd0] sm:$0xff] }
 0x2b5   : > { %2925 = vst.msk [vmem:[#allocation2 + $0x58] sm:$0xff] %vm2913_vm10, %v2909_v25  ;;  %v2895_v59 = vadd.f32 %v15189_v62, %v2875_v46  ;;  %v3024_v28 = vsel %vm370_vm2, %v3022_v5, %v3023_v29  ;;  %v12622_v46 = vpack.c.bf16 %v9630_v54, %v9629_v52  ;;  %v9632_v5 = vld [vmem:[%s17773_s1 + $0xd8] sm:$0xff] }
 0x2b6   : > { %v2854_v49 = vpop.f32.mrb[226].mxu0  ;;  %11539 = vmatprep.mubr.msk.f32.mxu1 %vm2913_vm10, %v3024_v28  ;;  %v15312_v28 = vld [vmem:[#allocation3 + $0x20] sm:$0x1] }
 0x2b7   : > { %v2910_v4 = vmax.f32 %v2895_v59, 0.0  ;;  %v2876_v60 = vadd.f32 %v2854_v49, %v15180_v30  ;;  %v11519_v38 = vpop.f32.mrb[227].mxu0  ;;  %v9633_v59 = vld [vmem:[%s17773_s1 + $0xe0] sm:$0xff]  ;;  %v9634_v49 = vld [vmem:[%s17773_s1 + $0xe8] sm:$0xff]  ;;  %v9648_v52 = vld [vmem:[%s17773_s1 + $0x158] sm:$0xff] }
 0x2b8   : > { %v3216_v38 = vrot.slane %v15243_v56, 2 }
 0x2b9   : > { %2926 = vst.msk [vmem:[#allocation2 + $0x60] sm:$0xff] %vm2913_vm10, %v2910_v4  ;;  %v2896_v24 = vadd.f32 %v15189_v62, %v2876_v60 }
 0x2ba   : > { %v2859_v44 = vpop.f32.mrb[228].mxu0 }
 0x2bb   : > { %v2911_v40 = vmax.f32 %v2896_v24, 0.0  ;;  %v2877_v43 = vadd.f32 %v2859_v44, %v15184_v3  ;;  %v11522_v2 = vpop.f32.mrb[229].mxu0  ;;  %v9615_v3 = vld [vmem:[%s17773_s1 + $0x50] sm:$0xff]  ;;  %v3215_v24 = vrot.slane %v15239_v20, 2  ;;  %v12630_v44 = vpack.c.bf16 %v9634_v49, %v9633_v59 }
 0x2bc   : > { %v2934_v26 = vld [vmem:[#allocation2 + $0x40] ss:$4 sm:$0xff]  ;;  %v2942_v9 = vld [vmem:[#allocation2 + $0x41] ss:$4 sm:$0xff]  ;;  %v2954_v35 = vld [vmem:[#allocation2 + $0x42] ss:$4 sm:$0xff] }
 0x2bd   : > { %v2947_v6 = vmax.f32 %v2934_v26, %v2942_v9  ;;  %2927 = vst.msk [vmem:[#allocation2 + $0x68] sm:$0xff] %vm2913_vm10, %v2911_v40  ;;  %v2897_v1 = vadd.f32 %v15189_v62, %v2877_v43  ;;  %v2966_v0 = vld [vmem:[#allocation2 + $0x43] ss:$4 sm:$0xff]  ;;  %v12610_v62 = vpack.c.bf16 %v9616_v27, %v9615_v3  ;;  %v3217_v2 = vsel %vm748_vm6, %v3215_v24, %v3216_v38 }
 0x2be   : > { %v9635_v40 = vld [vmem:[%s17773_s1 + $0xf0] sm:$0xff]  ;;  %v9636_v43 = vld [vmem:[%s17773_s1 + $0xf8] sm:$0xff]  ;;  %v9637_v9 = vld [vmem:[%s17773_s1 + $0x100] sm:$0xff]  ;;  %v3423_v59 = vrot.slane %v15239_v20, 4 }
 0x2bf   : > { %v2959_v30 = vmax.f32 %v2947_v6, %v2954_v35  ;;  %v2912_v36 = vmax.f32 %v2897_v1, 0.0  ;;  %v12634_v26 = vpack.c.bf16 %v9636_v43, %v9635_v40  ;;  %v9638_v6 = vld [vmem:[%s17773_s1 + $0x108] sm:$0xff]  ;;  %v9652_v24 = vld [vmem:[%s17773_s1 + $0x178] sm:$0xff] }
 0x2c0   : > { %v12638_v1 = vpack.c.bf16 %v9638_v6, %v9637_v9  ;;  %v9686_v6 = vld [vmem:[%s17773_s1 + $0x1e0] sm:$0xff] }
 0x2c1   : > { %2929 = vst.msk [vmem:[#allocation2 + $0x70] sm:$0xf] %vm2928_vm11, %v2912_v36  ;;  %v15261_v34 = vmax.f32 %v2959_v30, %v2966_v0  ;;  %v9639_v30 = vld [vmem:[%s17773_s1 + $0x110] sm:$0xff]  ;;  %v9640_v36 = vld [vmem:[%s17773_s1 + $0x118] sm:$0xff] }
 0x2c2   : > { %v12642_v3 = vpack.c.bf16 %v9640_v36, %v9639_v30  ;;  %v9690_v30 = vld [vmem:[%s17773_s1 + $0x200] sm:$0xff]  ;;  %v9691_v36 = vld [vmem:[%s17773_s1 + $0x208] sm:$0xff] }
 0x2c3   : > { %v3025_v47 = vrot.slane %v15261_v34, 1  ;;  %5557 = vst.msk [vmem:[#allocation3 + $0x12] sm:$0xff] %vm2913_vm10, %v15261_v34  ;;  %v3218_v35 = vrot.slane %v15261_v34, 2  ;;  %v3426_v43 = vrot.slane %v15261_v34, 4 }
 0x2c5   : > { %v3026_v51 = vsel %vm370_vm2, %v3023_v29, %v3025_v47  ;;  %v12626_v29 = vpack.c.bf16 %v9632_v5, %v9631_v7  ;;  %v3219_v27 = vsel %vm748_vm6, %v3216_v38, %v3218_v35  ;;  %v9650_v7 = vld [vmem:[%s17773_s1 + $0x168] sm:$0xff]  ;;  %v9651_v38 = vld [vmem:[%s17773_s1 + $0x170] sm:$0xff] }
 0x2c6   : > { %11540 = vmatmul.mubr.msk.f32.vlgmr.msra.gmra.mrb[160].mxu1 %vm2913_vm10, %v3026_v51  ;;  %v12666_v40 = vpack.c.bf16 %v9652_v24, %v9651_v38 }
 0x2c7   : > { %12609 = vmatpush3.bf16.msra.mxu1 %v15115_v39 }
 0x2c8   : > { %v2936_v8 = vld [vmem:[#allocation2 + $0x60] ss:$4 sm:$0x1f]  ;;  %v2944_v41 = vld [vmem:[#allocation2 + $0x61] ss:$4 sm:$0x1f]  ;;  %12611 = vmatprep.subr.bf16.mxu1 %v12610_v62 }
 0x2c9   : > { %v2948_v31 = vmax.f32 %v2936_v8, %v2944_v41  ;;  %v2956_v15 = vld [vmem:[#allocation2 + $0x62] ss:$4 sm:$0x1f]  ;;  %v2968_v58 = vld [vmem:[#allocation2 + $0x63] ss:$4 sm:$0x1f] }
 0x2ca   : > { %v15317_v4 = vld [vmem:[#allocation3 + $0x10] sm:$0xff]  ;;  %v9643_v41 = vld [vmem:[%s17773_s1 + $0x130] sm:$0xff] }
 0x2cb   : > { %12613 = vmatpush3.bf16.msra.mxu1 %v12610_v62  ;;  %v2960_v53 = vmax.f32 %v2948_v31, %v2956_v15  ;;  %v9642_v62 = vld [vmem:[%s17773_s1 + $0x128] sm:$0xff]  ;;  %v3321_v31 = vsel %vm966_vm4, %v3319_v16, %v3320_v37  ;;  %v9694_v16 = vld [vmem:[%s17773_s1 + $0x220] sm:$0xff] }
 0x2cc   : > { %12615 = vmatprep.subr.bf16.mxu1 %v12614_v48  ;;  %v9646_v15 = vld [vmem:[%s17773_s1 + $0x148] sm:$0xff] }
 0x2cd   : > { %v15287_v39 = vmax.f32 %v2960_v53, %v2968_v58  ;;  %v12654_v53 = vpack.c.bf16 %v9646_v15, %v9645_v55  ;;  %v3322_v58 = vrot.slane %v15261_v34, 3  ;;  %v9673_v55 = vld [vmem:[%s17774_s2 + $0x1] ss:$0 sm:$0xff] }
 0x2cf   : > { %12617 = vmatpush3.bf16.msra.mxu1 %v12614_v48  ;;  %v3027_v32 = vrot.slane %v15287_v39, 1  ;;  %5559 = vst.msk [vmem:[#allocation3 + $0x1a] sm:$0x1f] %vm5558_vm12, %v15287_v39  ;;  %v3220_v0 = vrot.slane %v15287_v39, 2  ;;  %v9644_v48 = vld [vmem:[%s17773_s1 + $0x138] sm:$0xff]  ;;  %v3324_v54 = vrot.slane %v15287_v39, 3 }
 0x2d0   : > { %12619 = vmatprep.subr.bf16.mxu1 %v12618_v45  ;;  %v12650_v10 = vpack.c.bf16 %v9644_v48, %v9643_v41  ;;  %v9696_v48 = vld [vmem:[%s17773_s1 + $0x230] sm:$0xff] }
 0x2d1   : > { %v3028_v25 = vsel %vm370_vm2, %v3025_v47, %v3027_v32  ;;  %v9641_v47 = vld [vmem:[%s17773_s1 + $0x120] sm:$0xff]  ;;  %v3221_v51 = vsel %vm748_vm6, %v3218_v35, %v3220_v0  ;;  %v3325_v5 = vsel %vm966_vm4, %v3322_v58, %v3324_v54 }
 0x2d2   : > { %11542 = vmatprep.mubr.msk.f32.mxu1 %vm2913_vm10, %v3028_v25  ;;  %v12646_v8 = vpack.c.bf16 %v9642_v62, %v9641_v47  ;;  %v3323_v25 = vsel %vm966_vm4, %v3320_v37, %v3322_v58  ;;  %v9688_v47 = vld [vmem:[%s17773_s1 + $0x1f0] sm:$0xff] }
 0x2d3   : > { %11543 = vmatmul.mubr.msk.f32.gmra.mrb[162].mxu1 %vm2913_vm10, %v3027_v32 }
 0x2d4   : > { %12621 = vmatpush3.bf16.msra.mxu1 %v12618_v45  ;;  %11561 = vmatprep.mubr.msk.f32.mxu1 %vm2913_vm10, %v15239_v20  ;;  %v9647_v45 = vld [vmem:[%s17773_s1 + $0x150] sm:$0xff] }
 0x2d5   : > { %12623 = vmatprep.subr.bf16.mxu1 %v12622_v46  ;;  %v12658_v32 = vpack.c.bf16 %v9648_v52, %v9647_v45 }
 0x2d6   : > { %v15319_v60 = vld [vmem:[#allocation3 + $0x18] sm:$0xff] }
 0x2d7   : > { %11562 = vmatmul.mubr.msk.f32.vlgmr.msra.gmra.mrb[160].mxu1 %vm2913_vm10, %v15243_v56  ;;  %6718 = vst.msk [vmem:[#allocation3 + $0x12] sm:$0xff] %vm402_vm3, %v14480_v33  ;;  %6719 = vst.msk [vmem:[#allocation3 + $0x1a] sm:$0xff] %vm402_vm3, %v14496_v42 }
 0x2d8   : > { %12625 = vmatpush3.bf16.msra.mxu1 %v12622_v46  ;;  %11564 = vmatprep.mubr.msk.f32.mxu1 %vm2913_vm10, %v15261_v34  ;;  %v9649_v46 = vld [vmem:[%s17773_s1 + $0x160] sm:$0xff] }
 0x2d9   : > { %12627 = vmatprep.subr.bf16.mxu1 %v12626_v29  ;;  %v12662_v49 = vpack.c.bf16 %v9650_v7, %v9649_v46 }
 0x2db   : > { %11565 = vmatmul.mubr.msk.f32.gmra.mrb[162].mxu1 %vm2913_vm10, %v15287_v39 }
 0x2dc   : > { %12629 = vmatpush3.bf16.msra.mxu1 %v12626_v29  ;;  %11583 = vmatprep.mubr.msk.f32.mxu1 %vm2913_vm10, %v3217_v2  ;;  %v3424_v29 = vrot.slane %v15243_v56, 4  ;;  %v3428_v2 = vrot.slane %v15287_v39, 4 }
 0x2dd   : > { %12631 = vmatprep.subr.bf16.mxu1 %v12630_v44 }
 0x2de   : > { %v3429_v9 = vsel %vm433_vm0, %v3426_v43, %v3428_v2 }
 0x2e0   : > { %12633 = vmatpush3.bf16.msra.mxu1 %v12630_v44  ;;  %v3425_v44 = vsel %vm433_vm0, %v3423_v59, %v3424_v29 }
 0x2e1   : > { %12635 = vmatprep.subr.bf16.mxu1 %v12634_v26 }
 0x2e4   : > { %12637 = vmatpush3.bf16.msra.mxu1 %v12634_v26  ;;  %v3427_v26 = vsel %vm433_vm0, %v3424_v29, %v3426_v43  ;;  %v9675_v43 = vld [vmem:[%s17773_s1 + $0x188] sm:$0xff] }
 0x2e5   : > { %12639 = vmatprep.subr.bf16.mxu1 %v12638_v1 }
 0x2e7   : > { %11584 = vmatmul.mubr.msk.f32.vlgmr.msra.gmra.mrb[160].mxu1 %vm2913_vm10, %v3219_v27  ;;  %v9693_v27 = vld [vmem:[%s17773_s1 + $0x218] sm:$0xff] }
 0x2e8   : > { %11586 = vmatprep.mubr.msk.f32.mxu1 %vm2913_vm10, %v3221_v51  ;;  %12641 = vmatpush3.bf16.msra.mxu1 %v12638_v1  ;;  %v9687_v1 = vld [vmem:[%s17773_s1 + $0x1e8] sm:$0xff]  ;;  %v9689_v51 = vld [vmem:[%s17773_s1 + $0x1f8] sm:$0xff] }
 0x2e9   : > { %12643 = vmatprep.subr.bf16.mxu1 %v12642_v3  ;;  %v12677_v35 = vpack.c.bf16 %v9687_v1, %v9686_v6  ;;  %v12680_v37 = vpack.c.bf16 %v9689_v51, %v9688_v47  ;;  %v9680_v47 = vld [vmem:[%s17773_s1 + $0x1b0] sm:$0xff] }
 0x2eb   : > { %11587 = vmatmul.mubr.msk.f32.gmra.mrb[162].mxu1 %vm2913_vm10, %v3220_v0  ;;  %12678 = vmatpush3.bf16.msra.mxu0 %v12677_v35  ;;  %v12695_v0 = vpack.c.bf16 %v9691_v36, %v9690_v30  ;;  %v9676_v35 = vld [vmem:[%s17773_s1 + $0x190] sm:$0xff]  ;;  %v9677_v30 = vld [vmem:[%s17773_s1 + $0x198] sm:$0xff] }
 0x2ec   : > { %12645 = vmatpush3.bf16.msra.mxu1 %v12642_v3  ;;  %11605 = vmatprep.mubr.msk.f32.mxu1 %vm2913_vm10, %v3321_v31  ;;  %v9692_v3 = vld [vmem:[%s17773_s1 + $0x210] sm:$0xff]  ;;  %v9697_v31 = vld [vmem:[%s17773_s1 + $0x238] sm:$0xff]  ;;  %v12686_v36 = vpack.c.bf16 %v9677_v30, %v9676_v35  ;;  %v9701_v35 = vld [vmem:[%s17774_s2 + $0x2] ss:$0 sm:$0xff] }
 0x2ed   : > { %12647 = vmatprep.subr.bf16.mxu1 %v12646_v8  ;;  %12679 = vmatprep.subr.bf16.mxu0 %v13309_v63  ;;  %v12698_v62 = vpack.c.bf16 %v9693_v27, %v9692_v3  ;;  %v9679_v3 = vld [vmem:[%s17773_s1 + $0x1a8] sm:$0xff] }
 0x2ef   : > { %12681 = vmatpush3.bf16.msra.mxu0 %v12680_v37  ;;  %v9702_v37 = vld [vmem:[%s17773_s1 + $0x240] sm:$0xff] }
 0x2f0   : > { %12649 = vmatpush3.bf16.msra.mxu1 %v12646_v8  ;;  %v9695_v8 = vld [vmem:[%s17773_s1 + $0x228] sm:$0xff]  ;;  %12682 = vmatprep.subr.bf16.mxu0 %v13309_v63 }
 0x2f1   : > { %12651 = vmatprep.subr.bf16.mxu1 %v12650_v10  ;;  %v12701_v41 = vpack.c.bf16 %v9695_v8, %v9694_v16  ;;  %v9703_v16 = vld [vmem:[%s17773_s1 + $0x248] sm:$0xff]  ;;  %v9710_v8 = vld [vmem:[%s17773_s1 + $0x280] sm:$0xff] }
 0x2f4   : > { %12653 = vmatpush3.bf16.msra.mxu1 %v12650_v10  ;;  %v12704_v10 = vpack.c.bf16 %v9697_v31, %v9696_v48  ;;  %v9711_v48 = vld [vmem:[%s17773_s1 + $0x288] sm:$0xff]  ;;  %v9704_v31 = vld [vmem:[%s17773_s1 + $0x250] sm:$0xff] }
 0x2f5   : > { %12655 = vmatprep.subr.bf16.mxu1 %v12654_v53 }
 0x2f7   : > { %11606 = vmatmul.mubr.msk.f32.vlgmr.msra.gmra.mrb[160].mxu1 %vm2913_vm10, %v3323_v25 }
 0x2f8   : > { %11608 = vmatprep.mubr.msk.f32.mxu1 %vm2913_vm10, %v3325_v5  ;;  %12657 = vmatpush3.bf16.msra.mxu1 %v12654_v53 }
 0x2f9   : > { %12659 = vmatprep.subr.bf16.mxu1 %v12658_v32 }
 0x2fb   : > { %11609 = vmatmul.mubr.msk.f32.gmra.mrb[162].mxu1 %vm2913_vm10, %v3324_v54 }
 0x2fc   : > { %12661 = vmatpush3.bf16.msra.mxu1 %v12658_v32  ;;  %11627 = vmatprep.mubr.msk.f32.mxu1 %vm2913_vm10, %v3425_v44 }
 0x2fd   : > { %12663 = vmatprep.subr.bf16.mxu1 %v12662_v49 }
 0x300   : > { %12665 = vmatpush3.bf16.msra.mxu1 %v12662_v49 }
 0x301   : > { %12667 = vmatprep.subr.bf16.mxu1 %v12666_v40 }
 0x304   : > { %12669 = vmatpush3.bf16.msra.mxu1 %v12666_v40  ;;  %v9674_v40 = vld [vmem:[%s17773_s1 + $0x180] sm:$0xff] }
 0x305   : > { %12694 = vmatprep.subr.bf16.mxu1 %v13309_v63 }
 0x307   : > { %11628 = vmatmul.mubr.msk.f32.vlgmr.msra.gmra.mrb[160].mxu1 %vm2913_vm10, %v3427_v26 }
 0x308   : > { %11630 = vmatprep.mubr.msk.f32.mxu1 %vm2913_vm10, %v3429_v9  ;;  %12696 = vmatpush3.bf16.msra.mxu1 %v12695_v0  ;;  %v12683_v9 = vpack.c.bf16 %v9675_v43, %v9674_v40  ;;  %v9678_v0 = vld [vmem:[%s17773_s1 + $0x1a0] sm:$0xff] }
 0x309   : > { %12697 = vmatprep.subr.bf16.mxu1 %v13309_v63  ;;  %v12689_v27 = vpack.c.bf16 %v9679_v3, %v9678_v0 }
 0x30b   : > { %11631 = vmatmul.mubr.msk.f32.gmra.mrb[162].mxu1 %vm2913_vm10, %v3428_v2 }
 0x30c   : > { %11687 = vmatprep.mubr.msk.f32.mxu1 %vm13308_vm1, %v17877_v61  ;;  %12699 = vmatpush3.bf16.msra.mxu1 %v12698_v62  ;;  %v9681_v62 = vld [vmem:[%s17773_s1 + $0x1b8] sm:$0xff] }
 0x30d   : > { %12700 = vmatprep.subr.bf16.mxu1 %v13309_v63  ;;  %v12692_v51 = vpack.c.bf16 %v9681_v62, %v9680_v47  ;;  %v9718_v62 = vld [vmem:[%s17773_s1 + $0x2c0] sm:$0xff] }
 0x310   : > { %12702 = vmatpush3.bf16.msra.mxu1 %v12701_v41  ;;  %v12719_v41 = vpack.c.bf16 %v9703_v16, %v9702_v37 }
 0x311   : > { %12703 = vmatprep.subr.bf16.mxu1 %v13309_v63 }
 0x314   : > { %12705 = vmatpush3.bf16.msra.mxu1 %v12704_v10  ;;  %v9705_v10 = vld [vmem:[%s17773_s1 + $0x258] sm:$0xff] }
 0x315   : > { %12718 = vmatprep.subr.bf16.mxu1 %v13309_v63 }
 0x3da   : > { %v11629_v15 = vpop.f32.mrb[160].mxu1 }
 0x3db   : > { %v3533_v53 = vadd.f32 %v11629_v15, %v9673_v55  ;;  %v3504_v58 = vpop.f32.mrb[161].mxu1  ;;  %v9712_v15 = vld [vmem:[%s17773_s1 + $0x290] sm:$0xff] }
 0x3dc   : > { %v3532_v45 = vadd.f32 %v9673_v55, %v3504_v58  ;;  %v12722_v58 = vpack.c.bf16 %v9705_v10, %v9704_v31  ;;  %v9722_v10 = vld [vmem:[%s17773_s1 + $0x2e0] sm:$0xff] }
 0x3dd   : > { %v3537_v52 = vmax.f32 %v3533_v53, 0.0  ;;  %v9713_v53 = vld [vmem:[%s17773_s1 + $0x298] sm:$0xff] }
 0x3de   : > { %v3536_v54 = vmax.f32 %v3532_v45, 0.0  ;;  %v11632_v32 = vpop.f32.mrb[162].mxu1  ;;  %v12710_v45 = vpack.c.bf16 %v9713_v53, %v9712_v15  ;;  %v15613_v15 = vld [vmem:[#allocation3 + $0x8] sm:$0x3] }
 0x3df   : > { %3541 = vst.msk [vmem:[#allocation2 + $0x8] sm:$0xff] %vm2913_vm10, %v3537_v52  ;;  %v3535_v25 = vadd.f32 %v11632_v32, %v9673_v55  ;;  %v3514_v46 = vpop.f32.mrb[163].mxu1  ;;  %v9706_v52 = vld [vmem:[%s17773_s1 + $0x260] sm:$0xff] }
 0x3e0   : > { %3540 = vst.msk [vmem:[#allocation2] sm:$0xff] %vm2913_vm10, %v3536_v54  ;;  %v3534_v7 = vadd.f32 %v9673_v55, %v3514_v46  ;;  %v12707_v55 = vpack.c.bf16 %v9711_v48, %v9710_v8  ;;  %v9707_v54 = vld [vmem:[%s17773_s1 + $0x268] sm:$0xff]  ;;  %v9714_v32 = vld [vmem:[%s17773_s1 + $0x2a0] sm:$0xff]  ;;  %v9721_v48 = vld [vmem:[%s17773_s1 + $0x2d8] sm:$0xff] }
 0x3e1   : > { %v3539_v5 = vmax.f32 %v3535_v25, 0.0  ;;  %v9715_v25 = vld [vmem:[%s17773_s1 + $0x2a8] sm:$0xff]  ;;  %v12725_v46 = vpack.c.bf16 %v9707_v54, %v9706_v52  ;;  %v9725_v52 = vld [vmem:[%s17773_s1 + $0x2f8] sm:$0xff] }
 0x3e2   : > { %v3538_v29 = vmax.f32 %v3534_v7, 0.0  ;;  %v12713_v7 = vpack.c.bf16 %v9715_v25, %v9714_v32 }
 0x3e3   : > { %3544 = vst.msk [vmem:[#allocation2 + $0x18] sm:$0x1] %vm3543_vm13, %v3539_v5  ;;  %v9708_v5 = vld [vmem:[%s17773_s1 + $0x270] sm:$0xff] }
 0x3e4   : > { %3542 = vst.msk [vmem:[#allocation2 + $0x10] sm:$0xff] %vm2913_vm10, %v3538_v29  ;;  %v9709_v29 = vld [vmem:[%s17773_s1 + $0x278] sm:$0xff] }
 0x3eb   : > { %v3545_v59 = vld [vmem:[#allocation2] ss:$4 sm:$0x3f]  ;;  %v3546_v49 = vld [vmem:[#allocation2 + $0x1] ss:$4 sm:$0x3f] }
 0x3ec   : > { %v3547_v38 = vmax.f32 %v3545_v59, %v3546_v49  ;;  %v3548_v24 = vld [vmem:[#allocation2 + $0x2] ss:$4 sm:$0x3f]  ;;  %v3550_v2 = vld [vmem:[#allocation2 + $0x3] ss:$4 sm:$0x3f] }
 0x3ed   : > { %v9716_v59 = vld [vmem:[%s17773_s1 + $0x2b0] sm:$0xff]  ;;  %v9717_v49 = vld [vmem:[%s17773_s1 + $0x2b8] sm:$0xff] }
 0x3ee   : > { %v3549_v44 = vmax.f32 %v3547_v38, %v3548_v24  ;;  %v12728_v38 = vpack.c.bf16 %v9709_v29, %v9708_v5  ;;  %v12716_v24 = vpack.c.bf16 %v9717_v49, %v9716_v59  ;;  %v9726_v5 = vld [vmem:[%s17773_s1 + $0x300] sm:$0xff]  ;;  %v9727_v29 = vld [vmem:[%s17773_s1 + $0x308] sm:$0xff] }
 0x3ef   : > { %v9734_v59 = vld [vmem:[%s17773_s1 + $0x340] sm:$0xff]  ;;  %v12755_v49 = vpack.c.bf16 %v9727_v29, %v9726_v5 }
 0x3f0   : > { %v15484_v26 = vmax.f32 %v3549_v44, %v3550_v2 }
 0x3f2   : > { %v3580_v6 = vrot.slane %v15484_v26, 1  ;;  %v3725_v1 = vrot.slane %v15484_v26, 2 }
 0x3f4   : > { %11650 = vmatmul.mubr.msk.f32.vlgmr.msra.gmra.mrb[230].mxu0 %vm2913_vm10, %v3580_v6  ;;  %11688 = vmatmul.mubr.msk.f32.vlgmr.msra.gmra.mrb[164].mxu1 %vm2913_vm10, %v3725_v1 }
 0x3f5   : > { %12684 = vmatpush3.bf16.msra.mxu0 %v12683_v9  ;;  %11668 = vmatprep.mubr.msk.f32.mxu0 %vm13308_vm1, %v17877_v61 }
 0x3f6   : > { %12685 = vmatprep.subr.bf16.mxu0 %v13309_v63  ;;  %11725 = vmatprep.mubr.msk.f32.mxu1 %vm13308_vm1, %v17877_v61 }
 0x3f7   : > { %12720 = vmatpush3.bf16.msra.mxu1 %v12719_v41  ;;  %v9720_v41 = vld [vmem:[%s17773_s1 + $0x2d0] sm:$0xff] }
 0x3f8   : > { %12721 = vmatprep.subr.bf16.mxu1 %v13309_v63  ;;  %v12734_v31 = vpack.c.bf16 %v9721_v48, %v9720_v41 }
 0x3f9   : > { %12687 = vmatpush3.bf16.msra.mxu0 %v12686_v36 }
 0x3fa   : > { %12688 = vmatprep.subr.bf16.mxu0 %v13309_v63 }
 0x3fb   : > { %12723 = vmatpush3.bf16.msra.mxu1 %v12722_v58 }
 0x3fc   : > { %12724 = vmatprep.subr.bf16.mxu1 %v13309_v63 }
 0x3fd   : > { %12690 = vmatpush3.bf16.msra.mxu0 %v12689_v27 }
 0x3fe   : > { %12691 = vmatprep.subr.bf16.mxu0 %v13309_v63 }
 0x3ff   : > { %12726 = vmatpush3.bf16.msra.mxu1 %v12725_v46 }
 0x400   : > { %12727 = vmatprep.subr.bf16.mxu1 %v13309_v63 }
 0x401   : > { %12693 = vmatpush3.bf16.msra.mxu0 %v12692_v51  ;;  %v9719_v51 = vld [vmem:[%s17773_s1 + $0x2c8] sm:$0xff] }
 0x402   : > { %12706 = vmatprep.subr.bf16.mxu0 %v13309_v63  ;;  %v12731_v16 = vpack.c.bf16 %v9719_v51, %v9718_v62  ;;  %v9733_v62 = vld [vmem:[%s17773_s1 + $0x338] sm:$0xff] }
 0x403   : > { %12729 = vmatpush3.bf16.msra.mxu1 %v12728_v38  ;;  %v9735_v38 = vld [vmem:[%s17773_s1 + $0x348] sm:$0xff] }
 0x404   : > { %11669 = vmatmul.mubr.msk.f32.vlgmr.msra.gmra.mrb[232].mxu0 %vm2913_vm10, %v15484_v26  ;;  %12742 = vmatprep.subr.bf16.mxu1 %v13309_v63 }
 0x405   : > { %11706 = vmatprep.mubr.msk.f32.mxu0 %vm13308_vm1, %v17877_v61  ;;  %12708 = vmatpush3.bf16.msra.mxu0 %v12707_v55  ;;  %v9723_v55 = vld [vmem:[%s17773_s1 + $0x2e8] sm:$0xff] }
 0x406   : > { %12709 = vmatprep.subr.bf16.mxu0 %v13309_v63  ;;  %v12737_v53 = vpack.c.bf16 %v9723_v55, %v9722_v10 }
 0x409   : > { %12711 = vmatpush3.bf16.msra.mxu0 %v12710_v45  ;;  %v9724_v45 = vld [vmem:[%s17773_s1 + $0x2f0] sm:$0xff] }
 0x40a   : > { %12712 = vmatprep.subr.bf16.mxu0 %v13309_v63  ;;  %v12740_v54 = vpack.c.bf16 %v9725_v52, %v9724_v45 }
 0x40d   : > { %12714 = vmatpush3.bf16.msra.mxu0 %v12713_v7  ;;  %v17878_v7 = vld [vmem:[#allocation8_spill] sm:$0xff] }
 0x40e   : > { %12715 = vmatprep.subr.bf16.mxu0 %v13309_v63 }
 0x411   : > { %12717 = vmatpush3.bf16.msra.mxu0 %v12716_v24  ;;  %v12743_v24 = vpack.c.bf16 %v9735_v38, %v9734_v59 }
 0x412   : > { %12730 = vmatprep.subr.bf16.mxu0 %v13309_v63 }
 0x4c7   : > { %v3649_v44 = vpop.f32.mrb[230].mxu0  ;;  %v3794_v40 = vpop.f32.mrb[164].mxu1 }
 0x4c8   : > { %v11651_v43 = vpop.f32.mrb[231].mxu0  ;;  %v11689_v2 = vpop.f32.mrb[165].mxu1 }
 0x4c9   : > { %v9736_v2 = vld [vmem:[%s17773_s1 + $0x350] sm:$0xff] }
 0x4d7   : > { %v3721_v9 = vpop.f32.mrb[232].mxu0 }
 0x4d8   : > { %v3722_v6 = vadd.f32 %v3721_v9, %v3649_v44  ;;  %v11670_v1 = vpop.f32.mrb[233].mxu0  ;;  %v9728_v44 = vld [vmem:[%s17773_s1 + $0x310] sm:$0xff]  ;;  %v9737_v9 = vld [vmem:[%s17773_s1 + $0x358] sm:$0xff] }
 0x4d9   : > { %v9730_v1 = vld [vmem:[%s17773_s1 + $0x320] sm:$0xff] }
 0x4da   : > { %v3798_v30 = vadd.f32 %v3794_v40, %v3722_v6  ;;  %v9729_v40 = vld [vmem:[%s17773_s1 + $0x318] sm:$0xff]  ;;  %v12746_v6 = vpack.c.bf16 %v9737_v9, %v9736_v2  ;;  %v9742_v9 = vld [vmem:[%s17773_s1 + $0x380] sm:$0xff] }
 0x4db   : > { %v12758_v43 = vpack.c.bf16 %v9729_v40, %v9728_v44 }
 0x4dc   : > { %v3804_v36 = vadd.f32 %v9701_v35, %v3798_v30  ;;  %v9731_v35 = vld [vmem:[%s17773_s1 + $0x328] sm:$0xff] }
 0x4dd   : > { %v12761_v30 = vpack.c.bf16 %v9731_v35, %v9730_v1 }
 0x4de   : > { %v3805_v0 = vmax.f32 %v3804_v36, 0.0  ;;  %v9738_v36 = vld [vmem:[%s17773_s1 + $0x360] sm:$0xff] }
 0x4e0   : > { %3806 = vst.msk [vmem:[#allocation2] sm:$0xf] %vm2928_vm11, %v3805_v0  ;;  %v9739_v0 = vld [vmem:[%s17773_s1 + $0x368] sm:$0xff]  ;;  %vm6714_vm11 = vcmask 25600  }
 0x4e1   : > { %6732 = vst.msk [vmem:[#allocation3 + $0x82] sm:$0x3] %vm6714_vm11, %v17877_v61 }
 0x4e7   : > { %v3807_v3 = vld [vmem:[#allocation2] ss:$2 sm:$0x3]  ;;  %v3808_v27 = vld [vmem:[#allocation2 + $0x1] ss:$2 sm:$0x3] }
 0x4e8   : > { %v15580_v47 = vmax.f32 %v3807_v3, %v3808_v27  ;;  %v12749_v3 = vpack.c.bf16 %v9739_v0, %v9738_v36  ;;  %v9732_v27 = vld [vmem:[%s17773_s1 + $0x330] sm:$0xff] }
 0x4e9   : > { %v12764_v51 = vpack.c.bf16 %v9733_v62, %v9732_v27  ;;  %v9744_v0 = vld [vmem:[%s17773_s1 + $0x390] sm:$0xff]  ;;  %v9746_v62 = vld [vmem:[%s17773_s1 + $0x3a0] sm:$0xff] }
 0x4ea   : > { %3875 = vst.msk [vmem:[#allocation3 + $0x2] sm:$0x3] %vm3810_vm9, %v15580_v47 }
 0x4f1   : > { %v3877_v37 = vld [vmem:[#allocation3] sm:$0x3f] }
 0x4f2   : > { %11726 = vmatmul.mubr.msk.f32.vlgmr.msra.gmra.mrb[166].mxu1 %vm2913_vm10, %v3877_v37  ;;  %4673 = vst.msk [vmem:[#allocation3] sm:$0x3] %vm3810_vm9, %v17877_v61  ;;  %v3879_v8 = vrot.slane %v3877_v37, 1  ;;  %v4024_v46 = vrot.slane %v3877_v37, 2  ;;  %v9740_v37 = vld [vmem:[%s17773_s1 + $0x370] sm:$0xff] }
 0x4f3   : > { %4675 = vst.msk [vmem:[#allocation3 + $0x2] sm:$0x3f] %vm4674_vm14, %v15484_v26  ;;  %11763 = vmatprep.mubr.msk.f32.mxu1 %vm13308_vm1, %v17877_v61  ;;  %12744 = vmatpush3.bf16.msra.mxu1 %v12743_v24 }
 0x4f4   : > { %11707 = vmatmul.mubr.msk.f32.vlgmr.msra.gmra.mrb[234].mxu0 %vm2913_vm10, %v3879_v8  ;;  %12745 = vmatprep.subr.bf16.mxu1 %v13309_v63 }
 0x4f5   : > { %12732 = vmatpush3.bf16.msra.mxu0 %v12731_v16  ;;  %11744 = vmatprep.mubr.msk.f32.mxu0 %vm13308_vm1, %v17877_v61  ;;  %v9741_v16 = vld [vmem:[%s17773_s1 + $0x378] sm:$0xff] }
 0x4f6   : > { %12733 = vmatprep.subr.bf16.mxu0 %v13309_v63  ;;  %v12752_v8 = vpack.c.bf16 %v9741_v16, %v9740_v37  ;;  %v9748_v16 = vld [vmem:[%s17773_s1 + $0x3b0] sm:$0xff] }
 0x4f7   : > { %12747 = vmatpush3.bf16.msra.mxu1 %v12746_v6  ;;  %v9743_v6 = vld [vmem:[%s17773_s1 + $0x388] sm:$0xff] }
 0x4f8   : > { %12748 = vmatprep.subr.bf16.mxu1 %v13309_v63 }
 0x4f9   : > { %12735 = vmatpush3.bf16.msra.mxu0 %v12734_v31 }
 0x4fa   : > { %v15615_v58 = vld [vmem:[#allocation3] sm:$0xff]  ;;  %12736 = vmatprep.subr.bf16.mxu0 %v13309_v63 }
 0x4fb   : > { %5555 = vst.msk [vmem:[#allocation3 + $0x2] sm:$0xff] %vm2913_vm10, %v15239_v20  ;;  %12750 = vmatpush3.bf16.msra.mxu1 %v12749_v3  ;;  %v9745_v3 = vld [vmem:[%s17773_s1 + $0x398] sm:$0xff] }
 0x4fc   : > { %5554 = vst.msk [vmem:[#allocation3] sm:$0x3] %vm3810_vm9, %v17877_v61  ;;  %12751 = vmatprep.subr.bf16.mxu1 %v13309_v63  ;;  %v12770_v27 = vpack.c.bf16 %v9745_v3, %v9744_v0  ;;  %v9786_v0 = vld [vmem:[%s17773_s1 + $0x3d8] sm:$0xff] }
 0x4fd   : > { %12738 = vmatpush3.bf16.msra.mxu0 %v12737_v53  ;;  %v17810_v53 = vlaneseq }
 0x4fe   : > { %12739 = vmatprep.subr.bf16.mxu0 %v13309_v63 }
 0x4ff   : > { %12753 = vmatpush3.bf16.msra.mxu1 %v12752_v8  ;;  %v15698_v45 = vshrl.u32 %v17810_v53, 7  ;;  %v9749_v8 = vld [vmem:[%s17773_s1 + $0x3b8] sm:$0xff] }
 0x500   : > { %12766 = vmatprep.subr.bf16.mxu1 %v13309_v63 }
 0x501   : > { %12741 = vmatpush3.bf16.msra.mxu0 %v12740_v54  ;;  %v15701_v52 = vsub.s32 0, %v15698_v45  ;;  %v15706_v54 = vld [vmem:[%s17774_s2 + $0x3] sm:$0x3f]  ;;  %v15711_v5 = vsub.s32 1, %v15698_v45  ;;  %vm4114_vm15 = vcmp.ge.s32.totalorder %v15698_v45, 1  ;;  %vm4115_vm5 = vcmp.le.s32.totalorder %v15698_v45, 2 }
 0x502   : > { %v15631_v25 = vld [vmem:[#allocation3 + $0x8] sm:$0xff]  ;;  %12754 = vmatprep.subr.bf16.mxu0 %v13309_v63  ;;  %vm4116_vm7 = vmand %vm4114_vm15, %vm4115_vm5 }
 0x503   : > { %v15629_v32 = vld [vmem:[#allocation3] sm:$0xff]  ;;  %6717 = vst.msk [vmem:[#allocation3 + $0xa] sm:$0xff] %vm402_vm3, %v14461_v50  ;;  %v4107_v44 = vrot.slane %v15706_v54, %v15711_v5 }
 0x504   : > { %6716 = vst.msk [vmem:[#allocation3 + $0x2] sm:$0xff] %vm402_vm3, %v17878_v7  ;;  %11745 = vmatmul.mubr.msk.f32.vlgmr.msra.gmra.mrb[236].mxu0 %vm2913_vm10, %v4024_v46  ;;  %v4101_v46 = vrot.slane %v15706_v54, %v15701_v52 }
 0x505   : > { %11782 = vmatprep.mubr.msk.f32.mxu0 %vm13308_vm1, %v17877_v61  ;;  %12756 = vmatpush3.bf16.msra.mxu0 %v12755_v49  ;;  %v15714_v49 = vsub.s32 2, %v15698_v45  ;;  %6715 = vst.msk [vmem:[#allocation3] sm:$0x3] %vm6714_vm11, %v17877_v61 }
 0x506   : > { %12757 = vmatprep.subr.bf16.mxu0 %v13309_v63 }
 0x509   : > { %12759 = vmatpush3.bf16.msra.mxu0 %v12758_v43  ;;  %v4112_v43 = vrot.slane %v15706_v54, %v15714_v49 }
 0x50a   : > { %12760 = vmatprep.subr.bf16.mxu0 %v13309_v63 }
 0x50d   : > { %12762 = vmatpush3.bf16.msra.mxu0 %v12761_v30  ;;  %v12767_v30 = vpack.c.bf16 %v9743_v6, %v9742_v9  ;;  %v9783_v9 = vld [vmem:[%s17773_s1 + $0x3c0] sm:$0xff]  ;;  %v9784_v6 = vld [vmem:[%s17773_s1 + $0x3c8] sm:$0xff] }
 0x50e   : > { %12763 = vmatprep.subr.bf16.mxu0 %v13309_v63 }
 0x511   : > { %12765 = vmatpush3.bf16.msra.mxu0 %v12764_v51  ;;  %v9747_v51 = vld [vmem:[%s17773_s1 + $0x3a8] sm:$0xff] }
 0x512   : > { %12778 = vmatprep.subr.bf16.mxu0 %v13309_v63  ;;  %v12773_v37 = vpack.c.bf16 %v9747_v51, %v9746_v62  ;;  %v9787_v62 = vld [vmem:[%s17773_s1 + $0x3e0] sm:$0xff]  ;;  %v9788_v51 = vld [vmem:[%s17773_s1 + $0x3e8] sm:$0xff] }
 0x5c5   : > { %v4020_v41 = vpop.f32.mrb[166].mxu1 }
 0x5c6   : > { %v11727_v48 = vpop.f32.mrb[167].mxu1 }
 0x5c7   : > { %v3948_v31 = vpop.f32.mrb[234].mxu0  ;;  %v9791_v48 = vld [vmem:[%s17773_s1 + $0x400] sm:$0xff] }
 0x5c8   : > { %v4021_v10 = vadd.f32 %v4020_v41, %v3948_v31  ;;  %v11708_v55 = vpop.f32.mrb[235].mxu0  ;;  %v12776_v41 = vpack.c.bf16 %v9749_v8, %v9748_v16  ;;  %v9792_v31 = vld [vmem:[%s17773_s1 + $0x408] sm:$0xff]  ;;  %v9789_v16 = vld [vmem:[%s17773_s1 + $0x3f0] sm:$0xff]  ;;  %v9790_v8 = vld [vmem:[%s17773_s1 + $0x3f8] sm:$0xff] }
 0x5d7   : > { %v4093_v29 = vpop.f32.mrb[236].mxu0 }
 0x5d8   : > { %v4097_v59 = vadd.f32 %v4093_v29, %v4021_v10  ;;  %v11746_v38 = vpop.f32.mrb[237].mxu0  ;;  %v12815_v10 = vpack.c.bf16 %v9792_v31, %v9791_v48  ;;  %v9794_v29 = vld [vmem:[%s17773_s1 + $0x418] sm:$0xff]  ;;  %v9799_v48 = vld [vmem:[%s17773_s1 + $0x440] sm:$0xff]  ;;  %v9800_v31 = vld [vmem:[%s17773_s1 + $0x448] sm:$0xff] }
 0x5d9   : > { %v9795_v38 = vld [vmem:[%s17773_s1 + $0x420] sm:$0xff] }
 0x5da   : > { %v4102_v24 = vadd.f32 %v4101_v46, %v4097_v59  ;;  %v9793_v46 = vld [vmem:[%s17773_s1 + $0x410] sm:$0xff] }
 0x5db   : > { %v12818_v59 = vpack.c.bf16 %v9794_v29, %v9793_v46  ;;  %v9802_v46 = vld [vmem:[%s17773_s1 + $0x458] sm:$0xff] }
 0x5dc   : > { %v4103_v40 = vmax.f32 %v4102_v24, 0.0  ;;  %v9796_v24 = vld [vmem:[%s17773_s1 + $0x428] sm:$0xff] }
 0x5de   : > { %v4108_v2 = vmul.f32 %v4107_v44, %v4103_v40  ;;  %v12821_v44 = vpack.c.bf16 %v9796_v24, %v9795_v38  ;;  %v9797_v40 = vld [vmem:[%s17773_s1 + $0x430] sm:$0xff]  ;;  %v9804_v38 = vld [vmem:[%s17773_s1 + $0x468] sm:$0xff] }
 0x5e0   : > { %v4113_v1 = vadd.f32 %v4112_v43, %v4108_v2  ;;  %v9798_v43 = vld [vmem:[%s17773_s1 + $0x438] sm:$0xff] }
 0x5e1   : > { %v12824_v2 = vpack.c.bf16 %v9798_v43, %v9797_v40  ;;  %v9806_v40 = vld [vmem:[%s17773_s1 + $0x478] sm:$0xff] }
 0x5e2   : > { %v4117_v35 = vsel %vm4116_vm7, %v4113_v1, 0.0  ;;  %v4681_v1 = vrot.slane %v15615_v58, 1  ;;  %vm5159_vm7 = vcmask 15360  }
 0x5e3   : > { %v4119_v36 = vrot.slane %v4117_v35, 1  ;;  %11783 = vmatmul.mubr.msk.f32.vlgmr.msra.gmra.mrb[238].mxu0 %vm2913_vm10, %v4117_v35  ;;  %v4264_v55 = vrot.slane %v4117_v35, 2  ;;  %v4682_v35 = vrot.slane %v15613_v15, 1 }
 0x5e4   : > { %11820 = vmatprep.mubr.msk.f32.mxu0 %vm13308_vm1, %v17877_v61 }
 0x5e5   : > { %11764 = vmatmul.mubr.msk.f32.vlgmr.msra.gmra.mrb[168].mxu1 %vm2913_vm10, %v4119_v36  ;;  %v9785_v36 = vld [vmem:[%s17773_s1 + $0x3d0] sm:$0xff]  ;;  %v4683_v3 = vsel %vm370_vm2, %v4681_v1, %v4682_v35  ;;  %v9764_v1 = vld [vmem:[%s17773_s1 + $0x700] sm:$0xff] }
 0x5e6   : > { %12768 = vmatpush3.bf16.msra.mxu1 %v12767_v30  ;;  %11801 = vmatprep.mubr.msk.f32.mxu1 %vm13308_vm1, %v17877_v61  ;;  %v12827_v30 = vpack.c.bf16 %v9784_v6, %v9783_v9  ;;  %v4829_v9 = vrot.slane %v15613_v15, 2  ;;  %v9766_v15 = vld [vmem:[%s17773_s1 + $0x710] sm:$0xff] }
 0x5e7   : > { %12769 = vmatprep.subr.bf16.mxu1 %v13309_v63 }
 0x5ea   : > { %12771 = vmatpush3.bf16.msra.mxu1 %v12770_v27  ;;  %v12830_v27 = vpack.c.bf16 %v9786_v0, %v9785_v36  ;;  %v9768_v0 = vld [vmem:[%s17773_s1 + $0x720] sm:$0xff] }
 0x5eb   : > { %12772 = vmatprep.subr.bf16.mxu1 %v13309_v63 }
 0x5ee   : > { %12774 = vmatpush3.bf16.msra.mxu1 %v12773_v37  ;;  %v12833_v37 = vpack.c.bf16 %v9788_v51, %v9787_v62  ;;  %v9770_v62 = vld [vmem:[%s17773_s1 + $0x730] sm:$0xff]  ;;  %v9771_v51 = vld [vmem:[%s17773_s1 + $0x738] sm:$0xff] }
 0x5ef   : > { %12775 = vmatprep.subr.bf16.mxu1 %v13309_v63 }
 0x5f2   : > { %12777 = vmatpush3.bf16.msra.mxu1 %v12776_v41  ;;  %v12836_v41 = vpack.c.bf16 %v9790_v8, %v9789_v16  ;;  %v9807_v16 = vld [vmem:[%s17773_s1 + $0x480] sm:$0xff]  ;;  %v9808_v8 = vld [vmem:[%s17773_s1 + $0x488] sm:$0xff] }
 0x5f3   : > { %12814 = vmatprep.subr.bf16.mxu1 %v13309_v63 }
 0x5f5   : > { %11802 = vmatmul.mubr.msk.f32.vlgmr.msra.gmra.mrb[170].mxu1 %vm2913_vm10, %v4264_v55  ;;  %v9801_v55 = vld [vmem:[%s17773_s1 + $0x450] sm:$0xff] }
 0x5f6   : > { %12816 = vmatpush3.bf16.msra.mxu1 %v12815_v10  ;;  %11877 = vmatprep.mubr.msk.f32.mxu1 %vm13308_vm1, %v17877_v61  ;;  %v12839_v10 = vpack.c.bf16 %v9800_v31, %v9799_v48  ;;  %v12842_v29 = vpack.c.bf16 %v9802_v46, %v9801_v55  ;;  %v9809_v48 = vld [vmem:[%s17773_s1 + $0x490] sm:$0xff]  ;;  %v9810_v31 = vld [vmem:[%s17773_s1 + $0x498] sm:$0xff]  ;;  %v9811_v55 = vld [vmem:[%s17773_s1 + $0x4a0] sm:$0xff] }
 0x5f7   : > { %12817 = vmatprep.subr.bf16.mxu1 %v13309_v63  ;;  %v9812_v46 = vld [vmem:[%s17773_s1 + $0x4a8] sm:$0xff] }
 0x5fa   : > { %12819 = vmatpush3.bf16.msra.mxu1 %v12818_v59  ;;  %v9803_v59 = vld [vmem:[%s17773_s1 + $0x460] sm:$0xff] }
 0x5fb   : > { %12820 = vmatprep.subr.bf16.mxu1 %v13309_v63  ;;  %v12845_v24 = vpack.c.bf16 %v9804_v38, %v9803_v59  ;;  %v9813_v59 = vld [vmem:[%s17773_s1 + $0x4b0] sm:$0xff]  ;;  %v9814_v38 = vld [vmem:[%s17773_s1 + $0x4b8] sm:$0xff] }
 0x5fe   : > { %12822 = vmatpush3.bf16.msra.mxu1 %v12821_v44  ;;  %v9805_v44 = vld [vmem:[%s17773_s1 + $0x470] sm:$0xff] }
 0x5ff   : > { %12823 = vmatprep.subr.bf16.mxu1 %v13309_v63  ;;  %v12848_v43 = vpack.c.bf16 %v9806_v40, %v9805_v44  ;;  %v3811_v40 = vsel %vm3810_vm9, %v15580_v47, 0.0 }
 0x602   : > { %12825 = vmatpush3.bf16.msra.mxu1 %v12824_v2  ;;  %v4828_v2 = vrot.slane %v15615_v58, 2 }
 0x603   : > { %12826 = vmatprep.subr.bf16.mxu1 %v13309_v63 }
 0x604   : > { %v4830_v6 = vsel %vm748_vm6, %v4828_v2, %v4829_v9 }
 0x605   : > { %11878 = vmatmul.mubr.msk.f32.vlgmr.msra.gmra.mrb[172].mxu1 %vm2913_vm10, %v4683_v3  ;;  %v9769_v3 = vld [vmem:[%s17773_s1 + $0x728] sm:$0xff] }
 0x606   : > { %12828 = vmatpush3.bf16.msra.mxu1 %v12827_v30  ;;  %11896 = vmatprep.mubr.msk.f32.mxu1 %vm13308_vm1, %v17877_v61  ;;  %v9767_v30 = vld [vmem:[%s17773_s1 + $0x718] sm:$0xff] }
 0x607   : > { %12829 = vmatprep.subr.bf16.mxu1 %v13309_v63  ;;  %v12782_v36 = vpack.c.bf16 %v9767_v30, %v9766_v15  ;;  %v15922_v15 = vsub.s32 3, %v15698_v45 }
 0x60a   : > { %12831 = vmatpush3.bf16.msra.mxu1 %v12830_v27  ;;  %v12785_v27 = vpack.c.bf16 %v9769_v3, %v9768_v0  ;;  %v4341_v0 = vrot.slane %v15706_v54, %v15922_v15  ;;  %v15930_v3 = vsub.s32 5, %v15698_v45 }
 0x60b   : > { %12832 = vmatprep.subr.bf16.mxu1 %v13309_v63 }
 0x60e   : > { %12834 = vmatpush3.bf16.msra.mxu1 %v12833_v37  ;;  %v12788_v37 = vpack.c.bf16 %v9771_v51, %v9770_v62 }
 0x60f   : > { %12835 = vmatprep.subr.bf16.mxu1 %v13309_v63 }
 0x612   : > { %12837 = vmatpush3.bf16.msra.mxu1 %v12836_v41  ;;  %v12863_v41 = vpack.c.bf16 %v9808_v8, %v9807_v16 }
 0x613   : > { %12838 = vmatprep.subr.bf16.mxu1 %v13309_v63 }
 0x615   : > { %11897 = vmatmul.mubr.msk.f32.vlgmr.msra.gmra.mrb[174].mxu1 %vm2913_vm10, %v15615_v58  ;;  %v9765_v58 = vld [vmem:[%s17773_s1 + $0x708] sm:$0xff] }
 0x616   : > { %12840 = vmatpush3.bf16.msra.mxu1 %v12839_v10  ;;  %11915 = vmatprep.mubr.msk.f32.mxu1 %vm13308_vm1, %v17877_v61  ;;  %v12779_v35 = vpack.c.bf16 %v9765_v58, %v9764_v1  ;;  %v12866_v10 = vpack.c.bf16 %v9810_v31, %v9809_v48  ;;  %v3812_v1 = vrot.slane %v3811_v40, 4 }
 0x617   : > { %12841 = vmatprep.subr.bf16.mxu1 %v13309_v63 }
 0x618   : > { %12780 = vmatpush3.bf16.msra.mxu0 %v12779_v35  ;;  %v3813_v58 = vadd.f32 %v3812_v1, %v3811_v40 }
 0x619   : > { %12781 = vmatprep.subr.bf16.mxu0 %v13309_v63 }
 0x61a   : > { %12843 = vmatpush3.bf16.msra.mxu1 %v12842_v29  ;;  %v12869_v29 = vpack.c.bf16 %v9812_v46, %v9811_v55  ;;  %v3814_v35 = vrot.slane %v3813_v58, 2 }
 0x61b   : > { %12844 = vmatprep.subr.bf16.mxu1 %v13309_v63 }
 0x61c   : > { %12783 = vmatpush3.bf16.msra.mxu0 %v12782_v36  ;;  %v3815_v30 = vadd.f32 %v3814_v35, %v3813_v58  ;;  %v15925_v36 = vsub.s32 4, %v15698_v45  ;;  %v9758_v35 = vld [vmem:[%s17773_s1 + $0x6d0] sm:$0xff] }
 0x61d   : > { %12784 = vmatprep.subr.bf16.mxu0 %v13309_v63 }
 0x61e   : > { %12846 = vmatpush3.bf16.msra.mxu1 %v12845_v24  ;;  %v12872_v24 = vpack.c.bf16 %v9814_v38, %v9813_v59  ;;  %v3816_v62 = vrot.slane %v3815_v30, 1 }
 0x61f   : > { %12847 = vmatprep.subr.bf16.mxu1 %v13309_v63 }
 0x620   : > { %12786 = vmatpush3.bf16.msra.mxu0 %v12785_v27  ;;  %v3817_v48 = vadd.f32 %v3816_v62, %v3815_v30  ;;  %v9759_v30 = vld [vmem:[%s17773_s1 + $0x6d8] sm:$0xff]  ;;  %v9761_v62 = vld [vmem:[%s17773_s1 + $0x6e8] sm:$0xff] }
 0x621   : > { %12787 = vmatprep.subr.bf16.mxu0 %v13309_v63 }
 0x622   : > { %12849 = vmatpush3.bf16.msra.mxu1 %v12848_v43  ;;  %v3818_v46 = vmul.f32 0.5, %v3817_v48  ;;  %v9763_v48 = vld [vmem:[%s17773_s1 + $0x6f8] sm:$0xff] }
 0x623   : > { %12862 = vmatprep.subr.bf16.mxu1 %v13309_v63 }
 0x624   : > { %12789 = vmatpush3.bf16.msra.mxu0 %v12788_v37  ;;  %v4346_v37 = vrot.slane %v15706_v54, %v15925_v36 }
 0x625   : > { %11916 = vmatmul.mubr.msk.f32.vlgmr.msra.gmra.mrb[176].mxu1 %vm2913_vm10, %v4830_v6  ;;  %12790 = vmatprep.subr.bf16.mxu0 %v13309_v63 }
 0x626   : > { %11953 = vmatprep.mubr.msk.f32.mxu1 %vm13308_vm1, %v17877_v61  ;;  %12864 = vmatpush3.bf16.msra.mxu1 %v12863_v41  ;;  %v4351_v41 = vrot.slane %v15706_v54, %v15930_v3 }
 0x627   : > { %12865 = vmatprep.subr.bf16.mxu1 %v13309_v63 }
 0x62a   : > { %12867 = vmatpush3.bf16.msra.mxu1 %v12866_v10  ;;  %v4382_v10 = vld [vmem:[%s17774_s2 + $0x1b] sm:$0x3] }
 0x62b   : > { %12868 = vmatprep.subr.bf16.mxu1 %v13309_v63  ;;  %v4386_v59 = vrot.slane %v4382_v10, %v15701_v52 }
 0x62e   : > { %12870 = vmatpush3.bf16.msra.mxu1 %v12869_v29 }
 0x62f   : > { %12871 = vmatprep.subr.bf16.mxu1 %v13309_v63 }
 0x632   : > { %12873 = vmatpush3.bf16.msra.mxu1 %v12872_v24  ;;  %v4391_v24 = vrot.slane %v4382_v10, %v15711_v5  ;;  %v9772_v10 = vld [vmem:[%s17773_s1 + $0x740] sm:$0xff] }
 0x633   : > { %11975 = vmatprep.subr.mxu1 %v17877_v61 }
 0x6b6   : > { %v4260_v44 = vpop.f32.mrb[238].mxu0 }
 0x6b7   : > { %v11784_v43 = vpop.f32.mrb[239].mxu0 }
 0x6b8   : > { %v4188_v2 = vpop.f32.mrb[168].mxu1 }
 0x6b9   : > { %v4261_v9 = vadd.f32 %v4260_v44, %v4188_v2  ;;  %v11765_v6 = vpop.f32.mrb[169].mxu1 }
 0x6c8   : > { %v4333_v27 = vpop.f32.mrb[170].mxu1 }
 0x6c9   : > { %v4337_v51 = vadd.f32 %v4333_v27, %v4261_v9  ;;  %v11803_v16 = vpop.f32.mrb[171].mxu1  ;;  %v9756_v9 = vld [vmem:[%s17773_s1 + $0x6c0] sm:$0xff] }
 0x6ca   : > { %v9760_v27 = vld [vmem:[%s17773_s1 + $0x6e0] sm:$0xff] }
 0x6cb   : > { %v4342_v8 = vadd.f32 %v4341_v0, %v4337_v51  ;;  %v12794_v0 = vpack.c.bf16 %v9759_v30, %v9758_v35  ;;  %v9778_v35 = vld [vmem:[%s17773_s1 + $0x770] sm:$0xff]  ;;  %v9779_v30 = vld [vmem:[%s17773_s1 + $0x778] sm:$0xff] }
 0x6cd   : > { %v4347_v31 = vmul.f32 %v4346_v37, %v4342_v8  ;;  %v12797_v8 = vpack.c.bf16 %v9761_v62, %v9760_v27  ;;  %v12812_v62 = vpack.c.bf16 %v9779_v30, %v9778_v35  ;;  %v9827_v35 = vld [vmem:[%s17773_s1 + $0x520] sm:$0xff]  ;;  %v9828_v30 = vld [vmem:[%s17773_s1 + $0x528] sm:$0xff] }
 0x6cf   : > { %v4352_v55 = vadd.f32 %v4351_v41, %v4347_v31  ;;  %v9762_v41 = vld [vmem:[%s17773_s1 + $0x6f0] sm:$0xff] }
 0x6d0   : > { %v12800_v31 = vpack.c.bf16 %v9763_v48, %v9762_v41 }
 0x6d1   : > { %v4353_v29 = vadd.f32 %v4352_v55, %v15580_v47  ;;  %v9757_v47 = vld [vmem:[%s17773_s1 + $0x6c8] sm:$0xff] }
 0x6d2   : > { %v12791_v1 = vpack.c.bf16 %v9757_v47, %v9756_v9  ;;  %v9773_v55 = vld [vmem:[%s17773_s1 + $0x748] sm:$0xff] }
 0x6d3   : > { %v4354_v38 = vadd.f32 %v4353_v29, %v3818_v46  ;;  %v12803_v46 = vpack.c.bf16 %v9773_v55, %v9772_v10  ;;  %v9774_v29 = vld [vmem:[%s17773_s1 + $0x750] sm:$0xff]  ;;  %v9818_v55 = vld [vmem:[%s17773_s1 + $0x4d8] sm:$0xff] }
 0x6d4   : > { %v9817_v10 = vld [vmem:[%s17773_s1 + $0x4d0] sm:$0xff] }
 0x6d5   : > { %v4387_v44 = vmul.f32 %v4386_v59, %v4354_v38  ;;  %v9775_v59 = vld [vmem:[%s17773_s1 + $0x758] sm:$0xff]  ;;  %v15994_v38 = vld [vmem:[%s17774_s2 + $0x9] sm:$0x3f] }
 0x6d6   : > { %v4918_v27 = vrot.slane %v15994_v38, %v15714_v49 }
 0x6d7   : > { %v4392_v40 = vadd.f32 %v4391_v24, %v4387_v44  ;;  %v12806_v24 = vpack.c.bf16 %v9775_v59, %v9774_v29  ;;  %v4907_v44 = vrot.slane %v15994_v38, %v15701_v52  ;;  %v9820_v29 = vld [vmem:[%s17773_s1 + $0x4e8] sm:$0xff] }
 0x6d8   : > { %v4752_v43 = vpop.f32.mrb[172].mxu1 }
 0x6d9   : > { %v4393_v2 = vmax.f32 %v4392_v40, 0.0  ;;  %v11879_v54 = vpop.f32.mrb[173].mxu1  ;;  %v9776_v40 = vld [vmem:[%s17773_s1 + $0x760] sm:$0xff] }
 0x6db   : > { %4395 = vst.msk [vmem:[#allocation4 + $0x1] sm:$0x3] %vm3810_vm9, %v4393_v2  ;;  %vm4920_vm9 = vcmp.le.s32.totalorder %v15698_v45, 6 }
 0x6dc   : > { %vm4921_vm5 = vmand %vm4114_vm15, %vm4920_vm9 }
 0x6e2   : > { %v15949_v6 = vld [vmem:[#allocation4] sm:$0xf] }
 0x6e3   : > { %v4399_v58 = vrot.slane %v15949_v6, 1  ;;  %5275 = vst.msk [vmem:[#allocation4] sm:$0x1] %vm3543_vm13, %v17877_v61  ;;  %v4544_v48 = vrot.slane %v15949_v6, 2 }
 0x6e5   : > { %11821 = vmatmul.mubr.msk.f32.vlgmr.msra.gmra.mrb[240].mxu0 %vm2913_vm10, %v4399_v58  ;;  %v4913_v58 = vrot.slane %v15994_v38, %v15711_v5 }
 0x6e6   : > { %12792 = vmatpush3.bf16.msra.mxu0 %v12791_v1  ;;  %11839 = vmatprep.mubr.msk.f32.mxu0 %vm13308_vm1, %v17877_v61 }
 0x6e7   : > { %12793 = vmatprep.subr.bf16.mxu0 %v13309_v63 }
 0x6e8   : > { %v4824_v51 = vpop.f32.mrb[174].mxu1 }
 0x6e9   : > { %v4825_v37 = vadd.f32 %v4824_v51, %v4752_v43  ;;  %v11898_v16 = vpop.f32.mrb[175].mxu1  ;;  %v9777_v43 = vld [vmem:[%s17773_s1 + $0x768] sm:$0xff] }
 0x6ea   : > { %12795 = vmatpush3.bf16.msra.mxu0 %v12794_v0  ;;  %v12809_v47 = vpack.c.bf16 %v9777_v43, %v9776_v40  ;;  %v9816_v16 = vld [vmem:[%s17773_s1 + $0x4c8] sm:$0xff]  ;;  %v9823_v43 = vld [vmem:[%s17773_s1 + $0x500] sm:$0xff] }
 0x6eb   : > { %12796 = vmatprep.subr.bf16.mxu0 %v13309_v63 }
 0x6ee   : > { %12798 = vmatpush3.bf16.msra.mxu0 %v12797_v8 }
 0x6ef   : > { %12799 = vmatprep.subr.bf16.mxu0 %v13309_v63 }
 0x6f2   : > { %12801 = vmatpush3.bf16.msra.mxu0 %v12800_v31 }
 0x6f3   : > { %12802 = vmatprep.subr.bf16.mxu0 %v13309_v63 }
 0x6f5   : > { %11840 = vmatmul.mubr.msk.f32.vlgmr.msra.gmra.mrb[240].mxu0 %vm2913_vm10, %v15949_v6  ;;  %v12854_v6 = vpack.c.bf16 %v9818_v55, %v9817_v10  ;;  %v5570_v10 = vrot.slane %v15629_v32, 1  ;;  %v5571_v55 = vrot.slane %v15631_v25, 1 }
 0x6f6   : > { %12804 = vmatpush3.bf16.msra.mxu0 %v12803_v46  ;;  %11858 = vmatprep.mubr.msk.f32.mxu0 %vm13308_vm1, %v17877_v61  ;;  %v9819_v46 = vld [vmem:[%s17773_s1 + $0x4e0] sm:$0xff] }
 0x6f7   : > { %12805 = vmatprep.subr.bf16.mxu0 %v13309_v63  ;;  %v12857_v59 = vpack.c.bf16 %v9820_v29, %v9819_v46  ;;  %v9878_v29 = vld [vmem:[%s17773_s1 + $0x5a0] sm:$0xff] }
 0x6f8   : > { %v4899_v2 = vpop.f32.mrb[176].mxu1 }
 0x6f9   : > { %v4903_v54 = vadd.f32 %v4899_v2, %v4825_v37  ;;  %v11917_v9 = vpop.f32.mrb[177].mxu1  ;;  %v9815_v37 = vld [vmem:[%s17773_s1 + $0x4c0] sm:$0xff]  ;;  %v9824_v2 = vld [vmem:[%s17773_s1 + $0x508] sm:$0xff] }
 0x6fa   : > { %12807 = vmatpush3.bf16.msra.mxu0 %v12806_v24  ;;  %v12851_v41 = vpack.c.bf16 %v9816_v16, %v9815_v37  ;;  %v9821_v24 = vld [vmem:[%s17773_s1 + $0x4f0] sm:$0xff]  ;;  %v9875_v37 = vld [vmem:[%s17773_s1 + $0x588] sm:$0xff] }
 0x6fb   : > { %v4908_v1 = vadd.f32 %v4907_v44, %v4903_v54  ;;  %12808 = vmatprep.subr.bf16.mxu0 %v13309_v63  ;;  %v9822_v44 = vld [vmem:[%s17773_s1 + $0x4f8] sm:$0xff]  ;;  %v12875_v54 = vpack.c.bf16 %v9824_v2, %v9823_v43  ;;  %v9866_v2 = vld [vmem:[%s17773_s1 + $0x540] sm:$0xff] }
 0x6fc   : > { %v12860_v40 = vpack.c.bf16 %v9822_v44, %v9821_v24  ;;  %v5572_v24 = vsel %vm370_vm2, %v5570_v10, %v5571_v55  ;;  %v9883_v10 = vld [vmem:[%s17773_s1 + $0x5c8] sm:$0xff] }
 0x6fd   : > { %v4909_v0 = vmax.f32 %v4908_v1, 0.0  ;;  %v9826_v1 = vld [vmem:[%s17773_s1 + $0x518] sm:$0xff] }
 0x6fe   : > { %12810 = vmatpush3.bf16.msra.mxu0 %v12809_v47  ;;  %v9825_v47 = vld [vmem:[%s17773_s1 + $0x510] sm:$0xff] }
 0x6ff   : > { %v4914_v51 = vmul.f32 %v4913_v58, %v4909_v0  ;;  %12811 = vmatprep.subr.bf16.mxu0 %v13309_v63  ;;  %v12878_v58 = vpack.c.bf16 %v9826_v1, %v9825_v47  ;;  %v12881_v0 = vpack.c.bf16 %v9828_v30, %v9827_v35  ;;  %v9868_v47 = vld [vmem:[%s17773_s1 + $0x550] sm:$0xff]  ;;  %v9869_v1 = vld [vmem:[%s17773_s1 + $0x558] sm:$0xff]  ;;  %v5573_v35 = vrot.slane %v15317_v4, 1 }
 0x700   : > { %v12942_v30 = vpack.c.bf16 %v9869_v1, %v9868_v47  ;;  %v5771_v1 = vrot.slane %v15312_v28, 2 }
 0x701   : > { %v4919_v8 = vadd.f32 %v4918_v27, %v4914_v51  ;;  %v9829_v27 = vld [vmem:[%s17773_s1 + $0x530] sm:$0xff]  ;;  %v9874_v51 = vld [vmem:[%s17773_s1 + $0x580] sm:$0xff] }
 0x702   : > { %12813 = vmatpush3.bf16.msra.mxu0 %v12812_v62  ;;  %v9830_v62 = vld [vmem:[%s17773_s1 + $0x538] sm:$0xff] }
 0x703   : > { %12850 = vmatprep.subr.bf16.mxu0 %v13309_v63  ;;  %v4922_v31 = vsel %vm4921_vm5, %v4919_v8, 0.0  ;;  %v12884_v16 = vpack.c.bf16 %v9830_v62, %v9829_v27  ;;  %v12922_v8 = vpack.c.bf16 %v9875_v37, %v9874_v51  ;;  %v9870_v27 = vld [vmem:[%s17773_s1 + $0x560] sm:$0xff]  ;;  %v9871_v62 = vld [vmem:[%s17773_s1 + $0x568] sm:$0xff] }
 0x704   : > { %11954 = vmatmul.mubr.msk.f32.vlgmr.msra.gmra.mrb[178].mxu1 %vm2913_vm10, %v4922_v31  ;;  %v4924_v9 = vrot.slane %v4922_v31, 1  ;;  %v12946_v37 = vpack.c.bf16 %v9871_v62, %v9870_v27 }
 0x705   : > { %11859 = vmatmul.mubr.msk.f32.vlgmr.msra.gmra.mrb[240].mxu0 %vm2913_vm10, %v4544_v48  ;;  %11977 = vmatprep.mubr.msk.f32.mxu1 %vm13308_vm1, %v17877_v61  ;;  %v9877_v48 = vld [vmem:[%s17773_s1 + $0x598] sm:$0xff] }
 0x706   : > { %12852 = vmatpush3.bf16.msra.mxu0 %v12851_v41  ;;  %11934 = vmatprep.mubr.msk.f32.mxu0 %vm13308_vm1, %v17877_v61  ;;  %v9876_v41 = vld [vmem:[%s17773_s1 + $0x590] sm:$0xff] }
 0x707   : > { %12853 = vmatprep.subr.bf16.mxu0 %v13309_v63  ;;  %v12926_v46 = vpack.c.bf16 %v9877_v48, %v9876_v41  ;;  %v9882_v48 = vld [vmem:[%s17773_s1 + $0x5c0] sm:$0xff] }
 0x70a   : > { %12855 = vmatpush3.bf16.msra.mxu0 %v12854_v6  ;;  %v5069_v6 = vrot.slane %v4922_v31, 2  ;;  %v9880_v31 = vld [vmem:[%s17773_s1 + $0x5b0] sm:$0xff] }
 0x70b   : > { %12856 = vmatprep.subr.bf16.mxu0 %v13309_v63 }
 0x70e   : > { %12858 = vmatpush3.bf16.msra.mxu0 %v12857_v59  ;;  %v9879_v59 = vld [vmem:[%s17773_s1 + $0x5a8] sm:$0xff] }
 0x70f   : > { %12859 = vmatprep.subr.bf16.mxu0 %v13309_v63  ;;  %v12930_v44 = vpack.c.bf16 %v9879_v59, %v9878_v29  ;;  %v9886_v59 = vld [vmem:[%s17773_s1 + $0x5e0] sm:$0xff] }
 0x712   : > { %12861 = vmatpush3.bf16.msra.mxu0 %v12860_v40  ;;  %v9881_v40 = vld [vmem:[%s17773_s1 + $0x5b8] sm:$0xff] }
 0x713   : > { %12874 = vmatprep.subr.bf16.mxu0 %v13309_v63  ;;  %v12934_v43 = vpack.c.bf16 %v9881_v40, %v9880_v31  ;;  %v5765_v31 = vrot.slane %v15631_v25, 2 }
 0x715   : > { %11935 = vmatmul.mubr.msk.f32.vlgmr.msra.gmra.mrb[242].mxu0 %vm2913_vm10, %v4924_v9 }
 0x716   : > { %12876 = vmatpush3.bf16.msra.mxu0 %v12875_v54  ;;  %11972 = vmatprep.mubr.msk.f32.mxu0 %vm13308_vm1, %v17877_v61  ;;  %v9867_v54 = vld [vmem:[%s17773_s1 + $0x548] sm:$0xff] }
 0x717   : > { %12877 = vmatprep.subr.bf16.mxu0 %v13309_v63  ;;  %v12938_v9 = vpack.c.bf16 %v9867_v54, %v9866_v2  ;;  %v9889_v2 = vld [vmem:[%s17773_s1 + $0x5f8] sm:$0xff]  ;;  %v5769_v54 = vrot.slane %v15319_v60, 2 }
 0x71a   : > { %12879 = vmatpush3.bf16.msra.mxu0 %v12878_v58  ;;  %v5575_v58 = vrot.slane %v15319_v60, 1 }
 0x71b   : > { %12880 = vmatprep.subr.bf16.mxu0 %v13309_v63 }
 0x71c   : > { %v5576_v51 = vsel %vm370_vm2, %v5573_v35, %v5575_v58 }
 0x71e   : > { %12882 = vmatpush3.bf16.msra.mxu0 %v12881_v0  ;;  %v5574_v0 = vsel %vm370_vm2, %v5571_v55, %v5573_v35  ;;  %v12954_v55 = vpack.c.bf16 %v9883_v10, %v9882_v48  ;;  %v5772_v35 = vsel %vm748_vm6, %v5769_v54, %v5771_v1 }
 0x71f   : > { %12883 = vmatprep.subr.bf16.mxu0 %v13309_v63 }
 0x722   : > { %12885 = vmatpush3.bf16.msra.mxu0 %v12884_v16  ;;  %v9872_v16 = vld [vmem:[%s17773_s1 + $0x570] sm:$0xff] }
 0x723   : > { %12923 = vmatprep.subr.bf16.mxu0 %v12922_v8 }
 0x725   : > { %11973 = vmatmul.mubr.msk.f32.vlgmr.msra.gmra.mrb[244].mxu0 %vm2913_vm10, %v5069_v6  ;;  %v9884_v6 = vld [vmem:[%s17773_s1 + $0x5d0] sm:$0xff] }
 0x726   : > { %12925 = vmatpush3.bf16.msra.mxu0 %v12922_v8  ;;  %12053 = vmatprep.mubr.msk.f32.mxu0 %vm2913_vm10, %v5572_v24  ;;  %v9873_v8 = vld [vmem:[%s17773_s1 + $0x578] sm:$0xff]  ;;  %v9887_v24 = vld [vmem:[%s17773_s1 + $0x5e8] sm:$0xff] }
 0x727   : > { %12927 = vmatprep.subr.bf16.mxu0 %v12926_v46  ;;  %v12950_v41 = vpack.c.bf16 %v9873_v8, %v9872_v16  ;;  %v12962_v40 = vpack.c.bf16 %v9887_v24, %v9886_v59 }
 0x72a   : > { %12929 = vmatpush3.bf16.msra.mxu0 %v12926_v46  ;;  %v9885_v46 = vld [vmem:[%s17773_s1 + $0x5d8] sm:$0xff] }
 0x72b   : > { %12931 = vmatprep.subr.bf16.mxu0 %v12930_v44  ;;  %v12958_v29 = vpack.c.bf16 %v9885_v46, %v9884_v6 }
 0x72e   : > { %12933 = vmatpush3.bf16.msra.mxu0 %v12930_v44  ;;  %v5764_v44 = vrot.slane %v15629_v32, 2 }
 0x72f   : > { %12935 = vmatprep.subr.bf16.mxu0 %v12934_v43 }
 0x732   : > { %12937 = vmatpush3.bf16.msra.mxu0 %v12934_v43  ;;  %v9888_v43 = vld [vmem:[%s17773_s1 + $0x5f0] sm:$0xff] }
 0x733   : > { %12939 = vmatprep.subr.bf16.mxu0 %v12938_v9 }
 0x735   : > { %12054 = vmatmul.mubr.msk.f32.vlgmr.msra.gmra.mrb[246].mxu0 %vm2913_vm10, %v5574_v0 }
 0x736   : > { %12056 = vmatprep.mubr.msk.f32.mxu0 %vm2913_vm10, %v5576_v51  ;;  %12941 = vmatpush3.bf16.msra.mxu0 %v12938_v9  ;;  %v5767_v9 = vrot.slane %v15317_v4, 2 }
 0x737   : > { %12943 = vmatprep.subr.bf16.mxu0 %v12942_v30 }
 0x738   : > { %v5768_v47 = vsel %vm748_vm6, %v5765_v31, %v5767_v9 }
 0x739   : > { %12057 = vmatmul.mubr.msk.f32.gmra.mrb[248].mxu0 %vm2913_vm10, %v5575_v58  ;;  %v5770_v58 = vsel %vm748_vm6, %v5767_v9, %v5769_v54  ;;  %v9848_v54 = vld [vmem:[%s17773_s1 + $0x7c8] sm:$0xff] }
 0x73a   : > { %12945 = vmatpush3.bf16.msra.mxu0 %v12942_v30  ;;  %12075 = vmatprep.mubr.msk.f32.mxu0 %vm2913_vm10, %v15629_v32  ;;  %v5766_v32 = vsel %vm748_vm6, %v5764_v44, %v5765_v31 }
 0x73b   : > { %12947 = vmatprep.subr.bf16.mxu0 %v12946_v37 }
 0x73e   : > { %12949 = vmatpush3.bf16.msra.mxu0 %v12946_v37 }
 0x73f   : > { %12951 = vmatprep.subr.bf16.mxu0 %v12950_v41 }
 0x742   : > { %12953 = vmatpush3.bf16.msra.mxu0 %v12950_v41  ;;  %v16207_v41 = vld [vmem:[%s17774_s2 + $0xf] sm:$0x3f] }
 0x743   : > { %12955 = vmatprep.subr.bf16.mxu0 %v12954_v55  ;;  %v5873_v48 = vrot.slane %v16207_v41, %v15701_v52  ;;  %v5885_v6 = vrot.slane %v16207_v41, %v15711_v5  ;;  %v5893_v24 = vrot.slane %v16207_v41, %v15714_v49 }
 0x745   : > { %12076 = vmatmul.mubr.msk.f32.vlgmr.msra.gmra.mrb[246].mxu0 %vm2913_vm10, %v15631_v25  ;;  %v12966_v25 = vpack.c.bf16 %v9889_v2, %v9888_v43  ;;  %v16216_v43 = vadd.s32 24, %v15698_v45 }
 0x746   : > { %12078 = vmatprep.mubr.msk.f32.mxu0 %vm2913_vm10, %v15317_v4  ;;  %12957 = vmatpush3.bf16.msra.mxu0 %v12954_v55 }
 0x747   : > { %12959 = vmatprep.subr.bf16.mxu0 %v12958_v29  ;;  %17879 = vst [vmem:[#allocation15_spill] sm:$0xff] %v16216_v43 }
 0x749   : > { %12079 = vmatmul.mubr.msk.f32.gmra.mrb[248].mxu0 %vm2913_vm10, %v15319_v60  ;;  %v276_v60 = vld [vmem:[%s17776_s4] sm:$0x3f] }
 0x74a   : > { %12961 = vmatpush3.bf16.msra.mxu0 %v12958_v29  ;;  %12097 = vmatprep.mubr.msk.f32.mxu0 %vm2913_vm10, %v5766_v32 }
 0x74b   : > { %12963 = vmatprep.subr.bf16.mxu0 %v12962_v40 }
 0x74e   : > { %12965 = vmatpush3.bf16.msra.mxu0 %v12962_v40 }
 0x74f   : > { %12967 = vmatprep.subr.bf16.mxu0 %v12966_v25 }
 0x752   : > { %12969 = vmatpush3.bf16.msra.mxu0 %v12966_v25  ;;  %v9847_v25 = vld [vmem:[%s17773_s1 + $0x7c0] sm:$0xff] }
 0x753   : > { %v12887_v1 = vpack.c.bf16 %v9848_v54, %v9847_v25  ;;  %v9854_v25 = vld [vmem:[%s17773_s1 + $0x7f8] sm:$0xff] }
 0x755   : > { %12098 = vmatmul.mubr.msk.f32.vlgmr.msra.gmra.mrb[246].mxu0 %vm2913_vm10, %v5768_v47 }
 0x756   : > { %12100 = vmatprep.mubr.msk.f32.mxu0 %vm2913_vm10, %v5770_v58 }
 0x759   : > { %12101 = vmatmul.mubr.msk.f32.gmra.mrb[248].mxu0 %vm2913_vm10, %v5772_v35 }
 0x7d7   : > { %v5065_v30 = vpop.f32.mrb[178].mxu1 }
 0x7d8   : > { %v4613_v4 = vpop.f32.mrb[240].mxu0  ;;  %v11955_v0 = vpop.f32.mrb[179].mxu1 }
 0x7d9   : > { %v11860_v27 = vpop.f32.mrb[241].mxu0  ;;  %11976 = vmatpush3.msk.msra.mxu1 %vm1622_vm8, %v4613_v4  ;;  %vm5904_vm8 = vcmp.le.s32.totalorder %v16216_v43, 29  ;;  %v9849_v0 = vld [vmem:[%s17773_s1 + $0x7d0] sm:$0xff] }
 0x7da   : > { %11978 = vmatmul.mubr.msk.f32.vlgmr.msra.gmra.mrb[180].mxu1 %vm5159_vm7, %v276_v60  ;;  %12886 = vmatprep.subr.bf16.mxu1 %v13309_v63  ;;  %v9850_v27 = vld [vmem:[%s17773_s1 + $0x7d8] sm:$0xff] }
 0x7db   : > { %11996 = vmatprep.mubr.msk.f32.mxu1 %vm13308_vm1, %v17877_v61  ;;  %12888 = vmatpush3.bf16.msra.mxu1 %v12887_v1 }
 0x7dc   : > { %12889 = vmatprep.subr.bf16.mxu1 %v13309_v63 }
 0x7e8   : > { %v4993_v28 = vpop.f32.mrb[242].mxu0 }
 0x7e9   : > { %v5066_v62 = vadd.f32 %v5065_v30, %v4993_v28  ;;  %v11936_v51 = vpop.f32.mrb[243].mxu0 }
 0x7ea   : > { %v12890_v51 = vpack.c.bf16 %v9850_v27, %v9849_v0  ;;  %v5151_v27 = vrot.slane %v15994_v38, %v15925_v36 }
 0x7ec   : > { %12891 = vmatpush3.bf16.msra.mxu1 %v12890_v51  ;;  %v5156_v51 = vrot.slane %v15994_v38, %v15930_v3 }
 0x7ed   : > { %12892 = vmatprep.subr.bf16.mxu1 %v13309_v63 }
 0x7f8   : > { %v5138_v37 = vpop.f32.mrb[244].mxu0 }
 0x7f9   : > { %v16202_v16 = vadd.f32 %v5138_v37, %v5066_v62  ;;  %v11974_v8 = vpop.f32.mrb[245].mxu0 }
 0x828   : > { %v12099_v10 = vpop.f32.mrb[246].mxu0 }
 0x829   : > { %v5875_v55 = vadd.f32 %v12099_v10, %v5873_v48  ;;  %v5847_v46 = vpop.f32.mrb[247].mxu0 }
 0x82a   : > { %v5874_v29 = vadd.f32 %v5873_v48, %v5847_v46 }
 0x82b   : > { %v5879_v59 = vmax.f32 %v5875_v55, 0.0 }
 0x82c   : > { %v5878_v44 = vmax.f32 %v5874_v29, 0.0  ;;  %v12102_v31 = vpop.f32.mrb[248].mxu0 }
 0x82d   : > { %v5887_v40 = vmul.f32 %v5885_v6, %v5879_v59  ;;  %v5877_v2 = vadd.f32 %v12102_v31, %v5873_v48  ;;  %v5857_v32 = vpop.f32.mrb[249].mxu0  ;;  %v9852_v59 = vld [vmem:[%s17773_s1 + $0x7e8] sm:$0xff] }
 0x82e   : > { %v5886_v9 = vmul.f32 %v5885_v6, %v5878_v44  ;;  %v5876_v47 = vadd.f32 %v5873_v48, %v5857_v32  ;;  %v9853_v32 = vld [vmem:[%s17773_s1 + $0x7f0] sm:$0xff] }
 0x82f   : > { %v16224_v58 = vadd.f32 %v5893_v24, %v5887_v40  ;;  %v5881_v35 = vmax.f32 %v5877_v2, 0.0 }
 0x830   : > { %v5894_v30 = vadd.f32 %v5893_v24, %v5886_v9  ;;  %v5880_v60 = vmax.f32 %v5876_v47, 0.0  ;;  %v12896_v47 = vpack.c.bf16 %v9854_v25, %v9853_v32 }
 0x831   : > { %v5889_v4 = vmul.f32 %v5885_v6, %v5881_v35  ;;  %v5918_v37 = vrot.slane %v16224_v58, 1  ;;  %v6111_v55 = vrot.slane %v16224_v58, 2 }
 0x832   : > { %v16236_v28 = vsel %vm4114_vm15, %v5894_v30, 0.0  ;;  %v5888_v62 = vmul.f32 %v5885_v6, %v5880_v60  ;;  %v9851_v6 = vld [vmem:[%s17773_s1 + $0x7e0] sm:$0xff] }
 0x833   : > { %v5897_v8 = vadd.f32 %v5893_v24, %v5889_v4  ;;  %v5917_v48 = vrot.slane %v16236_v28, 1  ;;  %v6110_v10 = vrot.slane %v16236_v28, 2  ;;  %v12893_v2 = vpack.c.bf16 %v9852_v59, %v9851_v6 }
 0x834   : > { %v16242_v46 = vadd.f32 %v5893_v24, %v5888_v62  ;;  %v5146_v4 = vrot.slane %v15994_v38, %v15922_v15  ;;  %v9839_v38 = vld [vmem:[%s17773_s1 + $0x780] sm:$0xff] }
 0x835   : > { %v16244_v29 = vsel %vm5904_vm8, %v5897_v8, 0.0  ;;  %v16254_v44 = vsel %vm370_vm2, %v5917_v48, %v5918_v37  ;;  %v16257_v31 = vsel %vm748_vm6, %v6110_v10, %v6111_v55  ;;  %12894 = vmatpush3.bf16.msra.mxu1 %v12893_v2  ;;  %v5263_v8 = vld [vmem:[%s17774_s2 + $0x1d] sm:$0x3] }
 0x836   : > { %v5920_v24 = vrot.slane %v16242_v46, 1  ;;  %v6113_v40 = vrot.slane %v16242_v46, 2  ;;  %v5922_v54 = vrot.slane %v16244_v29, 1  ;;  %v6115_v9 = vrot.slane %v16244_v29, 2  ;;  %12895 = vmatprep.subr.bf16.mxu1 %v13309_v63 }
 0x837   : > { %v5147_v0 = vadd.f32 %v5146_v4, %v16202_v16  ;;  %v5267_v10 = vrot.slane %v5263_v8, %v15701_v52  ;;  %v5272_v16 = vrot.slane %v5263_v8, %v15711_v5  ;;  %v9841_v4 = vld [vmem:[%s17773_s1 + $0x790] sm:$0xff] }
 0x838   : > { %v16270_v1 = vsel %vm370_vm2, %v5918_v37, %v5920_v24  ;;  %v16275_v35 = vsel %vm370_vm2, %v5920_v24, %v5922_v54  ;;  %v16278_v30 = vsel %vm748_vm6, %v6111_v55, %v6113_v40  ;;  %v16284_v60 = vsel %vm748_vm6, %v6113_v40, %v6115_v9  ;;  %v9845_v8 = vld [vmem:[%s17773_s1 + $0x7b0] sm:$0xff] }
 0x839   : > { %12897 = vmatpush3.bf16.msra.mxu1 %v12896_v47  ;;  %v5152_v62 = vmul.f32 %v5151_v27, %v5147_v0  ;;  %v9842_v0 = vld [vmem:[%s17773_s1 + $0x798] sm:$0xff] }
 0x83a   : > { %12898 = vmatprep.subr.bf16.mxu1 %v13309_v63  ;;  %v12902_v27 = vpack.c.bf16 %v9842_v0, %v9841_v4  ;;  %v9898_v4 = vld [vmem:[%s17773_s1 + $0x640] sm:$0xff]  ;;  %v9899_v0 = vld [vmem:[%s17773_s1 + $0x648] sm:$0xff] }
 0x83b   : > { %v5157_v37 = vadd.f32 %v5156_v51, %v5152_v62  ;;  %v9843_v62 = vld [vmem:[%s17773_s1 + $0x7a0] sm:$0xff]  ;;  %v9844_v51 = vld [vmem:[%s17773_s1 + $0x7a8] sm:$0xff] }
 0x83d   : > { %v5158_v48 = vadd.f32 %v5157_v37, %v15484_v26  ;;  %v9840_v26 = vld [vmem:[%s17773_s1 + $0x788] sm:$0xff]  ;;  %v12905_v37 = vpack.c.bf16 %v9844_v51, %v9843_v62  ;;  %v12970_v62 = vpack.c.bf16 %v9899_v0, %v9898_v4  ;;  %v9900_v51 = vld [vmem:[%s17773_s1 + $0x650] sm:$0xff]  ;;  %v9897_v0 = vld [vmem:[%s17773_s1 + $0x638] sm:$0xff] }
 0x83e   : > { %v12899_v25 = vpack.c.bf16 %v9840_v26, %v9839_v38  ;;  %v9860_v38 = vld [vmem:[%s17773_s1 + $0x828] sm:$0xff]  ;;  %v9896_v4 = vld [vmem:[%s17773_s1 + $0x630] sm:$0xff] }
 0x8ad   : > { %v5232_v55 = vpop.f32.mrb[180].mxu1 }
 0x8ae   : > { %v5233_v6 = vadd.f32 %v5232_v55, %v5158_v48  ;;  %v11979_v59 = vpop.f32.mrb[181].mxu1  ;;  %v9846_v48 = vld [vmem:[%s17773_s1 + $0x7b8] sm:$0xff]  ;;  %v9855_v55 = vld [vmem:[%s17773_s1 + $0x800] sm:$0xff] }
 0x8af   : > { %v9857_v59 = vld [vmem:[%s17773_s1 + $0x810] sm:$0xff] }
 0x8b0   : > { %v5268_v24 = vmul.f32 %v5267_v10, %v5233_v6  ;;  %v12908_v10 = vpack.c.bf16 %v9846_v48, %v9845_v8  ;;  %v9856_v6 = vld [vmem:[%s17773_s1 + $0x808] sm:$0xff] }
 0x8b2   : > { %v5273_v40 = vadd.f32 %v5272_v16, %v5268_v24  ;;  %v12911_v16 = vpack.c.bf16 %v9856_v6, %v9855_v55  ;;  %v9858_v24 = vld [vmem:[%s17773_s1 + $0x818] sm:$0xff] }
 0x8b3   : > { %v9905_v6 = vld [vmem:[%s17773_s1 + $0x678] sm:$0xff] }
 0x8b4   : > { %v5274_v2 = vmax.f32 %v5273_v40, 0.0  ;;  %v12914_v40 = vpack.c.bf16 %v9858_v24, %v9857_v59  ;;  %v9890_v59 = vld [vmem:[%s17773_s1 + $0x600] sm:$0xff] }
 0x8b6   : > { %5276 = vst.msk [vmem:[#allocation4 + $0x1] sm:$0x3f] %vm4674_vm14, %v5274_v2  ;;  %v9859_v2 = vld [vmem:[%s17773_s1 + $0x820] sm:$0xff]  ;;  %vm8531_vm14 = vcmask 24576  }
 0x8b7   : > { %v12917_v26 = vpack.c.bf16 %v9860_v38, %v9859_v2  ;;  %v9893_v2 = vld [vmem:[%s17773_s1 + $0x618] sm:$0xff]  ;;  %8549 = vst.msk [vmem:[#allocation4 + $0x81] sm:$0x1] %vm8531_vm14, %v17877_v61 }
 0x8bd   : > { %v5278_v32 = vld [vmem:[#allocation4] sm:$0xff] }
 0x8be   : > { %v5280_v47 = vrot.slane %v5278_v32, 1  ;;  %6391 = vst.msk [vmem:[#allocation4] sm:$0x1] %vm3543_vm13, %v17877_v61  ;;  %v5425_v8 = vrot.slane %v5278_v32, 2  ;;  %vm6242_vm13 = vcmask 48128  }
 0x8c0   : > { %11997 = vmatmul.mubr.msk.f32.vlgmr.msra.gmra.mrb[182].mxu1 %vm2913_vm10, %v5280_v47  ;;  %v9862_v47 = vld [vmem:[%s17773_s1 + $0x838] sm:$0xff] }
 0x8c1   : > { %12900 = vmatpush3.bf16.msra.mxu1 %v12899_v25  ;;  %12015 = vmatprep.mubr.msk.f32.mxu1 %vm13308_vm1, %v17877_v61  ;;  %v9861_v25 = vld [vmem:[%s17773_s1 + $0x830] sm:$0xff] }
 0x8c2   : > { %12901 = vmatprep.subr.bf16.mxu1 %v13309_v63 }
 0x8c5   : > { %12903 = vmatpush3.bf16.msra.mxu1 %v12902_v27  ;;  %v12920_v27 = vpack.c.bf16 %v9862_v47, %v9861_v25  ;;  %v9895_v25 = vld [vmem:[%s17773_s1 + $0x628] sm:$0xff] }
 0x8c6   : > { %12904 = vmatprep.subr.bf16.mxu1 %v13309_v63 }
 0x8c9   : > { %12906 = vmatpush3.bf16.msra.mxu1 %v12905_v37  ;;  %v9901_v37 = vld [vmem:[%s17773_s1 + $0x658] sm:$0xff] }
 0x8ca   : > { %12907 = vmatprep.subr.bf16.mxu1 %v13309_v63  ;;  %v12974_v48 = vpack.c.bf16 %v9901_v37, %v9900_v51  ;;  %v9910_v37 = vld [vmem:[%s17773_s1 + $0x6a0] sm:$0xff] }
 0x8cd   : > { %12909 = vmatpush3.bf16.msra.mxu1 %v12908_v10  ;;  %v9902_v10 = vld [vmem:[%s17773_s1 + $0x660] sm:$0xff] }
 0x8ce   : > { %12910 = vmatprep.subr.bf16.mxu1 %v13309_v63 }
 0x8d0   : > { %12016 = vmatmul.mubr.msk.f32.vlgmr.msra.gmra.mrb[182].mxu1 %vm2913_vm10, %v5278_v32  ;;  %v9904_v32 = vld [vmem:[%s17773_s1 + $0x670] sm:$0xff] }
 0x8d1   : > { %12912 = vmatpush3.bf16.msra.mxu1 %v12911_v16  ;;  %12034 = vmatprep.mubr.msk.f32.mxu1 %vm13308_vm1, %v17877_v61  ;;  %v12982_v16 = vpack.c.bf16 %v9905_v6, %v9904_v32  ;;  %v278_v6 = vld [vmem:[%s17777_s5 + $0x8] sm:$0xff] }
 0x8d2   : > { %12913 = vmatprep.subr.bf16.mxu1 %v13309_v63 }
 0x8d5   : > { %12915 = vmatpush3.bf16.msra.mxu1 %v12914_v40  ;;  %v9892_v40 = vld [vmem:[%s17773_s1 + $0x610] sm:$0xff] }
 0x8d6   : > { %12916 = vmatprep.subr.bf16.mxu1 %v13309_v63  ;;  %v12990_v38 = vpack.c.bf16 %v9893_v2, %v9892_v40 }
 0x8d9   : > { %12918 = vmatpush3.bf16.msra.mxu1 %v12917_v26  ;;  %v9894_v26 = vld [vmem:[%s17773_s1 + $0x620] sm:$0xff] }
 0x8da   : > { %12919 = vmatprep.subr.bf16.mxu1 %v13309_v63  ;;  %v9903_v63 = vld [vmem:[%s17773_s1 + $0x668] sm:$0xff]  ;;  %v12994_v47 = vpack.c.bf16 %v9895_v25, %v9894_v26 }
 0x8db   : > { %v12978_v55 = vpack.c.bf16 %v9903_v63, %v9902_v10  ;;  %v9912_v10 = vld [vmem:[%s17773_s1 + $0x6b0] sm:$0xff]  ;;  %v9913_v63 = vld [vmem:[%s17773_s1 + $0x6b8] sm:$0xff]  ;;  %v16507_v26 = vld [vmem:[#allocation3 + $0x10] sm:$0xff] }
 0x8dc   : > { %v6770_v25 = vrot.slane %v16507_v26, 1 }
 0x8dd   : > { %12921 = vmatpush3.bf16.msra.mxu1 %v12920_v27  ;;  %v9907_v27 = vld [vmem:[%s17773_s1 + $0x688] sm:$0xff] }
 0x8de   : > { %12971 = vmatprep.subr.bf16.mxu1 %v12970_v62 }
 0x8e0   : > { %12035 = vmatmul.mubr.msk.f32.vlgmr.msra.gmra.mrb[182].mxu1 %vm2913_vm10, %v5425_v8  ;;  %v9911_v8 = vld [vmem:[%s17773_s1 + $0x6a8] sm:$0xff] }
 0x8e1   : > { %12973 = vmatpush3.bf16.msra.mxu1 %v12970_v62  ;;  %12119 = vmatprep.mubr.msk.f32.mxu1 %vm2913_vm10, %v16254_v44  ;;  %v9891_v44 = vld [vmem:[%s17773_s1 + $0x608] sm:$0xff] }
 0x8e2   : > { %12975 = vmatprep.subr.bf16.mxu1 %v12974_v48  ;;  %v12986_v24 = vpack.c.bf16 %v9891_v44, %v9890_v59  ;;  %v279_v59 = vld [vmem:[%s17777_s5 + $0x10] sm:$0xff]  ;;  %v280_v44 = vld [vmem:[%s17777_s5 + $0x18] sm:$0x1f] }
 0x8e5   : > { %12977 = vmatpush3.bf16.msra.mxu1 %v12974_v48  ;;  %v13010_v48 = vpack.c.bf16 %v9911_v8, %v9910_v37  ;;  %v9953_v37 = vld [vmem:[%s17773_s1 + $0x890] sm:$0xff]  ;;  %v9954_v8 = vld [vmem:[%s17773_s1 + $0x898] sm:$0xff] }
 0x8e6   : > { %12979 = vmatprep.subr.bf16.mxu1 %v12978_v55 }
 0x8e9   : > { %12981 = vmatpush3.bf16.msra.mxu1 %v12978_v55 }
 0x8ea   : > { %12983 = vmatprep.subr.bf16.mxu1 %v12982_v16 }
 0x8ed   : > { %12985 = vmatpush3.bf16.msra.mxu1 %v12982_v16 }
 0x8ee   : > { %12987 = vmatprep.subr.bf16.mxu1 %v12986_v24 }
 0x8f0   : > { %12120 = vmatmul.mubr.msk.f32.vlgmr.msra.gmra.mrb[184].mxu1 %vm2913_vm10, %v16270_v1  ;;  %v12998_v1 = vpack.c.bf16 %v9897_v0, %v9896_v4  ;;  %v16512_v4 = vld [vmem:[#allocation3 + $0x18] sm:$0xff] }
 0x8f1   : > { %12122 = vmatprep.mubr.msk.f32.mxu1 %vm2913_vm10, %v16275_v35  ;;  %12989 = vmatpush3.bf16.msra.mxu1 %v12986_v24  ;;  %v9906_v35 = vld [vmem:[%s17773_s1 + $0x680] sm:$0xff]  ;;  %v6772_v0 = vrot.slane %v16512_v4, 1 }
 0x8f2   : > { %12991 = vmatprep.subr.bf16.mxu1 %v12990_v38  ;;  %v13002_v62 = vpack.c.bf16 %v9907_v27, %v9906_v35  ;;  %v9951_v35 = vld [vmem:[%s17773_s1 + $0x880] sm:$0xff]  ;;  %v9952_v27 = vld [vmem:[%s17773_s1 + $0x888] sm:$0xff] }
 0x8f4   : > { %12123 = vmatmul.mubr.msk.f32.gmra.mrb[186].mxu1 %vm2913_vm10, %v5922_v54  ;;  %v9908_v54 = vld [vmem:[%s17773_s1 + $0x690] sm:$0xff] }
 0x8f5   : > { %12993 = vmatpush3.bf16.msra.mxu1 %v12990_v38  ;;  %12141 = vmatprep.mubr.msk.f32.mxu1 %vm2913_vm10, %v16236_v28  ;;  %v9909_v28 = vld [vmem:[%s17773_s1 + $0x698] sm:$0xff] }
 0x8f6   : > { %12995 = vmatprep.subr.bf16.mxu1 %v12994_v47  ;;  %v13006_v51 = vpack.c.bf16 %v9909_v28, %v9908_v54  ;;  %v13018_v54 = vpack.c.bf16 %v9952_v27, %v9951_v35  ;;  %v9944_v35 = vld [vmem:[%s17773_s1 + $0x848] sm:$0xff] }
 0x8f9   : > { %12997 = vmatpush3.bf16.msra.mxu1 %v12994_v47 }
 0x8fa   : > { %12999 = vmatprep.subr.bf16.mxu1 %v12998_v1 }
 0x8fd   : > { %13001 = vmatpush3.bf16.msra.mxu1 %v12998_v1  ;;  %v6773_v1 = vsel %vm370_vm2, %v6770_v25, %v6772_v0 }
 0x8fe   : > { %13003 = vmatprep.subr.bf16.mxu1 %v13002_v62 }
 0x900   : > { %12142 = vmatmul.mubr.msk.f32.vlgmr.msra.gmra.mrb[184].mxu1 %vm2913_vm10, %v16224_v58  ;;  %v13014_v58 = vpack.c.bf16 %v9913_v63, %v9912_v10  ;;  %v13022_v10 = vpack.c.bf16 %v9954_v8, %v9953_v37  ;;  %v16593_v37 = vld [vmem:[#allocation3 + $0x48] sm:$0xff] }
 0x901   : > { %12144 = vmatprep.mubr.msk.f32.mxu1 %vm2913_vm10, %v16242_v46  ;;  %13005 = vmatpush3.bf16.msra.mxu1 %v13002_v62  ;;  %v277_v46 = vld [vmem:[%s17777_s5] sm:$0xff]  ;;  %v16525_v62 = vld [vmem:[#allocation3 + $0x20] sm:$0xff]  ;;  %v6784_v8 = vrot.slane %v16593_v37, 1 }
 0x902   : > { %13007 = vmatprep.subr.bf16.mxu1 %v13006_v51  ;;  %12171 = vmatprep.mubr.msk.f32.mxu0 %vm6242_vm13, %v277_v46  ;;  %v6774_v28 = vrot.slane %v16525_v62, 1  ;;  %v9955_v46 = vld [vmem:[%s17773_s1 + $0x8a0] sm:$0xff] }
 0x904   : > { %12145 = vmatmul.mubr.msk.f32.gmra.mrb[186].mxu1 %vm2913_vm10, %v16244_v29 }
 0x905   : > { %13009 = vmatpush3.bf16.msra.mxu1 %v13006_v51  ;;  %12163 = vmatprep.mubr.msk.f32.mxu1 %vm2913_vm10, %v16257_v31  ;;  %v9979_v31 = vld [vmem:[%s17775_s3 + $0x4] sm:$0xf]  ;;  %v6775_v51 = vsel %vm370_vm2, %v6772_v0, %v6774_v28 }
 0x906   : > { %13011 = vmatprep.subr.bf16.mxu1 %v13010_v48 }
 0x909   : > { %13013 = vmatpush3.bf16.msra.mxu1 %v13010_v48  ;;  %v16538_v48 = vld [vmem:[#allocation3 + $0x28] sm:$0xff] }
 0x90a   : > { %13015 = vmatprep.subr.bf16.mxu1 %v13014_v58  ;;  %v6776_v63 = vrot.slane %v16538_v48, 1 }
 0x90d   : > { %13017 = vmatpush3.bf16.msra.mxu1 %v13014_v58  ;;  %v6777_v58 = vsel %vm370_vm2, %v6774_v28, %v6776_v63 }
 0x90e   : > { %12243 = vmatprep.subr.mxu1 %v17877_v61 }
 0x910   : > { %12164 = vmatmul.mubr.msk.f32.vlgmr.msra.gmra.mrb[184].mxu1 %vm2913_vm10, %v16278_v30  ;;  %v16473_v30 = vld [vmem:[#allocation3] sm:$0xff] }
 0x911   : > { %12166 = vmatprep.mubr.msk.f32.mxu1 %vm2913_vm10, %v16284_v60  ;;  %v16475_v60 = vld [vmem:[#allocation3 + $0x8] sm:$0xff]  ;;  %12244 = vmatpush3.msk.msra.mxu1 %vm433_vm0, %v9979_v31  ;;  %v6767_v29 = vrot.slane %v16473_v30, 1  ;;  %v9956_v31 = vld [vmem:[%s17773_s1 + $0x8a8] sm:$0xff] }
 0x912   : > { %12349 = vmatprep.subr.mxu1 %v17877_v61 }
 0x914   : > { %12167 = vmatmul.mubr.msk.f32.gmra.mrb[186].mxu1 %vm2913_vm10, %v6115_v9  ;;  %v6768_v9 = vrot.slane %v16475_v60, 1 }
 0x915   : > { %12245 = vmatprep.mubr.msk.f32.mxu1 %vm13308_vm1, %v17877_v61 }
 0x916   : > { %v6769_v55 = vsel %vm370_vm2, %v6767_v29, %v6768_v9  ;;  %v6771_v47 = vsel %vm370_vm2, %v6768_v9, %v6770_v25  ;;  %v16551_v29 = vld [vmem:[#allocation3 + $0x30] sm:$0xff]  ;;  %v16568_v25 = vld [vmem:[#allocation3 + $0x38] sm:$0xff] }
 0x917   : > { %v9980_v9 = vld [vmem:[%s17775_s3 + $0x8] sm:$0xf] }
 0x918   : > { %12246 = vmatmul.mubr.msk.f32.vlgmr.msra.gmra.mrb[188].mxu1 %vm402_vm3, %v6769_v55  ;;  %v13026_v55 = vpack.c.bf16 %v9956_v31, %v9955_v46  ;;  %v16607_v31 = vld [vmem:[#allocation3 + $0x58] sm:$0xff] }
 0x919   : > { %12248 = vmatprep.mubr.msk.f32.mxu1 %vm13308_vm1, %v17877_v61  ;;  %12350 = vmatpush3.msk.msra.mxu1 %vm433_vm0, %v9980_v9  ;;  %v6788_v9 = vrot.slane %v16607_v31, 1 }
 0x91c   : > { %12249 = vmatmul.mubr.msk.f32.gmra.mrb[190].mxu1 %vm402_vm3, %v6771_v47  ;;  %v6780_v47 = vrot.slane %v16568_v25, 1 }
 0x91d   : > { %12251 = vmatprep.mubr.msk.f32.mxu1 %vm13308_vm1, %v17877_v61 }
 0x920   : > { %12252 = vmatmul.mubr.msk.f32.gmra.mrb[192].mxu1 %vm402_vm3, %v6773_v1  ;;  %v9943_v1 = vld [vmem:[%s17773_s1 + $0x840] sm:$0xff] }
 0x921   : > { %12254 = vmatprep.mubr.msk.f32.mxu1 %vm13308_vm1, %v17877_v61  ;;  %v16583_v27 = vpack.c.bf16 %v9944_v35, %v9943_v1 }
 0x924   : > { %12255 = vmatmul.mubr.msk.f32.gmra.mrb[194].mxu1 %vm402_vm3, %v6775_v51 }
 0x925   : > { %12257 = vmatprep.mubr.msk.f32.mxu1 %vm13308_vm1, %v17877_v61 }
 0x928   : > { %12258 = vmatmul.mubr.msk.f32.gmra.mrb[196].mxu1 %vm402_vm3, %v6777_v58 }
 0x929   : > { %12260 = vmatprep.mubr.msk.f32.mxu1 %vm13308_vm1, %v17877_v61 }
 0x9b3   : > { %v5494_v32 = vpop.f32.mrb[182].mxu1 }
 0x9b4   : > { %v12036_v16 = vpop.f32.mrb[183].mxu1  ;;  %12169 = vmatprep.subr.msk.mxu0 %vm748_vm6, %v5494_v32 }
 0x9b5   : > { %12170 = vmatpush3.msk.msra.mxu0 %vm748_vm6, %v5494_v32  ;;  %v6778_v32 = vrot.slane %v16551_v29, 1  ;;  %v9958_v16 = vld [vmem:[%s17773_s1 + $0x8b8] sm:$0xff] }
 0x9b6   : > { %12172 = vmatmul.mubr.msk.f32.vlgmr.msra.gmra.mrb[250].mxu0 %vm6242_vm13, %v278_v6  ;;  %13019 = vmatprep.subr.bf16.mxu0 %v13018_v54  ;;  %v9957_v6 = vld [vmem:[%s17773_s1 + $0x8b0] sm:$0xff] }
 0x9b7   : > { %12174 = vmatprep.mubr.msk.f32.mxu0 %vm6242_vm13, %v279_v59  ;;  %13021 = vmatpush3.bf16.msra.mxu0 %v13018_v54  ;;  %v13030_v59 = vpack.c.bf16 %v9958_v16, %v9957_v6  ;;  %v6781_v0 = vsel %vm370_vm2, %v6778_v32, %v6780_v47  ;;  %v16587_v54 = vld [vmem:[#allocation3 + $0x40] sm:$0xff] }
 0x9b8   : > { %13023 = vmatprep.subr.bf16.mxu0 %v13022_v10  ;;  %v6782_v28 = vrot.slane %v16587_v54, 1 }
 0x9ba   : > { %12175 = vmatmul.mubr.msk.f32.gmra.mrb[252].mxu0 %vm6242_vm13, %v280_v44  ;;  %v6779_v44 = vsel %vm370_vm2, %v6776_v63, %v6778_v32  ;;  %v6783_v51 = vsel %vm370_vm2, %v6780_v47, %v6782_v28  ;;  %v16600_v63 = vld [vmem:[#allocation3 + $0x50] sm:$0xff]  ;;  %v16614_v32 = vld [vmem:[#allocation3 + $0x60] sm:$0xff] }
 0x9bb   : > { %13025 = vmatpush3.bf16.msra.mxu0 %v13022_v10  ;;  %12261 = vmatmul.mubr.msk.f32.gmra.mrb[198].mxu1 %vm402_vm3, %v6779_v44  ;;  %v6785_v10 = vsel %vm370_vm2, %v6782_v28, %v6784_v8  ;;  %v6786_v58 = vrot.slane %v16600_v63, 1  ;;  %v6790_v6 = vrot.slane %v16614_v32, 1  ;;  %v16635_v28 = vld [vmem:[#allocation3 + $0x78] sm:$0xff] }
 0x9bc   : > { %13027 = vmatprep.subr.bf16.mxu0 %v13026_v55  ;;  %12263 = vmatprep.mubr.msk.f32.mxu1 %vm13308_vm1, %v17877_v61 }
 0x9bd   : > { %v6787_v46 = vsel %vm370_vm2, %v6784_v8, %v6786_v58  ;;  %v6791_v16 = vsel %vm370_vm2, %v6788_v9, %v6790_v6 }
 0x9bf   : > { %13029 = vmatpush3.bf16.msra.mxu0 %v13026_v55  ;;  %12264 = vmatmul.mubr.msk.f32.gmra.mrb[200].mxu1 %vm402_vm3, %v6781_v0  ;;  %v6789_v55 = vsel %vm370_vm2, %v6786_v58, %v6788_v9  ;;  %v16628_v0 = vld [vmem:[#allocation3 + $0x70] sm:$0xff]  ;;  %v7174_v9 = vrot.slane %v16473_v30, 2 }
 0x9c0   : > { %13031 = vmatprep.subr.bf16.mxu0 %v13030_v59  ;;  %12266 = vmatprep.mubr.msk.f32.mxu1 %vm13308_vm1, %v17877_v61  ;;  %v6794_v1 = vrot.slane %v16628_v0, 1 }
 0x9c3   : > { %13033 = vmatpush3.bf16.msra.mxu0 %v13030_v59  ;;  %12267 = vmatmul.mubr.msk.f32.gmra.mrb[202].mxu1 %vm402_vm3, %v6783_v51  ;;  %v16621_v59 = vld [vmem:[#allocation3 + $0x68] sm:$0xff]  ;;  %v6796_v51 = vrot.slane %v16635_v28, 1 }
 0x9c4   : > { %13035 = vmatprep.subr.bf16.mxu0 %v16583_v27  ;;  %12269 = vmatprep.mubr.msk.f32.mxu1 %vm13308_vm1, %v17877_v61  ;;  %v6792_v44 = vrot.slane %v16621_v59, 1 }
 0x9c5   : > { %v6797_v8 = vsel %vm370_vm2, %v6794_v1, %v6796_v51 }
 0x9c6   : > { %v6793_v47 = vsel %vm370_vm2, %v6790_v6, %v6792_v44  ;;  %v6795_v35 = vsel %vm370_vm2, %v6792_v44, %v6794_v1 }
 0x9c7   : > { %12270 = vmatmul.mubr.msk.f32.gmra.mrb[204].mxu1 %vm402_vm3, %v6785_v10  ;;  %v16642_v10 = vld [vmem:[#allocation3 + $0x80] sm:$0xf] }
 0x9c8   : > { %12272 = vmatprep.mubr.msk.f32.mxu1 %vm13308_vm1, %v17877_v61  ;;  %v6798_v58 = vrot.slane %v16642_v10, 1 }
 0x9cb   : > { %12273 = vmatmul.mubr.msk.f32.gmra.mrb[206].mxu1 %vm402_vm3, %v6787_v46  ;;  %v6799_v46 = vsel %vm370_vm2, %v6796_v51, %v6798_v58 }
 0x9cc   : > { %12275 = vmatprep.mubr.msk.f32.mxu1 %vm13308_vm1, %v17877_v61 }
 0x9cf   : > { %12276 = vmatmul.mubr.msk.f32.gmra.mrb[208].mxu1 %vm402_vm3, %v6789_v55  ;;  %v7175_v55 = vrot.slane %v16475_v60, 2 }
 0x9d0   : > { %12278 = vmatprep.mubr.msk.f32.mxu1 %vm13308_vm1, %v17877_v61 }
 0x9d1   : > { %v7176_v6 = vsel %vm748_vm6, %v7174_v9, %v7175_v55 }
 0x9d3   : > { %12279 = vmatmul.mubr.msk.f32.gmra.mrb[210].mxu1 %vm402_vm3, %v6791_v16  ;;  %v7177_v16 = vrot.slane %v16507_v26, 2 }
 0x9d4   : > { %12281 = vmatprep.mubr.msk.f32.mxu1 %vm13308_vm1, %v17877_v61 }
 0x9d5   : > { %v7178_v44 = vsel %vm748_vm6, %v7175_v55, %v7177_v16  ;;  %v7187_v55 = vrot.slane %v16568_v25, 2 }
 0x9d7   : > { %12282 = vmatmul.mubr.msk.f32.gmra.mrb[212].mxu1 %vm402_vm3, %v6793_v47  ;;  %v7179_v47 = vrot.slane %v16512_v4, 2 }
 0x9d8   : > { %12284 = vmatprep.mubr.msk.f32.mxu1 %vm13308_vm1, %v17877_v61 }
 0x9d9   : > { %v7180_v1 = vsel %vm748_vm6, %v7177_v16, %v7179_v47  ;;  %v7189_v16 = vrot.slane %v16587_v54, 2 }
 0x9db   : > { %12285 = vmatmul.mubr.msk.f32.gmra.mrb[214].mxu1 %vm402_vm3, %v6795_v35  ;;  %v7181_v35 = vrot.slane %v16525_v62, 2 }
 0x9dc   : > { %12287 = vmatprep.mubr.msk.f32.mxu1 %vm13308_vm1, %v17877_v61 }
 0x9dd   : > { %v7182_v51 = vsel %vm748_vm6, %v7179_v47, %v7181_v35  ;;  %v7191_v47 = vrot.slane %v16593_v37, 2 }
 0x9df   : > { %12288 = vmatmul.mubr.msk.f32.gmra.mrb[216].mxu1 %vm402_vm3, %v6797_v8  ;;  %v7183_v8 = vrot.slane %v16538_v48, 2 }
 0x9e0   : > { %12290 = vmatprep.mubr.msk.f32.mxu1 %vm13308_vm1, %v17877_v61 }
 0x9e3   : > { %v16499_v24 = vpop.f32.mrb[184].mxu1  ;;  %12291 = vmatmul.mubr.msk.f32.gmra.mrb[218].mxu1 %vm402_vm3, %v6799_v46  ;;  %v7185_v46 = vrot.slane %v16551_v29, 2 }
 0x9e4   : > { %v16501_v40 = vpop.f32.mrb[185].mxu1  ;;  %12293 = vmatprep.mubr.msk.f32.mxu1 %vm13308_vm1, %v17877_v61 }
 0x9e5   : > { %v7186_v9 = vsel %vm748_vm6, %v7183_v8, %v7185_v46 }
 0x9e7   : > { %v16503_v2 = vpop.f32.mrb[186].mxu1  ;;  %12294 = vmatmul.mubr.msk.f32.gmra.mrb[220].mxu1 %vm402_vm3, %v6798_v58  ;;  %v7184_v58 = vsel %vm748_vm6, %v7181_v35, %v7183_v8  ;;  %v7193_v35 = vrot.slane %v16600_v63, 2  ;;  %v7195_v8 = vrot.slane %v16607_v31, 2 }
 0x9e8   : > { %v16505_v38 = vpop.f32.mrb[187].mxu1  ;;  %12351 = vmatprep.mubr.msk.f32.mxu1 %vm13308_vm1, %v17877_v61 }
 0x9eb   : > { %12352 = vmatmul.mubr.msk.f32.vlgmr.msra.gmra.mrb[222].mxu1 %vm402_vm3, %v7176_v6  ;;  %v7188_v6 = vsel %vm748_vm6, %v7185_v46, %v7187_v55  ;;  %v7197_v46 = vrot.slane %v16614_v32, 2  ;;  %v16752_v43 = vpop.f32.mrb[188].mxu1 }
 0x9ec   : > { %12354 = vmatprep.mubr.msk.f32.mxu1 %vm13308_vm1, %v17877_v61 }
 0x9ef   : > { %12355 = vmatmul.mubr.msk.f32.gmra.mrb[224].mxu1 %vm402_vm3, %v7178_v44  ;;  %v7190_v44 = vsel %vm748_vm6, %v7187_v55, %v7189_v16  ;;  %v6217_v55 = vrot.slane %v16207_v41, %v15922_v15 }
 0x9f0   : > { %12357 = vmatprep.mubr.msk.f32.mxu1 %vm13308_vm1, %v17877_v61 }
 0x9f3   : > { %12358 = vmatmul.mubr.msk.f32.gmra.mrb[226].mxu1 %vm402_vm3, %v7180_v1  ;;  %v7192_v1 = vsel %vm748_vm6, %v7189_v16, %v7191_v47 }
 0x9f4   : > { %12360 = vmatprep.mubr.msk.f32.mxu1 %vm13308_vm1, %v17877_v61 }
 0x9f7   : > { %12361 = vmatmul.mubr.msk.f32.gmra.mrb[228].mxu1 %vm402_vm3, %v7182_v51  ;;  %v7194_v51 = vsel %vm748_vm6, %v7191_v47, %v7193_v35  ;;  %v6225_v47 = vrot.slane %v16207_v41, %v15925_v36 }
 0x9f8   : > { %12363 = vmatprep.mubr.msk.f32.mxu1 %vm13308_vm1, %v17877_v61 }
 0x9fb   : > { %12364 = vmatmul.mubr.msk.f32.gmra.mrb[230].mxu1 %vm402_vm3, %v7184_v58  ;;  %v7196_v58 = vsel %vm748_vm6, %v7193_v35, %v7195_v8  ;;  %v6218_v35 = vadd.f32 %v6217_v55, %v16501_v40 }
 0x9fc   : > { %12366 = vmatprep.mubr.msk.f32.mxu1 %vm13308_vm1, %v17877_v61 }
 0x9ff   : > { %12367 = vmatmul.mubr.msk.f32.gmra.mrb[232].mxu1 %vm402_vm3, %v7186_v9  ;;  %v7198_v9 = vsel %vm748_vm6, %v7195_v8, %v7197_v46 }
 0xa00   : > { %12369 = vmatprep.mubr.msk.f32.mxu1 %vm13308_vm1, %v17877_v61 }
 0xa03   : > { %12370 = vmatmul.mubr.msk.f32.gmra.mrb[234].mxu1 %vm402_vm3, %v7188_v6  ;;  %v7199_v6 = vrot.slane %v16621_v59, 2 }
 0xa04   : > { %12372 = vmatprep.mubr.msk.f32.mxu1 %vm13308_vm1, %v17877_v61 }
 0xa05   : > { %v7200_v16 = vsel %vm748_vm6, %v7197_v46, %v7199_v6  ;;  %v7203_v46 = vrot.slane %v16635_v28, 2 }
 0xa07   : > { %12373 = vmatmul.mubr.msk.f32.gmra.mrb[236].mxu1 %vm402_vm3, %v7190_v44  ;;  %v6219_v44 = vadd.f32 %v16499_v24, %v6217_v55  ;;  %v6233_v24 = vrot.slane %v16207_v41, %v15930_v3 }
 0xa08   : > { %12375 = vmatprep.mubr.msk.f32.mxu1 %vm13308_vm1, %v17877_v61 }
 0xa09   : > { %v6227_v8 = vmul.f32 %v6225_v47, %v6219_v44  ;;  %v6370_v44 = vld [vmem:[%s17774_s2 + $0x1f] sm:$0x3] }
 0xa0b   : > { %12376 = vmatmul.mubr.msk.f32.gmra.mrb[238].mxu1 %vm402_vm3, %v7192_v1  ;;  %v7201_v1 = vrot.slane %v16628_v0, 2 }
 0xa0c   : > { %12378 = vmatprep.mubr.msk.f32.mxu1 %vm13308_vm1, %v17877_v61 }
 0xa0d   : > { %v7204_v40 = vsel %vm748_vm6, %v7201_v1, %v7203_v46 }
 0xa0f   : > { %12379 = vmatmul.mubr.msk.f32.gmra.mrb[240].mxu1 %vm402_vm3, %v7194_v51  ;;  %v7202_v51 = vsel %vm748_vm6, %v7199_v6, %v7201_v1 }
 0xa10   : > { %12381 = vmatprep.mubr.msk.f32.mxu1 %vm13308_vm1, %v17877_v61 }
 0xa13   : > { %12382 = vmatmul.mubr.msk.f32.gmra.mrb[242].mxu1 %vm402_vm3, %v7196_v58  ;;  %v6221_v58 = vadd.f32 %v16503_v2, %v6217_v55  ;;  %v7205_v2 = vrot.slane %v16642_v10, 2 }
 0xa14   : > { %12384 = vmatprep.mubr.msk.f32.mxu1 %vm13308_vm1, %v17877_v61 }
 0xa15   : > { %v6229_v6 = vmul.f32 %v6225_v47, %v6221_v58 }
 0xa17   : > { %12385 = vmatmul.mubr.msk.f32.gmra.mrb[244].mxu1 %vm402_vm3, %v7198_v9  ;;  %v6226_v9 = vmul.f32 %v6225_v47, %v6218_v35  ;;  %v7206_v35 = vsel %vm748_vm6, %v7203_v46, %v7205_v2  ;;  %v6237_v1 = vadd.f32 %v6233_v24, %v6229_v6 }
 0xa18   : > { %12387 = vmatprep.mubr.msk.f32.mxu1 %vm13308_vm1, %v17877_v61 }
 0xa19   : > { %v6234_v53 = vadd.f32 %v6233_v24, %v6226_v9  ;;  %v6241_v6 = vadd.f32 %v6237_v1, %v15287_v39 }
 0xa1b   : > { %12388 = vmatmul.mubr.msk.f32.gmra.mrb[246].mxu1 %vm402_vm3, %v7200_v16  ;;  %v6220_v16 = vadd.f32 %v6217_v55, %v16505_v38  ;;  %v6374_v55 = vrot.slane %v6370_v44, %v15701_v52 }
 0xa1c   : > { %12390 = vmatprep.mubr.msk.f32.mxu1 %vm13308_vm1, %v17877_v61 }
 0xa1d   : > { %v6228_v41 = vmul.f32 %v6225_v47, %v6220_v16  ;;  %v6238_v47 = vadd.f32 %v6234_v53, %v15239_v20 }
 0xa1f   : > { %12391 = vmatmul.mubr.msk.f32.gmra.mrb[248].mxu1 %vm402_vm3, %v7202_v51  ;;  %v6235_v51 = vadd.f32 %v6233_v24, %v6227_v8  ;;  %v6236_v58 = vadd.f32 %v6233_v24, %v6228_v41 }
 0xa20   : > { %12393 = vmatprep.mubr.msk.f32.mxu1 %vm13308_vm1, %v17877_v61 }
 0xa21   : > { %v6239_v38 = vadd.f32 %v6235_v51, %v15243_v56  ;;  %v12247_v56 = vpop.f32.mrb[189].mxu1  ;;  %v6240_v57 = vadd.f32 %v6236_v58, %v15261_v34  ;;  %v9946_v58 = vld [vmem:[%s17773_s1 + $0x858] sm:$0xff] }
 0xa23   : > { %12394 = vmatmul.mubr.msk.f32.gmra.mrb[250].mxu1 %vm402_vm3, %v7204_v40  ;;  %v6382_v40 = vrot.slane %v6370_v44, %v15711_v5 }
 0xa24   : > { %12396 = vmatprep.mubr.msk.f32.mxu1 %vm13308_vm1, %v17877_v61 }
 0xa27   : > { %12397 = vmatmul.mubr.msk.f32.gmra.mrb[252].mxu1 %vm402_vm3, %v7206_v35 }
 0xa28   : > { %12399 = vmatprep.mubr.msk.f32.mxu1 %vm13308_vm1, %v17877_v61 }
 0xa2b   : > { %12400 = vmatmul.mubr.msk.f32.gmra.mrb[254].mxu1 %vm402_vm3, %v7205_v2 }
 0xa89   : > { %v12173_v8 = vpop.f32.mrb[250].mxu0 }
 0xa8a   : > { %v6330_v16 = vadd.f32 %v12173_v8, %v6239_v38  ;;  %v6324_v9 = vpop.f32.mrb[251].mxu0 }
 0xa8b   : > { %v6325_v46 = vadd.f32 %v6324_v9, %v6238_v47 }
 0xa8c   : > { %v6376_v51 = vmul.f32 %v6374_v55, %v6330_v16 }
 0xa8d   : > { %v6375_v35 = vmul.f32 %v6374_v55, %v6325_v46  ;;  %v12176_v23 = vpop.f32.mrb[252].mxu0 }
 0xa8e   : > { %v6384_v21 = vadd.f32 %v6382_v40, %v6376_v51  ;;  %v6340_v20 = vadd.f32 %v12176_v23, %v6241_v6  ;;  %v6334_v53 = vpop.f32.mrb[253].mxu0 }
 0xa8f   : > { %v6383_v24 = vadd.f32 %v6382_v40, %v6375_v35  ;;  %v6335_v41 = vadd.f32 %v6334_v53, %v6240_v57  ;;  %v9947_v35 = vld [vmem:[%s17773_s1 + $0x860] sm:$0xff] }
 0xa90   : > { %v6388_v44 = vmax.f32 %v6384_v21, 0.0  ;;  %v6378_v38 = vmul.f32 %v6374_v55, %v6340_v20  ;;  %v9948_v20 = vld [vmem:[%s17773_s1 + $0x868] sm:$0xff] }
 0xa91   : > { %v6387_v8 = vmax.f32 %v6383_v24, 0.0  ;;  %v6377_v22 = vmul.f32 %v6374_v55, %v6335_v41  ;;  %v13042_v53 = vpack.c.bf16 %v9948_v20, %v9947_v35  ;;  %v9949_v24 = vld [vmem:[%s17773_s1 + $0x870] sm:$0xff]  ;;  %v9950_v41 = vld [vmem:[%s17773_s1 + $0x878] sm:$0xff] }
 0xa92   : > { %6393 = vst.msk [vmem:[#allocation4 + $0x9] sm:$0xff] %vm2913_vm10, %v6388_v44  ;;  %v6386_v2 = vadd.f32 %v6382_v40, %v6378_v38  ;;  %v13046_v44 = vpack.c.bf16 %v9950_v41, %v9949_v24  ;;  %v9960_v38 = vld [vmem:[%s17773_s1 + $0x8c8] sm:$0xff]  ;;  %v9982_v35 = vld [vmem:[%s17775_s3 + $0x10] sm:$0xf] }
 0xa93   : > { %6392 = vst.msk [vmem:[#allocation4 + $0x1] sm:$0xff] %vm2913_vm10, %v6387_v8  ;;  %v6385_v47 = vadd.f32 %v6382_v40, %v6377_v22  ;;  %v9945_v22 = vld [vmem:[%s17773_s1 + $0x850] sm:$0xff] }
 0xa94   : > { %v6390_v39 = vmax.f32 %v6386_v2, 0.0  ;;  %v13038_v56 = vpack.c.bf16 %v9946_v58, %v9945_v22  ;;  %v9961_v2 = vld [vmem:[%s17773_s1 + $0x8d0] sm:$0xff] }
 0xa95   : > { %v6389_v1 = vmax.f32 %v6385_v47, 0.0  ;;  %v9962_v47 = vld [vmem:[%s17773_s1 + $0x8d8] sm:$0xff]  ;;  %v9965_v58 = vld [vmem:[%s17773_s1 + $0x8f0] sm:$0xff] }
 0xa96   : > { %6395 = vst.msk [vmem:[#allocation4 + $0x19] sm:$0x1f] %vm5558_vm12, %v6390_v39  ;;  %v13054_v39 = vpack.c.bf16 %v9962_v47, %v9961_v2 }
 0xa97   : > { %6394 = vst.msk [vmem:[#allocation4 + $0x11] sm:$0xff] %vm2913_vm10, %v6389_v1  ;;  %v9963_v1 = vld [vmem:[%s17773_s1 + $0x8e0] sm:$0xff] }
 0xa9a   : > { %v6397_v23 = vld [vmem:[#allocation4] sm:$0xff]  ;;  %v16761_v34 = vld [vmem:[#allocation4 + $0x8] sm:$0xff] }
 0xa9b   : > { %v6405_v57 = vrot.slane %v6397_v23, 1  ;;  %v6406_v21 = vrot.slane %v16761_v34, 1  ;;  %8532 = vst.msk [vmem:[#allocation4] sm:$0x1] %vm8531_vm14, %v17877_v61 }
 0xa9d   : > { %v6407_v55 = vsel %vm370_vm2, %v6405_v57, %v6406_v21  ;;  %v9964_v57 = vld [vmem:[%s17773_s1 + $0x8e8] sm:$0xff] }
 0xa9e   : > { %12193 = vmatprep.mubr.msk.f32.mxu0 %vm2913_vm10, %v6407_v55  ;;  %v6399_v16 = vld [vmem:[#allocation4 + $0x10] sm:$0xff]  ;;  %v6400_v40 = vld [vmem:[#allocation4 + $0x18] sm:$0x7f]  ;;  %v6599_v55 = vrot.slane %v16761_v34, 2  ;;  %v13058_v22 = vpack.c.bf16 %v9964_v57, %v9963_v1 }
 0xa9f   : > { %v6408_v9 = vrot.slane %v6399_v16, 1  ;;  %v6410_v46 = vrot.slane %v6400_v40, 1 }
 0xaa1   : > { %v6409_v51 = vsel %vm370_vm2, %v6406_v21, %v6408_v9  ;;  %v6411_v6 = vsel %vm370_vm2, %v6408_v9, %v6410_v46  ;;  %v6598_v21 = vrot.slane %v6397_v23, 2  ;;  %v9966_v9 = vld [vmem:[%s17773_s1 + $0x8f8] sm:$0xff] }
 0xaa2   : > { %12194 = vmatmul.mubr.msk.f32.vlgmr.msra.gmra.mrb[254].mxu0 %vm2913_vm10, %v6409_v51  ;;  %v6702_v51 = vld [vmem:[%s17775_s3] sm:$0xf] }
 0xaa3   : > { %13037 = vmatpush3.bf16.msra.mxu0 %v16583_v27  ;;  %12196 = vmatprep.mubr.msk.f32.mxu0 %vm2913_vm10, %v6411_v6  ;;  %v9959_v27 = vld [vmem:[%s17773_s1 + $0x8c0] sm:$0xff] }
 0xaa4   : > { %13039 = vmatprep.subr.bf16.mxu0 %v13038_v56  ;;  %v13050_v8 = vpack.c.bf16 %v9960_v38, %v9959_v27 }
 0xaa6   : > { %12197 = vmatmul.mubr.msk.f32.gmra.mrb[0].mxu0 %vm2913_vm10, %v6410_v46  ;;  %v6600_v46 = vsel %vm748_vm6, %v6598_v21, %v6599_v55 }
 0xaa7   : > { %13041 = vmatpush3.bf16.msra.mxu0 %v13038_v56  ;;  %12215 = vmatprep.mubr.msk.f32.mxu0 %vm2913_vm10, %v6397_v23  ;;  %v13062_v23 = vpack.c.bf16 %v9966_v9, %v9965_v58  ;;  %v6603_v56 = vrot.slane %v6400_v40, 2 }
 0xaa8   : > { %13043 = vmatprep.subr.bf16.mxu0 %v13042_v53 }
 0xaab   : > { %13045 = vmatpush3.bf16.msra.mxu0 %v13042_v53 }
 0xaac   : > { %13047 = vmatprep.subr.bf16.mxu0 %v13046_v44 }
 0xaaf   : > { %13049 = vmatpush3.bf16.msra.mxu0 %v13046_v44 }
 0xab0   : > { %13051 = vmatprep.subr.bf16.mxu0 %v13050_v8 }
 0xab2   : > { %12216 = vmatmul.mubr.msk.f32.vlgmr.msra.gmra.mrb[254].mxu0 %vm2913_vm10, %v16761_v34  ;;  %v6601_v34 = vrot.slane %v6399_v16, 2 }
 0xab3   : > { %12218 = vmatprep.mubr.msk.f32.mxu0 %vm2913_vm10, %v6399_v16  ;;  %13053 = vmatpush3.bf16.msra.mxu0 %v13050_v8 }
 0xab4   : > { %13055 = vmatprep.subr.bf16.mxu0 %v13054_v39  ;;  %v6602_v6 = vsel %vm748_vm6, %v6599_v55, %v6601_v34  ;;  %v6604_v20 = vsel %vm748_vm6, %v6601_v34, %v6603_v56 }
 0xab6   : > { %12219 = vmatmul.mubr.msk.f32.gmra.mrb[0].mxu0 %vm2913_vm10, %v6400_v40 }
 0xab7   : > { %13057 = vmatpush3.bf16.msra.mxu0 %v13054_v39  ;;  %12237 = vmatprep.mubr.msk.f32.mxu0 %vm2913_vm10, %v6600_v46 }
 0xab8   : > { %13059 = vmatprep.subr.bf16.mxu0 %v13058_v22 }
 0xabb   : > { %13061 = vmatpush3.bf16.msra.mxu0 %v13058_v22 }
 0xabc   : > { %13063 = vmatprep.subr.bf16.mxu0 %v13062_v23 }
 0xabf   : > { %13065 = vmatpush3.bf16.msra.mxu0 %v13062_v23 }
 0xac0   : > { %12296 = vmatprep.subr.mxu0 %v17877_v61 }
 0xac2   : > { %12238 = vmatmul.mubr.msk.f32.vlgmr.msra.gmra.mrb[254].mxu0 %vm2913_vm10, %v6602_v6 }
 0xac3   : > { %12240 = vmatprep.mubr.msk.f32.mxu0 %vm2913_vm10, %v6604_v20  ;;  %12297 = vmatpush3.msk.msra.mxu0 %vm433_vm0, %v6702_v51 }
 0xac4   : > { %12402 = vmatprep.subr.msk.mxu0 %vm433_vm0, %v9982_v35 }
 0xac6   : > { %12241 = vmatmul.mubr.msk.f32.gmra.mrb[0].mxu0 %vm2913_vm10, %v6603_v56  ;;  %vm13310_vm10 = vmmov 1  }
 0xac7   : > { %12298 = vmatprep.mubr.msk.f32.mxu0 %vm13308_vm1, %v17877_v61  ;;  %vm13071_vm12 = vmpackc.low %vm966_vm4, %vm13310_vm10 }
 0xaca   : > { %12299 = vmatmul.mubr.msk.f32.vlgmr.msra.gmra.mrb[2].mxu0 %vm402_vm3, %v16473_v30  ;;  %v16861_v30 = vpop.f32.mrb[190].mxu1 }
 0xacb   : > { %12301 = vmatprep.mubr.msk.f32.mxu0 %vm13308_vm1, %v17877_v61  ;;  %12403 = vmatpush3.msk.msra.mxu0 %vm433_vm0, %v9982_v35 }
 0xace   : > { %12302 = vmatmul.mubr.msk.f32.gmra.mrb[4].mxu0 %vm402_vm3, %v16475_v60  ;;  %v12250_v60 = vpop.f32.mrb[191].mxu1 }
 0xacf   : > { %12304 = vmatprep.mubr.msk.f32.mxu0 %vm13308_vm1, %v17877_v61 }
 0xad2   : > { %12305 = vmatmul.mubr.msk.f32.gmra.mrb[6].mxu0 %vm402_vm3, %v16507_v26  ;;  %v16867_v26 = vpop.f32.mrb[192].mxu1 }
 0xad3   : > { %12307 = vmatprep.mubr.msk.f32.mxu0 %vm13308_vm1, %v17877_v61 }
 0xad6   : > { %12308 = vmatmul.mubr.msk.f32.gmra.mrb[8].mxu0 %vm402_vm3, %v16512_v4  ;;  %v12253_v4 = vpop.f32.mrb[193].mxu1 }
 0xad7   : > { %12310 = vmatprep.mubr.msk.f32.mxu0 %vm13308_vm1, %v17877_v61 }
 0xada   : > { %12311 = vmatmul.mubr.msk.f32.gmra.mrb[10].mxu0 %vm402_vm3, %v16525_v62  ;;  %v16873_v62 = vpop.f32.mrb[194].mxu1 }
 0xadb   : > { %12313 = vmatprep.mubr.msk.f32.mxu0 %vm13308_vm1, %v17877_v61  ;;  %v12256_v16 = vpop.f32.mrb[195].mxu1 }
 0xade   : > { %12314 = vmatmul.mubr.msk.f32.gmra.mrb[12].mxu0 %vm402_vm3, %v16538_v48  ;;  %v16879_v48 = vpop.f32.mrb[196].mxu1 }
 0xadf   : > { %12316 = vmatprep.mubr.msk.f32.mxu0 %vm13308_vm1, %v17877_v61  ;;  %v12259_v40 = vpop.f32.mrb[197].mxu1 }
 0xae2   : > { %12317 = vmatmul.mubr.msk.f32.gmra.mrb[14].mxu0 %vm402_vm3, %v16551_v29  ;;  %v16885_v29 = vpop.f32.mrb[198].mxu1 }
 0xae3   : > { %12319 = vmatprep.mubr.msk.f32.mxu0 %vm13308_vm1, %v17877_v61  ;;  %v12262_v53 = vpop.f32.mrb[199].mxu1 }
 0xae6   : > { %12320 = vmatmul.mubr.msk.f32.gmra.mrb[16].mxu0 %vm402_vm3, %v16568_v25  ;;  %v16891_v25 = vpop.f32.mrb[200].mxu1 }
 0xae7   : > { %12322 = vmatprep.mubr.msk.f32.mxu0 %vm13308_vm1, %v17877_v61  ;;  %v12265_v24 = vpop.f32.mrb[201].mxu1 }
 0xaea   : > { %12323 = vmatmul.mubr.msk.f32.gmra.mrb[18].mxu0 %vm402_vm3, %v16587_v54  ;;  %v16899_v54 = vpop.f32.mrb[202].mxu1 }
 0xaeb   : > { %12325 = vmatprep.mubr.msk.f32.mxu0 %vm13308_vm1, %v17877_v61 }
 0xaee   : > { %12326 = vmatmul.mubr.msk.f32.gmra.mrb[20].mxu0 %vm402_vm3, %v16593_v37  ;;  %v12268_v37 = vpop.f32.mrb[203].mxu1 }
 0xaef   : > { %12328 = vmatprep.mubr.msk.f32.mxu0 %vm13308_vm1, %v17877_v61  ;;  %v16905_v41 = vpop.f32.mrb[204].mxu1 }
 0xaf2   : > { %12329 = vmatmul.mubr.msk.f32.gmra.mrb[22].mxu0 %vm402_vm3, %v16600_v63  ;;  %v12271_v63 = vpop.f32.mrb[205].mxu1 }
 0xaf3   : > { %12331 = vmatprep.mubr.msk.f32.mxu0 %vm13308_vm1, %v17877_v61  ;;  %v16911_v44 = vpop.f32.mrb[206].mxu1 }
 0xaf6   : > { %12332 = vmatmul.mubr.msk.f32.gmra.mrb[24].mxu0 %vm402_vm3, %v16607_v31  ;;  %v12274_v31 = vpop.f32.mrb[207].mxu1 }
 0xaf7   : > { %12334 = vmatprep.mubr.msk.f32.mxu0 %vm13308_vm1, %v17877_v61  ;;  %v16917_v27 = vpop.f32.mrb[208].mxu1 }
 0xafa   : > { %12335 = vmatmul.mubr.msk.f32.gmra.mrb[26].mxu0 %vm402_vm3, %v16614_v32  ;;  %v12277_v32 = vpop.f32.mrb[209].mxu1 }
 0xafb   : > { %12337 = vmatprep.mubr.msk.f32.mxu0 %vm13308_vm1, %v17877_v61  ;;  %v16923_v38 = vpop.f32.mrb[210].mxu1 }
 0xafe   : > { %12338 = vmatmul.mubr.msk.f32.gmra.mrb[28].mxu0 %vm402_vm3, %v16621_v59  ;;  %v12280_v59 = vpop.f32.mrb[211].mxu1 }
 0xaff   : > { %12340 = vmatprep.mubr.msk.f32.mxu0 %vm13308_vm1, %v17877_v61  ;;  %v16929_v8 = vpop.f32.mrb[212].mxu1 }
 0xb02   : > { %12341 = vmatmul.mubr.msk.f32.gmra.mrb[30].mxu0 %vm402_vm3, %v16628_v0  ;;  %v12283_v0 = vpop.f32.mrb[213].mxu1 }
 0xb03   : > { %12343 = vmatprep.mubr.msk.f32.mxu0 %vm13308_vm1, %v17877_v61  ;;  %v16931_v2 = vpop.f32.mrb[214].mxu1 }
 0xb04   : > { %v12286_v47 = vpop.f32.mrb[215].mxu1 }
 0xb05   : > { %v16933_v39 = vpop.f32.mrb[216].mxu1 }
 0xb06   : > { %12344 = vmatmul.mubr.msk.f32.gmra.mrb[32].mxu0 %vm402_vm3, %v16635_v28  ;;  %v12289_v1 = vpop.f32.mrb[217].mxu1 }
 0xb07   : > { %12346 = vmatprep.mubr.msk.f32.mxu0 %vm13308_vm1, %v17877_v61  ;;  %v16935_v57 = vpop.f32.mrb[218].mxu1  ;;  %vm8271_vm1 = vcmask 236544  }
 0xb08   : > { %v12292_v28 = vpop.f32.mrb[219].mxu1 }
 0xb09   : > { %v16937_v21 = vpop.f32.mrb[220].mxu1 }
 0xb0a   : > { %12347 = vmatmul.mubr.msk.f32.gmra.mrb[34].mxu0 %vm402_vm3, %v16642_v10  ;;  %v12295_v55 = vpop.f32.mrb[221].mxu1 }
 0xb0b   : > { %v7310_v61 = vpop.f32.mrb[222].mxu1 }
 0xb0c   : > { %v12353_v22 = vpop.f32.mrb[223].mxu1 }
 0xb0d   : > { %v16939_v58 = vpop.f32.mrb[224].mxu1 }
 0xb0e   : > { %v12356_v10 = vpop.f32.mrb[225].mxu1 }
 0xb0f   : > { %v16941_v9 = vpop.f32.mrb[226].mxu1 }
 0xb10   : > { %v12359_v46 = vpop.f32.mrb[227].mxu1 }
 0xb11   : > { %v16943_v23 = vpop.f32.mrb[228].mxu1 }
 0xb12   : > { %v12362_v34 = vpop.f32.mrb[229].mxu1 }
 0xb13   : > { %v16945_v56 = vpop.f32.mrb[230].mxu1 }
 0xb14   : > { %v12365_v51 = vpop.f32.mrb[231].mxu1 }
 0xb15   : > { %v16947_v6 = vpop.f32.mrb[232].mxu1 }
 0xb16   : > { %v12368_v35 = vpop.f32.mrb[233].mxu1 }
 0xb17   : > { %v16949_v20 = vpop.f32.mrb[234].mxu1  ;;  %v16974_v35 = vld [vmem:[%s17775_s3 + $0xc] sm:$0xf] }
 0xb18   : > { %v12371_v60 = vpop.f32.mrb[235].mxu1  ;;  %12428 = vmatprep.subr.msk.mxu0 %vm433_vm0, %v16974_v35 }
 0xb19   : > { %v16951_v4 = vpop.f32.mrb[236].mxu1 }
 0xb1a   : > { %v12374_v16 = vpop.f32.mrb[237].mxu1 }
 0xb1b   : > { %v16953_v40 = vpop.f32.mrb[238].mxu1 }
 0xb1c   : > { %v12377_v53 = vpop.f32.mrb[239].mxu1 }
 0xb1d   : > { %v16955_v24 = vpop.f32.mrb[240].mxu1 }
 0xb1e   : > { %v12380_v37 = vpop.f32.mrb[241].mxu1 }
 0xb1f   : > { %v16957_v63 = vpop.f32.mrb[242].mxu1  ;;  %v281_v37 = vld [vmem:[%s17778_s6] sm:$0xff] }
 0xb20   : > { %v12383_v31 = vpop.f32.mrb[243].mxu1  ;;  %12488 = vmatprep.mubr.msk.f32.mxu1 %vm8271_vm1, %v281_v37 }
 0xb21   : > { %v16959_v32 = vpop.f32.mrb[244].mxu1 }
 0xb22   : > { %v12386_v59 = vpop.f32.mrb[245].mxu1 }
 0xb23   : > { %v16961_v0 = vpop.f32.mrb[246].mxu1 }
 0xb24   : > { %v12389_v47 = vpop.f32.mrb[247].mxu1 }
 0xb25   : > { %v16963_v1 = vpop.f32.mrb[248].mxu1  ;;  %v16986_v47 = vld [vmem:[%s17774_s2 + $0x15] sm:$0x3f] }
 0xb26   : > { %v12392_v28 = vpop.f32.mrb[249].mxu1 }
 0xb27   : > { %v16965_v55 = vpop.f32.mrb[250].mxu1 }
 0xb28   : > { %v12395_v22 = vpop.f32.mrb[251].mxu1 }
 0xb29   : > { %v16967_v10 = vpop.f32.mrb[252].mxu1 }
 0xb2a   : > { %v12398_v46 = vpop.f32.mrb[253].mxu1 }
 0xb2b   : > { %v16969_v34 = vpop.f32.mrb[254].mxu1  ;;  %v16990_v46 = vrot.slane %v16986_v47, %v15701_v52 }
 0xb2c   : > { %v12401_v51 = vpop.f32.mrb[255].mxu1 }
 0xb95   : > { %v12239_v60 = vpop.f32.mrb[254].mxu0 }
 0xb96   : > { %v6679_v16 = vpop.f32.mrb[255].mxu0 }
 0xb97   : > { %v13066_v53 = vpack.c.bf16 %v12239_v60, %v6679_v16  ;;  %v282_v16 = vld [vmem:[%s17778_s6 + $0x8] sm:$0xff] }
 0xb99   : > { %v12242_v31 = vpop.f32.mrb[0].mxu0  ;;  %13067 = vmatprep.subr.bf16.mxu1 %v13066_v53 }
 0xb9a   : > { %v6689_v59 = vpop.f32.mrb[1].mxu0  ;;  %13069 = vmatpush3.bf16.msra.mxu1 %v13066_v53  ;;  %v283_v53 = vld [vmem:[%s17778_s6 + $0x10] sm:$0xff] }
 0xb9b   : > { %v13070_v28 = vpack.c.bf16 %v12242_v31, %v6689_v59  ;;  %v17002_v59 = vrot.slane %v16986_v47, %v15711_v5 }
 0xb9d   : > { %v7090_v22 = vpop.f32.mrb[2].mxu0  ;;  %13072 = vmatprep.subr.msk.bf16.mxu1 %vm13071_vm12, %v13070_v28 }
 0xb9e   : > { %v7091_v51 = vadd.f32 %v7090_v22, %v16752_v43  ;;  %13075 = vmatpush3.bf16.msk.msra.mxu1 %vm13071_vm12, %v13070_v28  ;;  %v12300_v60 = vpop.f32.mrb[3].mxu0 }
 0xb9f   : > { %v284_v60 = vld [vmem:[%s17778_s6 + $0x18] sm:$0xff] }
 0xba0   : > { %v7394_v37 = vadd.f32 %v7310_v61, %v7091_v51  ;;  %v285_v61 = vld [vmem:[%s17778_s6 + $0x20] sm:$0xff]  ;;  %v17015_v51 = vrot.slane %v16986_v47, %v15714_v49  ;;  %v286_v49 = vld [vmem:[%s17778_s6 + $0x28] sm:$0xff] }
 0xba1   : > { %v7095_v31 = vpop.f32.mrb[4].mxu0  ;;  %12489 = vmatmul.mubr.msk.f32.vlgmr.msra.gmra.mrb[0].mxu1 %vm8271_vm1, %v282_v16 }
 0xba2   : > { %v7415_v43 = vadd.f32 %v16990_v46, %v7394_v37  ;;  %v7096_v28 = vadd.f32 %v7095_v31, %v16861_v30  ;;  %v12303_v22 = vpop.f32.mrb[5].mxu0  ;;  %12491 = vmatprep.mubr.msk.f32.mxu1 %vm8271_vm1, %v283_v53 }
 0xba4   : > { %v7432_v16 = vmax.f32 %v7415_v43, 0.0  ;;  %v7395_v37 = vadd.f32 %v16939_v58, %v7096_v28  ;;  %v287_v58 = vld [vmem:[%s17778_s6 + $0x30] sm:$0xff] }
 0xba5   : > { %v7100_v18 = vpop.f32.mrb[6].mxu0  ;;  %12492 = vmatmul.mubr.msk.f32.gmra.mrb[2].mxu1 %vm8271_vm1, %v284_v60 }
 0xba6   : > { %v7453_v30 = vmul.f32 %v17002_v59, %v7432_v16  ;;  %v7416_v53 = vadd.f32 %v16990_v46, %v7395_v37  ;;  %v7101_v31 = vadd.f32 %v7100_v18, %v16867_v26  ;;  %v12306_v22 = vpop.f32.mrb[7].mxu0  ;;  %12494 = vmatprep.mubr.msk.f32.mxu1 %vm8271_vm1, %v285_v61 }
 0xba8   : > { %v7474_v43 = vadd.f32 %v17015_v51, %v7453_v30  ;;  %v7433_v28 = vmax.f32 %v7416_v53, 0.0  ;;  %v7396_v60 = vadd.f32 %v16941_v9, %v7101_v31  ;;  %v288_v9 = vld [vmem:[%s17778_s6 + $0x38] sm:$0xff]  ;;  %v289_v30 = vld [vmem:[%s17778_s6 + $0x40] sm:$0xff] }
 0xba9   : > { %v7105_v16 = vpop.f32.mrb[8].mxu0  ;;  %12495 = vmatmul.mubr.msk.f32.gmra.mrb[4].mxu1 %vm8271_vm1, %v286_v49 }
 0xbaa   : > { %v17034_v18 = vsel %vm4114_vm15, %v7474_v43, 0.0  ;;  %v7454_v26 = vmul.f32 %v17002_v59, %v7433_v28  ;;  %v7417_v61 = vadd.f32 %v16990_v46, %v7396_v60  ;;  %v7106_v37 = vadd.f32 %v7105_v16, %v16873_v62  ;;  %v12309_v22 = vpop.f32.mrb[9].mxu0  ;;  %12497 = vmatprep.mubr.msk.f32.mxu1 %vm8271_vm1, %v287_v58 }
 0xbab   : > { %v7573_v62 = vrot.slane %v17034_v18, 1 }
 0xbac   : > { %v17047_v53 = vadd.f32 %v17015_v51, %v7454_v26  ;;  %v7434_v31 = vmax.f32 %v7417_v61, 0.0  ;;  %v7397_v49 = vadd.f32 %v16943_v23, %v7106_v37  ;;  %v290_v23 = vld [vmem:[%s17778_s6 + $0x48] sm:$0xff]  ;;  %v291_v26 = vld [vmem:[%s17778_s6 + $0x50] sm:$0xff] }
 0xbad   : > { %v7110_v43 = vpop.f32.mrb[10].mxu0  ;;  %12498 = vmatmul.mubr.msk.f32.gmra.mrb[6].mxu1 %vm8271_vm1, %v288_v9 }
 0xbae   : > { %v7455_v58 = vmul.f32 %v17002_v59, %v7434_v31  ;;  %v7418_v28 = vadd.f32 %v16990_v46, %v7397_v49  ;;  %v7111_v60 = vadd.f32 %v7110_v43, %v16879_v48  ;;  %v12312_v16 = vpop.f32.mrb[11].mxu0  ;;  %v7574_v22 = vrot.slane %v17047_v53, 1  ;;  %12500 = vmatprep.mubr.msk.f32.mxu1 %vm8271_vm1, %v289_v30 }
 0xbb0   : > { %v17064_v61 = vadd.f32 %v17015_v51, %v7455_v58  ;;  %v7435_v37 = vmax.f32 %v7418_v28, 0.0  ;;  %v7398_v9 = vadd.f32 %v16945_v56, %v7111_v60  ;;  %v7575_v48 = vsel %vm370_vm2, %v7573_v62, %v7574_v22  ;;  %v292_v56 = vld [vmem:[%s17778_s6 + $0x58] sm:$0xff]  ;;  %v293_v58 = vld [vmem:[%s17778_s6 + $0x60] sm:$0xff] }
 0xbb1   : > { %v7115_v31 = vpop.f32.mrb[12].mxu0  ;;  %12404 = vmatprep.mubr.msk.f32.mxu0 %vm402_vm3, %v7575_v48  ;;  %12501 = vmatmul.mubr.msk.f32.gmra.mrb[8].mxu1 %vm8271_vm1, %v290_v23 }
 0xbb2   : > { %v7576_v30 = vrot.slane %v17064_v61, 1  ;;  %v7456_v49 = vmul.f32 %v17002_v59, %v7435_v37  ;;  %v7419_v43 = vadd.f32 %v16990_v46, %v7398_v9  ;;  %v12315_v16 = vpop.f32.mrb[13].mxu0  ;;  %12503 = vmatprep.mubr.msk.f32.mxu1 %vm8271_vm1, %v291_v26  ;;  %v7116_v62 = vadd.f32 %v7115_v31, %v16885_v29  ;;  %v17088_v26 = vld [vmem:[%s17775_s3 + $0x14] sm:$0xf] }
 0xbb4   : > { %v17082_v28 = vadd.f32 %v17015_v51, %v7456_v49  ;;  %v7436_v60 = vmax.f32 %v7419_v43, 0.0  ;;  %v7577_v23 = vsel %vm370_vm2, %v7574_v22, %v7576_v30  ;;  %v7399_v37 = vadd.f32 %v16947_v6, %v7116_v62  ;;  %v294_v6 = vld [vmem:[%s17778_s6 + $0x68] sm:$0xff] }
 0xbb5   : > { %v7120_v9 = vpop.f32.mrb[14].mxu0  ;;  %12405 = vmatmul.mubr.msk.f32.vlgmr.msra.gmra.mrb[36].mxu0 %vm402_vm3, %v7577_v23  ;;  %12504 = vmatmul.mubr.msk.f32.gmra.mrb[10].mxu1 %vm8271_vm1, %v292_v56 }
 0xbb6   : > { %v7457_v29 = vmul.f32 %v17002_v59, %v7436_v60  ;;  %v7121_v48 = vadd.f32 %v7120_v9, %v16891_v25  ;;  %v12318_v31 = vpop.f32.mrb[15].mxu0  ;;  %v7578_v49 = vrot.slane %v17082_v28, 1  ;;  %12429 = vmatpush3.msk.msra.mxu0 %vm433_vm0, %v16974_v35  ;;  %12506 = vmatprep.mubr.msk.f32.mxu1 %vm8271_vm1, %v293_v58  ;;  %v7420_v22 = vadd.f32 %v16990_v46, %v7399_v37  ;;  %v295_v25 = vld [vmem:[%s17778_s6 + $0x70] sm:$0xff] }
 0xbb7   : > { %12454 = vmatprep.subr.msk.mxu0 %vm433_vm0, %v17088_v26  ;;  %v17817_v58 = vrot.slane %v17082_v28, 2 }
 0xbb8   : > { %v17109_v43 = vadd.f32 %v17015_v51, %v7457_v29  ;;  %v7400_v35 = vadd.f32 %v16949_v20, %v7121_v48  ;;  %v7579_v16 = vsel %vm370_vm2, %v7576_v30, %v7578_v49  ;;  %v7437_v56 = vmax.f32 %v7420_v22, 0.0  ;;  %v296_v20 = vld [vmem:[%s17778_s6 + $0x78] sm:$0xff] }
 0xbb9   : > { %v7125_v62 = vpop.f32.mrb[16].mxu0  ;;  %12407 = vmatprep.mubr.msk.f32.mxu0 %vm402_vm3, %v7579_v16  ;;  %12507 = vmatmul.mubr.msk.f32.gmra.mrb[12].mxu1 %vm8271_vm1, %v294_v6 }
 0xbba   : > { %v7580_v60 = vrot.slane %v17109_v43, 1  ;;  %v7973_v23 = vrot.slane %v17109_v43, 2  ;;  %v7421_v37 = vadd.f32 %v16990_v46, %v7400_v35  ;;  %v7126_v9 = vadd.f32 %v7125_v62, %v16899_v54  ;;  %v12321_v29 = vpop.f32.mrb[17].mxu0  ;;  %12509 = vmatprep.mubr.msk.f32.mxu1 %vm8271_vm1, %v295_v25 }
 0xbbb   : > { %v7458_v30 = vmul.f32 %v17002_v59, %v7437_v56 }
 0xbbc   : > { %v7438_v48 = vmax.f32 %v7421_v37, 0.0  ;;  %v7401_v31 = vadd.f32 %v16951_v4, %v7126_v9  ;;  %v7581_v6 = vsel %vm370_vm2, %v7578_v49, %v7580_v60  ;;  %v17130_v22 = vsel %vm748_vm6, %v17817_v58, %v7973_v23 }
 0xbbd   : > { %v17133_v54 = vadd.f32 %v17015_v51, %v7458_v30  ;;  %v7130_v25 = vpop.f32.mrb[18].mxu0  ;;  %12408 = vmatmul.mubr.msk.f32.gmra.mrb[38].mxu0 %vm402_vm3, %v7581_v6  ;;  %12510 = vmatmul.mubr.msk.f32.gmra.mrb[14].mxu1 %vm8271_vm1, %v296_v20 }
 0xbbe   : > { %v7459_v35 = vmul.f32 %v17002_v59, %v7438_v48  ;;  %v7422_v16 = vadd.f32 %v16990_v46, %v7401_v31  ;;  %v7131_v4 = vadd.f32 %v7130_v25, %v16905_v41  ;;  %v12324_v49 = vpop.f32.mrb[19].mxu0 }
 0xbbf   : > { %v7582_v56 = vrot.slane %v17133_v54, 1  ;;  %v7975_v62 = vrot.slane %v17133_v54, 2 }
 0xbc0   : > { %v17143_v37 = vadd.f32 %v17015_v51, %v7459_v35  ;;  %v7439_v9 = vmax.f32 %v7422_v16, 0.0  ;;  %v7402_v29 = vadd.f32 %v16953_v40, %v7131_v4 }
 0xbc1   : > { %v7135_v30 = vpop.f32.mrb[20].mxu0  ;;  %v7583_v20 = vsel %vm370_vm2, %v7580_v60, %v7582_v56  ;;  %v17148_v48 = vsel %vm748_vm6, %v7973_v23, %v7975_v62 }
 0xbc2   : > { %v7584_v31 = vrot.slane %v17143_v37, 1  ;;  %v7977_v41 = vrot.slane %v17143_v37, 2  ;;  %v7460_v6 = vmul.f32 %v17002_v59, %v7439_v9  ;;  %v7423_v25 = vadd.f32 %v16990_v46, %v7402_v29  ;;  %12410 = vmatprep.mubr.msk.f32.mxu0 %vm402_vm3, %v7583_v20  ;;  %v12327_v35 = vpop.f32.mrb[21].mxu0 }
 0xbc3   : > { %v7136_v16 = vadd.f32 %v7135_v30, %v16911_v44 }
 0xbc4   : > { %v17157_v40 = vadd.f32 %v17015_v51, %v7460_v6  ;;  %v7440_v60 = vmax.f32 %v7423_v25, 0.0  ;;  %v7585_v23 = vsel %vm370_vm2, %v7582_v56, %v7584_v31  ;;  %v17161_v4 = vsel %vm748_vm6, %v7975_v62, %v7977_v41 }
 0xbc5   : > { %v7403_v49 = vadd.f32 %v16955_v24, %v7136_v16  ;;  %v7140_v58 = vpop.f32.mrb[22].mxu0  ;;  %12411 = vmatmul.mubr.msk.f32.gmra.mrb[40].mxu0 %vm402_vm3, %v7585_v23 }
 0xbc6   : > { %v7461_v9 = vmul.f32 %v17002_v59, %v7440_v60  ;;  %v7141_v29 = vadd.f32 %v7140_v58, %v16917_v27  ;;  %v12330_v20 = vpop.f32.mrb[23].mxu0  ;;  %v7586_v44 = vrot.slane %v17157_v40, 1  ;;  %v7979_v30 = vrot.slane %v17157_v40, 2 }
 0xbc7   : > { %v7424_v6 = vadd.f32 %v16990_v46, %v7403_v49 }
 0xbc8   : > { %v17171_v56 = vadd.f32 %v17015_v51, %v7461_v9  ;;  %v7404_v62 = vadd.f32 %v16957_v63, %v7141_v29  ;;  %v7587_v24 = vsel %vm370_vm2, %v7584_v31, %v7586_v44  ;;  %v17176_v25 = vsel %vm748_vm6, %v7977_v41, %v7979_v30 }
 0xbc9   : > { %v7441_v35 = vmax.f32 %v7424_v6, 0.0  ;;  %v7145_v16 = vpop.f32.mrb[24].mxu0  ;;  %12413 = vmatprep.mubr.msk.f32.mxu0 %vm402_vm3, %v7587_v24 }
 0xbca   : > { %v7588_v27 = vrot.slane %v17171_v56, 1  ;;  %v7981_v58 = vrot.slane %v17171_v56, 2  ;;  %v7425_v60 = vadd.f32 %v16990_v46, %v7404_v62  ;;  %v7146_v23 = vadd.f32 %v7145_v16, %v16923_v38  ;;  %v12333_v49 = vpop.f32.mrb[25].mxu0 }
 0xbcb   : > { %v7462_v63 = vmul.f32 %v17002_v59, %v7441_v35 }
 0xbcc   : > { %v7442_v9 = vmax.f32 %v7425_v60, 0.0  ;;  %v7405_v31 = vadd.f32 %v16959_v32, %v7146_v23  ;;  %v7589_v41 = vsel %vm370_vm2, %v7586_v44, %v7588_v27  ;;  %v17187_v29 = vsel %vm748_vm6, %v7979_v30, %v7981_v58 }
 0xbcd   : > { %v17190_v20 = vadd.f32 %v17015_v51, %v7462_v63  ;;  %v7150_v6 = vpop.f32.mrb[26].mxu0  ;;  %12414 = vmatmul.mubr.msk.f32.gmra.mrb[42].mxu0 %vm402_vm3, %v7589_v41 }
 0xbce   : > { %v7463_v62 = vmul.f32 %v17002_v59, %v7442_v9  ;;  %v7426_v38 = vadd.f32 %v16990_v46, %v7405_v31  ;;  %v7151_v24 = vadd.f32 %v7150_v6, %v16929_v8  ;;  %v12336_v35 = vpop.f32.mrb[27].mxu0 }
 0xbcf   : > { %v7590_v32 = vrot.slane %v17190_v20, 1  ;;  %v7983_v44 = vrot.slane %v17190_v20, 2 }
 0xbd0   : > { %v17199_v30 = vadd.f32 %v17015_v51, %v7463_v62  ;;  %v7443_v16 = vmax.f32 %v7426_v38, 0.0  ;;  %v7406_v60 = vadd.f32 %v16961_v0, %v7151_v24 }
 0xbd1   : > { %v7155_v23 = vpop.f32.mrb[28].mxu0  ;;  %v7591_v49 = vsel %vm370_vm2, %v7588_v27, %v7590_v32  ;;  %v17204_v63 = vsel %vm748_vm6, %v7981_v58, %v7983_v44 }
 0xbd2   : > { %v7592_v9 = vrot.slane %v17199_v30, 1  ;;  %v7985_v8 = vrot.slane %v17199_v30, 2  ;;  %v7464_v31 = vmul.f32 %v17002_v59, %v7443_v16  ;;  %v7427_v41 = vadd.f32 %v16990_v46, %v7406_v60  ;;  %12416 = vmatprep.mubr.msk.f32.mxu0 %vm402_vm3, %v7591_v49  ;;  %v12339_v6 = vpop.f32.mrb[29].mxu0 }
 0xbd3   : > { %v7156_v62 = vadd.f32 %v7155_v23, %v16931_v2 }
 0xbd4   : > { %v17213_v0 = vadd.f32 %v17015_v51, %v7464_v31  ;;  %v7444_v27 = vmax.f32 %v7427_v41, 0.0  ;;  %v7593_v58 = vsel %vm370_vm2, %v7590_v32, %v7592_v9  ;;  %v17217_v38 = vsel %vm748_vm6, %v7983_v44, %v7985_v8 }
 0xbd5   : > { %v7407_v24 = vadd.f32 %v16963_v1, %v7156_v62  ;;  %v7160_v35 = vpop.f32.mrb[30].mxu0  ;;  %12417 = vmatmul.mubr.msk.f32.gmra.mrb[44].mxu0 %vm402_vm3, %v7593_v58 }
 0xbd6   : > { %v7465_v16 = vmul.f32 %v17002_v59, %v7444_v27  ;;  %v7161_v60 = vadd.f32 %v7160_v35, %v16933_v39  ;;  %v12342_v49 = vpop.f32.mrb[31].mxu0  ;;  %v7594_v2 = vrot.slane %v17213_v0, 1  ;;  %v7987_v23 = vrot.slane %v17213_v0, 2 }
 0xbd7   : > { %v7428_v31 = vadd.f32 %v16990_v46, %v7407_v24 }
 0xbd8   : > { %v17227_v32 = vadd.f32 %v17015_v51, %v7465_v16  ;;  %v7408_v44 = vadd.f32 %v16965_v55, %v7161_v60  ;;  %v7595_v1 = vsel %vm370_vm2, %v7592_v9, %v7594_v2  ;;  %v17232_v41 = vsel %vm748_vm6, %v7985_v8, %v7987_v23 }
 0xbd9   : > { %v7445_v6 = vmax.f32 %v7428_v31, 0.0  ;;  %v7165_v62 = vpop.f32.mrb[32].mxu0  ;;  %12419 = vmatprep.mubr.msk.f32.mxu0 %vm402_vm3, %v7595_v1 }
 0xbda   : > { %v7596_v39 = vrot.slane %v17227_v32, 1  ;;  %v7989_v27 = vrot.slane %v17227_v32, 2  ;;  %v7429_v58 = vadd.f32 %v16990_v46, %v7408_v44  ;;  %v7166_v24 = vadd.f32 %v7165_v62, %v16935_v57  ;;  %v12345_v35 = vpop.f32.mrb[33].mxu0 }
 0xbdb   : > { %v7466_v55 = vmul.f32 %v17002_v59, %v7445_v6 }
 0xbdc   : > { %v7446_v16 = vmax.f32 %v7429_v58, 0.0  ;;  %v7409_v9 = vadd.f32 %v16967_v10, %v7166_v24  ;;  %v7597_v8 = vsel %vm370_vm2, %v7594_v2, %v7596_v39  ;;  %v17243_v60 = vsel %vm748_vm6, %v7987_v23, %v7989_v27 }
 0xbdd   : > { %v7487_v49 = vadd.f32 %v17015_v51, %v7466_v55  ;;  %v7170_v31 = vpop.f32.mrb[34].mxu0  ;;  %12420 = vmatmul.mubr.msk.f32.gmra.mrb[46].mxu0 %vm402_vm3, %v7597_v8 }
 0xbde   : > { %v7467_v44 = vmul.f32 %v17002_v59, %v7446_v16  ;;  %v7430_v57 = vadd.f32 %v16990_v46, %v7409_v9  ;;  %v7171_v1 = vadd.f32 %v7170_v31, %v16937_v21  ;;  %v12348_v6 = vpop.f32.mrb[35].mxu0  ;;  %v7491_v21 = vadd.s32 128, %v15698_v45 }
 0xbdf   : > { %v7598_v62 = vrot.slane %v7487_v49, 1  ;;  %v7991_v58 = vrot.slane %v7487_v49, 2 }
 0xbe0   : > { %v7488_v10 = vadd.f32 %v17015_v51, %v7467_v44  ;;  %v7447_v2 = vmax.f32 %v7430_v57, 0.0  ;;  %v7410_v23 = vadd.f32 %v16969_v34, %v7171_v1  ;;  %vm7521_vm4 = vcmp.le.s32.totalorder %v7491_v21, 128 }
 0xbe1   : > { %v7599_v24 = vsel %vm370_vm2, %v7596_v39, %v7598_v62  ;;  %v7992_v35 = vsel %vm748_vm6, %v7989_v27, %v7991_v58 }
 0xbe2   : > { %v7600_v55 = vrot.slane %v7488_v10, 1  ;;  %v7993_v8 = vrot.slane %v7488_v10, 2  ;;  %v7468_v16 = vmul.f32 %v17002_v59, %v7447_v2  ;;  %v7431_v9 = vadd.f32 %v16990_v46, %v7410_v23  ;;  %12422 = vmatprep.mubr.msk.f32.mxu0 %vm402_vm3, %v7599_v24 }
 0xbe4   : > { %v7489_v31 = vadd.f32 %v17015_v51, %v7468_v16  ;;  %v7448_v44 = vmax.f32 %v7431_v9, 0.0  ;;  %v7601_v57 = vsel %vm370_vm2, %v7598_v62, %v7600_v55  ;;  %v7994_v34 = vsel %vm748_vm6, %v7991_v58, %v7993_v8 }
 0xbe5   : > { %12423 = vmatmul.mubr.msk.f32.gmra.mrb[48].mxu0 %vm402_vm3, %v7601_v57 }
 0xbe6   : > { %v7469_v39 = vmul.f32 %v17002_v59, %v7448_v44  ;;  %v7602_v27 = vrot.slane %v7489_v31, 1  ;;  %v7995_v1 = vrot.slane %v7489_v31, 2  ;;  %v7967_v59 = vrot.slane %v17047_v53, 2 }
 0xbe8   : > { %v7490_v46 = vadd.f32 %v17015_v51, %v7469_v39  ;;  %v7603_v6 = vsel %vm370_vm2, %v7600_v55, %v7602_v27  ;;  %v7996_v2 = vsel %vm748_vm6, %v7993_v8, %v7995_v1  ;;  %v7966_v51 = vrot.slane %v17034_v18, 2 }
 0xbe9   : > { %12425 = vmatprep.mubr.msk.f32.mxu0 %vm402_vm3, %v7603_v6  ;;  %v17380_v55 = vrot.slane %v16986_v47, %v15930_v3 }
 0xbea   : > { %v7555_v23 = vsel %vm7521_vm4, %v7490_v46, 0.0 }
 0xbeb   : > { %v7604_v24 = vrot.slane %v7555_v23, 1  ;;  %v7997_v62 = vrot.slane %v7555_v23, 2 }
 0xbed   : > { %v7605_v58 = vsel %vm370_vm2, %v7602_v27, %v7604_v24  ;;  %v7998_v16 = vsel %vm748_vm6, %v7995_v1, %v7997_v62 }
 0xbee   : > { %12426 = vmatmul.mubr.msk.f32.gmra.mrb[50].mxu0 %vm402_vm3, %v7605_v58 }
 0xbef   : > { %12430 = vmatprep.mubr.msk.f32.mxu0 %vm402_vm3, %v17034_v18  ;;  %v10107_v18 = vld [vmem:[%s17775_s3 + $0x1c] sm:$0xf] }
 0xbf0   : > { %12512 = vmatprep.subr.msk.mxu1 %vm433_vm0, %v10107_v18 }
 0xbf1   : > { %12513 = vmatpush3.msk.msra.mxu1 %vm433_vm0, %v10107_v18 }
 0xbf2   : > { %12431 = vmatmul.mubr.msk.f32.vlgmr.msra.gmra.mrb[36].mxu0 %vm402_vm3, %v17047_v53 }
 0xbf3   : > { %12433 = vmatprep.mubr.msk.f32.mxu0 %vm402_vm3, %v17064_v61  ;;  %12455 = vmatpush3.msk.msra.mxu0 %vm433_vm0, %v17088_v26  ;;  %v7969_v26 = vrot.slane %v17064_v61, 2 }
 0xbf6   : > { %12434 = vmatmul.mubr.msk.f32.gmra.mrb[38].mxu0 %vm402_vm3, %v17082_v28 }
 0xbf7   : > { %12436 = vmatprep.mubr.msk.f32.mxu0 %vm402_vm3, %v17109_v43  ;;  %v7968_v43 = vsel %vm748_vm6, %v7966_v51, %v7967_v59 }
 0xbfa   : > { %12437 = vmatmul.mubr.msk.f32.gmra.mrb[40].mxu0 %vm402_vm3, %v17133_v54  ;;  %v7970_v54 = vsel %vm748_vm6, %v7967_v59, %v7969_v26 }
 0xbfb   : > { %12439 = vmatprep.mubr.msk.f32.mxu0 %vm402_vm3, %v17143_v37  ;;  %v17880_v37 = vrot.slane %v17082_v28, 2 }
 0xbfd   : > { %v7972_v53 = vsel %vm748_vm6, %v7969_v26, %v17880_v37 }
 0xbfe   : > { %12440 = vmatmul.mubr.msk.f32.gmra.mrb[42].mxu0 %vm402_vm3, %v17157_v40 }
 0xbff   : > { %12442 = vmatprep.mubr.msk.f32.mxu0 %vm402_vm3, %v17171_v56 }
 0xc02   : > { %12443 = vmatmul.mubr.msk.f32.gmra.mrb[44].mxu0 %vm402_vm3, %v17190_v20 }
 0xc03   : > { %12445 = vmatprep.mubr.msk.f32.mxu0 %vm402_vm3, %v17199_v30 }
 0xc06   : > { %12446 = vmatmul.mubr.msk.f32.gmra.mrb[46].mxu0 %vm402_vm3, %v17213_v0 }
 0xc07   : > { %12448 = vmatprep.mubr.msk.f32.mxu0 %vm402_vm3, %v17227_v32 }
 0xc0a   : > { %12449 = vmatmul.mubr.msk.f32.gmra.mrb[48].mxu0 %vm402_vm3, %v7487_v49  ;;  %v17372_v49 = vrot.slane %v16986_v47, %v15922_v15  ;;  %v8474_v15 = vld [vmem:[%s17774_s2 + $0x21] sm:$0x3] }
 0xc0b   : > { %12451 = vmatprep.mubr.msk.f32.mxu0 %vm402_vm3, %v7488_v10  ;;  %v17376_v10 = vrot.slane %v16986_v47, %v15925_v36  ;;  %v17394_v27 = vrot.slane %v8474_v15, %v15701_v52  ;;  %v17401_v24 = vrot.slane %v8474_v15, %v15711_v5 }
 0xc0e   : > { %12452 = vmatmul.mubr.msk.f32.gmra.mrb[50].mxu0 %vm402_vm3, %v7489_v31 }
 0xc0f   : > { %12456 = vmatprep.mubr.msk.f32.mxu0 %vm402_vm3, %v7968_v43 }
 0xc12   : > { %12457 = vmatmul.mubr.msk.f32.vlgmr.msra.gmra.mrb[36].mxu0 %vm402_vm3, %v7970_v54 }
 0xc13   : > { %12459 = vmatprep.mubr.msk.f32.mxu0 %vm402_vm3, %v7972_v53 }
 0xc16   : > { %12460 = vmatmul.mubr.msk.f32.gmra.mrb[38].mxu0 %vm402_vm3, %v17130_v22 }
 0xc17   : > { %12462 = vmatprep.mubr.msk.f32.mxu0 %vm402_vm3, %v17148_v48 }
 0xc1a   : > { %12463 = vmatmul.mubr.msk.f32.gmra.mrb[40].mxu0 %vm402_vm3, %v17161_v4 }
 0xc1b   : > { %12465 = vmatprep.mubr.msk.f32.mxu0 %vm402_vm3, %v17176_v25 }
 0xc1e   : > { %12466 = vmatmul.mubr.msk.f32.gmra.mrb[42].mxu0 %vm402_vm3, %v17187_v29 }
 0xc1f   : > { %12468 = vmatprep.mubr.msk.f32.mxu0 %vm402_vm3, %v17204_v63 }
 0xc22   : > { %12469 = vmatmul.mubr.msk.f32.gmra.mrb[44].mxu0 %vm402_vm3, %v17217_v38 }
 0xc23   : > { %12471 = vmatprep.mubr.msk.f32.mxu0 %vm402_vm3, %v17232_v41 }
 0xc26   : > { %12472 = vmatmul.mubr.msk.f32.gmra.mrb[46].mxu0 %vm402_vm3, %v17243_v60  ;;  %v17366_v60 = vld [vmem:[%s17775_s3 + $0x18] sm:$0xf] }
 0xc27   : > { %12474 = vmatprep.mubr.msk.f32.mxu0 %vm402_vm3, %v7992_v35  ;;  %12538 = vmatprep.subr.msk.mxu1 %vm433_vm0, %v17366_v60 }
 0xc2a   : > { %12475 = vmatmul.mubr.msk.f32.gmra.mrb[48].mxu0 %vm402_vm3, %v7994_v34 }
 0xc2b   : > { %12477 = vmatprep.mubr.msk.f32.mxu0 %vm402_vm3, %v7996_v2 }
 0xc2e   : > { %12478 = vmatmul.mubr.msk.f32.gmra.mrb[50].mxu0 %vm402_vm3, %v7998_v16 }
 0xc74   : > { %v12490_v61 = vpop.f32.mrb[0].mxu1 }
 0xc75   : > { %v8389_v28 = vpop.f32.mrb[1].mxu1 }
 0xc78   : > { %v12493_v22 = vpop.f32.mrb[2].mxu1 }
 0xc79   : > { %v8399_v48 = vpop.f32.mrb[3].mxu1 }
 0xc7c   : > { %v17339_v40 = vpop.f32.mrb[4].mxu1 }
 0xc7d   : > { %v17341_v4 = vpop.f32.mrb[5].mxu1 }
 0xc80   : > { %v17343_v56 = vpop.f32.mrb[6].mxu1 }
 0xc81   : > { %v17345_v25 = vpop.f32.mrb[7].mxu1 }
 0xc84   : > { %v17347_v29 = vpop.f32.mrb[8].mxu1 }
 0xc85   : > { %v17349_v20 = vpop.f32.mrb[9].mxu1 }
 0xc88   : > { %v17351_v30 = vpop.f32.mrb[10].mxu1 }
 0xc89   : > { %v17353_v63 = vpop.f32.mrb[11].mxu1 }
 0xc8c   : > { %v17355_v0 = vpop.f32.mrb[12].mxu1 }
 0xc8d   : > { %v17357_v38 = vpop.f32.mrb[13].mxu1 }
 0xc90   : > { %v17359_v32 = vpop.f32.mrb[14].mxu1 }
 0xc91   : > { %v17361_v41 = vpop.f32.mrb[15].mxu1 }
 0xce5   : > { %v12458_v35 = vpop.f32.mrb[36].mxu0 }
 0xce6   : > { %v8200_v8 = vadd.f32 %v12458_v35, %v17372_v49  ;;  %v8100_v9 = vpop.f32.mrb[37].mxu0 }
 0xce7   : > { %v8199_v21 = vadd.f32 %v17372_v49, %v8100_v9 }
 0xce8   : > { %v8220_v31 = vmul.f32 %v17376_v10, %v8200_v8 }
 0xce9   : > { %v8219_v44 = vmul.f32 %v17376_v10, %v8199_v21  ;;  %v12461_v36 = vpop.f32.mrb[38].mxu0 }
 0xcea   : > { %v8202_v57 = vadd.f32 %v12461_v36, %v17372_v49  ;;  %v8110_v34 = vpop.f32.mrb[39].mxu0  ;;  %v8240_v3 = vadd.f32 %v17380_v55, %v8220_v31 }
 0xceb   : > { %v8201_v47 = vadd.f32 %v17372_v49, %v8110_v34  ;;  %v8239_v39 = vadd.f32 %v17380_v55, %v8219_v44 }
 0xcec   : > { %v8222_v1 = vmul.f32 %v17376_v10, %v8202_v57  ;;  %v8256_v46 = vadd.f32 %v14461_v50, %v8240_v3 }
 0xced   : > { %v8221_v6 = vmul.f32 %v17376_v10, %v8201_v47  ;;  %v12464_v2 = vpop.f32.mrb[40].mxu0  ;;  %v8255_v23 = vadd.f32 %v8239_v39, %v17878_v7 }
 0xcee   : > { %v8204_v62 = vadd.f32 %v12464_v2, %v17372_v49  ;;  %v8395_v58 = vadd.f32 %v12490_v61, %v8256_v46  ;;  %v8120_v16 = vpop.f32.mrb[41].mxu0  ;;  %v8242_v59 = vadd.f32 %v17380_v55, %v8222_v1 }
 0xcef   : > { %v8203_v52 = vadd.f32 %v17372_v49, %v8120_v16  ;;  %v8390_v51 = vadd.f32 %v8389_v28, %v8255_v23  ;;  %v8241_v26 = vadd.f32 %v17380_v55, %v8221_v6 }
 0xcf0   : > { %v8224_v50 = vmul.f32 %v17376_v10, %v8204_v62  ;;  %v8480_v43 = vmul.f32 %v17394_v27, %v8395_v58  ;;  %v8258_v7 = vadd.f32 %v14496_v42, %v8242_v59 }
 0xcf1   : > { %v8223_v5 = vmul.f32 %v17376_v10, %v8203_v52  ;;  %v8479_v54 = vmul.f32 %v17394_v27, %v8390_v51  ;;  %v12467_v37 = vpop.f32.mrb[42].mxu0  ;;  %v8257_v53 = vadd.f32 %v14480_v33, %v8241_v26 }
 0xcf2   : > { %v8500_v18 = vadd.f32 %v17401_v24, %v8480_v43  ;;  %v8206_v61 = vadd.f32 %v12467_v37, %v17372_v49  ;;  %v8405_v28 = vadd.f32 %v12493_v22, %v8258_v7  ;;  %v8130_v35 = vpop.f32.mrb[43].mxu0  ;;  %v8244_v8 = vadd.f32 %v17380_v55, %v8224_v50 }
 0xcf3   : > { %v8499_v9 = vadd.f32 %v17401_v24, %v8479_v54  ;;  %v8205_v21 = vadd.f32 %v17372_v49, %v8130_v35  ;;  %v8400_v42 = vadd.f32 %v8399_v48, %v8257_v53  ;;  %v8243_v31 = vadd.f32 %v17380_v55, %v8223_v5 }
 0xcf4   : > { %v8516_v15 = vmax.f32 %v8500_v18, 0.0  ;;  %v8226_v44 = vmul.f32 %v17376_v10, %v8206_v61  ;;  %v8482_v33 = vmul.f32 %v17394_v27, %v8405_v28  ;;  %v8260_v36 = vadd.f32 %v8244_v8, %v13445_v12 }
 0xcf5   : > { %v8515_v57 = vmax.f32 %v8499_v9, 0.0  ;;  %v8225_v22 = vmul.f32 %v17376_v10, %v8205_v21  ;;  %v8481_v34 = vmul.f32 %v17394_v27, %v8400_v42  ;;  %v12470_v3 = vpop.f32.mrb[44].mxu0  ;;  %v8259_v47 = vadd.f32 %v8243_v31, %v13442_v11  ;;  %v17881_v42 = vld [vmem:[#allocation9_spill] sm:$0xff] }
 0xcf6   : > { %8534 = vst.msk [vmem:[#allocation4 + $0x9] sm:$0xff] %vm402_vm3, %v8516_v15  ;;  %v8502_v48 = vadd.f32 %v17401_v24, %v8482_v33  ;;  %v8208_v39 = vadd.f32 %v12470_v3, %v17372_v49  ;;  %v8415_v1 = vadd.f32 %v17339_v40, %v8260_v36  ;;  %v8140_v46 = vpop.f32.mrb[45].mxu0  ;;  %v8246_v6 = vadd.f32 %v17380_v55, %v8226_v44 }
 0xcf7   : > { %8533 = vst.msk [vmem:[#allocation4 + $0x1] sm:$0xff] %vm402_vm3, %v8515_v57  ;;  %v8501_v12 = vadd.f32 %v17401_v24, %v8481_v34  ;;  %v8207_v2 = vadd.f32 %v17372_v49, %v8140_v46  ;;  %v8410_v23 = vadd.f32 %v17341_v4, %v8259_v47  ;;  %v8245_v11 = vadd.f32 %v17380_v55, %v8225_v22 }
 0xcf8   : > { %v8518_v62 = vmax.f32 %v8502_v48, 0.0  ;;  %v8228_v58 = vmul.f32 %v17376_v10, %v8208_v39  ;;  %v8484_v16 = vmul.f32 %v17394_v27, %v8415_v1  ;;  %v8262_v40 = vadd.f32 %v8246_v6, %v13455_v14 }
 0xcf9   : > { %v8517_v59 = vmax.f32 %v8501_v12, 0.0  ;;  %v8227_v52 = vmul.f32 %v17376_v10, %v8207_v2  ;;  %v8483_v51 = vmul.f32 %v17394_v27, %v8410_v23  ;;  %v12473_v26 = vpop.f32.mrb[46].mxu0  ;;  %v8261_v50 = vadd.f32 %v8245_v11, %v13452_v13 }
 0xcfa   : > { %8536 = vst.msk [vmem:[#allocation4 + $0x19] sm:$0xff] %vm402_vm3, %v8518_v62  ;;  %v8504_v4 = vadd.f32 %v17401_v24, %v8484_v16  ;;  %v8210_v43 = vadd.f32 %v12473_v26, %v17372_v49  ;;  %v8425_v7 = vadd.f32 %v17343_v56, %v8262_v40  ;;  %v8150_v5 = vpop.f32.mrb[47].mxu0  ;;  %v8248_v54 = vadd.f32 %v17380_v55, %v8228_v58 }
 0xcfb   : > { %8535 = vst.msk [vmem:[#allocation4 + $0x11] sm:$0xff] %vm402_vm3, %v8517_v59  ;;  %v8503_v14 = vadd.f32 %v17401_v24, %v8483_v51  ;;  %v8209_v37 = vadd.f32 %v17372_v49, %v8150_v5  ;;  %v8420_v53 = vadd.f32 %v17345_v25, %v8261_v50  ;;  %v8247_v13 = vadd.f32 %v17380_v55, %v8227_v52 }
 0xcfc   : > { %v8520_v18 = vmax.f32 %v8504_v4, 0.0  ;;  %v8230_v61 = vmul.f32 %v17376_v10, %v8210_v43  ;;  %v8486_v28 = vmul.f32 %v17394_v27, %v8425_v7  ;;  %v8264_v56 = vadd.f32 %v8248_v54, %v13468_v17 }
 0xcfd   : > { %v8519_v35 = vmax.f32 %v8503_v14, 0.0  ;;  %v8229_v8 = vmul.f32 %v17376_v10, %v8209_v37  ;;  %v8485_v9 = vmul.f32 %v17394_v27, %v8420_v53  ;;  %v12476_v21 = vpop.f32.mrb[48].mxu0  ;;  %v8263_v31 = vadd.f32 %v8247_v13, %v17881_v42 }
 0xcfe   : > { %8538 = vst.msk [vmem:[#allocation4 + $0x29] sm:$0xff] %vm402_vm3, %v8520_v18  ;;  %v8506_v25 = vadd.f32 %v17401_v24, %v8486_v28  ;;  %v8212_v15 = vadd.f32 %v12476_v21, %v17372_v49  ;;  %v8435_v44 = vadd.f32 %v17347_v29, %v8264_v56  ;;  %v8160_v33 = vpop.f32.mrb[49].mxu0  ;;  %v8250_v36 = vadd.f32 %v17380_v55, %v8230_v61  ;;  %v17467_v3 = vld [vmem:[#allocation4] sm:$0xff]  ;;  %v17472_v1 = vld [vmem:[#allocation4 + $0x8] sm:$0xff] }
 0xcff   : > { %8537 = vst.msk [vmem:[#allocation4 + $0x21] sm:$0xff] %vm402_vm3, %v8519_v35  ;;  %v8505_v17 = vadd.f32 %v17401_v24, %v8485_v9  ;;  %v8211_v57 = vadd.f32 %v17372_v49, %v8160_v33  ;;  %v8430_v22 = vadd.f32 %v17349_v20, %v8263_v31  ;;  %v8249_v34 = vadd.f32 %v17380_v55, %v8229_v8  ;;  %v17882_v20 = vld [vmem:[#allocation10_spill] sm:$0xff]  ;;  %v17883_v21 = vld [vmem:[#allocation12_spill] sm:$0xff]  ;;  %v17884_v31 = vld [vmem:[#allocation11_spill] sm:$0xff] }
 0xd00   : > { %v8522_v47 = vmax.f32 %v8506_v25, 0.0  ;;  %v8232_v48 = vmul.f32 %v17376_v10, %v8212_v15  ;;  %v8488_v29 = vmul.f32 %v17394_v27, %v8435_v44  ;;  %v8266_v39 = vadd.f32 %v8250_v36, %v13474_v19  ;;  %v17885_v36 = vld [vmem:[#allocation14_spill] sm:$0xff] }
 0xd01   : > { %v8521_v46 = vmax.f32 %v8505_v17, 0.0  ;;  %v8231_v6 = vmul.f32 %v17376_v10, %v8211_v57  ;;  %v8487_v12 = vmul.f32 %v17394_v27, %v8430_v22  ;;  %v12479_v2 = vpop.f32.mrb[50].mxu0  ;;  %v8265_v23 = vadd.f32 %v8249_v34, %v17882_v20  ;;  %v17886_v57 = vld [vmem:[#allocation13_spill] sm:$0xff] }
 0xd02   : > { %8540 = vst.msk [vmem:[#allocation4 + $0x39] sm:$0xff] %vm402_vm3, %v8522_v47  ;;  %v8508_v11 = vadd.f32 %v17401_v24, %v8488_v29  ;;  %v8214_v62 = vadd.f32 %v12479_v2, %v17372_v49  ;;  %v8445_v58 = vadd.f32 %v17351_v30, %v8266_v39  ;;  %v8170_v16 = vpop.f32.mrb[51].mxu0  ;;  %v17481_v19 = vld [vmem:[#allocation4 + $0x10] sm:$0xff]  ;;  %v8584_v40 = vrot.slane %v17467_v3, 1  ;;  %v17492_v7 = vld [vmem:[#allocation4 + $0x18] sm:$0xff] }
 0xd03   : > { %8539 = vst.msk [vmem:[#allocation4 + $0x31] sm:$0xff] %vm402_vm3, %v8521_v46  ;;  %v8507_v59 = vadd.f32 %v17401_v24, %v8487_v12  ;;  %v8213_v52 = vadd.f32 %v17372_v49, %v8170_v16  ;;  %v8440_v51 = vadd.f32 %v17353_v63, %v8265_v23  ;;  %v8585_v26 = vrot.slane %v17472_v1, 1 }
 0xd04   : > { %v8524_v50 = vmax.f32 %v8508_v11, 0.0  ;;  %v8234_v4 = vmul.f32 %v17376_v10, %v8214_v62  ;;  %v8490_v30 = vmul.f32 %v17394_v27, %v8445_v58  ;;  %v8587_v43 = vrot.slane %v17481_v19, 1 }
 0xd05   : > { %v8523_v5 = vmax.f32 %v8507_v59, 0.0  ;;  %v8233_v54 = vmul.f32 %v17376_v10, %v8213_v52  ;;  %v8489_v14 = vmul.f32 %v17394_v27, %v8440_v51  ;;  %v8586_v49 = vsel %vm370_vm2, %v8584_v40, %v8585_v26  ;;  %v17508_v10 = vld [vmem:[%s17775_s3 + $0x20] sm:$0xf] }
 0xd06   : > { %8542 = vst.msk [vmem:[#allocation4 + $0x49] sm:$0xff] %vm402_vm3, %v8524_v50  ;;  %v8510_v63 = vadd.f32 %v17401_v24, %v8490_v30  ;;  %v8588_v37 = vsel %vm370_vm2, %v8585_v26, %v8587_v43  ;;  %12514 = vmatprep.mubr.msk.f32.mxu1 %vm402_vm3, %v8586_v49  ;;  %v8252_v53 = vadd.f32 %v17380_v55, %v8232_v48  ;;  %v17503_v18 = vld [vmem:[#allocation4 + $0x20] sm:$0xff]  ;;  %v8589_v28 = vrot.slane %v17492_v7, 1  ;;  %v17516_v8 = vld [vmem:[#allocation4 + $0x28] sm:$0xff] }
 0xd07   : > { %v8251_v13 = vadd.f32 %v17380_v55, %v8231_v6  ;;  %8541 = vst.msk [vmem:[#allocation4 + $0x41] sm:$0xff] %vm402_vm3, %v8523_v5  ;;  %v8509_v61 = vadd.f32 %v17401_v24, %v8489_v14  ;;  %12515 = vmatmul.mubr.msk.f32.vlgmr.msra.gmra.mrb[16].mxu1 %vm402_vm3, %v8588_v37  ;;  %v8254_v56 = vadd.f32 %v17380_v55, %v8234_v4  ;;  %v8591_v15 = vrot.slane %v17503_v18, 1 }
 0xd08   : > { %v8253_v35 = vadd.f32 %v17380_v55, %v8233_v54  ;;  %v8526_v9 = vmax.f32 %v8510_v63, 0.0  ;;  %v8268_v42 = vadd.f32 %v8252_v53, %v17883_v21  ;;  %12539 = vmatpush3.msk.msra.mxu1 %vm433_vm0, %v17366_v60  ;;  %v8590_v33 = vsel %vm370_vm2, %v8587_v43, %v8589_v28 }
 0xd09   : > { %v8267_v25 = vadd.f32 %v8251_v13, %v17884_v31  ;;  %v8525_v44 = vmax.f32 %v8509_v61, 0.0  ;;  %v8270_v17 = vadd.f32 %v8254_v56, %v17885_v36  ;;  %12564 = vmatprep.subr.msk.mxu1 %vm433_vm0, %v17508_v10  ;;  %12517 = vmatprep.mubr.msk.f32.mxu1 %vm402_vm3, %v8590_v33  ;;  %v8592_v60 = vsel %vm370_vm2, %v8589_v28, %v8591_v15 }
 0xd0a   : > { %v8269_v22 = vadd.f32 %v8253_v35, %v17886_v57  ;;  %8544 = vst.msk [vmem:[#allocation4 + $0x59] sm:$0xff] %vm402_vm3, %v8526_v9  ;;  %v8455_v55 = vadd.f32 %v17355_v0, %v8268_v42  ;;  %v8593_v47 = vrot.slane %v17516_v8, 1  ;;  %v17534_v48 = vld [vmem:[#allocation4 + $0x30] sm:$0xff]  ;;  %v17536_v29 = vld [vmem:[#allocation4 + $0x38] sm:$0xff]  ;;  %v8977_v20 = vrot.slane %v17467_v3, 2 }
 0xd0b   : > { %v8450_v34 = vadd.f32 %v17357_v38, %v8267_v25  ;;  %8543 = vst.msk [vmem:[#allocation4 + $0x51] sm:$0xff] %vm402_vm3, %v8525_v44  ;;  %v8465_v39 = vadd.f32 %v17359_v32, %v8270_v17  ;;  %12518 = vmatmul.mubr.msk.f32.gmra.mrb[18].mxu1 %vm402_vm3, %v8592_v60  ;;  %v8595_v0 = vrot.slane %v17534_v48, 1  ;;  %v8597_v38 = vrot.slane %v17536_v29, 1 }
 0xd0c   : > { %v8460_v46 = vadd.f32 %v17361_v41, %v8269_v22  ;;  %v8492_v6 = vmul.f32 %v17394_v27, %v8455_v55  ;;  %v8594_v2 = vsel %vm370_vm2, %v8591_v15, %v8593_v47  ;;  %v8978_v59 = vrot.slane %v17472_v1, 2 }
 0xd0d   : > { %v8491_v12 = vmul.f32 %v17394_v27, %v8450_v34  ;;  %v8494_v23 = vmul.f32 %v17394_v27, %v8465_v39  ;;  %12520 = vmatprep.mubr.msk.f32.mxu1 %vm402_vm3, %v8594_v2  ;;  %v8596_v41 = vsel %vm370_vm2, %v8593_v47, %v8595_v0  ;;  %v8598_v11 = vsel %vm370_vm2, %v8595_v0, %v8597_v38 }
 0xd0e   : > { %v8493_v32 = vmul.f32 %v17394_v27, %v8460_v46  ;;  %v8512_v62 = vadd.f32 %v17401_v24, %v8492_v6  ;;  %v17555_v16 = vld [vmem:[#allocation4 + $0x40] sm:$0xff]  ;;  %v17557_v40 = vld [vmem:[#allocation4 + $0x48] sm:$0xff]  ;;  %v8980_v52 = vrot.slane %v17481_v19, 2  ;;  %v17568_v43 = vsel %vm748_vm6, %v8977_v20, %v8978_v59 }
 0xd0f   : > { %v8511_v58 = vadd.f32 %v17401_v24, %v8491_v12  ;;  %v8514_v27 = vadd.f32 %v17401_v24, %v8494_v23  ;;  %12521 = vmatmul.mubr.msk.f32.gmra.mrb[20].mxu1 %vm402_vm3, %v8596_v41  ;;  %v8599_v26 = vrot.slane %v17555_v16, 1  ;;  %v8601_v50 = vrot.slane %v17557_v40, 1 }
 0xd10   : > { %v8513_v51 = vadd.f32 %v17401_v24, %v8493_v32  ;;  %v8528_v4 = vmax.f32 %v8512_v62, 0.0  ;;  %12523 = vmatprep.mubr.msk.f32.mxu1 %vm402_vm3, %v8598_v11  ;;  %v17571_v5 = vsel %vm748_vm6, %v8978_v59, %v8980_v52  ;;  %v8982_v53 = vrot.slane %v17492_v7, 2 }
 0xd11   : > { %v8527_v30 = vmax.f32 %v8511_v58, 0.0  ;;  %v8530_v54 = vmax.f32 %v8514_v27, 0.0  ;;  %v8600_v24 = vsel %vm370_vm2, %v8597_v38, %v8599_v26  ;;  %v8602_v49 = vsel %vm370_vm2, %v8599_v26, %v8601_v50 }
 0xd12   : > { %v8529_v14 = vmax.f32 %v8513_v51, 0.0  ;;  %8546 = vst.msk [vmem:[#allocation4 + $0x69] sm:$0xff] %vm402_vm3, %v8528_v4  ;;  %v17577_v63 = vld [vmem:[#allocation4 + $0x50] sm:$0xff]  ;;  %v17579_v37 = vld [vmem:[#allocation4 + $0x58] sm:$0xff]  ;;  %v8984_v13 = vrot.slane %v17503_v18, 2  ;;  %v8986_v61 = vrot.slane %v17516_v8, 2  ;;  %v17594_v42 = vsel %vm748_vm6, %v8980_v52, %v8982_v53 }
 0xd13   : > { %8545 = vst.msk [vmem:[#allocation4 + $0x61] sm:$0xff] %vm402_vm3, %v8527_v30  ;;  %v8988_v28 = vrot.slane %v17534_v48, 2  ;;  %8548 = vst.msk [vmem:[#allocation4 + $0x79] sm:$0xff] %vm402_vm3, %v8530_v54  ;;  %12524 = vmatmul.mubr.msk.f32.gmra.mrb[22].mxu1 %vm402_vm3, %v8600_v24  ;;  %v8603_v56 = vrot.slane %v17577_v63, 1  ;;  %v8605_v35 = vrot.slane %v17579_v37, 1  ;;  %v8990_v9 = vrot.slane %v17536_v29, 2 }
 0xd14   : > { %8547 = vst.msk [vmem:[#allocation4 + $0x71] sm:$0xff] %vm402_vm3, %v8529_v14  ;;  %v8992_v21 = vrot.slane %v17555_v16, 2  ;;  %12526 = vmatprep.mubr.msk.f32.mxu1 %vm402_vm3, %v8602_v49  ;;  %v17597_v31 = vsel %vm748_vm6, %v8982_v53, %v8984_v13  ;;  %v17600_v25 = vsel %vm748_vm6, %v8984_v13, %v8986_v61  ;;  %v8994_v57 = vrot.slane %v17557_v40, 2 }
 0xd15   : > { %v17603_v15 = vsel %vm748_vm6, %v8986_v61, %v8988_v28  ;;  %v8604_v44 = vsel %vm370_vm2, %v8601_v50, %v8603_v56  ;;  %v8606_v33 = vsel %vm370_vm2, %v8603_v56, %v8605_v35  ;;  %v17608_v36 = vsel %vm748_vm6, %v8988_v28, %v8990_v9 }
 0xd16   : > { %v17611_v17 = vsel %vm748_vm6, %v8990_v9, %v8992_v21  ;;  %v8996_v22 = vrot.slane %v17577_v63, 2  ;;  %v8998_v55 = vrot.slane %v17579_v37, 2  ;;  %v8995_v34 = vsel %vm748_vm6, %v8992_v21, %v8994_v57 }
 0xd17   : > { %12527 = vmatmul.mubr.msk.f32.gmra.mrb[24].mxu1 %vm402_vm3, %v8604_v44  ;;  %v17887_v13 = vlaneseq  ;;  %v299_v28 = vadd.s32 8, %v15698_v45  ;;  %v17888_v44 = vld [vmem:[#allocation15_spill] sm:$0xff] }
 0xd18   : > { %12529 = vmatprep.mubr.msk.f32.mxu1 %vm402_vm3, %v8606_v33  ;;  %v8997_v60 = vsel %vm748_vm6, %v8994_v57, %v8996_v22  ;;  %v8999_v47 = vsel %vm748_vm6, %v8996_v22, %v8998_v55  ;;  %v303_v33 = vadd.s32 40, %v15698_v45 }
 0xd19   : > { %v17691_v61 = vand.u32 127, %v17887_v13 }
 0xd1a   : > { %v8562_v39 = vld [vmem:[#allocation4 + $0x60] sm:$0xff]  ;;  %v8563_v46 = vld [vmem:[#allocation4 + $0x68] sm:$0xff] }
 0xd1b   : > { %v8607_v0 = vrot.slane %v8562_v39, 1  ;;  %v8609_v38 = vrot.slane %v8563_v46, 1  ;;  %v8564_v6 = vld [vmem:[#allocation4 + $0x70] sm:$0xff]  ;;  %v8565_v12 = vld [vmem:[#allocation4 + $0x78] sm:$0xff]  ;;  %v8566_v23 = vld [vmem:[#allocation4 + $0x80] sm:$0x3]  ;;  %vm321_vm11 = vcmp.eq.s32.totalorder %v303_v33, %v17691_v61 }
 0xd1c   : > { %v8611_v2 = vrot.slane %v8564_v6, 1  ;;  %v8613_v20 = vrot.slane %v8565_v12, 1  ;;  %v9000_v32 = vrot.slane %v8562_v39, 2  ;;  %v9002_v62 = vrot.slane %v8563_v46, 2 }
 0xd1d   : > { %v8608_v41 = vsel %vm370_vm2, %v8605_v35, %v8607_v0  ;;  %v8610_v11 = vsel %vm370_vm2, %v8607_v0, %v8609_v38  ;;  %v9004_v58 = vrot.slane %v8564_v6, 2  ;;  %v9006_v26 = vrot.slane %v8565_v12, 2 }
 0xd1e   : > { %12530 = vmatmul.mubr.msk.f32.gmra.mrb[26].mxu1 %vm402_vm3, %v8608_v41  ;;  %v8612_v59 = vsel %vm370_vm2, %v8609_v38, %v8611_v2  ;;  %v9001_v52 = vsel %vm748_vm6, %v8998_v55, %v9000_v32  ;;  %v9003_v27 = vsel %vm748_vm6, %v9000_v32, %v9002_v62  ;;  %v9008_v50 = vrot.slane %v8566_v23, 2 }
 0xd1f   : > { %12532 = vmatprep.mubr.msk.f32.mxu1 %vm402_vm3, %v8610_v11  ;;  %v9005_v51 = vsel %vm748_vm6, %v9002_v62, %v9004_v58  ;;  %v8614_v4 = vsel %vm370_vm2, %v8611_v2, %v8613_v20  ;;  %v8615_v30 = vrot.slane %v8566_v23, 1  ;;  %v9007_v54 = vsel %vm748_vm6, %v9004_v58, %v9006_v26 }
 0xd20   : > { %v9009_v14 = vsel %vm748_vm6, %v9006_v26, %v9008_v50  ;;  %v300_v35 = vadd.s32 16, %v15698_v45  ;;  %vm319_vm6 = vcmp.eq.s32.totalorder %v17888_v44, %v17691_v61  ;;  %v304_v55 = vadd.s32 48, %v15698_v45 }
 0xd21   : > { %v8616_v24 = vsel %vm370_vm2, %v8613_v20, %v8615_v30  ;;  %vm317_vm2 = vcmp.eq.s32.totalorder %v299_v28, %v17691_v61  ;;  %v307_v20 = vadd.s32 72, %v15698_v45  ;;  %v308_v62 = vadd.s32 80, %v15698_v45 }
 0xd22   : > { %12533 = vmatmul.mubr.msk.f32.gmra.mrb[28].mxu1 %vm402_vm3, %v8612_v59  ;;  %vm322_vm9 = vcmp.eq.s32.totalorder %v304_v55, %v17691_v61 }
 0xd23   : > { %12535 = vmatprep.mubr.msk.f32.mxu1 %vm402_vm3, %v8614_v4  ;;  %vm325_vm8 = vcmp.eq.s32.totalorder %v307_v20, %v17691_v61  ;;  %vm326_vm13 = vcmp.eq.s32.totalorder %v308_v62, %v17691_v61  ;;  %v310_v4 = vadd.s32 96, %v15698_v45 }
 0xd25   : > { %vm328_vm1 = vcmp.eq.s32.totalorder %v310_v4, %v17691_v61 }
 0xd26   : > { %12536 = vmatmul.mubr.msk.f32.gmra.mrb[30].mxu1 %vm402_vm3, %v8616_v24 }
 0xd27   : > { %12540 = vmatprep.mubr.msk.f32.mxu1 %vm402_vm3, %v17467_v3  ;;  %v13311_v3 = vmov 0  }
 0xd28   : > { %13234 = vset.pattern.permute.xlu0 %v13311_v3  ;;  %13235 = vset.pattern.permute.xlu1 %v13311_v3 }
 0xd2a   : > { %12541 = vmatmul.mubr.msk.f32.vlgmr.msra.gmra.mrb[16].mxu1 %vm402_vm3, %v17472_v1 }
 0xd2b   : > { %12543 = vmatprep.mubr.msk.f32.mxu1 %vm402_vm3, %v17481_v19  ;;  %12565 = vmatpush3.msk.msra.mxu1 %vm433_vm0, %v17508_v10  ;;  %vm316_vm0 = vcmp.eq.s32.totalorder %v15698_v45, %v17691_v61 }
 0xd2e   : > { %12544 = vmatmul.mubr.msk.f32.gmra.mrb[18].mxu1 %vm402_vm3, %v17492_v7 }
 0xd2f   : > { %12546 = vmatprep.mubr.msk.f32.mxu1 %vm402_vm3, %v17503_v18 }
 0xd32   : > { %12547 = vmatmul.mubr.msk.f32.gmra.mrb[20].mxu1 %vm402_vm3, %v17516_v8 }
 0xd33   : > { %12549 = vmatprep.mubr.msk.f32.mxu1 %vm402_vm3, %v17534_v48 }
 0xd36   : > { %12550 = vmatmul.mubr.msk.f32.gmra.mrb[22].mxu1 %vm402_vm3, %v17536_v29 }
 0xd37   : > { %12552 = vmatprep.mubr.msk.f32.mxu1 %vm402_vm3, %v17555_v16 }
 0xd3a   : > { %12553 = vmatmul.mubr.msk.f32.gmra.mrb[24].mxu1 %vm402_vm3, %v17557_v40 }
 0xd3b   : > { %12555 = vmatprep.mubr.msk.f32.mxu1 %vm402_vm3, %v17577_v63 }
 0xd3e   : > { %12556 = vmatmul.mubr.msk.f32.gmra.mrb[26].mxu1 %vm402_vm3, %v17579_v37 }
 0xd3f   : > { %12558 = vmatprep.mubr.msk.f32.mxu1 %vm402_vm3, %v8562_v39 }
 0xd42   : > { %12559 = vmatmul.mubr.msk.f32.gmra.mrb[28].mxu1 %vm402_vm3, %v8563_v46 }
 0xd43   : > { %12561 = vmatprep.mubr.msk.f32.mxu1 %vm402_vm3, %v8564_v6  ;;  %v306_v6 = vadd.s32 64, %v15698_v45 }
 0xd45   : > { %vm324_vm7 = vcmp.eq.s32.totalorder %v306_v6, %v17691_v61 }
 0xd46   : > { %12562 = vmatmul.mubr.msk.f32.gmra.mrb[30].mxu1 %vm402_vm3, %v8565_v12 }
 0xd47   : > { %12566 = vmatprep.mubr.msk.f32.mxu1 %vm402_vm3, %v17568_v43 }
 0xd4a   : > { %12567 = vmatmul.mubr.msk.f32.vlgmr.msra.gmra.mrb[16].mxu1 %vm402_vm3, %v17571_v5 }
 0xd4b   : > { %12569 = vmatprep.mubr.msk.f32.mxu1 %vm402_vm3, %v17594_v42  ;;  %v302_v42 = vadd.s32 32, %v15698_v45 }
 0xd4d   : > { %vm320_vm15 = vcmp.eq.s32.totalorder %v302_v42, %v17691_v61 }
 0xd4e   : > { %12570 = vmatmul.mubr.msk.f32.gmra.mrb[18].mxu1 %vm402_vm3, %v17597_v31 }
 0xd4f   : > { %12572 = vmatprep.mubr.msk.f32.mxu1 %vm402_vm3, %v17600_v25 }
 0xd52   : > { %12573 = vmatmul.mubr.msk.f32.gmra.mrb[20].mxu1 %vm402_vm3, %v17603_v15 }
 0xd53   : > { %12575 = vmatprep.mubr.msk.f32.mxu1 %vm402_vm3, %v17608_v36 }
 0xd56   : > { %12576 = vmatmul.mubr.msk.f32.gmra.mrb[22].mxu1 %vm402_vm3, %v17611_v17 }
 0xd57   : > { %12578 = vmatprep.mubr.msk.f32.mxu1 %vm402_vm3, %v8995_v34 }
 0xd5a   : > { %12579 = vmatmul.mubr.msk.f32.gmra.mrb[24].mxu1 %vm402_vm3, %v8997_v60 }
 0xd5b   : > { %12581 = vmatprep.mubr.msk.f32.mxu1 %vm402_vm3, %v8999_v47  ;;  %v305_v47 = vadd.s32 56, %v15698_v45 }
 0xd5d   : > { %vm323_vm5 = vcmp.eq.s32.totalorder %v305_v47, %v17691_v61 }
 0xd5e   : > { %12582 = vmatmul.mubr.msk.f32.gmra.mrb[26].mxu1 %vm402_vm3, %v9001_v52  ;;  %v309_v52 = vadd.s32 88, %v15698_v45 }
 0xd5f   : > { %12584 = vmatprep.mubr.msk.f32.mxu1 %vm402_vm3, %v9003_v27 }
 0xd60   : > { %vm327_vm14 = vcmp.eq.s32.totalorder %v309_v52, %v17691_v61 }
 0xd62   : > { %12585 = vmatmul.mubr.msk.f32.gmra.mrb[28].mxu1 %vm402_vm3, %v9005_v51 }
 0xd63   : > { %12587 = vmatprep.mubr.msk.f32.mxu1 %vm402_vm3, %v9007_v54 }
 0xd66   : > { %12588 = vmatmul.mubr.msk.f32.gmra.mrb[30].mxu1 %vm402_vm3, %v9009_v14  ;;  %vm318_vm3 = vcmp.eq.s32.totalorder %v300_v35, %v17691_v61  ;;  %v311_v14 = vadd.s32 104, %v15698_v45 }
 0xd68   : > { %vm329_vm10 = vcmp.eq.s32.totalorder %v311_v14, %v17691_v61 }
 0xe1d   : > { %v12568_v1 = vpop.f32.mrb[16].mxu1 }
 0xe1e   : > { %v9111_v19 = vpop.f32.mrb[17].mxu1 }
 0xe1f   : > { %9208 = vperm.xlu0 %13234, %v9111_v19  }
 0xe21   : > { %v12571_v7 = vpop.f32.mrb[18].mxu1 }
 0xe22   : > { %v9121_v18 = vpop.f32.mrb[19].mxu1 }
 0xe23   : > { %9213 = vperm.xlu0 %13234, %v12568_v1   ;;  %9218 = vperm.xlu1 %13235, %v9121_v18  }
 0xe25   : > { %v12574_v10 = vpop.f32.mrb[20].mxu1 }
 0xe26   : > { %v9131_v8 = vpop.f32.mrb[21].mxu1 }
 0xe27   : > { %9223 = vperm.xlu1 %13235, %v12571_v7   ;;  %9228 = vperm.xlu0 %13234, %v9131_v8   ;;  %v312_v7 = vadd.s32 112, %v15698_v45  ;;  %v313_v8 = vadd.s32 120, %v15698_v45 }
 0xe29   : > { %v12577_v48 = vpop.f32.mrb[22].mxu1  ;;  %vm330_vm12 = vcmp.eq.s32.totalorder %v312_v7, %v17691_v61  ;;  %vm331_vm4 = vcmp.eq.s32.totalorder %v313_v8, %v17691_v61 }
 0xe2a   : > { %v9141_v29 = vpop.f32.mrb[23].mxu1 }
 0xe2b   : > { %9233 = vperm.xlu1 %13235, %v12574_v10   ;;  %9238 = vperm.xlu0 %13234, %v9141_v29  }
 0xe2d   : > { %v12580_v16 = vpop.f32.mrb[24].mxu1 }
 0xe2e   : > { %v9151_v40 = vpop.f32.mrb[25].mxu1 }
 0xe2f   : > { %9243 = vperm.xlu1 %13235, %v12577_v48   ;;  %9248 = vperm.xlu0 %13234, %v9151_v40  }
 0xe31   : > { %v12583_v43 = vpop.f32.mrb[26].mxu1 }
 0xe32   : > { %v9161_v5 = vpop.f32.mrb[27].mxu1 }
 0xe33   : > { %9253 = vperm.xlu1 %13235, %v12580_v16   ;;  %9258 = vperm.xlu0 %13234, %v9161_v5  }
 0xe35   : > { %v12586_v49 = vpop.f32.mrb[28].mxu1 }
 0xe36   : > { %v9171_v63 = vpop.f32.mrb[29].mxu1 }
 0xe37   : > { %9263 = vperm.xlu1 %13235, %v12583_v43   ;;  %9268 = vperm.xlu0 %13234, %v9171_v63  }
 0xe39   : > { %v12589_v37 = vpop.f32.mrb[30].mxu1 }
 0xe3a   : > { %v9181_v53 = vpop.f32.mrb[31].mxu1 }
 0xe3b   : > { %9273 = vperm.xlu1 %13235, %v12586_v49   ;;  %9278 = vperm.xlu0 %13234, %v9181_v53  }
 0xe3f   : > { %9283 = vperm.xlu1 %13235, %v12589_v37  }
 0xe9e   : > { %v9209_v56 = vpop.permute.xlu0 %9208 }
 0xe9f   : > { %v9286_v31 = vsel %vm316_vm0, %v9209_v56, 0.0 }
 0xea2   : > { %v9214_v9 = vpop.permute.xlu0 %9213  ;;  %v9219_v21 = vpop.permute.xlu1 %9218 }
 0xea3   : > { %v9287_v25 = vsel %vm317_vm2, %v9214_v9, 0.0  ;;  %v9288_v36 = vsel %vm318_vm3, %v9219_v21, 0.0 }
 0xea4   : > { %v9302_v15 = vadd.f32 %v9287_v25, %v9286_v31 }
 0xea6   : > { %v9303_v17 = vadd.f32 %v9302_v15, %v9288_v36  ;;  %v9224_v57 = vpop.permute.xlu1 %9223  ;;  %v9229_v22 = vpop.permute.xlu0 %9228 }
 0xea7   : > { %v9289_v34 = vsel %vm319_vm6, %v9224_v57, 0.0  ;;  %v9290_v39 = vsel %vm320_vm15, %v9229_v22, 0.0 }
 0xea8   : > { %v9304_v60 = vadd.f32 %v9303_v17, %v9289_v34 }
 0xeaa   : > { %v9305_v46 = vadd.f32 %v9304_v60, %v9290_v39  ;;  %v9234_v0 = vpop.permute.xlu1 %9233  ;;  %v9239_v38 = vpop.permute.xlu0 %9238 }
 0xeab   : > { %v9291_v12 = vsel %vm321_vm11, %v9234_v0, 0.0  ;;  %v9292_v23 = vsel %vm322_vm9, %v9239_v38, 0.0 }
 0xeac   : > { %v9306_v2 = vadd.f32 %v9305_v46, %v9291_v12 }
 0xeae   : > { %v9307_v32 = vadd.f32 %v9306_v2, %v9292_v23  ;;  %v9244_v41 = vpop.permute.xlu1 %9243  ;;  %v9249_v11 = vpop.permute.xlu0 %9248 }
 0xeaf   : > { %v9293_v58 = vsel %vm323_vm5, %v9244_v41, 0.0  ;;  %v9294_v27 = vsel %vm324_vm7, %v9249_v11, 0.0 }
 0xeb0   : > { %v9308_v59 = vadd.f32 %v9307_v32, %v9293_v58 }
 0xeb2   : > { %v9309_v51 = vadd.f32 %v9308_v59, %v9294_v27  ;;  %v9254_v26 = vpop.permute.xlu1 %9253  ;;  %v9259_v50 = vpop.permute.xlu0 %9258 }
 0xeb3   : > { %v9295_v30 = vsel %vm325_vm8, %v9254_v26, 0.0  ;;  %v9296_v24 = vsel %vm326_vm13, %v9259_v50, 0.0 }
 0xeb4   : > { %v9310_v54 = vadd.f32 %v9309_v51, %v9295_v30 }
 0xeb6   : > { %v9311_v3 = vadd.f32 %v9310_v54, %v9296_v24  ;;  %v9264_v1 = vpop.permute.xlu1 %9263  ;;  %v9269_v19 = vpop.permute.xlu0 %9268 }
 0xeb7   : > { %v9297_v18 = vsel %vm327_vm14, %v9264_v1, 0.0  ;;  %v9298_v48 = vsel %vm328_vm1, %v9269_v19, 0.0 }
 0xeb8   : > { %v9312_v10 = vadd.f32 %v9311_v3, %v9297_v18 }
 0xeba   : > { %v9313_v29 = vadd.f32 %v9312_v10, %v9298_v48  ;;  %v9274_v16 = vpop.permute.xlu1 %9273  ;;  %v9279_v40 = vpop.permute.xlu0 %9278 }
 0xebb   : > { %v9299_v43 = vsel %vm329_vm10, %v9274_v16, 0.0  ;;  %v9300_v49 = vsel %vm330_vm12, %v9279_v40, 0.0 }
 0xebc   : > { %v9314_v5 = vadd.f32 %v9313_v29, %v9299_v43 }
 0xebe   : > { %v9315_v63 = vadd.f32 %v9314_v5, %v9300_v49  ;;  %v9284_v37 = vpop.permute.xlu1 %9283 }
 0xebf   : > { %v9301_v53 = vsel %vm331_vm4, %v9284_v37, 0.0 }
 0xec0   : > { %v9316_v13 = vadd.f32 %v9315_v63, %v9301_v53 }
 0xec2   : > { %v9317_v28 = vrot.slane %v9316_v13, 4 }
 0xec4   : > { %v9318_v56 = vadd.f32 %v9317_v28, %v9316_v13 }
 0xec6   : > { %v9319_v45 = vrot.slane %v9318_v56, 2 }
 0xec8   : > { %v9320_v35 = vadd.f32 %v9319_v45, %v9318_v56 }
 0xeca   : > { %v9321_v9 = vrot.slane %v9320_v35, 1 }
 0xecc   : > { %v9322_v21 = vadd.f32 %v9321_v9, %v9320_v35 }
 0xece   : > { %v9323_v42 = vsub.f32 0.0, %v9322_v21 }
 0xed0   : > { %v9324_v31 = vmul.f32 1.442695, %v9323_v42 }
 0xed2   : > { %13236 = vpow2.f32 %v9324_v31 }
 0xedc   : > { %v13237_v25 = vpop.eup %13236 }
 0xedd   : > { %v9326_v15 = vadd.f32 1.0, %v13237_v25 }
 0xedf   : > { %13238 = vrcp.f32 %v9326_v15 }
 0xee9   : > { %v13239_v61 = vpop.eup %13238 }
 0xeea   : > { %9329 = vst [vmem:[%s270_s18] sm:$0x1] %v13239_v61 }
 0xeeb   : > { %13256 = shalt.err (!%p13253_p3)
}
 0xeec   : > { %s13257_s13 = scalar_lea.hbm %s17730_s22, 16  ;;  %s13261_s16 = scalar_lea.hbm %s17779_s7, 32 }
 0xeed   : > { %p13258_p4 = scmp.ne.s32.totalorder %s17730_s22, %s13257_s13  ;;  %p13262_p9 = scmp.lt.u32.totalorder %s17730_s22, %s17779_s7 }
 0xeee   : > { %p13263_p10 = scmp.lt.u32.totalorder %s13261_s16, %s13257_s13  ;;  %p13265_p12 = scmp.lt.u32.totalorder %s13257_s13, %s17730_s22 }
 0xeef   : > { %p13259_p7 = pnand %p13258_p4, %p13391_p5 }
 0xef0   : > { %p13264_p11 = por %p13263_p10, %p13262_p9 }
 0xef1   : > { %p13260_p8 = pneg %p13259_p7 }
 0xef2   : > { %p13266_p13 = por %p13265_p12, %p13264_p11 }
 0xef4   : > { %p13267_p0 = pnand %p13266_p13, %p13260_p8 }
 0xef6   : > { %13270 = shalt.err (!%p13267_p0)
}
 0xef7   : > { %13190 = dma.vmem_to_hbm [thread:$0]  (%p13391_p5), %s17732_s19, 16, %s17730_s22, %s9331_s23  }
 0xef8 PF: > { %p13196_p1 = scmp.ge.s32.totalorder %s13305_s27, 2  ;;  %s9355_s20 = sand.u32 1, %s13293_s24  }
 0xef9   : > { %s9356_s21 = scalar_lea.sflag [#allocation6], %s9355_s20 }
 0xefa   : > { %p13193_p2 = pnand %p13196_p1, %p13395_p6 }
 0xefc   : > { %13288 = dma.done.wait (!%p13193_p2), %s9356_s21, 16  }
 0xefd   : > { %13290 = vsyncadd (!%p13193_p2), %s9356_s21, 4294967280  ;;  %p17_p3 = scmp.ge.s32.totalorder %s13378_s30, 4   ;;  %s17889_s24 = smov %s13297_s25 }
 0xefe   : > { %s17890_s25 = smov %s13301_s26  ;;  %s17891_s26 = smov %s13389_s10 }
 0xeff   : > { %s17892_s27 = smov %s13378_s30  ;;  %19 = sbr.rel (!%p17_p3) target bundleno = 3 (0x3), region = 141 }
 0xf06   :  { %9360 = vsyncpa [#allocation6], 1 }
 0xf07   :  { %9362 = vsyncpa [#allocation6 + $0x1], 1 }

</bundles_post_ra>
